<compile_context>
chip_gen: v5e
topology: v5e:2x2
jax: 0.10.0
libtpu: 0.0.40
codegen_flags: <defaults>
</compile_context>

<pallas_src>
import jax
import jax.numpy as jnp
from jax.experimental import pallas as pl
from jax.experimental.pallas import tpu as pltpu

INPUT_SIZE = 6
HIDDEN = 100

I_PAD = 8            # input feature dim padded to a sublane multiple
H_PAD = 128          # hidden dim padded to one full lane tile
G_PAD = 4 * H_PAD    # fused gate width (gate order: i, f, g, o)


def _make_kernel(T, B):
    def lstm_kernel(x_ref, wx1_ref, wh1_ref, b1_ref,
                    wx2_ref, wh2_ref, b2_ref,
                    wfc_ref, bfc_ref, out_ref):
        # Hoisted layer-1 input projection for ALL timesteps at once:
        # (T*B, I_PAD) @ (I_PAD, 4*H_PAD); layer-1 bias folded in.
        xproj = (jnp.dot(x_ref[...], wx1_ref[...],
                         preferred_element_type=jnp.float32)
                 + b1_ref[...])                                   # (T*B, 4*Hp)

        # Layer-2 bias broadcast hoisted out of the time loop.
        b2 = jnp.broadcast_to(b2_ref[...], (B, G_PAD))

        def cell(pre, c):
            # Fused pre-activation (B, 4*Hp); PyTorch gate order [i, f, g, o].
            i = jax.nn.sigmoid(pre[:, 0 * H_PAD:1 * H_PAD])
            f = jax.nn.sigmoid(pre[:, 1 * H_PAD:2 * H_PAD])
            g = jnp.tanh(pre[:, 2 * H_PAD:3 * H_PAD])
            o = jax.nn.sigmoid(pre[:, 3 * H_PAD:4 * H_PAD])
            c_new = f * c + i * g
            h_new = o * jnp.tanh(c_new)
            return h_new, c_new

        zeros = jnp.zeros((B, H_PAD), jnp.float32)
        h1, c1, h2, c2 = zeros, zeros, zeros, zeros

        # T is small and static: a Python loop fully unrolls at trace time,
        # keeps the recurrent state in vregs and uses static slices of xproj.
        for t in range(T):
            # Layer 1 (x-projection already computed above).
            pre1 = (xproj[t * B:(t + 1) * B, :]
                    + jnp.dot(h1, wh1_ref[...],
                              preferred_element_type=jnp.float32))
            h1, c1 = cell(pre1, c1)

            # TODO(synk): nn.Dropout is identity in eval/inference mode; omitted.

            # Layer 2 consumes layer-1 output of the same timestep.
            pre2 = (jnp.dot(h1, wx2_ref[...],
                            preferred_element_type=jnp.float32)
                    + jnp.dot(h2, wh2_ref[...],
                              preferred_element_type=jnp.float32)
                    + b2)
            h2, c2 = cell(pre2, c2)

        # fc applied to the last timestep's hidden state only
        # (padded lanes of h2 and padded rows of wfc are exactly zero).
        out_ref[...] = (jnp.dot(h2, wfc_ref[...],
                                preferred_element_type=jnp.float32)
                        + bfc_ref[...])

    return lstm_kernel


def lstm_model_forward(x, packed):
    """x: (B, T, INPUT_SIZE) float32 -> (B, 1) float32."""
    B, T, I = x.shape
    assert I == INPUT_SIZE
    # batch_first -> time-major, flatten (T, B) and zero-pad the feature dim.
    x_flat = jnp.transpose(x, (1, 0, 2)).reshape(T * B, I)
    x_flat = jnp.pad(x_flat, ((0, 0), (0, I_PAD - I)))

    def vmem():
        return pl.BlockSpec(memory_space=pltpu.MemorySpace.VMEM)

    return pl.pallas_call(
        _make_kernel(T, B),
        out_shape=jax.ShapeDtypeStruct((B, 1), jnp.float32),
        in_specs=[vmem() for _ in range(9)],
        out_specs=vmem(),
    )(x_flat, *packed)


# ----------------------------------------------------------------------------
# Parameter construction / packing
# ----------------------------------------------------------------------------

def init_params(key):
    """Raw PyTorch-layout params: LSTM W_ih (4H, in), W_hh (4H, H), b_ih (4H,),
    b_hh (4H,) with gate order [i, f, g, o]; Linear weight (1, H), bias (1,)."""
    H, I = HIDDEN, INPUT_SIZE
    bound = 1.0 / jnp.sqrt(jnp.float32(H))
    ks = jax.random.split(key, 10)

    def u(k, shape):
        return jax.random.uniform(k, shape, jnp.float32, -bound, bound)

    w_ih1 = u(ks[0], (4 * H, I))
    w_hh1 = u(ks[1], (4 * H, H))
    b_ih1 = u(ks[2], (4 * H,))
    b_hh1 = u(ks[3], (4 * H,))
    w_ih2 = u(ks[4], (4 * H, H))
    w_hh2 = u(ks[5], (4 * H, H))
    b_ih2 = u(ks[6], (4 * H,))
    b_hh2 = u(ks[7], (4 * H,))
    w_fc = u(ks[8], (1, H))
    b_fc = u(ks[9], (1,))
    return (w_ih1, w_hh1, b_ih1, b_hh1,
            w_ih2, w_hh2, b_ih2, b_hh2, w_fc, b_fc)


def _pack_lstm_w(w, in_dim, in_pad):
    """(4H, in_dim) PyTorch layout -> (in_pad, 4*H_PAD) fused, zero-padded."""
    out = jnp.zeros((in_pad, G_PAD), jnp.float32)
    for g in range(4):
        blk = w[g * HIDDEN:(g + 1) * HIDDEN, :].T            # (in_dim, H)
        out = out.at[:in_dim, g * H_PAD:g * H_PAD + HIDDEN].set(blk)
    return out


def _pack_lstm_b(b_ih, b_hh):
    """(4H,) + (4H,) -> (1, 4*H_PAD) fused, zero-padded."""
    b = b_ih + b_hh
    out = jnp.zeros((1, G_PAD), jnp.float32)
    for g in range(4):
        out = out.at[0, g * H_PAD:g * H_PAD + HIDDEN].set(
            b[g * HIDDEN:(g + 1) * HIDDEN])
    return out


def pack_params(raw):
    """Repack raw PyTorch params into the fused, lane-dense kernel layout.

    Padding uses exact zeros everywhere, so padded h/c lanes stay identically
    zero through the recurrence and never affect the real lanes.
    """
    (w_ih1, w_hh1, b_ih1, b_hh1,
     w_ih2, w_hh2, b_ih2, b_hh2, w_fc, b_fc) = raw
    wx1 = _pack_lstm_w(w_ih1, INPUT_SIZE, I_PAD)              # (8,   512)
    wh1 = _pack_lstm_w(w_hh1, HIDDEN, H_PAD)                  # (128, 512)
    b1 = _pack_lstm_b(b_ih1, b_hh1)                           # (1,   512)
    wx2 = _pack_lstm_w(w_ih2, HIDDEN, H_PAD)                  # (128, 512)
    wh2 = _pack_lstm_w(w_hh2, HIDDEN, H_PAD)                  # (128, 512)
    b2 = _pack_lstm_b(b_ih2, b_hh2)                           # (1,   512)
    wfc = jnp.zeros((H_PAD, 1), jnp.float32).at[:HIDDEN, 0].set(w_fc[0])
    bfc = b_fc.reshape(1, 1)
    return (wx1, wh1, b1, wx2, wh2, b2, wfc, bfc)


# ----------------------------------------------------------------------------
# Pure-JAX reference (PyTorch semantics) for correctness checking
# ----------------------------------------------------------------------------

def ref_forward(x, raw):
    (w_ih1, w_hh1, b_ih1, b_hh1,
     w_ih2, w_hh2, b_ih2, b_hh2, w_fc, b_fc) = raw
    B = x.shape[0]
    H = HIDDEN

    def run_layer(seq, w_ih, w_hh, b_ih, b_hh):
        def step(carry, x_t):
            h, c = carry
            gates = x_t @ w_ih.T + h @ w_hh.T + b_ih + b_hh   # (B, 4H)
            i = jax.nn.sigmoid(gates[:, 0 * H:1 * H])
            f = jax.nn.sigmoid(gates[:, 1 * H:2 * H])
            g = jnp.tanh(gates[:, 2 * H:3 * H])
            o = jax.nn.sigmoid(gates[:, 3 * H:4 * H])
            c = f * c + i * g
            h = o * jnp.tanh(c)
            return (h, c), h

        h0 = jnp.zeros((B, H), jnp.float32)
        c0 = jnp.zeros((B, H), jnp.float32)
        _, outs = jax.lax.scan(step, (h0, c0), jnp.transpose(seq, (1, 0, 2)))
        return jnp.transpose(outs, (1, 0, 2))

    out1 = run_layer(x, w_ih1, w_hh1, b_ih1, b_hh1)
    out2 = run_layer(out1, w_ih2, w_hh2, b_ih2, b_hh2)
    last = out2[:, -1, :]
    return last @ w_fc.T + b_fc


if __name__ == "__main__":
    key = jax.random.PRNGKey(0)
    k_x, k_p = jax.random.split(key)

    B, T = 2, 8
    x = jax.random.normal(k_x, (B, T, INPUT_SIZE), jnp.float32)

    raw = init_params(k_p)
    packed = pack_params(raw)

    out = lstm_model_forward(x, packed)
    out = jax.block_until_ready(out)

    ref = ref_forward(x, raw)
    assert out.shape == (B, 1), out.shape
    assert jnp.allclose(out, ref, atol=1e-4, rtol=1e-4), (out, ref)

    print("KERNEL_OK")
</pallas_src>

<mosaic_0001>
module attributes {stable_mosaic.version = 11 : i64} {
  func.func @lstm_kernel(%arg0: memref<16x8xf32, #tpu.memory_space<vmem>>, %arg1: memref<8x512xf32, #tpu.memory_space<vmem>>, %arg2: memref<128x512xf32, #tpu.memory_space<vmem>>, %arg3: memref<1x512xf32, #tpu.memory_space<vmem>>, %arg4: memref<128x512xf32, #tpu.memory_space<vmem>>, %arg5: memref<128x512xf32, #tpu.memory_space<vmem>>, %arg6: memref<1x512xf32, #tpu.memory_space<vmem>>, %arg7: memref<128x1xf32, #tpu.memory_space<vmem>>, %arg8: memref<1x1xf32, #tpu.memory_space<vmem>>, %arg9: memref<2x1xf32, #tpu.memory_space<vmem>>) attributes {dimension_semantics = [], scalar_prefetch = 0 : i64, scratch_operands = 0 : i64, tpu.core_type = #tpu.core_type<tc>} {
    %c0 = arith.constant 0 : index
    %c0_0 = arith.constant 0 : index
    %0 = vector.load %arg0[%c0, %c0_0] : memref<16x8xf32, #tpu.memory_space<vmem>>, vector<16x8xf32>
    %c0_1 = arith.constant 0 : index
    %c0_2 = arith.constant 0 : index
    %1 = vector.load %arg1[%c0_1, %c0_2] : memref<8x512xf32, #tpu.memory_space<vmem>>, vector<8x512xf32>
    %cst = arith.constant dense<0.000000e+00> : vector<16x512xf32>
    %2 = tpu.matmul %0, %1, %cst {dimension_numbers = #tpu.dot_dimension_numbers<[1], [0], [0], [1], [0, 0, 1, 1], [], []>} : vector<16x8xf32>, vector<8x512xf32>, vector<16x512xf32> -> vector<16x512xf32>
    %c0_3 = arith.constant 0 : index
    %c0_4 = arith.constant 0 : index
    %3 = vector.load %arg3[%c0_3, %c0_4] : memref<1x512xf32, #tpu.memory_space<vmem>>, vector<1x512xf32>
    %4 = vector.broadcast %3 : vector<1x512xf32> to vector<16x512xf32>
    %5 = arith.addf %2, %4 : vector<16x512xf32>
    %c0_5 = arith.constant 0 : index
    %c0_6 = arith.constant 0 : index
    %6 = vector.load %arg6[%c0_5, %c0_6] : memref<1x512xf32, #tpu.memory_space<vmem>>, vector<1x512xf32>
    %7 = vector.shape_cast %6 : vector<1x512xf32> to vector<1x512xf32>
    %8 = vector.broadcast %7 : vector<1x512xf32> to vector<2x512xf32>
    %cst_7 = arith.constant 0.000000e+00 : f32
    %9 = vector.broadcast %cst_7 : f32 to vector<2x128xf32>
    %10 = vector.extract_strided_slice %5 {offsets = [0, 0], sizes = [2, 512], strides = [1, 1]} : vector<16x512xf32> to vector<2x512xf32>
    %c0_8 = arith.constant 0 : index
    %c0_9 = arith.constant 0 : index
    %11 = vector.load %arg2[%c0_8, %c0_9] : memref<128x512xf32, #tpu.memory_space<vmem>>, vector<128x512xf32>
    %cst_10 = arith.constant dense<0.000000e+00> : vector<2x512xf32>
    %12 = tpu.matmul %9, %11, %cst_10 {dimension_numbers = #tpu.dot_dimension_numbers<[1], [0], [0], [1], [0, 0, 1, 1], [], []>} : vector<2x128xf32>, vector<128x512xf32>, vector<2x512xf32> -> vector<2x512xf32>
    %13 = arith.addf %10, %12 : vector<2x512xf32>
    %14 = vector.extract_strided_slice %13 {offsets = [0, 0], sizes = [2, 128], strides = [1, 1]} : vector<2x512xf32> to vector<2x128xf32>
    %15 = arith.negf %14 : vector<2x128xf32>
    %16 = math.exp %15 : vector<2x128xf32>
    %cst_11 = arith.constant 1.000000e+00 : f32
    %17 = vector.broadcast %cst_11 : f32 to vector<2x128xf32>
    %18 = arith.addf %17, %16 : vector<2x128xf32>
    %19 = arith.divf %17, %18 : vector<2x128xf32>
    %20 = vector.extract_strided_slice %13 {offsets = [0, 128], sizes = [2, 128], strides = [1, 1]} : vector<2x512xf32> to vector<2x128xf32>
    %21 = arith.negf %20 : vector<2x128xf32>
    %22 = math.exp %21 : vector<2x128xf32>
    %cst_12 = arith.constant 1.000000e+00 : f32
    %23 = vector.broadcast %cst_12 : f32 to vector<2x128xf32>
    %24 = arith.addf %23, %22 : vector<2x128xf32>
    %25 = arith.divf %23, %24 : vector<2x128xf32>
    %26 = vector.extract_strided_slice %13 {offsets = [0, 256], sizes = [2, 128], strides = [1, 1]} : vector<2x512xf32> to vector<2x128xf32>
    %27 = math.tanh %26 : vector<2x128xf32>
    %28 = vector.extract_strided_slice %13 {offsets = [0, 384], sizes = [2, 128], strides = [1, 1]} : vector<2x512xf32> to vector<2x128xf32>
    %29 = arith.negf %28 : vector<2x128xf32>
    %30 = math.exp %29 : vector<2x128xf32>
    %cst_13 = arith.constant 1.000000e+00 : f32
    %31 = vector.broadcast %cst_13 : f32 to vector<2x128xf32>
    %32 = arith.addf %31, %30 : vector<2x128xf32>
    %33 = arith.divf %31, %32 : vector<2x128xf32>
    %34 = arith.mulf %25, %9 : vector<2x128xf32>
    %35 = arith.mulf %19, %27 : vector<2x128xf32>
    %36 = arith.addf %34, %35 : vector<2x128xf32>
    %37 = math.tanh %36 : vector<2x128xf32>
    %38 = arith.mulf %33, %37 : vector<2x128xf32>
    %c0_14 = arith.constant 0 : index
    %c0_15 = arith.constant 0 : index
    %39 = vector.load %arg4[%c0_14, %c0_15] : memref<128x512xf32, #tpu.memory_space<vmem>>, vector<128x512xf32>
    %cst_16 = arith.constant dense<0.000000e+00> : vector<2x512xf32>
    %40 = tpu.matmul %38, %39, %cst_16 {dimension_numbers = #tpu.dot_dimension_numbers<[1], [0], [0], [1], [0, 0, 1, 1], [], []>} : vector<2x128xf32>, vector<128x512xf32>, vector<2x512xf32> -> vector<2x512xf32>
    %c0_17 = arith.constant 0 : index
    %c0_18 = arith.constant 0 : index
    %41 = vector.load %arg5[%c0_17, %c0_18] : memref<128x512xf32, #tpu.memory_space<vmem>>, vector<128x512xf32>
    %cst_19 = arith.constant dense<0.000000e+00> : vector<2x512xf32>
    %42 = tpu.matmul %9, %41, %cst_19 {dimension_numbers = #tpu.dot_dimension_numbers<[1], [0], [0], [1], [0, 0, 1, 1], [], []>} : vector<2x128xf32>, vector<128x512xf32>, vector<2x512xf32> -> vector<2x512xf32>
    %43 = arith.addf %40, %42 : vector<2x512xf32>
    %44 = arith.addf %43, %8 : vector<2x512xf32>
    %45 = vector.extract_strided_slice %44 {offsets = [0, 0], sizes = [2, 128], strides = [1, 1]} : vector<2x512xf32> to vector<2x128xf32>
    %46 = arith.negf %45 : vector<2x128xf32>
    %47 = math.exp %46 : vector<2x128xf32>
    %cst_20 = arith.constant 1.000000e+00 : f32
    %48 = vector.broadcast %cst_20 : f32 to vector<2x128xf32>
    %49 = arith.addf %48, %47 : vector<2x128xf32>
    %50 = arith.divf %48, %49 : vector<2x128xf32>
    %51 = vector.extract_strided_slice %44 {offsets = [0, 128], sizes = [2, 128], strides = [1, 1]} : vector<2x512xf32> to vector<2x128xf32>
    %52 = arith.negf %51 : vector<2x128xf32>
    %53 = math.exp %52 : vector<2x128xf32>
    %cst_21 = arith.constant 1.000000e+00 : f32
    %54 = vector.broadcast %cst_21 : f32 to vector<2x128xf32>
    %55 = arith.addf %54, %53 : vector<2x128xf32>
    %56 = arith.divf %54, %55 : vector<2x128xf32>
    %57 = vector.extract_strided_slice %44 {offsets = [0, 256], sizes = [2, 128], strides = [1, 1]} : vector<2x512xf32> to vector<2x128xf32>
    %58 = math.tanh %57 : vector<2x128xf32>
    %59 = vector.extract_strided_slice %44 {offsets = [0, 384], sizes = [2, 128], strides = [1, 1]} : vector<2x512xf32> to vector<2x128xf32>
    %60 = arith.negf %59 : vector<2x128xf32>
    %61 = math.exp %60 : vector<2x128xf32>
    %cst_22 = arith.constant 1.000000e+00 : f32
    %62 = vector.broadcast %cst_22 : f32 to vector<2x128xf32>
    %63 = arith.addf %62, %61 : vector<2x128xf32>
    %64 = arith.divf %62, %63 : vector<2x128xf32>
    %65 = arith.mulf %56, %9 : vector<2x128xf32>
    %66 = arith.mulf %50, %58 : vector<2x128xf32>
    %67 = arith.addf %65, %66 : vector<2x128xf32>
    %68 = math.tanh %67 : vector<2x128xf32>
    %69 = arith.mulf %64, %68 : vector<2x128xf32>
    %70 = vector.extract_strided_slice %5 {offsets = [2, 0], sizes = [2, 512], strides = [1, 1]} : vector<16x512xf32> to vector<2x512xf32>
    %c0_23 = arith.constant 0 : index
    %c0_24 = arith.constant 0 : index
    %71 = vector.load %arg2[%c0_23, %c0_24] : memref<128x512xf32, #tpu.memory_space<vmem>>, vector<128x512xf32>
    %cst_25 = arith.constant dense<0.000000e+00> : vector<2x512xf32>
    %72 = tpu.matmul %38, %71, %cst_25 {dimension_numbers = #tpu.dot_dimension_numbers<[1], [0], [0], [1], [0, 0, 1, 1], [], []>} : vector<2x128xf32>, vector<128x512xf32>, vector<2x512xf32> -> vector<2x512xf32>
    %73 = arith.addf %70, %72 : vector<2x512xf32>
    %74 = vector.extract_strided_slice %73 {offsets = [0, 0], sizes = [2, 128], strides = [1, 1]} : vector<2x512xf32> to vector<2x128xf32>
    %75 = arith.negf %74 : vector<2x128xf32>
    %76 = math.exp %75 : vector<2x128xf32>
    %cst_26 = arith.constant 1.000000e+00 : f32
    %77 = vector.broadcast %cst_26 : f32 to vector<2x128xf32>
    %78 = arith.addf %77, %76 : vector<2x128xf32>
    %79 = arith.divf %77, %78 : vector<2x128xf32>
    %80 = vector.extract_strided_slice %73 {offsets = [0, 128], sizes = [2, 128], strides = [1, 1]} : vector<2x512xf32> to vector<2x128xf32>
    %81 = arith.negf %80 : vector<2x128xf32>
    %82 = math.exp %81 : vector<2x128xf32>
    %cst_27 = arith.constant 1.000000e+00 : f32
    %83 = vector.broadcast %cst_27 : f32 to vector<2x128xf32>
    %84 = arith.addf %83, %82 : vector<2x128xf32>
    %85 = arith.divf %83, %84 : vector<2x128xf32>
    %86 = vector.extract_strided_slice %73 {offsets = [0, 256], sizes = [2, 128], strides = [1, 1]} : vector<2x512xf32> to vector<2x128xf32>
    %87 = math.tanh %86 : vector<2x128xf32>
    %88 = vector.extract_strided_slice %73 {offsets = [0, 384], sizes = [2, 128], strides = [1, 1]} : vector<2x512xf32> to vector<2x128xf32>
    %89 = arith.negf %88 : vector<2x128xf32>
    %90 = math.exp %89 : vector<2x128xf32>
    %cst_28 = arith.constant 1.000000e+00 : f32
    %91 = vector.broadcast %cst_28 : f32 to vector<2x128xf32>
    %92 = arith.addf %91, %90 : vector<2x128xf32>
    %93 = arith.divf %91, %92 : vector<2x128xf32>
    %94 = arith.mulf %85, %36 : vector<2x128xf32>
    %95 = arith.mulf %79, %87 : vector<2x128xf32>
    %96 = arith.addf %94, %95 : vector<2x128xf32>
    %97 = math.tanh %96 : vector<2x128xf32>
    %98 = arith.mulf %93, %97 : vector<2x128xf32>
    %c0_29 = arith.constant 0 : index
    %c0_30 = arith.constant 0 : index
    %99 = vector.load %arg4[%c0_29, %c0_30] : memref<128x512xf32, #tpu.memory_space<vmem>>, vector<128x512xf32>
    %cst_31 = arith.constant dense<0.000000e+00> : vector<2x512xf32>
    %100 = tpu.matmul %98, %99, %cst_31 {dimension_numbers = #tpu.dot_dimension_numbers<[1], [0], [0], [1], [0, 0, 1, 1], [], []>} : vector<2x128xf32>, vector<128x512xf32>, vector<2x512xf32> -> vector<2x512xf32>
    %c0_32 = arith.constant 0 : index
    %c0_33 = arith.constant 0 : index
    %101 = vector.load %arg5[%c0_32, %c0_33] : memref<128x512xf32, #tpu.memory_space<vmem>>, vector<128x512xf32>
    %cst_34 = arith.constant dense<0.000000e+00> : vector<2x512xf32>
    %102 = tpu.matmul %69, %101, %cst_34 {dimension_numbers = #tpu.dot_dimension_numbers<[1], [0], [0], [1], [0, 0, 1, 1], [], []>} : vector<2x128xf32>, vector<128x512xf32>, vector<2x512xf32> -> vector<2x512xf32>
    %103 = arith.addf %100, %102 : vector<2x512xf32>
    %104 = arith.addf %103, %8 : vector<2x512xf32>
    %105 = vector.extract_strided_slice %104 {offsets = [0, 0], sizes = [2, 128], strides = [1, 1]} : vector<2x512xf32> to vector<2x128xf32>
    %106 = arith.negf %105 : vector<2x128xf32>
    %107 = math.exp %106 : vector<2x128xf32>
    %cst_35 = arith.constant 1.000000e+00 : f32
    %108 = vector.broadcast %cst_35 : f32 to vector<2x128xf32>
    %109 = arith.addf %108, %107 : vector<2x128xf32>
    %110 = arith.divf %108, %109 : vector<2x128xf32>
    %111 = vector.extract_strided_slice %104 {offsets = [0, 128], sizes = [2, 128], strides = [1, 1]} : vector<2x512xf32> to vector<2x128xf32>
    %112 = arith.negf %111 : vector<2x128xf32>
    %113 = math.exp %112 : vector<2x128xf32>
    %cst_36 = arith.constant 1.000000e+00 : f32
    %114 = vector.broadcast %cst_36 : f32 to vector<2x128xf32>
    %115 = arith.addf %114, %113 : vector<2x128xf32>
    %116 = arith.divf %114, %115 : vector<2x128xf32>
    %117 = vector.extract_strided_slice %104 {offsets = [0, 256], sizes = [2, 128], strides = [1, 1]} : vector<2x512xf32> to vector<2x128xf32>
    %118 = math.tanh %117 : vector<2x128xf32>
    %119 = vector.extract_strided_slice %104 {offsets = [0, 384], sizes = [2, 128], strides = [1, 1]} : vector<2x512xf32> to vector<2x128xf32>
    %120 = arith.negf %119 : vector<2x128xf32>
    %121 = math.exp %120 : vector<2x128xf32>
    %cst_37 = arith.constant 1.000000e+00 : f32
    %122 = vector.broadcast %cst_37 : f32 to vector<2x128xf32>
    %123 = arith.addf %122, %121 : vector<2x128xf32>
    %124 = arith.divf %122, %123 : vector<2x128xf32>
    %125 = arith.mulf %116, %67 : vector<2x128xf32>
    %126 = arith.mulf %110, %118 : vector<2x128xf32>
    %127 = arith.addf %125, %126 : vector<2x128xf32>
    %128 = math.tanh %127 : vector<2x128xf32>
    %129 = arith.mulf %124, %128 : vector<2x128xf32>
    %130 = vector.extract_strided_slice %5 {offsets = [4, 0], sizes = [2, 512], strides = [1, 1]} : vector<16x512xf32> to vector<2x512xf32>
    %c0_38 = arith.constant 0 : index
    %c0_39 = arith.constant 0 : index
    %131 = vector.load %arg2[%c0_38, %c0_39] : memref<128x512xf32, #tpu.memory_space<vmem>>, vector<128x512xf32>
    %cst_40 = arith.constant dense<0.000000e+00> : vector<2x512xf32>
    %132 = tpu.matmul %98, %131, %cst_40 {dimension_numbers = #tpu.dot_dimension_numbers<[1], [0], [0], [1], [0, 0, 1, 1], [], []>} : vector<2x128xf32>, vector<128x512xf32>, vector<2x512xf32> -> vector<2x512xf32>
    %133 = arith.addf %130, %132 : vector<2x512xf32>
    %134 = vector.extract_strided_slice %133 {offsets = [0, 0], sizes = [2, 128], strides = [1, 1]} : vector<2x512xf32> to vector<2x128xf32>
    %135 = arith.negf %134 : vector<2x128xf32>
    %136 = math.exp %135 : vector<2x128xf32>
    %cst_41 = arith.constant 1.000000e+00 : f32
    %137 = vector.broadcast %cst_41 : f32 to vector<2x128xf32>
    %138 = arith.addf %137, %136 : vector<2x128xf32>
    %139 = arith.divf %137, %138 : vector<2x128xf32>
    %140 = vector.extract_strided_slice %133 {offsets = [0, 128], sizes = [2, 128], strides = [1, 1]} : vector<2x512xf32> to vector<2x128xf32>
    %141 = arith.negf %140 : vector<2x128xf32>
    %142 = math.exp %141 : vector<2x128xf32>
    %cst_42 = arith.constant 1.000000e+00 : f32
    %143 = vector.broadcast %cst_42 : f32 to vector<2x128xf32>
    %144 = arith.addf %143, %142 : vector<2x128xf32>
    %145 = arith.divf %143, %144 : vector<2x128xf32>
    %146 = vector.extract_strided_slice %133 {offsets = [0, 256], sizes = [2, 128], strides = [1, 1]} : vector<2x512xf32> to vector<2x128xf32>
    %147 = math.tanh %146 : vector<2x128xf32>
    %148 = vector.extract_strided_slice %133 {offsets = [0, 384], sizes = [2, 128], strides = [1, 1]} : vector<2x512xf32> to vector<2x128xf32>
    %149 = arith.negf %148 : vector<2x128xf32>
    %150 = math.exp %149 : vector<2x128xf32>
    %cst_43 = arith.constant 1.000000e+00 : f32
    %151 = vector.broadcast %cst_43 : f32 to vector<2x128xf32>
    %152 = arith.addf %151, %150 : vector<2x128xf32>
    %153 = arith.divf %151, %152 : vector<2x128xf32>
    %154 = arith.mulf %145, %96 : vector<2x128xf32>
    %155 = arith.mulf %139, %147 : vector<2x128xf32>
    %156 = arith.addf %154, %155 : vector<2x128xf32>
    %157 = math.tanh %156 : vector<2x128xf32>
    %158 = arith.mulf %153, %157 : vector<2x128xf32>
    %c0_44 = arith.constant 0 : index
    %c0_45 = arith.constant 0 : index
    %159 = vector.load %arg4[%c0_44, %c0_45] : memref<128x512xf32, #tpu.memory_space<vmem>>, vector<128x512xf32>
    %cst_46 = arith.constant dense<0.000000e+00> : vector<2x512xf32>
    %160 = tpu.matmul %158, %159, %cst_46 {dimension_numbers = #tpu.dot_dimension_numbers<[1], [0], [0], [1], [0, 0, 1, 1], [], []>} : vector<2x128xf32>, vector<128x512xf32>, vector<2x512xf32> -> vector<2x512xf32>
    %c0_47 = arith.constant 0 : index
    %c0_48 = arith.constant 0 : index
    %161 = vector.load %arg5[%c0_47, %c0_48] : memref<128x512xf32, #tpu.memory_space<vmem>>, vector<128x512xf32>
    %cst_49 = arith.constant dense<0.000000e+00> : vector<2x512xf32>
    %162 = tpu.matmul %129, %161, %cst_49 {dimension_numbers = #tpu.dot_dimension_numbers<[1], [0], [0], [1], [0, 0, 1, 1], [], []>} : vector<2x128xf32>, vector<128x512xf32>, vector<2x512xf32> -> vector<2x512xf32>
    %163 = arith.addf %160, %162 : vector<2x512xf32>
    %164 = arith.addf %163, %8 : vector<2x512xf32>
    %165 = vector.extract_strided_slice %164 {offsets = [0, 0], sizes = [2, 128], strides = [1, 1]} : vector<2x512xf32> to vector<2x128xf32>
    %166 = arith.negf %165 : vector<2x128xf32>
    %167 = math.exp %166 : vector<2x128xf32>
    %cst_50 = arith.constant 1.000000e+00 : f32
    %168 = vector.broadcast %cst_50 : f32 to vector<2x128xf32>
    %169 = arith.addf %168, %167 : vector<2x128xf32>
    %170 = arith.divf %168, %169 : vector<2x128xf32>
    %171 = vector.extract_strided_slice %164 {offsets = [0, 128], sizes = [2, 128], strides = [1, 1]} : vector<2x512xf32> to vector<2x128xf32>
    %172 = arith.negf %171 : vector<2x128xf32>
    %173 = math.exp %172 : vector<2x128xf32>
    %cst_51 = arith.constant 1.000000e+00 : f32
    %174 = vector.broadcast %cst_51 : f32 to vector<2x128xf32>
    %175 = arith.addf %174, %173 : vector<2x128xf32>
    %176 = arith.divf %174, %175 : vector<2x128xf32>
    %177 = vector.extract_strided_slice %164 {offsets = [0, 256], sizes = [2, 128], strides = [1, 1]} : vector<2x512xf32> to vector<2x128xf32>
    %178 = math.tanh %177 : vector<2x128xf32>
    %179 = vector.extract_strided_slice %164 {offsets = [0, 384], sizes = [2, 128], strides = [1, 1]} : vector<2x512xf32> to vector<2x128xf32>
    %180 = arith.negf %179 : vector<2x128xf32>
    %181 = math.exp %180 : vector<2x128xf32>
    %cst_52 = arith.constant 1.000000e+00 : f32
    %182 = vector.broadcast %cst_52 : f32 to vector<2x128xf32>
    %183 = arith.addf %182, %181 : vector<2x128xf32>
    %184 = arith.divf %182, %183 : vector<2x128xf32>
    %185 = arith.mulf %176, %127 : vector<2x128xf32>
    %186 = arith.mulf %170, %178 : vector<2x128xf32>
    %187 = arith.addf %185, %186 : vector<2x128xf32>
    %188 = math.tanh %187 : vector<2x128xf32>
    %189 = arith.mulf %184, %188 : vector<2x128xf32>
    %190 = vector.extract_strided_slice %5 {offsets = [6, 0], sizes = [2, 512], strides = [1, 1]} : vector<16x512xf32> to vector<2x512xf32>
    %c0_53 = arith.constant 0 : index
    %c0_54 = arith.constant 0 : index
    %191 = vector.load %arg2[%c0_53, %c0_54] : memref<128x512xf32, #tpu.memory_space<vmem>>, vector<128x512xf32>
    %cst_55 = arith.constant dense<0.000000e+00> : vector<2x512xf32>
    %192 = tpu.matmul %158, %191, %cst_55 {dimension_numbers = #tpu.dot_dimension_numbers<[1], [0], [0], [1], [0, 0, 1, 1], [], []>} : vector<2x128xf32>, vector<128x512xf32>, vector<2x512xf32> -> vector<2x512xf32>
    %193 = arith.addf %190, %192 : vector<2x512xf32>
    %194 = vector.extract_strided_slice %193 {offsets = [0, 0], sizes = [2, 128], strides = [1, 1]} : vector<2x512xf32> to vector<2x128xf32>
    %195 = arith.negf %194 : vector<2x128xf32>
    %196 = math.exp %195 : vector<2x128xf32>
    %cst_56 = arith.constant 1.000000e+00 : f32
    %197 = vector.broadcast %cst_56 : f32 to vector<2x128xf32>
    %198 = arith.addf %197, %196 : vector<2x128xf32>
    %199 = arith.divf %197, %198 : vector<2x128xf32>
    %200 = vector.extract_strided_slice %193 {offsets = [0, 128], sizes = [2, 128], strides = [1, 1]} : vector<2x512xf32> to vector<2x128xf32>
    %201 = arith.negf %200 : vector<2x128xf32>
    %202 = math.exp %201 : vector<2x128xf32>
    %cst_57 = arith.constant 1.000000e+00 : f32
    %203 = vector.broadcast %cst_57 : f32 to vector<2x128xf32>
    %204 = arith.addf %203, %202 : vector<2x128xf32>
    %205 = arith.divf %203, %204 : vector<2x128xf32>
    %206 = vector.extract_strided_slice %193 {offsets = [0, 256], sizes = [2, 128], strides = [1, 1]} : vector<2x512xf32> to vector<2x128xf32>
    %207 = math.tanh %206 : vector<2x128xf32>
    %208 = vector.extract_strided_slice %193 {offsets = [0, 384], sizes = [2, 128], strides = [1, 1]} : vector<2x512xf32> to vector<2x128xf32>
    %209 = arith.negf %208 : vector<2x128xf32>
    %210 = math.exp %209 : vector<2x128xf32>
    %cst_58 = arith.constant 1.000000e+00 : f32
    %211 = vector.broadcast %cst_58 : f32 to vector<2x128xf32>
    %212 = arith.addf %211, %210 : vector<2x128xf32>
    %213 = arith.divf %211, %212 : vector<2x128xf32>
    %214 = arith.mulf %205, %156 : vector<2x128xf32>
    %215 = arith.mulf %199, %207 : vector<2x128xf32>
    %216 = arith.addf %214, %215 : vector<2x128xf32>
    %217 = math.tanh %216 : vector<2x128xf32>
    %218 = arith.mulf %213, %217 : vector<2x128xf32>
    %c0_59 = arith.constant 0 : index
    %c0_60 = arith.constant 0 : index
    %219 = vector.load %arg4[%c0_59, %c0_60] : memref<128x512xf32, #tpu.memory_space<vmem>>, vector<128x512xf32>
    %cst_61 = arith.constant dense<0.000000e+00> : vector<2x512xf32>
    %220 = tpu.matmul %218, %219, %cst_61 {dimension_numbers = #tpu.dot_dimension_numbers<[1], [0], [0], [1], [0, 0, 1, 1], [], []>} : vector<2x128xf32>, vector<128x512xf32>, vector<2x512xf32> -> vector<2x512xf32>
    %c0_62 = arith.constant 0 : index
    %c0_63 = arith.constant 0 : index
    %221 = vector.load %arg5[%c0_62, %c0_63] : memref<128x512xf32, #tpu.memory_space<vmem>>, vector<128x512xf32>
    %cst_64 = arith.constant dense<0.000000e+00> : vector<2x512xf32>
    %222 = tpu.matmul %189, %221, %cst_64 {dimension_numbers = #tpu.dot_dimension_numbers<[1], [0], [0], [1], [0, 0, 1, 1], [], []>} : vector<2x128xf32>, vector<128x512xf32>, vector<2x512xf32> -> vector<2x512xf32>
    %223 = arith.addf %220, %222 : vector<2x512xf32>
    %224 = arith.addf %223, %8 : vector<2x512xf32>
    %225 = vector.extract_strided_slice %224 {offsets = [0, 0], sizes = [2, 128], strides = [1, 1]} : vector<2x512xf32> to vector<2x128xf32>
    %226 = arith.negf %225 : vector<2x128xf32>
    %227 = math.exp %226 : vector<2x128xf32>
    %cst_65 = arith.constant 1.000000e+00 : f32
    %228 = vector.broadcast %cst_65 : f32 to vector<2x128xf32>
    %229 = arith.addf %228, %227 : vector<2x128xf32>
    %230 = arith.divf %228, %229 : vector<2x128xf32>
    %231 = vector.extract_strided_slice %224 {offsets = [0, 128], sizes = [2, 128], strides = [1, 1]} : vector<2x512xf32> to vector<2x128xf32>
    %232 = arith.negf %231 : vector<2x128xf32>
    %233 = math.exp %232 : vector<2x128xf32>
    %cst_66 = arith.constant 1.000000e+00 : f32
    %234 = vector.broadcast %cst_66 : f32 to vector<2x128xf32>
    %235 = arith.addf %234, %233 : vector<2x128xf32>
    %236 = arith.divf %234, %235 : vector<2x128xf32>
    %237 = vector.extract_strided_slice %224 {offsets = [0, 256], sizes = [2, 128], strides = [1, 1]} : vector<2x512xf32> to vector<2x128xf32>
    %238 = math.tanh %237 : vector<2x128xf32>
    %239 = vector.extract_strided_slice %224 {offsets = [0, 384], sizes = [2, 128], strides = [1, 1]} : vector<2x512xf32> to vector<2x128xf32>
    %240 = arith.negf %239 : vector<2x128xf32>
    %241 = math.exp %240 : vector<2x128xf32>
    %cst_67 = arith.constant 1.000000e+00 : f32
    %242 = vector.broadcast %cst_67 : f32 to vector<2x128xf32>
    %243 = arith.addf %242, %241 : vector<2x128xf32>
    %244 = arith.divf %242, %243 : vector<2x128xf32>
    %245 = arith.mulf %236, %187 : vector<2x128xf32>
    %246 = arith.mulf %230, %238 : vector<2x128xf32>
    %247 = arith.addf %245, %246 : vector<2x128xf32>
    %248 = math.tanh %247 : vector<2x128xf32>
    %249 = arith.mulf %244, %248 : vector<2x128xf32>
    %250 = vector.extract_strided_slice %5 {offsets = [8, 0], sizes = [2, 512], strides = [1, 1]} : vector<16x512xf32> to vector<2x512xf32>
    %c0_68 = arith.constant 0 : index
    %c0_69 = arith.constant 0 : index
    %251 = vector.load %arg2[%c0_68, %c0_69] : memref<128x512xf32, #tpu.memory_space<vmem>>, vector<128x512xf32>
    %cst_70 = arith.constant dense<0.000000e+00> : vector<2x512xf32>
    %252 = tpu.matmul %218, %251, %cst_70 {dimension_numbers = #tpu.dot_dimension_numbers<[1], [0], [0], [1], [0, 0, 1, 1], [], []>} : vector<2x128xf32>, vector<128x512xf32>, vector<2x512xf32> -> vector<2x512xf32>
    %253 = arith.addf %250, %252 : vector<2x512xf32>
    %254 = vector.extract_strided_slice %253 {offsets = [0, 0], sizes = [2, 128], strides = [1, 1]} : vector<2x512xf32> to vector<2x128xf32>
    %255 = arith.negf %254 : vector<2x128xf32>
    %256 = math.exp %255 : vector<2x128xf32>
    %cst_71 = arith.constant 1.000000e+00 : f32
    %257 = vector.broadcast %cst_71 : f32 to vector<2x128xf32>
    %258 = arith.addf %257, %256 : vector<2x128xf32>
    %259 = arith.divf %257, %258 : vector<2x128xf32>
    %260 = vector.extract_strided_slice %253 {offsets = [0, 128], sizes = [2, 128], strides = [1, 1]} : vector<2x512xf32> to vector<2x128xf32>
    %261 = arith.negf %260 : vector<2x128xf32>
    %262 = math.exp %261 : vector<2x128xf32>
    %cst_72 = arith.constant 1.000000e+00 : f32
    %263 = vector.broadcast %cst_72 : f32 to vector<2x128xf32>
    %264 = arith.addf %263, %262 : vector<2x128xf32>
    %265 = arith.divf %263, %264 : vector<2x128xf32>
    %266 = vector.extract_strided_slice %253 {offsets = [0, 256], sizes = [2, 128], strides = [1, 1]} : vector<2x512xf32> to vector<2x128xf32>
    %267 = math.tanh %266 : vector<2x128xf32>
    %268 = vector.extract_strided_slice %253 {offsets = [0, 384], sizes = [2, 128], strides = [1, 1]} : vector<2x512xf32> to vector<2x128xf32>
    %269 = arith.negf %268 : vector<2x128xf32>
    %270 = math.exp %269 : vector<2x128xf32>
    %cst_73 = arith.constant 1.000000e+00 : f32
    %271 = vector.broadcast %cst_73 : f32 to vector<2x128xf32>
    %272 = arith.addf %271, %270 : vector<2x128xf32>
    %273 = arith.divf %271, %272 : vector<2x128xf32>
    %274 = arith.mulf %265, %216 : vector<2x128xf32>
    %275 = arith.mulf %259, %267 : vector<2x128xf32>
    %276 = arith.addf %274, %275 : vector<2x128xf32>
    %277 = math.tanh %276 : vector<2x128xf32>
    %278 = arith.mulf %273, %277 : vector<2x128xf32>
    %c0_74 = arith.constant 0 : index
    %c0_75 = arith.constant 0 : index
    %279 = vector.load %arg4[%c0_74, %c0_75] : memref<128x512xf32, #tpu.memory_space<vmem>>, vector<128x512xf32>
    %cst_76 = arith.constant dense<0.000000e+00> : vector<2x512xf32>
    %280 = tpu.matmul %278, %279, %cst_76 {dimension_numbers = #tpu.dot_dimension_numbers<[1], [0], [0], [1], [0, 0, 1, 1], [], []>} : vector<2x128xf32>, vector<128x512xf32>, vector<2x512xf32> -> vector<2x512xf32>
    %c0_77 = arith.constant 0 : index
    %c0_78 = arith.constant 0 : index
    %281 = vector.load %arg5[%c0_77, %c0_78] : memref<128x512xf32, #tpu.memory_space<vmem>>, vector<128x512xf32>
    %cst_79 = arith.constant dense<0.000000e+00> : vector<2x512xf32>
    %282 = tpu.matmul %249, %281, %cst_79 {dimension_numbers = #tpu.dot_dimension_numbers<[1], [0], [0], [1], [0, 0, 1, 1], [], []>} : vector<2x128xf32>, vector<128x512xf32>, vector<2x512xf32> -> vector<2x512xf32>
    %283 = arith.addf %280, %282 : vector<2x512xf32>
    %284 = arith.addf %283, %8 : vector<2x512xf32>
    %285 = vector.extract_strided_slice %284 {offsets = [0, 0], sizes = [2, 128], strides = [1, 1]} : vector<2x512xf32> to vector<2x128xf32>
    %286 = arith.negf %285 : vector<2x128xf32>
    %287 = math.exp %286 : vector<2x128xf32>
    %cst_80 = arith.constant 1.000000e+00 : f32
    %288 = vector.broadcast %cst_80 : f32 to vector<2x128xf32>
    %289 = arith.addf %288, %287 : vector<2x128xf32>
    %290 = arith.divf %288, %289 : vector<2x128xf32>
    %291 = vector.extract_strided_slice %284 {offsets = [0, 128], sizes = [2, 128], strides = [1, 1]} : vector<2x512xf32> to vector<2x128xf32>
    %292 = arith.negf %291 : vector<2x128xf32>
    %293 = math.exp %292 : vector<2x128xf32>
    %cst_81 = arith.constant 1.000000e+00 : f32
    %294 = vector.broadcast %cst_81 : f32 to vector<2x128xf32>
    %295 = arith.addf %294, %293 : vector<2x128xf32>
    %296 = arith.divf %294, %295 : vector<2x128xf32>
    %297 = vector.extract_strided_slice %284 {offsets = [0, 256], sizes = [2, 128], strides = [1, 1]} : vector<2x512xf32> to vector<2x128xf32>
    %298 = math.tanh %297 : vector<2x128xf32>
    %299 = vector.extract_strided_slice %284 {offsets = [0, 384], sizes = [2, 128], strides = [1, 1]} : vector<2x512xf32> to vector<2x128xf32>
    %300 = arith.negf %299 : vector<2x128xf32>
    %301 = math.exp %300 : vector<2x128xf32>
    %cst_82 = arith.constant 1.000000e+00 : f32
    %302 = vector.broadcast %cst_82 : f32 to vector<2x128xf32>
    %303 = arith.addf %302, %301 : vector<2x128xf32>
    %304 = arith.divf %302, %303 : vector<2x128xf32>
    %305 = arith.mulf %296, %247 : vector<2x128xf32>
    %306 = arith.mulf %290, %298 : vector<2x128xf32>
    %307 = arith.addf %305, %306 : vector<2x128xf32>
    %308 = math.tanh %307 : vector<2x128xf32>
    %309 = arith.mulf %304, %308 : vector<2x128xf32>
    %310 = vector.extract_strided_slice %5 {offsets = [10, 0], sizes = [2, 512], strides = [1, 1]} : vector<16x512xf32> to vector<2x512xf32>
    %c0_83 = arith.constant 0 : index
    %c0_84 = arith.constant 0 : index
    %311 = vector.load %arg2[%c0_83, %c0_84] : memref<128x512xf32, #tpu.memory_space<vmem>>, vector<128x512xf32>
    %cst_85 = arith.constant dense<0.000000e+00> : vector<2x512xf32>
    %312 = tpu.matmul %278, %311, %cst_85 {dimension_numbers = #tpu.dot_dimension_numbers<[1], [0], [0], [1], [0, 0, 1, 1], [], []>} : vector<2x128xf32>, vector<128x512xf32>, vector<2x512xf32> -> vector<2x512xf32>
    %313 = arith.addf %310, %312 : vector<2x512xf32>
    %314 = vector.extract_strided_slice %313 {offsets = [0, 0], sizes = [2, 128], strides = [1, 1]} : vector<2x512xf32> to vector<2x128xf32>
    %315 = arith.negf %314 : vector<2x128xf32>
    %316 = math.exp %315 : vector<2x128xf32>
    %cst_86 = arith.constant 1.000000e+00 : f32
    %317 = vector.broadcast %cst_86 : f32 to vector<2x128xf32>
    %318 = arith.addf %317, %316 : vector<2x128xf32>
    %319 = arith.divf %317, %318 : vector<2x128xf32>
    %320 = vector.extract_strided_slice %313 {offsets = [0, 128], sizes = [2, 128], strides = [1, 1]} : vector<2x512xf32> to vector<2x128xf32>
    %321 = arith.negf %320 : vector<2x128xf32>
    %322 = math.exp %321 : vector<2x128xf32>
    %cst_87 = arith.constant 1.000000e+00 : f32
    %323 = vector.broadcast %cst_87 : f32 to vector<2x128xf32>
    %324 = arith.addf %323, %322 : vector<2x128xf32>
    %325 = arith.divf %323, %324 : vector<2x128xf32>
    %326 = vector.extract_strided_slice %313 {offsets = [0, 256], sizes = [2, 128], strides = [1, 1]} : vector<2x512xf32> to vector<2x128xf32>
    %327 = math.tanh %326 : vector<2x128xf32>
    %328 = vector.extract_strided_slice %313 {offsets = [0, 384], sizes = [2, 128], strides = [1, 1]} : vector<2x512xf32> to vector<2x128xf32>
    %329 = arith.negf %328 : vector<2x128xf32>
    %330 = math.exp %329 : vector<2x128xf32>
    %cst_88 = arith.constant 1.000000e+00 : f32
    %331 = vector.broadcast %cst_88 : f32 to vector<2x128xf32>
    %332 = arith.addf %331, %330 : vector<2x128xf32>
    %333 = arith.divf %331, %332 : vector<2x128xf32>
    %334 = arith.mulf %325, %276 : vector<2x128xf32>
    %335 = arith.mulf %319, %327 : vector<2x128xf32>
    %336 = arith.addf %334, %335 : vector<2x128xf32>
    %337 = math.tanh %336 : vector<2x128xf32>
    %338 = arith.mulf %333, %337 : vector<2x128xf32>
    %c0_89 = arith.constant 0 : index
    %c0_90 = arith.constant 0 : index
    %339 = vector.load %arg4[%c0_89, %c0_90] : memref<128x512xf32, #tpu.memory_space<vmem>>, vector<128x512xf32>
    %cst_91 = arith.constant dense<0.000000e+00> : vector<2x512xf32>
    %340 = tpu.matmul %338, %339, %cst_91 {dimension_numbers = #tpu.dot_dimension_numbers<[1], [0], [0], [1], [0, 0, 1, 1], [], []>} : vector<2x128xf32>, vector<128x512xf32>, vector<2x512xf32> -> vector<2x512xf32>
    %c0_92 = arith.constant 0 : index
    %c0_93 = arith.constant 0 : index
    %341 = vector.load %arg5[%c0_92, %c0_93] : memref<128x512xf32, #tpu.memory_space<vmem>>, vector<128x512xf32>
    %cst_94 = arith.constant dense<0.000000e+00> : vector<2x512xf32>
    %342 = tpu.matmul %309, %341, %cst_94 {dimension_numbers = #tpu.dot_dimension_numbers<[1], [0], [0], [1], [0, 0, 1, 1], [], []>} : vector<2x128xf32>, vector<128x512xf32>, vector<2x512xf32> -> vector<2x512xf32>
    %343 = arith.addf %340, %342 : vector<2x512xf32>
    %344 = arith.addf %343, %8 : vector<2x512xf32>
    %345 = vector.extract_strided_slice %344 {offsets = [0, 0], sizes = [2, 128], strides = [1, 1]} : vector<2x512xf32> to vector<2x128xf32>
    %346 = arith.negf %345 : vector<2x128xf32>
    %347 = math.exp %346 : vector<2x128xf32>
    %cst_95 = arith.constant 1.000000e+00 : f32
    %348 = vector.broadcast %cst_95 : f32 to vector<2x128xf32>
    %349 = arith.addf %348, %347 : vector<2x128xf32>
    %350 = arith.divf %348, %349 : vector<2x128xf32>
    %351 = vector.extract_strided_slice %344 {offsets = [0, 128], sizes = [2, 128], strides = [1, 1]} : vector<2x512xf32> to vector<2x128xf32>
    %352 = arith.negf %351 : vector<2x128xf32>
    %353 = math.exp %352 : vector<2x128xf32>
    %cst_96 = arith.constant 1.000000e+00 : f32
    %354 = vector.broadcast %cst_96 : f32 to vector<2x128xf32>
    %355 = arith.addf %354, %353 : vector<2x128xf32>
    %356 = arith.divf %354, %355 : vector<2x128xf32>
    %357 = vector.extract_strided_slice %344 {offsets = [0, 256], sizes = [2, 128], strides = [1, 1]} : vector<2x512xf32> to vector<2x128xf32>
    %358 = math.tanh %357 : vector<2x128xf32>
    %359 = vector.extract_strided_slice %344 {offsets = [0, 384], sizes = [2, 128], strides = [1, 1]} : vector<2x512xf32> to vector<2x128xf32>
    %360 = arith.negf %359 : vector<2x128xf32>
    %361 = math.exp %360 : vector<2x128xf32>
    %cst_97 = arith.constant 1.000000e+00 : f32
    %362 = vector.broadcast %cst_97 : f32 to vector<2x128xf32>
    %363 = arith.addf %362, %361 : vector<2x128xf32>
    %364 = arith.divf %362, %363 : vector<2x128xf32>
    %365 = arith.mulf %356, %307 : vector<2x128xf32>
    %366 = arith.mulf %350, %358 : vector<2x128xf32>
    %367 = arith.addf %365, %366 : vector<2x128xf32>
    %368 = math.tanh %367 : vector<2x128xf32>
    %369 = arith.mulf %364, %368 : vector<2x128xf32>
    %370 = vector.extract_strided_slice %5 {offsets = [12, 0], sizes = [2, 512], strides = [1, 1]} : vector<16x512xf32> to vector<2x512xf32>
    %c0_98 = arith.constant 0 : index
    %c0_99 = arith.constant 0 : index
    %371 = vector.load %arg2[%c0_98, %c0_99] : memref<128x512xf32, #tpu.memory_space<vmem>>, vector<128x512xf32>
    %cst_100 = arith.constant dense<0.000000e+00> : vector<2x512xf32>
    %372 = tpu.matmul %338, %371, %cst_100 {dimension_numbers = #tpu.dot_dimension_numbers<[1], [0], [0], [1], [0, 0, 1, 1], [], []>} : vector<2x128xf32>, vector<128x512xf32>, vector<2x512xf32> -> vector<2x512xf32>
    %373 = arith.addf %370, %372 : vector<2x512xf32>
    %374 = vector.extract_strided_slice %373 {offsets = [0, 0], sizes = [2, 128], strides = [1, 1]} : vector<2x512xf32> to vector<2x128xf32>
    %375 = arith.negf %374 : vector<2x128xf32>
    %376 = math.exp %375 : vector<2x128xf32>
    %cst_101 = arith.constant 1.000000e+00 : f32
    %377 = vector.broadcast %cst_101 : f32 to vector<2x128xf32>
    %378 = arith.addf %377, %376 : vector<2x128xf32>
    %379 = arith.divf %377, %378 : vector<2x128xf32>
    %380 = vector.extract_strided_slice %373 {offsets = [0, 128], sizes = [2, 128], strides = [1, 1]} : vector<2x512xf32> to vector<2x128xf32>
    %381 = arith.negf %380 : vector<2x128xf32>
    %382 = math.exp %381 : vector<2x128xf32>
    %cst_102 = arith.constant 1.000000e+00 : f32
    %383 = vector.broadcast %cst_102 : f32 to vector<2x128xf32>
    %384 = arith.addf %383, %382 : vector<2x128xf32>
    %385 = arith.divf %383, %384 : vector<2x128xf32>
    %386 = vector.extract_strided_slice %373 {offsets = [0, 256], sizes = [2, 128], strides = [1, 1]} : vector<2x512xf32> to vector<2x128xf32>
    %387 = math.tanh %386 : vector<2x128xf32>
    %388 = vector.extract_strided_slice %373 {offsets = [0, 384], sizes = [2, 128], strides = [1, 1]} : vector<2x512xf32> to vector<2x128xf32>
    %389 = arith.negf %388 : vector<2x128xf32>
    %390 = math.exp %389 : vector<2x128xf32>
    %cst_103 = arith.constant 1.000000e+00 : f32
    %391 = vector.broadcast %cst_103 : f32 to vector<2x128xf32>
    %392 = arith.addf %391, %390 : vector<2x128xf32>
    %393 = arith.divf %391, %392 : vector<2x128xf32>
    %394 = arith.mulf %385, %336 : vector<2x128xf32>
    %395 = arith.mulf %379, %387 : vector<2x128xf32>
    %396 = arith.addf %394, %395 : vector<2x128xf32>
    %397 = math.tanh %396 : vector<2x128xf32>
    %398 = arith.mulf %393, %397 : vector<2x128xf32>
    %c0_104 = arith.constant 0 : index
    %c0_105 = arith.constant 0 : index
    %399 = vector.load %arg4[%c0_104, %c0_105] : memref<128x512xf32, #tpu.memory_space<vmem>>, vector<128x512xf32>
    %cst_106 = arith.constant dense<0.000000e+00> : vector<2x512xf32>
    %400 = tpu.matmul %398, %399, %cst_106 {dimension_numbers = #tpu.dot_dimension_numbers<[1], [0], [0], [1], [0, 0, 1, 1], [], []>} : vector<2x128xf32>, vector<128x512xf32>, vector<2x512xf32> -> vector<2x512xf32>
    %c0_107 = arith.constant 0 : index
    %c0_108 = arith.constant 0 : index
    %401 = vector.load %arg5[%c0_107, %c0_108] : memref<128x512xf32, #tpu.memory_space<vmem>>, vector<128x512xf32>
    %cst_109 = arith.constant dense<0.000000e+00> : vector<2x512xf32>
    %402 = tpu.matmul %369, %401, %cst_109 {dimension_numbers = #tpu.dot_dimension_numbers<[1], [0], [0], [1], [0, 0, 1, 1], [], []>} : vector<2x128xf32>, vector<128x512xf32>, vector<2x512xf32> -> vector<2x512xf32>
    %403 = arith.addf %400, %402 : vector<2x512xf32>
    %404 = arith.addf %403, %8 : vector<2x512xf32>
    %405 = vector.extract_strided_slice %404 {offsets = [0, 0], sizes = [2, 128], strides = [1, 1]} : vector<2x512xf32> to vector<2x128xf32>
    %406 = arith.negf %405 : vector<2x128xf32>
    %407 = math.exp %406 : vector<2x128xf32>
    %cst_110 = arith.constant 1.000000e+00 : f32
    %408 = vector.broadcast %cst_110 : f32 to vector<2x128xf32>
    %409 = arith.addf %408, %407 : vector<2x128xf32>
    %410 = arith.divf %408, %409 : vector<2x128xf32>
    %411 = vector.extract_strided_slice %404 {offsets = [0, 128], sizes = [2, 128], strides = [1, 1]} : vector<2x512xf32> to vector<2x128xf32>
    %412 = arith.negf %411 : vector<2x128xf32>
    %413 = math.exp %412 : vector<2x128xf32>
    %cst_111 = arith.constant 1.000000e+00 : f32
    %414 = vector.broadcast %cst_111 : f32 to vector<2x128xf32>
    %415 = arith.addf %414, %413 : vector<2x128xf32>
    %416 = arith.divf %414, %415 : vector<2x128xf32>
    %417 = vector.extract_strided_slice %404 {offsets = [0, 256], sizes = [2, 128], strides = [1, 1]} : vector<2x512xf32> to vector<2x128xf32>
    %418 = math.tanh %417 : vector<2x128xf32>
    %419 = vector.extract_strided_slice %404 {offsets = [0, 384], sizes = [2, 128], strides = [1, 1]} : vector<2x512xf32> to vector<2x128xf32>
    %420 = arith.negf %419 : vector<2x128xf32>
    %421 = math.exp %420 : vector<2x128xf32>
    %cst_112 = arith.constant 1.000000e+00 : f32
    %422 = vector.broadcast %cst_112 : f32 to vector<2x128xf32>
    %423 = arith.addf %422, %421 : vector<2x128xf32>
    %424 = arith.divf %422, %423 : vector<2x128xf32>
    %425 = arith.mulf %416, %367 : vector<2x128xf32>
    %426 = arith.mulf %410, %418 : vector<2x128xf32>
    %427 = arith.addf %425, %426 : vector<2x128xf32>
    %428 = math.tanh %427 : vector<2x128xf32>
    %429 = arith.mulf %424, %428 : vector<2x128xf32>
    %430 = vector.extract_strided_slice %5 {offsets = [14, 0], sizes = [2, 512], strides = [1, 1]} : vector<16x512xf32> to vector<2x512xf32>
    %c0_113 = arith.constant 0 : index
    %c0_114 = arith.constant 0 : index
    %431 = vector.load %arg2[%c0_113, %c0_114] : memref<128x512xf32, #tpu.memory_space<vmem>>, vector<128x512xf32>
    %cst_115 = arith.constant dense<0.000000e+00> : vector<2x512xf32>
    %432 = tpu.matmul %398, %431, %cst_115 {dimension_numbers = #tpu.dot_dimension_numbers<[1], [0], [0], [1], [0, 0, 1, 1], [], []>} : vector<2x128xf32>, vector<128x512xf32>, vector<2x512xf32> -> vector<2x512xf32>
    %433 = arith.addf %430, %432 : vector<2x512xf32>
    %434 = vector.extract_strided_slice %433 {offsets = [0, 0], sizes = [2, 128], strides = [1, 1]} : vector<2x512xf32> to vector<2x128xf32>
    %435 = arith.negf %434 : vector<2x128xf32>
    %436 = math.exp %435 : vector<2x128xf32>
    %cst_116 = arith.constant 1.000000e+00 : f32
    %437 = vector.broadcast %cst_116 : f32 to vector<2x128xf32>
    %438 = arith.addf %437, %436 : vector<2x128xf32>
    %439 = arith.divf %437, %438 : vector<2x128xf32>
    %440 = vector.extract_strided_slice %433 {offsets = [0, 128], sizes = [2, 128], strides = [1, 1]} : vector<2x512xf32> to vector<2x128xf32>
    %441 = arith.negf %440 : vector<2x128xf32>
    %442 = math.exp %441 : vector<2x128xf32>
    %cst_117 = arith.constant 1.000000e+00 : f32
    %443 = vector.broadcast %cst_117 : f32 to vector<2x128xf32>
    %444 = arith.addf %443, %442 : vector<2x128xf32>
    %445 = arith.divf %443, %444 : vector<2x128xf32>
    %446 = vector.extract_strided_slice %433 {offsets = [0, 256], sizes = [2, 128], strides = [1, 1]} : vector<2x512xf32> to vector<2x128xf32>
    %447 = math.tanh %446 : vector<2x128xf32>
    %448 = vector.extract_strided_slice %433 {offsets = [0, 384], sizes = [2, 128], strides = [1, 1]} : vector<2x512xf32> to vector<2x128xf32>
    %449 = arith.negf %448 : vector<2x128xf32>
    %450 = math.exp %449 : vector<2x128xf32>
    %cst_118 = arith.constant 1.000000e+00 : f32
    %451 = vector.broadcast %cst_118 : f32 to vector<2x128xf32>
    %452 = arith.addf %451, %450 : vector<2x128xf32>
    %453 = arith.divf %451, %452 : vector<2x128xf32>
    %454 = arith.mulf %445, %396 : vector<2x128xf32>
    %455 = arith.mulf %439, %447 : vector<2x128xf32>
    %456 = arith.addf %454, %455 : vector<2x128xf32>
    %457 = math.tanh %456 : vector<2x128xf32>
    %458 = arith.mulf %453, %457 : vector<2x128xf32>
    %c0_119 = arith.constant 0 : index
    %c0_120 = arith.constant 0 : index
    %459 = vector.load %arg4[%c0_119, %c0_120] : memref<128x512xf32, #tpu.memory_space<vmem>>, vector<128x512xf32>
    %cst_121 = arith.constant dense<0.000000e+00> : vector<2x512xf32>
    %460 = tpu.matmul %458, %459, %cst_121 {dimension_numbers = #tpu.dot_dimension_numbers<[1], [0], [0], [1], [0, 0, 1, 1], [], []>} : vector<2x128xf32>, vector<128x512xf32>, vector<2x512xf32> -> vector<2x512xf32>
    %c0_122 = arith.constant 0 : index
    %c0_123 = arith.constant 0 : index
    %461 = vector.load %arg5[%c0_122, %c0_123] : memref<128x512xf32, #tpu.memory_space<vmem>>, vector<128x512xf32>
    %cst_124 = arith.constant dense<0.000000e+00> : vector<2x512xf32>
    %462 = tpu.matmul %429, %461, %cst_124 {dimension_numbers = #tpu.dot_dimension_numbers<[1], [0], [0], [1], [0, 0, 1, 1], [], []>} : vector<2x128xf32>, vector<128x512xf32>, vector<2x512xf32> -> vector<2x512xf32>
    %463 = arith.addf %460, %462 : vector<2x512xf32>
    %464 = arith.addf %463, %8 : vector<2x512xf32>
    %465 = vector.extract_strided_slice %464 {offsets = [0, 0], sizes = [2, 128], strides = [1, 1]} : vector<2x512xf32> to vector<2x128xf32>
    %466 = arith.negf %465 : vector<2x128xf32>
    %467 = math.exp %466 : vector<2x128xf32>
    %cst_125 = arith.constant 1.000000e+00 : f32
    %468 = vector.broadcast %cst_125 : f32 to vector<2x128xf32>
    %469 = arith.addf %468, %467 : vector<2x128xf32>
    %470 = arith.divf %468, %469 : vector<2x128xf32>
    %471 = vector.extract_strided_slice %464 {offsets = [0, 128], sizes = [2, 128], strides = [1, 1]} : vector<2x512xf32> to vector<2x128xf32>
    %472 = arith.negf %471 : vector<2x128xf32>
    %473 = math.exp %472 : vector<2x128xf32>
    %cst_126 = arith.constant 1.000000e+00 : f32
    %474 = vector.broadcast %cst_126 : f32 to vector<2x128xf32>
    %475 = arith.addf %474, %473 : vector<2x128xf32>
    %476 = arith.divf %474, %475 : vector<2x128xf32>
    %477 = vector.extract_strided_slice %464 {offsets = [0, 256], sizes = [2, 128], strides = [1, 1]} : vector<2x512xf32> to vector<2x128xf32>
    %478 = math.tanh %477 : vector<2x128xf32>
    %479 = vector.extract_strided_slice %464 {offsets = [0, 384], sizes = [2, 128], strides = [1, 1]} : vector<2x512xf32> to vector<2x128xf32>
    %480 = arith.negf %479 : vector<2x128xf32>
    %481 = math.exp %480 : vector<2x128xf32>
    %cst_127 = arith.constant 1.000000e+00 : f32
    %482 = vector.broadcast %cst_127 : f32 to vector<2x128xf32>
    %483 = arith.addf %482, %481 : vector<2x128xf32>
    %484 = arith.divf %482, %483 : vector<2x128xf32>
    %485 = arith.mulf %476, %427 : vector<2x128xf32>
    %486 = arith.mulf %470, %478 : vector<2x128xf32>
    %487 = arith.addf %485, %486 : vector<2x128xf32>
    %488 = math.tanh %487 : vector<2x128xf32>
    %489 = arith.mulf %484, %488 : vector<2x128xf32>
    %c0_128 = arith.constant 0 : index
    %c0_129 = arith.constant 0 : index
    %490 = vector.load %arg7[%c0_128, %c0_129] : memref<128x1xf32, #tpu.memory_space<vmem>>, vector<128x1xf32>
    %cst_130 = arith.constant dense<0.000000e+00> : vector<2x1xf32>
    %491 = tpu.matmul %489, %490, %cst_130 {dimension_numbers = #tpu.dot_dimension_numbers<[1], [0], [0], [1], [0, 0, 1, 1], [], []>} : vector<2x128xf32>, vector<128x1xf32>, vector<2x1xf32> -> vector<2x1xf32>
    %c0_131 = arith.constant 0 : index
    %c0_132 = arith.constant 0 : index
    %492 = vector.load %arg8[%c0_131, %c0_132] : memref<1x1xf32, #tpu.memory_space<vmem>>, vector<1x1xf32>
    %493 = vector.broadcast %492 : vector<1x1xf32> to vector<2x1xf32>
    %494 = arith.addf %491, %493 : vector<2x1xf32>
    %c0_133 = arith.constant 0 : index
    %c0_134 = arith.constant 0 : index
    %495 = vector.load %arg9[%c0_133, %c0_134] : memref<2x1xf32, #tpu.memory_space<vmem>>, vector<2x1xf32>
    tpu.vector_store %arg9[%c0_133, %c0_134], %494 {strides = array<i32>} : memref<2x1xf32, #tpu.memory_space<vmem>>, vector<2x1xf32>,
    return
  }
}

</mosaic_0001>

<bundles_post_ra>
// kernel: tpu_custom_call.1
= control target key start
LH: loop header
LB: loop body
LE: loop exit
PB: predicated region body
PF: predicated region fallthrough
CT: control target
= control target key end

     0   :  { %s8289_s0 = inlined_call_operand.vmem [shape: f32[16,8], index: 0, kind: input, shape index: {}]   ;;  %s8290_s1 = inlined_call_operand.vmem [shape: f32[8,512], index: 1, kind: input, shape index: {}]   ;;  %s8291_s2 = inlined_call_operand.hbm [shape: f32[128,512], index: 2, kind: input, shape index: {}]   ;;  %s8292_s3 = inlined_call_operand.vmem [shape: f32[1,512], index: 3, kind: input, shape index: {}]   ;;  %s8293_s4 = inlined_call_operand.hbm [shape: f32[128,512], index: 4, kind: input, shape index: {}]   ;;  %s8294_s5 = inlined_call_operand.hbm [shape: f32[128,512], index: 5, kind: input, shape index: {}]   ;;  %s8295_s6 = inlined_call_operand.vmem [shape: f32[1,512], index: 6, kind: input, shape index: {}]   ;;  %s8296_s7 = inlined_call_operand.vmem [shape: f32[128,1], index: 7, kind: input, shape index: {}]   ;;  %s8297_s8 = inlined_call_operand.<no memory space> [shape: f32[1,1], index: 8, kind: input, shape index: {}]   ;;  %s8298_s9 = inlined_call_operand.vmem [shape: f32[2,1], index: 9, kind: output, shape index: {}]  }
   0x1   :  { %v14_v0 = vstv %s8297_s8 }
   0x2   :  { %15 = vst [vmem:[#allocation2] sm:$0x1] %v14_v0 }
   0x3   :  { %16 = vsyncpa [#allocation4], 0 }
   0x4   :  { %17 = vsyncpa [#allocation6], 0  ;;  %s41_s13 = sshll.u32 %s8293_s4, 4  ;;  %s4520_s14 = smov [#allocation5]   ;;  %s42_s13 = int_to_ptr.hbm [resolvable:$true] %s41_s13 }
   0x5   :  { %s43_s15 = sshll.u32 %s4520_s14, 4  ;;  %s26_s18 = sshll.u32 %s8291_s2, 4  ;;  %s44_s15 = int_to_ptr.vmem [resolvable:$true] %s43_s15  ;;  %s27_s18 = int_to_ptr.hbm [resolvable:$true] %s26_s18 }
   0x6   :  { %s4521_s19 = smov 512   ;;  %s4522_s20 = smov 32  }
   0x7   :  { %49 = dma.hbm_to_vmem [thread:$0]  %s42_s13, 8192, %s44_s15, [#allocation6], %s4521_s19, %s4521_s19, %s4522_s20  }
   0x8   :  { %s4523_s8 = smov [#allocation3]   ;;  %s54_s24 = sshll.u32 %s8294_s5, 4  ;;  %s55_s24 = int_to_ptr.hbm [resolvable:$true] %s54_s24 }
   0x9   :  { %s28_s21 = sshll.u32 %s4523_s8, 4  ;;  %s4524_s4 = smov [#allocation7]   ;;  %s29_s21 = int_to_ptr.vmem [resolvable:$true] %s28_s21 }
   0xa   :  { %34 = dma.hbm_to_vmem [thread:$0]  %s27_s18, 8192, %s29_s21, [#allocation4], %s4521_s19, %s4521_s19, %s4522_s20  }
   0xb   :  { %s56_s25 = sshll.u32 %s4524_s4, 4  ;;  %s57_s25 = int_to_ptr.vmem [resolvable:$true] %s56_s25 }
   0xc   :  { %62 = dma.hbm_to_vmem [thread:$0]  %s55_s24, 8192, %s57_s25, [#allocation6], %s4521_s19, %s4521_s19, %s4522_s20  }
   0xd   :  { %4516 = dma.done.wait [#allocation4], 8192  }
   0xe   :  { %4517 = vsyncadd [#allocation4], 4294959104 }
   0xf   :  { %4518 = dma.done.wait [#allocation6], 16384  }
  0x10   :  { %4519 = vsyncadd [#allocation6], 4294950912  ;;  %vm97_vm0 = vcmask 64512   ;;  %v83_v1 = vld [vmem:[%s8290_s1] sm:$0xff]  ;;  %v86_v2 = vld [vmem:[%s8290_s1 + $0x18] sm:$0xff] }
  0x11   :  { %v4594_v3 = vld [vmem:[#allocation3 + $0x1e0] sm:$0xff]  ;;  %119 = vmatpush.msra.mxu1 %v83_v1  ;;  %188 = vmatpush.msra.mxu3 %v86_v2  ;;  %v4604_v6 = vld [vmem:[#allocation3 + $0x1f8] sm:$0xff]  ;;  %v85_v7 = vld [vmem:[%s8290_s1 + $0x10] sm:$0xff] }
  0x12   :  { %v4599_v4 = vld [vmem:[%s8289_s0] sm:$0xff]  ;;  %v84_v5 = vld [vmem:[%s8290_s1 + $0x8] sm:$0xff]  ;;  %270 = vmatpush.msra.mxu0 %v4594_v3  ;;  %v4617_v10 = vld [vmem:[#allocation3 + $0x1f0] sm:$0xff]  ;;  %165 = vmatpush.msra.mxu2 %v85_v7 }
  0x13   :  { %3549 = vmatmul.msk.f32.vlgmr.msra.gmra.mxu1 %vm97_vm0, %v4599_v4  ;;  %v4612_v8 = vld [vmem:[#allocation3 + $0x1c0] sm:$0xff]  ;;  %v4614_v9 = vld [vmem:[#allocation3 + $0x1e8] sm:$0xff]  ;;  %330 = vmatpush.msrb.mxu3 %v4604_v6  ;;  %v4619_v11 = vld [vmem:[#allocation3 + $0x1d8] sm:$0xff] }
  0x14   :  { %142 = vmatpush.msrb.mxu1 %v84_v5  ;;  %v4621_v12 = vld [vmem:[#allocation3 + $0x1a0] sm:$0xff]  ;;  %271 = vmatpush.msra.mxu0 %v4612_v8  ;;  %v4624_v13 = vld [vmem:[#allocation3 + $0x1c8] sm:$0xff]  ;;  %v4626_v14 = vld [vmem:[#allocation3 + $0x1d0] sm:$0xff] }
  0x15   :  { %310 = vmatpush.msrb.mxu2 %v4617_v10  ;;  %v4630_v15 = vld [vmem:[#allocation3 + $0x1b8] sm:$0xff]  ;;  %v4632_v16 = vld [vmem:[#allocation3 + $0x180] sm:$0xff]  ;;  %331 = vmatpush.msrb.mxu3 %v4619_v11  ;;  %v4636_v17 = vld [vmem:[#allocation3 + $0x1a8] sm:$0xff] }
  0x16   :  { %290 = vmatpush.msra.mxu1 %v4614_v9  ;;  %272 = vmatpush.msra.mxu0 %v4621_v12  ;;  %v4638_v18 = vld [vmem:[#allocation3 + $0x1b0] sm:$0xff]  ;;  %v4642_v19 = vld [vmem:[#allocation3 + $0x198] sm:$0xff]  ;;  %v4644_v20 = vld [vmem:[#allocation3 + $0x160] sm:$0xff] }
  0x17   :  { %311 = vmatpush.msrb.mxu2 %v4626_v14  ;;  %332 = vmatpush.msrb.mxu3 %v4630_v15  ;;  %v4648_v21 = vld [vmem:[#allocation3 + $0x188] sm:$0xff]  ;;  %v4650_v22 = vld [vmem:[#allocation3 + $0x190] sm:$0xff]  ;;  %v4659_v24 = vld [vmem:[#allocation3 + $0x178] sm:$0xff] }
  0x18   :  { %291 = vmatpush.msra.mxu1 %v4624_v13  ;;  %273 = vmatpush.msra.mxu0 %v4632_v16  ;;  %v4657_v23 = vld [vmem:[%s8289_s0 + $0x8] sm:$0xff]  ;;  %v4669_v27 = vld [vmem:[#allocation3 + $0x170] sm:$0xff]  ;;  %v4671_v28 = vld [vmem:[#allocation3 + $0x158] sm:$0xff] }
  0x19   :  { %312 = vmatpush.msrb.mxu2 %v4638_v18  ;;  %333 = vmatpush.msrb.mxu3 %v4642_v19  ;;  %v4663_v25 = vld [vmem:[#allocation3 + $0x140] sm:$0xff]  ;;  %v4665_v26 = vld [vmem:[#allocation3 + $0x168] sm:$0xff]  ;;  %v4682_v31 = vld [vmem:[#allocation3 + $0x150] sm:$0xff] }
  0x1a   :  { %292 = vmatpush.msra.mxu1 %v4636_v17  ;;  %274 = vmatpush.msra.mxu0 %v4644_v20  ;;  %v4676_v29 = vld [vmem:[#allocation3 + $0x120] sm:$0xff]  ;;  %v4678_v30 = vld [vmem:[#allocation3 + $0x148] sm:$0xff]  ;;  %v4684_v32 = vld [vmem:[#allocation3 + $0x138] sm:$0xff] }
  0x1b   :  { %313 = vmatpush.msrb.mxu2 %v4650_v22  ;;  %3550 = vmatmul.msk.f32.gmra.mxu1 %vm97_vm0, %v4657_v23  ;;  %v4688_v33 = vld [vmem:[#allocation3 + $0x100] sm:$0xff]  ;;  %v4690_v34 = vld [vmem:[#allocation3 + $0x128] sm:$0xff]  ;;  %v4694_v35 = vld [vmem:[#allocation3 + $0x130] sm:$0xff] }
  0x1c   :  { %293 = vmatpush.msra.mxu1 %v4648_v21  ;;  %334 = vmatpush.msrb.mxu3 %v4659_v24  ;;  %v4696_v36 = vld [vmem:[#allocation3 + $0x118] sm:$0xff]  ;;  %v4700_v37 = vld [vmem:[#allocation3 + $0xe0] sm:$0xff]  ;;  %v4704_v38 = vld [vmem:[#allocation3 + $0x108] sm:$0xff] }
  0x1d   :  { %275 = vmatpush.msra.mxu0 %v4663_v25  ;;  %314 = vmatpush.msrb.mxu2 %v4669_v27  ;;  %v4706_v39 = vld [vmem:[#allocation3 + $0x110] sm:$0xff]  ;;  %v4710_v40 = vld [vmem:[#allocation3 + $0xf8] sm:$0xff]  ;;  %v4715_v41 = vld [vmem:[#allocation3 + $0xc0] sm:$0xff] }
  0x1e   :  { %294 = vmatpush.msra.mxu1 %v4665_v26  ;;  %335 = vmatpush.msrb.mxu3 %v4671_v28  ;;  %v4719_v42 = vld [vmem:[#allocation3 + $0xe8] sm:$0xff]  ;;  %v4721_v43 = vld [vmem:[#allocation3 + $0xf0] sm:$0xff]  ;;  %v4726_v44 = vld [vmem:[#allocation3 + $0xd8] sm:$0xff] }
  0x1f   :  { %276 = vmatpush.msra.mxu0 %v4676_v29  ;;  %315 = vmatpush.msrb.mxu2 %v4682_v31  ;;  %v4728_v45 = vld [vmem:[#allocation3 + $0xa0] sm:$0xff]  ;;  %v4733_v46 = vld [vmem:[#allocation3 + $0xc8] sm:$0xff]  ;;  %v4735_v47 = vld [vmem:[#allocation3 + $0xd0] sm:$0xff] }
  0x20   :  { %295 = vmatpush.msra.mxu1 %v4678_v30  ;;  %336 = vmatpush.msrb.mxu3 %v4684_v32  ;;  %v4739_v48 = vld [vmem:[#allocation3 + $0xb8] sm:$0xff]  ;;  %v4741_v49 = vld [vmem:[#allocation3 + $0x80] sm:$0xff]  ;;  %v4745_v50 = vld [vmem:[#allocation3 + $0xa8] sm:$0xff] }
  0x21   :  { %277 = vmatpush.msra.mxu0 %v4688_v33  ;;  %316 = vmatpush.msrb.mxu2 %v4694_v35  ;;  %v4747_v51 = vld [vmem:[#allocation3 + $0xb0] sm:$0xff]  ;;  %v4751_v52 = vld [vmem:[#allocation3 + $0x98] sm:$0xff]  ;;  %v4753_v53 = vld [vmem:[#allocation3 + $0x60] sm:$0xff] }
  0x22   :  { %296 = vmatpush.msra.mxu1 %v4690_v34  ;;  %337 = vmatpush.msrb.mxu3 %v4696_v36  ;;  %v4757_v54 = vld [vmem:[#allocation3 + $0x88] sm:$0xff]  ;;  %v4761_v55 = vld [vmem:[#allocation3 + $0x90] sm:$0xff]  ;;  %v4765_v56 = vld [vmem:[#allocation3 + $0x78] sm:$0xff] }
  0x23   :  { %3555 = vmatmul.msk.f32.vlgmr.msra.gmra.mxu3 %vm97_vm0, %v4599_v4  ;;  %278 = vmatpush.msra.mxu0 %v4700_v37  ;;  %v4770_v57 = vld [vmem:[#allocation3 + $0x40] sm:$0xff]  ;;  %v4772_v58 = vld [vmem:[#allocation3 + $0x68] sm:$0xff]  ;;  %v4777_v59 = vld [vmem:[#allocation3 + $0x70] sm:$0xff] }
  0x24   :  { %297 = vmatpush.msra.mxu1 %v4704_v38  ;;  %317 = vmatpush.msrb.mxu2 %v4706_v39  ;;  %8945 = vst [vmem:[#allocation10_spill] sm:$0xff] %v4770_v57  ;;  %v4779_v60 = vld [vmem:[#allocation3 + $0x58] sm:$0xff]  ;;  %v4784_v61 = vld [vmem:[#allocation3 + $0x20] sm:$0xff]  ;;  %v4786_v62 = vld [vmem:[#allocation3 + $0x48] sm:$0xff] }
  0x25   :  { %3551 = vmatmul.msk.f32.vlgmr.msrb.gmra.mxu1 %vm97_vm0, %v4599_v4  ;;  %338 = vmatpush.msrb.mxu3 %v4710_v40  ;;  %8946 = vst [vmem:[#allocation11_spill] sm:$0xff] %v4779_v60  ;;  %v4790_v63 = vld [vmem:[#allocation3 + $0x50] sm:$0xff]  ;;  %v4792_v0 = vld [vmem:[#allocation3 + $0x38] sm:$0xff]  ;;  %v4796_v1 = vld [vmem:[#allocation3] sm:$0xff] }
  0x26   :  { %3553 = vmatmul.msk.f32.vlgmr.msra.gmra.mxu2 %vm97_vm0, %v4599_v4  ;;  %279 = vmatpush.msra.mxu0 %v4715_v41  ;;  %8947 = vst [vmem:[#allocation12_spill] sm:$0xff] %v4784_v61  ;;  %v4798_v2 = vld [vmem:[#allocation3 + $0x28] sm:$0xff]  ;;  %v4802_v4 = vld [vmem:[#allocation3 + $0x30] sm:$0xff]  ;;  %v4806_v5 = vld [vmem:[#allocation3 + $0x18] sm:$0xff] }
  0x27   :  { %298 = vmatpush.msra.mxu1 %v4719_v42  ;;  %318 = vmatpush.msrb.mxu2 %v4721_v43  ;;  %8948 = vst [vmem:[#allocation13_spill] sm:$0xff] %v4786_v62  ;;  %v4808_v7 = vld [vmem:[#allocation3 + $0x8] sm:$0xff] }
  0x28   :  { %339 = vmatpush.msrb.mxu3 %v4726_v44  ;;  %280 = vmatpush.msra.mxu0 %v4728_v45  ;;  %8949 = vst [vmem:[#allocation14_spill] sm:$0xff] %v4790_v63 }
  0x29   :  { %299 = vmatpush.msra.mxu1 %v4733_v46  ;;  %319 = vmatpush.msrb.mxu2 %v4735_v47  ;;  %8950 = vst [vmem:[#allocation15_spill] sm:$0xff] %v4792_v0 }
  0x2a   :  { %340 = vmatpush.msrb.mxu3 %v4739_v48  ;;  %281 = vmatpush.msra.mxu0 %v4741_v49  ;;  %8951 = vst [vmem:[#allocation16_spill] sm:$0xff] %v4796_v1 }
  0x2b   :  { %300 = vmatpush.msra.mxu1 %v4745_v50  ;;  %320 = vmatpush.msrb.mxu2 %v4747_v51  ;;  %8952 = vst [vmem:[#allocation17_spill] sm:$0xff] %v4798_v2 }
  0x2c   :  { %341 = vmatpush.msrb.mxu3 %v4751_v52  ;;  %282 = vmatpush.msra.mxu0 %v4753_v53  ;;  %8953 = vst [vmem:[#allocation18_spill] sm:$0xff] %v4802_v4 }
  0x2d   :  { %3556 = vmatmul.msk.f32.gmra.mxu3 %vm97_vm0, %v4657_v23  ;;  %301 = vmatpush.msra.mxu1 %v4757_v54  ;;  %8954 = vst [vmem:[#allocation19_spill] sm:$0xff] %v4806_v5 }
  0x2e   :  { %3552 = vmatmul.msk.f32.gmra.mxu1 %vm97_vm0, %v4657_v23  ;;  %321 = vmatpush.msrb.mxu2 %v4761_v55  ;;  %8955 = vst [vmem:[#allocation20_spill] sm:$0xff] %v4808_v7 }
  0x2f   :  { %342 = vmatpush.msrb.mxu3 %v4765_v56  ;;  %3554 = vmatmul.msk.f32.gmra.mxu2 %vm97_vm0, %v4657_v23  ;;  %v8311_v23 = vmov 0.0  }
  0x30   :  { %283 = vmatpush.msra.mxu0 %v4770_v57  ;;  %302 = vmatpush.msra.mxu1 %v4772_v58  ;;  %v5058_v57 = vld [vmem:[#allocation5 + $0x198] sm:$0xff] }
  0x31   :  { %322 = vmatpush.msrb.mxu2 %v4777_v59  ;;  %343 = vmatpush.msrb.mxu3 %v4779_v60  ;;  %v4816_v60 = vld [vmem:[#allocation7 + $0x1e0] sm:$0xff]  ;;  %9037 = vst [vmem:[#allocation101_spill] sm:$0xff] %v5058_v57 }
  0x32   :  { %284 = vmatpush.msra.mxu0 %v4784_v61  ;;  %303 = vmatpush.msra.mxu1 %v4786_v62  ;;  %v4814_v61 = vld [vmem:[#allocation3 + $0x10] sm:$0xff]  ;;  %8957 = vst [vmem:[#allocation22_spill] sm:$0xff] %v4816_v60  ;;  %v4842_v62 = vld [vmem:[#allocation7 + $0x1a0] sm:$0xff] }
  0x33   :  { %323 = vmatpush.msrb.mxu2 %v4790_v63  ;;  %344 = vmatpush.msrb.mxu3 %v4792_v0  ;;  %8956 = vst [vmem:[#allocation21_spill] sm:$0xff] %v4814_v61  ;;  %v4820_v0 = vld [vmem:[#allocation7 + $0x1e8] sm:$0xff] }
  0x34   :  { %285 = vmatpush.msra.mxu0 %v4796_v1  ;;  %304 = vmatpush.msra.mxu1 %v4798_v2  ;;  %8958 = vst [vmem:[#allocation23_spill] sm:$0xff] %v4820_v0  ;;  %v4824_v1 = vld [vmem:[#allocation7 + $0x1f0] sm:$0xff]  ;;  %v4826_v2 = vld [vmem:[#allocation7 + $0x1f8] sm:$0xff]  ;;  %v4832_v63 = vld [vmem:[#allocation7 + $0x1c8] sm:$0xff] }
  0x35   :  { %286 = vmatmul.f32.vlgmr.msra.gmra.mxu0 %v8311_v23  ;;  %324 = vmatpush.msrb.mxu2 %v4802_v4  ;;  %8959 = vst [vmem:[#allocation24_spill] sm:$0xff] %v4824_v1  ;;  %v4830_v4 = vld [vmem:[#allocation7 + $0x1c0] sm:$0xff] }
  0x36   :  { %345 = vmatpush.msrb.mxu3 %v4806_v5  ;;  %305 = vmatpush.msra.mxu1 %v4808_v7  ;;  %8960 = vst [vmem:[#allocation25_spill] sm:$0xff] %v4826_v2  ;;  %v4836_v5 = vld [vmem:[#allocation7 + $0x1d0] sm:$0xff]  ;;  %v4838_v7 = vld [vmem:[#allocation7 + $0x1d8] sm:$0xff] }
  0x37   :  { %346 = vmatmul.f32.vlgmr.msrb.gmra.mxu3 %v8311_v23  ;;  %306 = vmatmul.f32.vlgmr.msra.gmra.mxu1 %v8311_v23  ;;  %8961 = vst [vmem:[#allocation26_spill] sm:$0xff] %v4830_v4 }
  0x38   :  { %325 = vmatpush.msrb.mxu2 %v4814_v61  ;;  %545 = vmatpush.msrb.mxu0 %v4816_v60  ;;  %8962 = vst [vmem:[#allocation27_spill] sm:$0xff] %v4832_v63  ;;  %v4844_v61 = vld [vmem:[#allocation7 + $0x1a8] sm:$0xff]  ;;  %v4848_v60 = vld [vmem:[#allocation7 + $0x1b0] sm:$0xff] }
  0x39   :  { %326 = vmatmul.f32.vlgmr.msrb.gmra.mxu2 %v8311_v23  ;;  %565 = vmatpush.msrb.mxu1 %v4820_v0  ;;  %8963 = vst [vmem:[#allocation28_spill] sm:$0xff] %v4836_v5  ;;  %v4850_v23 = vld [vmem:[#allocation7 + $0x1b8] sm:$0xff]  ;;  %v4854_v0 = vld [vmem:[#allocation7 + $0x180] sm:$0xff] }
  0x3a   :  { %8964 = vst [vmem:[#allocation29_spill] sm:$0xff] %v4838_v7  ;;  %585 = vmatpush.msra.mxu2 %v4824_v1  ;;  %605 = vmatpush.msra.mxu3 %v4826_v2  ;;  %v4856_v1 = vld [vmem:[#allocation7 + $0x188] sm:$0xff]  ;;  %v4860_v2 = vld [vmem:[#allocation7 + $0x190] sm:$0xff] }
  0x3b   :  { %8965 = vst [vmem:[#allocation30_spill] sm:$0xff] %v4842_v62  ;;  %546 = vmatpush.msrb.mxu0 %v4830_v4  ;;  %566 = vmatpush.msrb.mxu1 %v4832_v63  ;;  %v4862_v4 = vld [vmem:[#allocation7 + $0x198] sm:$0xff]  ;;  %v4866_v63 = vld [vmem:[#allocation7 + $0x160] sm:$0xff] }
  0x3c   :  { %8966 = vst [vmem:[#allocation31_spill] sm:$0xff] %v4844_v61  ;;  %586 = vmatpush.msra.mxu2 %v4836_v5  ;;  %606 = vmatpush.msra.mxu3 %v4838_v7  ;;  %v4868_v5 = vld [vmem:[#allocation7 + $0x168] sm:$0xff]  ;;  %v4872_v7 = vld [vmem:[#allocation7 + $0x170] sm:$0xff] }
  0x3d   :  { %8967 = vst [vmem:[#allocation32_spill] sm:$0xff] %v4848_v60  ;;  %547 = vmatpush.msrb.mxu0 %v4842_v62  ;;  %567 = vmatpush.msrb.mxu1 %v4844_v61  ;;  %v4874_v62 = vld [vmem:[#allocation7 + $0x178] sm:$0xff] }
  0x3e   :  { %8968 = vst [vmem:[#allocation33_spill] sm:$0xff] %v4850_v23  ;;  %587 = vmatpush.msra.mxu2 %v4848_v60  ;;  %607 = vmatpush.msra.mxu3 %v4850_v23  ;;  %v4882_v23 = vld [vmem:[#allocation7 + $0x140] sm:$0xff]  ;;  %v4910_v60 = vld [vmem:[#allocation7 + $0x118] sm:$0xff] }
  0x3f   :  { %8969 = vst [vmem:[#allocation34_spill] sm:$0xff] %v4854_v0  ;;  %548 = vmatpush.msrb.mxu0 %v4854_v0  ;;  %568 = vmatpush.msrb.mxu1 %v4856_v1  ;;  %v4884_v0 = vld [vmem:[#allocation7 + $0x148] sm:$0xff] }
  0x40   :  { %8970 = vst [vmem:[#allocation35_spill] sm:$0xff] %v4856_v1  ;;  %588 = vmatpush.msra.mxu2 %v4860_v2  ;;  %608 = vmatpush.msra.mxu3 %v4862_v4  ;;  %v4886_v1 = vld [vmem:[#allocation7 + $0x150] sm:$0xff] }
  0x41   :  { %8971 = vst [vmem:[#allocation36_spill] sm:$0xff] %v4860_v2  ;;  %549 = vmatpush.msrb.mxu0 %v4866_v63  ;;  %569 = vmatpush.msrb.mxu1 %v4868_v5  ;;  %v4890_v2 = vld [vmem:[#allocation7 + $0x158] sm:$0xff] }
  0x42   :  { %8972 = vst [vmem:[#allocation37_spill] sm:$0xff] %v4862_v4  ;;  %589 = vmatpush.msra.mxu2 %v4872_v7  ;;  %609 = vmatpush.msra.mxu3 %v4874_v62  ;;  %v4892_v4 = vld [vmem:[#allocation7 + $0x120] sm:$0xff] }
  0x43   :  { %8973 = vst [vmem:[#allocation38_spill] sm:$0xff] %v4866_v63  ;;  %550 = vmatpush.msrb.mxu0 %v4882_v23  ;;  %570 = vmatpush.msrb.mxu1 %v4884_v0  ;;  %v4894_v63 = vld [vmem:[#allocation7 + $0x128] sm:$0xff] }
  0x44   :  { %8974 = vst [vmem:[#allocation39_spill] sm:$0xff] %v4868_v5  ;;  %590 = vmatpush.msra.mxu2 %v4886_v1  ;;  %610 = vmatpush.msra.mxu3 %v4890_v2  ;;  %v4902_v5 = vld [vmem:[#allocation7 + $0x100] sm:$0xff] }
  0x45   :  { %8975 = vst [vmem:[#allocation40_spill] sm:$0xff] %v4872_v7  ;;  %v4900_v7 = vld [vmem:[#allocation7 + $0x138] sm:$0xff]  ;;  %551 = vmatpush.msrb.mxu0 %v4892_v4  ;;  %571 = vmatpush.msrb.mxu1 %v4894_v63 }
  0x46   :  { %8976 = vst [vmem:[#allocation41_spill] sm:$0xff] %v4874_v62  ;;  %v4898_v62 = vld [vmem:[#allocation7 + $0x130] sm:$0xff]  ;;  %611 = vmatpush.msra.mxu3 %v4900_v7 }
  0x47   :  { %8977 = vst [vmem:[#allocation42_spill] sm:$0xff] %v4882_v23  ;;  %v4908_v23 = vld [vmem:[#allocation7 + $0x110] sm:$0xff]  ;;  %591 = vmatpush.msra.mxu2 %v4898_v62  ;;  %552 = vmatpush.msrb.mxu0 %v4902_v5 }
  0x48   :  { %8978 = vst [vmem:[#allocation43_spill] sm:$0xff] %v4884_v0  ;;  %v4906_v0 = vld [vmem:[#allocation7 + $0x108] sm:$0xff]  ;;  %612 = vmatpush.msra.mxu3 %v4910_v60 }
  0x49   :  { %8979 = vst [vmem:[#allocation44_spill] sm:$0xff] %v4886_v1  ;;  %v4916_v1 = vld [vmem:[#allocation7 + $0xe8] sm:$0xff]  ;;  %572 = vmatpush.msrb.mxu1 %v4906_v0  ;;  %592 = vmatpush.msra.mxu2 %v4908_v23 }
  0x4a   :  { %8980 = vst [vmem:[#allocation45_spill] sm:$0xff] %v4890_v2  ;;  %v4914_v2 = vld [vmem:[#allocation7 + $0xe0] sm:$0xff] }
  0x4b   :  { %8981 = vst [vmem:[#allocation46_spill] sm:$0xff] %v4892_v4  ;;  %v4920_v4 = vld [vmem:[#allocation7 + $0xf0] sm:$0xff]  ;;  %553 = vmatpush.msrb.mxu0 %v4914_v2  ;;  %573 = vmatpush.msrb.mxu1 %v4916_v1 }
  0x4c   :  { %8982 = vst [vmem:[#allocation47_spill] sm:$0xff] %v4894_v63  ;;  %v4922_v63 = vld [vmem:[#allocation7 + $0xf8] sm:$0xff]  ;;  %593 = vmatpush.msra.mxu2 %v4920_v4 }
  0x4d   :  { %8983 = vst [vmem:[#allocation48_spill] sm:$0xff] %v4898_v62  ;;  %613 = vmatpush.msra.mxu3 %v4922_v63  ;;  %v4958_v62 = vld [vmem:[#allocation7 + $0x98] sm:$0xff] }
  0x4e   :  { %8984 = vst [vmem:[#allocation49_spill] sm:$0xff] %v4900_v7  ;;  %v4930_v7 = vld [vmem:[#allocation7 + $0xc0] sm:$0xff] }
  0x4f   :  { %8985 = vst [vmem:[#allocation50_spill] sm:$0xff] %v4902_v5  ;;  %v4932_v5 = vld [vmem:[#allocation7 + $0xc8] sm:$0xff]  ;;  %554 = vmatpush.msrb.mxu0 %v4930_v7 }
  0x50   :  { %8986 = vst [vmem:[#allocation51_spill] sm:$0xff] %v4906_v0  ;;  %v4934_v0 = vld [vmem:[#allocation7 + $0xd0] sm:$0xff]  ;;  %574 = vmatpush.msrb.mxu1 %v4932_v5 }
  0x51   :  { %8987 = vst [vmem:[#allocation52_spill] sm:$0xff] %v4908_v23  ;;  %v4938_v23 = vld [vmem:[#allocation7 + $0xd8] sm:$0xff]  ;;  %594 = vmatpush.msra.mxu2 %v4934_v0 }
  0x52   :  { %8988 = vst [vmem:[#allocation53_spill] sm:$0xff] %v4910_v60  ;;  %v4940_v60 = vld [vmem:[#allocation7 + $0xa0] sm:$0xff]  ;;  %614 = vmatpush.msra.mxu3 %v4938_v23 }
  0x53   :  { %8989 = vst [vmem:[#allocation54_spill] sm:$0xff] %v4914_v2  ;;  %v4942_v2 = vld [vmem:[#allocation7 + $0xa8] sm:$0xff]  ;;  %555 = vmatpush.msrb.mxu0 %v4940_v60 }
  0x54   :  { %8990 = vst [vmem:[#allocation55_spill] sm:$0xff] %v4916_v1  ;;  %v4950_v1 = vld [vmem:[#allocation7 + $0x80] sm:$0xff]  ;;  %575 = vmatpush.msrb.mxu1 %v4942_v2 }
  0x55   :  { %8991 = vst [vmem:[#allocation56_spill] sm:$0xff] %v4920_v4  ;;  %v4948_v4 = vld [vmem:[#allocation7 + $0xb8] sm:$0xff]  ;;  %556 = vmatpush.msrb.mxu0 %v4950_v1 }
  0x56   :  { %8992 = vst [vmem:[#allocation57_spill] sm:$0xff] %v4922_v63  ;;  %v4946_v63 = vld [vmem:[#allocation7 + $0xb0] sm:$0xff]  ;;  %615 = vmatpush.msra.mxu3 %v4948_v4 }
  0x57   :  { %8993 = vst [vmem:[#allocation58_spill] sm:$0xff] %v4930_v7  ;;  %v4956_v7 = vld [vmem:[#allocation7 + $0x90] sm:$0xff]  ;;  %595 = vmatpush.msra.mxu2 %v4946_v63 }
  0x58   :  { %8994 = vst [vmem:[#allocation59_spill] sm:$0xff] %v4932_v5  ;;  %v4954_v5 = vld [vmem:[#allocation7 + $0x88] sm:$0xff]  ;;  %616 = vmatpush.msra.mxu3 %v4958_v62 }
  0x59   :  { %8995 = vst [vmem:[#allocation60_spill] sm:$0xff] %v4934_v0  ;;  %v4964_v0 = vld [vmem:[#allocation7 + $0x68] sm:$0xff]  ;;  %576 = vmatpush.msrb.mxu1 %v4954_v5  ;;  %596 = vmatpush.msra.mxu2 %v4956_v7 }
  0x5a   :  { %8996 = vst [vmem:[#allocation61_spill] sm:$0xff] %v4938_v23  ;;  %v4962_v23 = vld [vmem:[#allocation7 + $0x60] sm:$0xff] }
  0x5b   :  { %8997 = vst [vmem:[#allocation62_spill] sm:$0xff] %v4940_v60  ;;  %v4968_v60 = vld [vmem:[#allocation7 + $0x70] sm:$0xff]  ;;  %557 = vmatpush.msrb.mxu0 %v4962_v23  ;;  %577 = vmatpush.msrb.mxu1 %v4964_v0 }
  0x5c   :  { %8998 = vst [vmem:[#allocation63_spill] sm:$0xff] %v4942_v2  ;;  %v4970_v2 = vld [vmem:[#allocation7 + $0x78] sm:$0xff]  ;;  %597 = vmatpush.msra.mxu2 %v4968_v60 }
  0x5d   :  { %8999 = vst [vmem:[#allocation64_spill] sm:$0xff] %v4946_v63  ;;  %617 = vmatpush.msra.mxu3 %v4970_v2  ;;  %v5048_v63 = vld [vmem:[#allocation5 + $0x180] sm:$0xff] }
  0x5e   :  { %9000 = vst [vmem:[#allocation65_spill] sm:$0xff] %v4948_v4  ;;  %v4978_v4 = vld [vmem:[#allocation7 + $0x40] sm:$0xff] }
  0x5f   :  { %9001 = vst [vmem:[#allocation66_spill] sm:$0xff] %v4950_v1  ;;  %v4980_v1 = vld [vmem:[#allocation7 + $0x48] sm:$0xff]  ;;  %558 = vmatpush.msrb.mxu0 %v4978_v4 }
  0x60   :  { %9002 = vst [vmem:[#allocation67_spill] sm:$0xff] %v4954_v5  ;;  %v4982_v5 = vld [vmem:[#allocation7 + $0x50] sm:$0xff]  ;;  %578 = vmatpush.msrb.mxu1 %v4980_v1 }
  0x61   :  { %9003 = vst [vmem:[#allocation68_spill] sm:$0xff] %v4956_v7  ;;  %v4986_v7 = vld [vmem:[#allocation7 + $0x58] sm:$0xff]  ;;  %598 = vmatpush.msra.mxu2 %v4982_v5 }
  0x62   :  { %9004 = vst [vmem:[#allocation69_spill] sm:$0xff] %v4958_v62  ;;  %v4988_v62 = vld [vmem:[#allocation7 + $0x20] sm:$0xff]  ;;  %618 = vmatpush.msra.mxu3 %v4986_v7 }
  0x63   :  { %9005 = vst [vmem:[#allocation70_spill] sm:$0xff] %v4962_v23  ;;  %v4990_v23 = vld [vmem:[#allocation7 + $0x28] sm:$0xff]  ;;  %559 = vmatpush.msrb.mxu0 %v4988_v62 }
  0x64   :  { %9006 = vst [vmem:[#allocation71_spill] sm:$0xff] %v4964_v0  ;;  %579 = vmatpush.msrb.mxu1 %v4990_v23  ;;  %v5006_v0 = vld [vmem:[#allocation7 + $0x10] sm:$0xff] }
  0x65   :  { %9007 = vst [vmem:[#allocation72_spill] sm:$0xff] %v4968_v60  ;;  %v4996_v60 = vld [vmem:[#allocation7 + $0x38] sm:$0xff] }
  0x66   :  { %9008 = vst [vmem:[#allocation73_spill] sm:$0xff] %v4970_v2  ;;  %v4994_v2 = vld [vmem:[#allocation7 + $0x30] sm:$0xff]  ;;  %619 = vmatpush.msra.mxu3 %v4996_v60 }
  0x67   :  { %9009 = vst [vmem:[#allocation74_spill] sm:$0xff] %v4978_v4  ;;  %599 = vmatpush.msra.mxu2 %v4994_v2  ;;  %v5004_v4 = vld [vmem:[#allocation7 + $0x8] sm:$0xff] }
  0x68   :  { %9010 = vst [vmem:[#allocation75_spill] sm:$0xff] %v4980_v1  ;;  %v5002_v1 = vld [vmem:[#allocation7] sm:$0xff]  ;;  %580 = vmatpush.msrb.mxu1 %v5004_v4 }
  0x69   :  { %9011 = vst [vmem:[#allocation76_spill] sm:$0xff] %v4982_v5  ;;  %560 = vmatpush.msrb.mxu0 %v5002_v1  ;;  %v5012_v5 = vld [vmem:[#allocation5 + $0x1e0] sm:$0xff]  ;;  %600 = vmatpush.msra.mxu2 %v5006_v0 }
  0x6a   :  { %9012 = vst [vmem:[#allocation77_spill] sm:$0xff] %v4986_v7  ;;  %v5010_v7 = vld [vmem:[#allocation7 + $0x18] sm:$0xff] }
  0x6b   :  { %9013 = vst [vmem:[#allocation78_spill] sm:$0xff] %v4988_v62  ;;  %v5014_v62 = vld [vmem:[#allocation5 + $0x1e8] sm:$0xff]  ;;  %620 = vmatpush.msra.mxu3 %v5010_v7  ;;  %625 = vmatpush.msra.mxu0 %v5012_v5 }
  0x6c   :  { %9014 = vst [vmem:[#allocation79_spill] sm:$0xff] %v4990_v23  ;;  %645 = vmatpush.msra.mxu1 %v5014_v62  ;;  %v5030_v23 = vld [vmem:[#allocation5 + $0x1d0] sm:$0xff] }
  0x6d   :  { %9015 = vst [vmem:[#allocation80_spill] sm:$0xff] %v4994_v2  ;;  %v5020_v2 = vld [vmem:[#allocation5 + $0x1f8] sm:$0xff] }
  0x6e   :  { %9016 = vst [vmem:[#allocation81_spill] sm:$0xff] %v4996_v60  ;;  %v5018_v60 = vld [vmem:[#allocation5 + $0x1f0] sm:$0xff]  ;;  %685 = vmatpush.msrb.mxu3 %v5020_v2 }
  0x6f   :  { %9017 = vst [vmem:[#allocation82_spill] sm:$0xff] %v5002_v1  ;;  %665 = vmatpush.msrb.mxu2 %v5018_v60  ;;  %v5028_v1 = vld [vmem:[#allocation5 + $0x1c8] sm:$0xff] }
  0x70   :  { %9018 = vst [vmem:[#allocation83_spill] sm:$0xff] %v5004_v4  ;;  %v5026_v4 = vld [vmem:[#allocation5 + $0x1c0] sm:$0xff]  ;;  %646 = vmatpush.msra.mxu1 %v5028_v1 }
  0x71   :  { %9019 = vst [vmem:[#allocation84_spill] sm:$0xff] %v5006_v0  ;;  %v9028_v0 = vmov 0.0   ;;  %626 = vmatpush.msra.mxu0 %v5026_v4  ;;  %666 = vmatpush.msrb.mxu2 %v5030_v23 }
  0x72   :  { %9020 = vst [vmem:[#allocation85_spill] sm:$0xff] %v5010_v7  ;;  %561 = vmatmul.f32.vlgmr.msrb.gmra.mxu0 %v9028_v0  ;;  %581 = vmatmul.f32.vlgmr.msrb.gmra.mxu1 %v9028_v0  ;;  %v5046_v7 = vld [vmem:[#allocation5 + $0x1b8] sm:$0xff] }
  0x73   :  { %9021 = vst [vmem:[#allocation86_spill] sm:$0xff] %v5012_v5  ;;  %v5036_v5 = vld [vmem:[#allocation5 + $0x1d8] sm:$0xff]  ;;  %601 = vmatmul.f32.vlgmr.msra.gmra.mxu2 %v9028_v0  ;;  %621 = vmatmul.f32.vlgmr.msra.gmra.mxu3 %v9028_v0  ;;  %v5146_v0 = vld [vmem:[#allocation5 + $0xb0] sm:$0xff] }
  0x74   :  { %9022 = vst [vmem:[#allocation87_spill] sm:$0xff] %v5014_v62  ;;  %v5038_v62 = vld [vmem:[#allocation5 + $0x1a0] sm:$0xff]  ;;  %686 = vmatpush.msrb.mxu3 %v5036_v5 }
  0x75   :  { %9023 = vst [vmem:[#allocation88_spill] sm:$0xff] %v5018_v60  ;;  %v5040_v60 = vld [vmem:[#allocation5 + $0x1a8] sm:$0xff]  ;;  %627 = vmatpush.msra.mxu0 %v5038_v62 }
  0x76   :  { %9024 = vst [vmem:[#allocation89_spill] sm:$0xff] %v5020_v2  ;;  %v5044_v2 = vld [vmem:[#allocation5 + $0x1b0] sm:$0xff]  ;;  %647 = vmatpush.msra.mxu1 %v5040_v60  ;;  %687 = vmatpush.msrb.mxu3 %v5046_v7 }
  0x77   :  { %9025 = vst [vmem:[#allocation90_spill] sm:$0xff] %v5026_v4  ;;  %v5056_v4 = vld [vmem:[#allocation5 + $0x190] sm:$0xff]  ;;  %667 = vmatpush.msrb.mxu2 %v5044_v2  ;;  %628 = vmatpush.msra.mxu0 %v5048_v63 }
  0x78   :  { %9026 = vst [vmem:[#allocation91_spill] sm:$0xff] %v5028_v1  ;;  %v5054_v1 = vld [vmem:[#allocation5 + $0x188] sm:$0xff]  ;;  %688 = vmatpush.msrb.mxu3 %v5058_v57  ;;  %v5082_v57 = vld [vmem:[#allocation5 + $0x150] sm:$0xff] }
  0x79   :  { %9027 = vst [vmem:[#allocation92_spill] sm:$0xff] %v5030_v23  ;;  %648 = vmatpush.msra.mxu1 %v5054_v1  ;;  %668 = vmatpush.msrb.mxu2 %v5056_v4 }
  0x7a   :  { %9029 = vst [vmem:[#allocation93_spill] sm:$0xff] %v5036_v5  ;;  %v5070_v5 = vld [vmem:[#allocation5 + $0x170] sm:$0xff] }
  0x7b   :  { %9030 = vst [vmem:[#allocation94_spill] sm:$0xff] %v5038_v62  ;;  %v5066_v62 = vld [vmem:[#allocation5 + $0x160] sm:$0xff]  ;;  %669 = vmatpush.msrb.mxu2 %v5070_v5 }
  0x7c   :  { %9031 = vst [vmem:[#allocation95_spill] sm:$0xff] %v5040_v60  ;;  %v5068_v60 = vld [vmem:[#allocation5 + $0x168] sm:$0xff]  ;;  %629 = vmatpush.msra.mxu0 %v5066_v62 }
  0x7d   :  { %9032 = vst [vmem:[#allocation96_spill] sm:$0xff] %v5044_v2  ;;  %649 = vmatpush.msra.mxu1 %v5068_v60  ;;  %v5074_v2 = vld [vmem:[#allocation5 + $0x178] sm:$0xff]  ;;  %670 = vmatpush.msrb.mxu2 %v5082_v57 }
  0x7e   :  { %9033 = vst [vmem:[#allocation97_spill] sm:$0xff] %v5046_v7  ;;  %689 = vmatpush.msrb.mxu3 %v5074_v2  ;;  %v5203_v7 = vld [vmem:[%s8292_s3] sm:$0xf] }
  0x7f   :  { %9034 = vst [vmem:[#allocation98_spill] sm:$0xff] %v5048_v63  ;;  %v5086_v63 = vld [vmem:[#allocation5 + $0x158] sm:$0xff] }
  0x80   :  { %9035 = vst [vmem:[#allocation99_spill] sm:$0xff] %v5054_v1  ;;  %v5078_v1 = vld [vmem:[#allocation5 + $0x140] sm:$0xff]  ;;  %690 = vmatpush.msrb.mxu3 %v5086_v63 }
  0x81   :  { %9036 = vst [vmem:[#allocation100_spill] sm:$0xff] %v5056_v4  ;;  %v5080_v4 = vld [vmem:[#allocation5 + $0x148] sm:$0xff]  ;;  %630 = vmatpush.msra.mxu0 %v5078_v1 }
  0x82   :  { %9038 = vst [vmem:[#allocation102_spill] sm:$0xff] %v5066_v62  ;;  %650 = vmatpush.msra.mxu1 %v5080_v4  ;;  %v5098_v62 = vld [vmem:[#allocation5 + $0x138] sm:$0xff] }
  0x83   :  { %9039 = vst [vmem:[#allocation103_spill] sm:$0xff] %v5068_v60  ;;  %v5090_v60 = vld [vmem:[#allocation5 + $0x120] sm:$0xff]  ;;  %691 = vmatpush.msrb.mxu3 %v5098_v62 }
  0x84   :  { %9040 = vst [vmem:[#allocation104_spill] sm:$0xff] %v5070_v5  ;;  %v5092_v5 = vld [vmem:[#allocation5 + $0x128] sm:$0xff]  ;;  %631 = vmatpush.msra.mxu0 %v5090_v60 }
  0x85   :  { %9041 = vst [vmem:[#allocation105_spill] sm:$0xff] %v5074_v2  ;;  %v5094_v2 = vld [vmem:[#allocation5 + $0x130] sm:$0xff]  ;;  %651 = vmatpush.msra.mxu1 %v5092_v5 }
  0x86   :  { %9042 = vst [vmem:[#allocation106_spill] sm:$0xff] %v5078_v1  ;;  %671 = vmatpush.msrb.mxu2 %v5094_v2 }
  0x87   :  { %9043 = vst [vmem:[#allocation107_spill] sm:$0xff] %v5080_v4  ;;  %v5102_v4 = vld [vmem:[#allocation5 + $0x100] sm:$0xff] }
  0x88   :  { %9044 = vst [vmem:[#allocation108_spill] sm:$0xff] %v5082_v57  ;;  %v5104_v57 = vld [vmem:[#allocation5 + $0x108] sm:$0xff]  ;;  %632 = vmatpush.msra.mxu0 %v5102_v4 }
  0x89   :  { %9045 = vst [vmem:[#allocation109_spill] sm:$0xff] %v5086_v63  ;;  %v5106_v63 = vld [vmem:[#allocation5 + $0x110] sm:$0xff]  ;;  %652 = vmatpush.msra.mxu1 %v5104_v57 }
  0x8a   :  { %9046 = vst [vmem:[#allocation110_spill] sm:$0xff] %v5090_v60  ;;  %v5112_v60 = vld [vmem:[#allocation5 + $0x118] sm:$0xff]  ;;  %672 = vmatpush.msrb.mxu2 %v5106_v63 }
  0x8b   :  { %9047 = vst [vmem:[#allocation111_spill] sm:$0xff] %v5092_v5  ;;  %692 = vmatpush.msrb.mxu3 %v5112_v60  ;;  %v5120_v5 = vld [vmem:[#allocation5 + $0xf0] sm:$0xff] }
  0x8c   :  { %9048 = vst [vmem:[#allocation112_spill] sm:$0xff] %v5094_v2  ;;  %v5116_v2 = vld [vmem:[#allocation5 + $0xe0] sm:$0xff]  ;;  %673 = vmatpush.msrb.mxu2 %v5120_v5 }
  0x8d   :  { %9049 = vst [vmem:[#allocation113_spill] sm:$0xff] %v5098_v62  ;;  %v5118_v62 = vld [vmem:[#allocation5 + $0xe8] sm:$0xff]  ;;  %633 = vmatpush.msra.mxu0 %v5116_v2 }
  0x8e   :  { %9050 = vst [vmem:[#allocation114_spill] sm:$0xff] %v5102_v4  ;;  %653 = vmatpush.msra.mxu1 %v5118_v62  ;;  %v5176_v4 = vld [vmem:[#allocation5 + $0x78] sm:$0xff] }
  0x8f   :  { %9051 = vst [vmem:[#allocation115_spill] sm:$0xff] %v5104_v57  ;;  %v5134_v57 = vld [vmem:[#allocation5 + $0xd0] sm:$0xff] }
  0x90   :  { %v5050_v61 = vpop.f32.mrf.mxu1  ;;  %9052 = vst [vmem:[#allocation116_spill] sm:$0xff] %v5106_v63  ;;  %v5132_v63 = vld [vmem:[#allocation5 + $0xc8] sm:$0xff]  ;;  %674 = vmatpush.msrb.mxu2 %v5134_v57 }
  0x91   :  { %9054 = vst [vmem:[#allocation118_spill] sm:$0xff] %v5112_v60  ;;  %v5130_v60 = vld [vmem:[#allocation5 + $0xc0] sm:$0xff]  ;;  %654 = vmatpush.msra.mxu1 %v5132_v63 }
  0x92   :  { %9055 = vst [vmem:[#allocation119_spill] sm:$0xff] %v5116_v2  ;;  %634 = vmatpush.msra.mxu0 %v5130_v60  ;;  %v5150_v2 = vld [vmem:[#allocation5 + $0xb8] sm:$0xff]  ;;  %675 = vmatpush.msrb.mxu2 %v5146_v0 }
  0x93   :  { %9056 = vst [vmem:[#allocation120_spill] sm:$0xff] %v5118_v62  ;;  %v5138_v62 = vld [vmem:[#allocation5 + $0xd8] sm:$0xff] }
  0x94   :  { %9057 = vst [vmem:[#allocation121_spill] sm:$0xff] %v5120_v5  ;;  %v5144_v5 = vld [vmem:[#allocation5 + $0xa8] sm:$0xff] }
  0x95   :  { %9059 = vst [vmem:[#allocation123_spill] sm:$0xff] %v5130_v60  ;;  %655 = vmatpush.msra.mxu1 %v5144_v5 }
  0x96   :  { %9060 = vst [vmem:[#allocation124_spill] sm:$0xff] %v5132_v63  ;;  %v5160_v63 = vld [vmem:[#allocation5 + $0x90] sm:$0xff] }
  0x97   :  { %9061 = vst [vmem:[#allocation125_spill] sm:$0xff] %v5134_v57  ;;  %v5156_v57 = vld [vmem:[#allocation5 + $0x80] sm:$0xff]  ;;  %676 = vmatpush.msrb.mxu2 %v5160_v63 }
  0x98   :  { %v5108_v1 = vpop.f32.mrf.mxu1  ;;  %9062 = vst [vmem:[#allocation126_spill] sm:$0xff] %v5138_v62 }
  0x99   :  { %9053 = vst [vmem:[#allocation117_spill] sm:$0xff] %v5108_v1  ;;  %v5124_v1 = vld [vmem:[#allocation5 + $0xf8] sm:$0xff] }
  0x9a   :  { %9058 = vst [vmem:[#allocation122_spill] sm:$0xff] %v5124_v1  ;;  %693 = vmatpush.msrb.mxu3 %v5124_v1  ;;  %v5142_v1 = vld [vmem:[#allocation5 + $0xa0] sm:$0xff] }
  0x9b   :  { %9063 = vst [vmem:[#allocation127_spill] sm:$0xff] %v5142_v1  ;;  %635 = vmatpush.msra.mxu0 %v5142_v1  ;;  %v5164_v1 = vld [vmem:[#allocation5 + $0x98] sm:$0xff] }
  0x9c   :  { %694 = vmatpush.msrb.mxu3 %v5138_v62  ;;  %9064 = vst [vmem:[#allocation128_spill] sm:$0xff] %v5144_v5  ;;  %v5158_v62 = vld [vmem:[#allocation5 + $0x88] sm:$0xff]  ;;  %v5168_v5 = vld [vmem:[#allocation5 + $0x60] sm:$0xff] }
  0x9d   :  { %9065 = vst [vmem:[#allocation129_spill] sm:$0xff] %v5146_v0  ;;  %636 = vmatpush.msra.mxu0 %v5156_v57  ;;  %656 = vmatpush.msra.mxu1 %v5158_v62  ;;  %v5170_v0 = vld [vmem:[#allocation5 + $0x68] sm:$0xff] }
  0x9e   :  { %9066 = vst [vmem:[#allocation130_spill] sm:$0xff] %v5150_v2  ;;  %695 = vmatpush.msrb.mxu3 %v5150_v2  ;;  %v5172_v2 = vld [vmem:[#allocation5 + $0x70] sm:$0xff] }
  0x9f   :  { %9067 = vst [vmem:[#allocation131_spill] sm:$0xff] %v5156_v57  ;;  %637 = vmatpush.msra.mxu0 %v5168_v5  ;;  %657 = vmatpush.msra.mxu1 %v5170_v0 }
  0xa0   :  { %9068 = vst [vmem:[#allocation132_spill] sm:$0xff] %v5158_v62  ;;  %696 = vmatpush.msrb.mxu3 %v5164_v1  ;;  %677 = vmatpush.msrb.mxu2 %v5172_v2  ;;  %v5186_v62 = vld [vmem:[#allocation5 + $0x50] sm:$0xff] }
  0xa1   :  { %9069 = vst [vmem:[#allocation133_spill] sm:$0xff] %v5160_v63  ;;  %v5182_v63 = vld [vmem:[#allocation5 + $0x40] sm:$0xff] }
  0xa2   :  { %v5152_v60 = vpop.f32.mrf.mxu1  ;;  %9070 = vst [vmem:[#allocation134_spill] sm:$0xff] %v5164_v1  ;;  %697 = vmatpush.msrb.mxu3 %v5176_v4  ;;  %v5184_v1 = vld [vmem:[#allocation5 + $0x48] sm:$0xff]  ;;  %638 = vmatpush.msra.mxu0 %v5182_v63 }
  0xa3   :  { %9071 = vst [vmem:[#allocation135_spill] sm:$0xff] %v5168_v5  ;;  %658 = vmatpush.msra.mxu1 %v5184_v1  ;;  %v5190_v5 = vld [vmem:[#allocation5 + $0x58] sm:$0xff]  ;;  %678 = vmatpush.msrb.mxu2 %v5186_v62 }
  0xa4   :  { %9072 = vst [vmem:[#allocation136_spill] sm:$0xff] %v5170_v0  ;;  %698 = vmatpush.msrb.mxu3 %v5190_v5  ;;  %v5194_v0 = vld [vmem:[#allocation5 + $0x20] sm:$0xff] }
  0xa5   :  { %9073 = vst [vmem:[#allocation137_spill] sm:$0xff] %v5172_v2  ;;  %v5196_v2 = vld [vmem:[#allocation5 + $0x28] sm:$0xff]  ;;  %639 = vmatpush.msra.mxu0 %v5194_v0 }
  0xa6   :  { %9074 = vst [vmem:[#allocation138_spill] sm:$0xff] %v5176_v4  ;;  %v5178_v57 = vpop.f32.mrf.mxu3  ;;  %v5198_v4 = vld [vmem:[#allocation5 + $0x30] sm:$0xff]  ;;  %659 = vmatpush.msra.mxu1 %v5196_v2 }
  0xa7   :  { %9075 = vst [vmem:[#allocation139_spill] sm:$0xff] %v5182_v63  ;;  %679 = vmatpush.msrb.mxu2 %v5198_v4  ;;  %v5215_v63 = vld [vmem:[#allocation5 + $0x10] sm:$0xff] }
  0xa8   :  { %9076 = vst [vmem:[#allocation140_spill] sm:$0xff] %v5184_v1  ;;  %v5207_v1 = vld [vmem:[#allocation5 + $0x38] sm:$0xff] }
  0xa9   :  { %9077 = vst [vmem:[#allocation141_spill] sm:$0xff] %v5186_v62  ;;  %699 = vmatpush.msrb.mxu3 %v5207_v1  ;;  %v5213_v62 = vld [vmem:[#allocation5 + $0x8] sm:$0xff]  ;;  %680 = vmatpush.msrb.mxu2 %v5215_v63 }
  0xaa   :  { %9078 = vst [vmem:[#allocation142_spill] sm:$0xff] %v5190_v5  ;;  %v5211_v5 = vld [vmem:[#allocation5] sm:$0xff]  ;;  %660 = vmatpush.msra.mxu1 %v5213_v62 }
  0xab   :  { %9079 = vst [vmem:[#allocation143_spill] sm:$0xff] %v5194_v0  ;;  %v5217_v23 = vpop.f32.mrf.mxu1  ;;  %640 = vmatpush.msra.mxu0 %v5211_v5  ;;  %v5221_v0 = vld [vmem:[#allocation5 + $0x18] sm:$0xff]  ;;  %812 = vmatpush.msra.mxu2 %v4617_v10 }
  0xac   :  { %9080 = vst [vmem:[#allocation144_spill] sm:$0xff] %v5203_v7  ;;  %700 = vmatpush.msrb.mxu3 %v5221_v0  ;;  %792 = vmatpush.msrb.mxu1 %v4614_v9  ;;  %v167_v9 = vpop.f32.mrf.mxu2 }
  0xad   :  { %9081 = vst [vmem:[#allocation145_spill] sm:$0xff] %v5207_v1  ;;  %v8439_v1 = vperm.slane %v5203_v7, 0  ;;  %772 = vmatpush.msrb.mxu0 %v4594_v3  ;;  %813 = vmatpush.msra.mxu2 %v4626_v14 }
  0xae   :  { %9082 = vst [vmem:[#allocation146_spill] sm:$0xff] %v5213_v62  ;;  %832 = vmatpush.msra.mxu3 %v4604_v6  ;;  %793 = vmatpush.msrb.mxu1 %v4624_v13 }
  0xaf   :  { %9083 = vst [vmem:[#allocation147_spill] sm:$0xff] %v5217_v23  ;;  %v8438_v23 = vperm.slane %v5203_v7, 1  ;;  %773 = vmatpush.msrb.mxu0 %v4612_v8  ;;  %v5240_v3 = vadd.f32 %v5050_v61, %v8439_v1  ;;  %814 = vmatpush.msra.mxu2 %v4638_v18  ;;  %v5695_v1 = vld [vmem:[#allocation3 + $0x68] sm:$0xff] }
  0xb0   :  { %v5233_v62 = vpop.f32.mrf.mxu3  ;;  %833 = vmatpush.msra.mxu3 %v4619_v11  ;;  %794 = vmatpush.msrb.mxu1 %v4636_v17 }
  0xb1   :  { %9084 = vst [vmem:[#allocation148_spill] sm:$0xff] %v5233_v62  ;;  %774 = vmatpush.msrb.mxu0 %v4621_v12  ;;  %v5249_v8 = vadd.f32 %v5152_v60, %v8438_v23  ;;  %815 = vmatpush.msra.mxu2 %v4650_v22  ;;  %v8437_v12 = vperm.slane %v5203_v7, 3  ;;  %v5692_v23 = vld [vmem:[#allocation3 + $0x60] sm:$0xff]  ;;  %v5701_v62 = vld [vmem:[#allocation3 + $0x78] sm:$0xff] }
  0xb2   :  { %9085 = vst [vmem:[#allocation149_spill] sm:$0xff] %v5240_v3  ;;  %v287_v6 = vpop.f32.mrf.mxu0  ;;  %834 = vmatpush.msra.mxu3 %v4630_v15  ;;  %795 = vmatpush.msrb.mxu1 %v4648_v21 }
  0xb3   :  { %9086 = vst [vmem:[#allocation150_spill] sm:$0xff] %v5249_v8  ;;  %v350_v10 = vadd.f32 %v287_v6, %v5240_v3  ;;  %775 = vmatpush.msrb.mxu0 %v4632_v16  ;;  %816 = vmatpush.msra.mxu2 %v4669_v27  ;;  %v5269_v16 = vadd.f32 %v5178_v57, %v8437_v12  ;;  %v5689_v12 = vld [vmem:[#allocation3 + $0x98] sm:$0xff] }
  0xb4   :  { %v307_v11 = vpop.f32.mrf.mxu1  ;;  %835 = vmatpush.msra.mxu3 %v4642_v19  ;;  %796 = vmatpush.msrb.mxu1 %v4665_v26  ;;  %v5275_v18 = vpop.f32.mrf.mxu2 }
  0xb5   :  { %v3557_v13 = vmul.f32 -1.442695, %v350_v10  ;;  %v351_v14 = vadd.f32 %v307_v11, %v5249_v8  ;;  %776 = vmatpush.msrb.mxu0 %v4644_v20  ;;  %817 = vmatpush.msra.mxu2 %v4682_v31  ;;  %9087 = vst [vmem:[#allocation151_spill] sm:$0xff] %v5275_v18  ;;  %v5698_v18 = vld [vmem:[#allocation3 + $0x70] sm:$0xff] }
  0xb6   :  { %836 = vmatpush.msra.mxu3 %v4659_v24  ;;  %797 = vmatpush.msrb.mxu1 %v4678_v30 }
  0xb7   :  { %3612 = vpow2.f32 %v3557_v13  ;;  %v3558_v15 = vmul.f32 -1.442695, %v351_v14  ;;  %777 = vmatpush.msrb.mxu0 %v4663_v25  ;;  %818 = vmatpush.msra.mxu2 %v4694_v35  ;;  %v8436_v25 = vperm.slane %v5203_v7, 2  ;;  %v5704_v7 = vld [vmem:[#allocation3 + $0x40] sm:$0xff] }
  0xb8   :  { %837 = vmatpush.msra.mxu3 %v4671_v28  ;;  %798 = vmatpush.msrb.mxu1 %v4690_v34  ;;  %v9089_v34 = vld [vmem:[#allocation13_spill] sm:$0xff] }
  0xb9   :  { %3614 = vpow2.f32 %v3558_v15  ;;  %778 = vmatpush.msrb.mxu0 %v4676_v29  ;;  %819 = vmatpush.msra.mxu2 %v4706_v39  ;;  %v5305_v27 = vadd.f32 %v167_v9, %v8436_v25  ;;  %v5686_v25 = vld [vmem:[#allocation3 + $0x90] sm:$0xff] }
  0xba   :  { %v347_v17 = vpop.f32.mrf.mxu3  ;;  %838 = vmatpush.msra.mxu3 %v4684_v32  ;;  %799 = vmatpush.msrb.mxu1 %v4704_v38  ;;  %v9091_v38 = vld [vmem:[#allocation11_spill] sm:$0xff] }
  0xbb   :  { %v353_v19 = vadd.f32 %v347_v17, %v5269_v16  ;;  %779 = vmatpush.msrb.mxu0 %v4688_v33  ;;  %820 = vmatpush.msra.mxu2 %v4721_v43  ;;  %v9088_v33 = vld [vmem:[#allocation10_spill] sm:$0xff] }
  0xbc   :  { %839 = vmatpush.msra.mxu3 %v4696_v36  ;;  %800 = vmatpush.msrb.mxu1 %v4719_v42  ;;  %v327_v29 = vpop.f32.mrf.mxu2  ;;  %v9093_v42 = vld [vmem:[#allocation17_spill] sm:$0xff] }
  0xbd   :  { %v3613_v20 = vpop.eup %3612  ;;  %v3559_v21 = vmul.f32 -1.442695, %v353_v19  ;;  %780 = vmatpush.msrb.mxu0 %v4700_v37  ;;  %821 = vmatpush.msra.mxu2 %v4735_v47  ;;  %v352_v36 = vadd.f32 %v327_v29, %v5305_v27  ;;  %v9090_v37 = vld [vmem:[#allocation14_spill] sm:$0xff] }
  0xbe   :  { %v5284_v22 = vadd.f32 1.0, %v3613_v20  ;;  %840 = vmatpush.msra.mxu3 %v4710_v40  ;;  %801 = vmatpush.msrb.mxu1 %v4733_v46 }
  0xbf   :  { %v3615_v24 = vpop.eup %3614  ;;  %3616 = vpow2.f32 %v3559_v21  ;;  %781 = vmatpush.msrb.mxu0 %v4715_v41  ;;  %822 = vmatpush.msra.mxu2 %v4747_v51  ;;  %v9092_v41 = vld [vmem:[#allocation12_spill] sm:$0xff] }
  0xc0   :  { %3618 = vrcp.f32 %v5284_v22  ;;  %v5292_v26 = vadd.f32 1.0, %v3615_v24  ;;  %841 = vmatpush.msra.mxu3 %v4726_v44  ;;  %802 = vmatpush.msrb.mxu1 %v4745_v50  ;;  %v369_v43 = vand.u32 2147483648, %v5284_v22  ;;  %v9094_v44 = vld [vmem:[#allocation18_spill] sm:$0xff]  ;;  %v9097_v50 = vld [vmem:[#allocation20_spill] sm:$0xff]  ;;  %vm363_vm2 = vweird.f32 %v5284_v22 }
  0xc1   :  { %782 = vmatpush.msrb.mxu0 %v4728_v45  ;;  %823 = vmatpush.msra.mxu2 %v4761_v55  ;;  %v9095_v45 = vld [vmem:[#allocation15_spill] sm:$0xff] }
  0xc2   :  { %3620 = vrcp.f32 %v5292_v26  ;;  %842 = vmatpush.msra.mxu3 %v4739_v48  ;;  %803 = vmatpush.msrb.mxu1 %v4757_v54  ;;  %v367_v48 = vand.u32 2147483647, %v5284_v22  ;;  %v388_v51 = vand.u32 2147483648, %v5292_v26  ;;  %vm382_vm4 = vweird.f32 %v5292_v26 }
  0xc3   :  { %783 = vmatpush.msrb.mxu0 %v4741_v49  ;;  %824 = vmatpush.msra.mxu2 %v4777_v59  ;;  %v9096_v49 = vld [vmem:[#allocation16_spill] sm:$0xff] }
  0xc4   :  { %843 = vmatpush.msra.mxu3 %v4751_v52  ;;  %804 = vmatpush.msrb.mxu1 %v4772_v58  ;;  %v9098_v52 = vld [vmem:[#allocation21_spill] sm:$0xff]  ;;  %v370_v58 = vor.u32 1.1754944e-38, %v369_v43  ;;  %vm368_vm6 = vcmp.eq.f32.partialorder %v367_v48, 8.507059e+37  ;;  %v389_v9 = vor.u32 1.1754944e-38, %v388_v51  ;;  %v9116_v48 = vld [vmem:[#allocation38_spill] sm:$0xff] }
  0xc5   :  { %v3617_v28 = vpop.eup %3616  ;;  %784 = vmatpush.msrb.mxu0 %v4753_v53  ;;  %825 = vmatpush.msra.mxu2 %v9090_v37  ;;  %v9099_v53 = vld [vmem:[#allocation19_spill] sm:$0xff]  ;;  %v9111_v43 = vld [vmem:[#allocation33_spill] sm:$0xff] }
  0xc6   :  { %v3619_v30 = vpop.eup %3618  ;;  %v396_v31 = vadd.f32 1.0, %v3617_v28  ;;  %844 = vmatpush.msra.mxu3 %v4765_v56  ;;  %805 = vmatpush.msrb.mxu1 %v9089_v34  ;;  %v386_v56 = vand.u32 2147483647, %v5292_v26  ;;  %v9101_v34 = vld [vmem:[#allocation23_spill] sm:$0xff]  ;;  %v9119_v51 = vld [vmem:[#allocation41_spill] sm:$0xff]  ;;  %9250 = vst [vmem:[#allocation33_spill] sm:$0xff] %v5704_v7 }
  0xc7   :  { %v359_v32 = vmul.f32 %v3619_v30, %v5284_v22  ;;  %785 = vmatpush.msrb.mxu0 %v9088_v33  ;;  %826 = vmatpush.msra.mxu2 %v9094_v44  ;;  %vm364_vm1 = vweird.f32 %v3619_v30  ;;  %v9100_v33 = vld [vmem:[#allocation22_spill] sm:$0xff]  ;;  %v9105_v37 = vld [vmem:[#allocation27_spill] sm:$0xff] }
  0xc8   :  { %v3621_v35 = vpop.eup %3620  ;;  %3622 = vrcp.f32 %v396_v31  ;;  %845 = vmatpush.msra.mxu3 %v9091_v38  ;;  %806 = vmatpush.msrb.mxu1 %v9093_v42  ;;  %vm365_vm5 = vmor %vm363_vm2, %vm364_vm1  ;;  %vm387_vm8 = vcmp.eq.f32.partialorder %v386_v56, 8.507059e+37  ;;  %v408_v22 = vand.u32 2147483648, %v396_v31  ;;  %vm402_vm10 = vweird.f32 %v396_v31  ;;  %v9106_v38 = vld [vmem:[#allocation28_spill] sm:$0xff]  ;;  %v9112_v44 = vld [vmem:[#allocation34_spill] sm:$0xff]  ;;  %9244 = vst [vmem:[#allocation27_spill] sm:$0xff] %v5686_v25 }
  0xc9   :  { %v360_v39 = vsub.f32 1.0, %v359_v32  ;;  %v378_v40 = vmul.f32 %v3621_v35, %v5292_v26  ;;  %786 = vmatpush.msrb.mxu0 %v9092_v41  ;;  %3624 = vtanh.f32 %v352_v36  ;;  %827 = vmatpush.msra.mxu2 %v9098_v52  ;;  %vm383_vm3 = vweird.f32 %v3621_v35  ;;  %v9103_v36 = vld [vmem:[#allocation25_spill] sm:$0xff]  ;;  %v9109_v41 = vld [vmem:[#allocation31_spill] sm:$0xff]  ;;  %v9110_v42 = vld [vmem:[#allocation32_spill] sm:$0xff]  ;;  %9245 = vst [vmem:[#allocation28_spill] sm:$0xff] %v5689_v12 }
  0xca   :  { %846 = vmatpush.msra.mxu3 %v9095_v45  ;;  %807 = vmatpush.msrb.mxu1 %v9097_v50  ;;  %vm384_vm7 = vmor %vm382_vm4, %vm383_vm3  ;;  %v406_v24 = vand.u32 2147483647, %v396_v31  ;;  %v409_v28 = vor.u32 1.1754944e-38, %v408_v22  ;;  %v9113_v45 = vld [vmem:[#allocation35_spill] sm:$0xff]  ;;  %v9118_v50 = vld [vmem:[#allocation40_spill] sm:$0xff]  ;;  %9248 = vst [vmem:[#allocation31_spill] sm:$0xff] %v5698_v18 }
  0xcb   :  { %v379_v46 = vsub.f32 1.0, %v378_v40  ;;  %v361_v47 = vmul.f32 %v3619_v30, %v360_v39  ;;  %787 = vmatpush.msrb.mxu0 %v9096_v49  ;;  %v9107_v39 = vld [vmem:[#allocation29_spill] sm:$0xff]  ;;  %v9108_v40 = vld [vmem:[#allocation30_spill] sm:$0xff]  ;;  %v9117_v49 = vld [vmem:[#allocation39_spill] sm:$0xff]  ;;  %9249 = vst [vmem:[#allocation32_spill] sm:$0xff] %v5701_v62 }
  0xcc   :  { %847 = vmatpush.msra.mxu3 %v9099_v53  ;;  %vm407_vm12 = vcmp.eq.f32.partialorder %v406_v24, 8.507059e+37  ;;  %v9120_v52 = vld [vmem:[#allocation42_spill] sm:$0xff]  ;;  %v9121_v53 = vld [vmem:[#allocation43_spill] sm:$0xff]  ;;  %9246 = vst [vmem:[#allocation29_spill] sm:$0xff] %v5692_v23 }
  0xcd   :  { %v380_v54 = vmul.f32 %v3621_v35, %v379_v46  ;;  %v362_v55 = vadd.f32 %v3619_v30, %v361_v47  ;;  %v9114_v46 = vld [vmem:[#allocation36_spill] sm:$0xff]  ;;  %v9115_v47 = vld [vmem:[#allocation37_spill] sm:$0xff]  ;;  %v9124_v56 = vld [vmem:[#allocation46_spill] sm:$0xff]  ;;  %9247 = vst [vmem:[#allocation30_spill] sm:$0xff] %v5695_v1 }
  0xce   :  { %v3623_v57 = vpop.eup %3622  ;;  %v9140_v22 = vld [vmem:[#allocation62_spill] sm:$0xff]  ;;  %v9141_v24 = vld [vmem:[#allocation63_spill] sm:$0xff] }
  0xcf   :  { %v398_v59 = vmul.f32 %v3623_v57, %v396_v31  ;;  %v366_v60 = vsel %vm365_vm5, %v3619_v30, %v362_v55  ;;  %v381_v61 = vadd.f32 %v3621_v35, %v380_v54  ;;  %v3625_v13 = vpop.eup %3624  ;;  %vm403_vm9 = vweird.f32 %v3623_v57  ;;  %v9104_v31 = vld [vmem:[#allocation26_spill] sm:$0xff]  ;;  %v9122_v54 = vld [vmem:[#allocation44_spill] sm:$0xff]  ;;  %v9123_v55 = vld [vmem:[#allocation45_spill] sm:$0xff] }
  0xd0   :  { %v371_v6 = vsel %vm368_vm6, %v370_v58, %v366_v60  ;;  %vm404_vm11 = vmor %vm402_vm10, %vm403_vm9  ;;  %v9126_v58 = vld [vmem:[#allocation48_spill] sm:$0xff]  ;;  %v9128_v60 = vld [vmem:[#allocation50_spill] sm:$0xff] }
  0xd1   :  { %v399_v10 = vsub.f32 1.0, %v398_v59  ;;  %v385_v11 = vsel %vm384_vm7, %v3621_v35, %v381_v61  ;;  %v413_v19 = vmul.f32 %v3625_v13, %v371_v6  ;;  %v9102_v35 = vld [vmem:[#allocation24_spill] sm:$0xff]  ;;  %v9127_v59 = vld [vmem:[#allocation49_spill] sm:$0xff]  ;;  %v9129_v61 = vld [vmem:[#allocation51_spill] sm:$0xff] }
  0xd2   :  { %v390_v14 = vsel %vm387_vm8, %v389_v9, %v385_v11  ;;  %v9130_v9 = vld [vmem:[#allocation52_spill] sm:$0xff]  ;;  %v9131_v6 = vld [vmem:[#allocation53_spill] sm:$0xff]  ;;  %v9133_v11 = vld [vmem:[#allocation55_spill] sm:$0xff] }
  0xd3   :  { %v400_v15 = vmul.f32 %v3623_v57, %v399_v10  ;;  %v412_v17 = vmul.f32 0.0, %v390_v14  ;;  %v9132_v10 = vld [vmem:[#allocation54_spill] sm:$0xff]  ;;  %v9134_v13 = vld [vmem:[#allocation56_spill] sm:$0xff]  ;;  %v9135_v14 = vld [vmem:[#allocation57_spill] sm:$0xff] }
  0xd5   :  { %v5335_v20 = vadd.f32 %v413_v19, %v412_v17  ;;  %v401_v21 = vadd.f32 %v3623_v57, %v400_v15  ;;  %v9136_v15 = vld [vmem:[#allocation58_spill] sm:$0xff]  ;;  %v9137_v17 = vld [vmem:[#allocation59_spill] sm:$0xff]  ;;  %v9138_v19 = vld [vmem:[#allocation60_spill] sm:$0xff] }
  0xd7   :  { %3626 = vtanh.f32 %v5335_v20  ;;  %v405_v26 = vsel %vm404_vm11, %v3623_v57, %v401_v21  ;;  %v9125_v57 = vld [vmem:[#allocation47_spill] sm:$0xff]  ;;  %v9139_v21 = vld [vmem:[#allocation61_spill] sm:$0xff] }
  0xd8   :  { %v410_v30 = vsel %vm407_vm12, %v409_v28, %v405_v26  ;;  %v9142_v26 = vld [vmem:[#allocation64_spill] sm:$0xff]  ;;  %v9143_v28 = vld [vmem:[#allocation65_spill] sm:$0xff] }
  0xdd   :  { %v3627_v29 = vpop.eup %3626 }
  0xde   :  { %v416_v32 = vmul.f32 %v3627_v29, %v410_v30  ;;  %v9144_v29 = vld [vmem:[#allocation66_spill] sm:$0xff]  ;;  %v9145_v30 = vld [vmem:[#allocation67_spill] sm:$0xff] }
  0xe0   :  { %641 = vmatmul.f32.vlgmr.msra.gmra.mxu0 %v416_v32  ;;  %661 = vmatmul.f32.vlgmr.msra.gmra.mxu1 %v416_v32 }
  0xe1   :  { %681 = vmatmul.f32.vlgmr.msrb.gmra.mxu2 %v416_v32  ;;  %701 = vmatmul.f32.vlgmr.msrb.gmra.mxu3 %v416_v32 }
  0xe2   :  { %934 = vmatpush.msra.mxu0 %v9100_v33  ;;  %954 = vmatpush.msra.mxu1 %v9101_v34  ;;  %v9147_v33 = vld [vmem:[#allocation69_spill] sm:$0xff]  ;;  %v9148_v34 = vld [vmem:[#allocation70_spill] sm:$0xff] }
  0xe3   :  { %974 = vmatpush.msrb.mxu2 %v9102_v35  ;;  %994 = vmatpush.msrb.mxu3 %v9103_v36  ;;  %v9149_v35 = vld [vmem:[#allocation71_spill] sm:$0xff]  ;;  %v9150_v36 = vld [vmem:[#allocation72_spill] sm:$0xff] }
  0xe4   :  { %935 = vmatpush.msra.mxu0 %v9104_v31  ;;  %955 = vmatpush.msra.mxu1 %v9105_v37  ;;  %v9151_v31 = vld [vmem:[#allocation73_spill] sm:$0xff]  ;;  %v9152_v37 = vld [vmem:[#allocation74_spill] sm:$0xff] }
  0xe5   :  { %975 = vmatpush.msrb.mxu2 %v9106_v38  ;;  %995 = vmatpush.msrb.mxu3 %v9107_v39  ;;  %v9153_v38 = vld [vmem:[#allocation75_spill] sm:$0xff]  ;;  %v9154_v39 = vld [vmem:[#allocation76_spill] sm:$0xff] }
  0xe6   :  { %936 = vmatpush.msra.mxu0 %v9108_v40  ;;  %956 = vmatpush.msra.mxu1 %v9109_v41  ;;  %v9155_v40 = vld [vmem:[#allocation77_spill] sm:$0xff]  ;;  %v9156_v41 = vld [vmem:[#allocation78_spill] sm:$0xff] }
  0xe7   :  { %976 = vmatpush.msrb.mxu2 %v9110_v42  ;;  %996 = vmatpush.msrb.mxu3 %v9111_v43  ;;  %v9157_v42 = vld [vmem:[#allocation79_spill] sm:$0xff]  ;;  %v9158_v43 = vld [vmem:[#allocation80_spill] sm:$0xff] }
  0xe8   :  { %788 = vmatmul.f32.vlgmr.msrb.gmra.mxu0 %v416_v32  ;;  %808 = vmatmul.f32.vlgmr.msrb.gmra.mxu1 %v416_v32 }
  0xe9   :  { %828 = vmatmul.f32.vlgmr.msra.gmra.mxu2 %v416_v32  ;;  %848 = vmatmul.f32.vlgmr.msra.gmra.mxu3 %v416_v32  ;;  %v9146_v32 = vld [vmem:[#allocation68_spill] sm:$0xff] }
  0xea   :  { %937 = vmatpush.msra.mxu0 %v9112_v44  ;;  %957 = vmatpush.msra.mxu1 %v9113_v45  ;;  %v9159_v44 = vld [vmem:[#allocation81_spill] sm:$0xff]  ;;  %v9160_v45 = vld [vmem:[#allocation82_spill] sm:$0xff] }
  0xeb   :  { %977 = vmatpush.msrb.mxu2 %v9114_v46  ;;  %997 = vmatpush.msrb.mxu3 %v9115_v47  ;;  %v9161_v46 = vld [vmem:[#allocation83_spill] sm:$0xff]  ;;  %v9162_v47 = vld [vmem:[#allocation84_spill] sm:$0xff] }
  0xec   :  { %938 = vmatpush.msra.mxu0 %v9116_v48  ;;  %958 = vmatpush.msra.mxu1 %v9117_v49  ;;  %v9163_v48 = vld [vmem:[#allocation85_spill] sm:$0xff]  ;;  %v9164_v49 = vld [vmem:[#allocation86_spill] sm:$0xff] }
  0xed   :  { %978 = vmatpush.msrb.mxu2 %v9118_v50  ;;  %998 = vmatpush.msrb.mxu3 %v9119_v51  ;;  %v9165_v50 = vld [vmem:[#allocation87_spill] sm:$0xff]  ;;  %v9166_v51 = vld [vmem:[#allocation88_spill] sm:$0xff] }
  0xee   :  { %939 = vmatpush.msra.mxu0 %v9120_v52  ;;  %959 = vmatpush.msra.mxu1 %v9121_v53  ;;  %v9167_v52 = vld [vmem:[#allocation89_spill] sm:$0xff]  ;;  %v9168_v53 = vld [vmem:[#allocation90_spill] sm:$0xff] }
  0xef   :  { %979 = vmatpush.msrb.mxu2 %v9122_v54  ;;  %999 = vmatpush.msrb.mxu3 %v9123_v55  ;;  %v9169_v54 = vld [vmem:[#allocation91_spill] sm:$0xff]  ;;  %v9170_v55 = vld [vmem:[#allocation92_spill] sm:$0xff] }
  0xf0   :  { %940 = vmatpush.msra.mxu0 %v9124_v56  ;;  %960 = vmatpush.msra.mxu1 %v9125_v57  ;;  %v9171_v56 = vld [vmem:[#allocation93_spill] sm:$0xff]  ;;  %v9172_v57 = vld [vmem:[#allocation94_spill] sm:$0xff] }
  0xf1   :  { %980 = vmatpush.msrb.mxu2 %v9126_v58  ;;  %1000 = vmatpush.msrb.mxu3 %v9127_v59  ;;  %v9173_v58 = vld [vmem:[#allocation95_spill] sm:$0xff]  ;;  %v9174_v59 = vld [vmem:[#allocation96_spill] sm:$0xff] }
  0xf2   :  { %941 = vmatpush.msra.mxu0 %v9128_v60  ;;  %961 = vmatpush.msra.mxu1 %v9129_v61  ;;  %v9175_v60 = vld [vmem:[#allocation97_spill] sm:$0xff]  ;;  %v9176_v61 = vld [vmem:[#allocation98_spill] sm:$0xff] }
  0xf3   :  { %981 = vmatpush.msrb.mxu2 %v9130_v9  ;;  %1001 = vmatpush.msrb.mxu3 %v9131_v6  ;;  %v9177_v9 = vld [vmem:[#allocation99_spill] sm:$0xff]  ;;  %v9178_v6 = vld [vmem:[#allocation100_spill] sm:$0xff] }
  0xf4   :  { %942 = vmatpush.msra.mxu0 %v9132_v10  ;;  %962 = vmatpush.msra.mxu1 %v9133_v11  ;;  %v9179_v10 = vld [vmem:[#allocation101_spill] sm:$0xff]  ;;  %v9180_v11 = vld [vmem:[#allocation102_spill] sm:$0xff] }
  0xf5   :  { %982 = vmatpush.msrb.mxu2 %v9134_v13  ;;  %1002 = vmatpush.msrb.mxu3 %v9135_v14  ;;  %v9181_v13 = vld [vmem:[#allocation103_spill] sm:$0xff]  ;;  %v9182_v14 = vld [vmem:[#allocation104_spill] sm:$0xff] }
  0xf6   :  { %943 = vmatpush.msra.mxu0 %v9136_v15  ;;  %963 = vmatpush.msra.mxu1 %v9137_v17  ;;  %v9183_v15 = vld [vmem:[#allocation105_spill] sm:$0xff]  ;;  %v9184_v17 = vld [vmem:[#allocation106_spill] sm:$0xff] }
  0xf7   :  { %983 = vmatpush.msrb.mxu2 %v9138_v19  ;;  %1003 = vmatpush.msrb.mxu3 %v9139_v21  ;;  %v9185_v19 = vld [vmem:[#allocation107_spill] sm:$0xff]  ;;  %v9186_v21 = vld [vmem:[#allocation108_spill] sm:$0xff] }
  0xf8   :  { %944 = vmatpush.msra.mxu0 %v9140_v22  ;;  %964 = vmatpush.msra.mxu1 %v9141_v24  ;;  %v9187_v22 = vld [vmem:[#allocation109_spill] sm:$0xff]  ;;  %v9188_v24 = vld [vmem:[#allocation110_spill] sm:$0xff] }
  0xf9   :  { %984 = vmatpush.msrb.mxu2 %v9142_v26  ;;  %1004 = vmatpush.msrb.mxu3 %v9143_v28  ;;  %v9189_v26 = vld [vmem:[#allocation111_spill] sm:$0xff]  ;;  %v9190_v28 = vld [vmem:[#allocation112_spill] sm:$0xff] }
  0xfa   :  { %945 = vmatpush.msra.mxu0 %v9144_v29  ;;  %965 = vmatpush.msra.mxu1 %v9145_v30  ;;  %v9191_v29 = vld [vmem:[#allocation113_spill] sm:$0xff]  ;;  %v9192_v30 = vld [vmem:[#allocation114_spill] sm:$0xff] }
  0xfb   :  { %985 = vmatpush.msrb.mxu2 %v9146_v32  ;;  %1005 = vmatpush.msrb.mxu3 %v9147_v33  ;;  %v9193_v32 = vld [vmem:[#allocation115_spill] sm:$0xff]  ;;  %v9194_v33 = vld [vmem:[#allocation116_spill] sm:$0xff] }
  0xfc   :  { %946 = vmatpush.msra.mxu0 %v9148_v34  ;;  %966 = vmatpush.msra.mxu1 %v9149_v35  ;;  %v9195_v34 = vld [vmem:[#allocation118_spill] sm:$0xff]  ;;  %v9196_v35 = vld [vmem:[#allocation119_spill] sm:$0xff] }
  0xfd   :  { %986 = vmatpush.msrb.mxu2 %v9150_v36  ;;  %1006 = vmatpush.msrb.mxu3 %v9151_v31  ;;  %v9197_v36 = vld [vmem:[#allocation120_spill] sm:$0xff]  ;;  %v9198_v31 = vld [vmem:[#allocation121_spill] sm:$0xff] }
  0xfe   :  { %947 = vmatpush.msra.mxu0 %v9152_v37  ;;  %967 = vmatpush.msra.mxu1 %v9153_v38  ;;  %v9199_v37 = vld [vmem:[#allocation122_spill] sm:$0xff]  ;;  %v9200_v38 = vld [vmem:[#allocation123_spill] sm:$0xff] }
  0xff   :  { %987 = vmatpush.msrb.mxu2 %v9154_v39  ;;  %1007 = vmatpush.msrb.mxu3 %v9155_v40  ;;  %v9201_v39 = vld [vmem:[#allocation124_spill] sm:$0xff]  ;;  %v9202_v40 = vld [vmem:[#allocation125_spill] sm:$0xff] }
 0x100   :  { %948 = vmatpush.msra.mxu0 %v9156_v41  ;;  %968 = vmatpush.msra.mxu1 %v9157_v42  ;;  %v9203_v41 = vld [vmem:[#allocation126_spill] sm:$0xff]  ;;  %v9204_v42 = vld [vmem:[#allocation127_spill] sm:$0xff] }
 0x101   :  { %988 = vmatpush.msrb.mxu2 %v9158_v43  ;;  %1008 = vmatpush.msrb.mxu3 %v9159_v44  ;;  %v9205_v43 = vld [vmem:[#allocation128_spill] sm:$0xff]  ;;  %v9206_v44 = vld [vmem:[#allocation129_spill] sm:$0xff] }
 0x102   :  { %949 = vmatpush.msra.mxu0 %v9160_v45  ;;  %969 = vmatpush.msra.mxu1 %v9161_v46  ;;  %v9207_v45 = vld [vmem:[#allocation130_spill] sm:$0xff]  ;;  %v9208_v46 = vld [vmem:[#allocation131_spill] sm:$0xff] }
 0x103   :  { %989 = vmatpush.msrb.mxu2 %v9162_v47  ;;  %1009 = vmatpush.msrb.mxu3 %v9163_v48  ;;  %v9209_v47 = vld [vmem:[#allocation132_spill] sm:$0xff]  ;;  %v9210_v48 = vld [vmem:[#allocation133_spill] sm:$0xff] }
 0x104   :  { %1017 = vmatpush.msrb.mxu0 %v9164_v49  ;;  %1037 = vmatpush.msrb.mxu1 %v9165_v50  ;;  %v9211_v49 = vld [vmem:[#allocation134_spill] sm:$0xff]  ;;  %v9212_v50 = vld [vmem:[#allocation135_spill] sm:$0xff] }
 0x105   :  { %1057 = vmatpush.msra.mxu2 %v9166_v51  ;;  %1077 = vmatpush.msra.mxu3 %v9167_v52  ;;  %v9213_v51 = vld [vmem:[#allocation136_spill] sm:$0xff]  ;;  %v9214_v52 = vld [vmem:[#allocation137_spill] sm:$0xff] }
 0x106   :  { %1018 = vmatpush.msrb.mxu0 %v9168_v53  ;;  %1038 = vmatpush.msrb.mxu1 %v9169_v54  ;;  %v9215_v53 = vld [vmem:[#allocation138_spill] sm:$0xff]  ;;  %v9216_v54 = vld [vmem:[#allocation139_spill] sm:$0xff] }
 0x107   :  { %1058 = vmatpush.msra.mxu2 %v9170_v55  ;;  %1078 = vmatpush.msra.mxu3 %v9171_v56  ;;  %v9217_v55 = vld [vmem:[#allocation140_spill] sm:$0xff]  ;;  %v9218_v56 = vld [vmem:[#allocation141_spill] sm:$0xff] }
 0x108   :  { %1019 = vmatpush.msrb.mxu0 %v9172_v57  ;;  %1039 = vmatpush.msrb.mxu1 %v9173_v58  ;;  %v9219_v57 = vld [vmem:[#allocation142_spill] sm:$0xff]  ;;  %v9220_v58 = vld [vmem:[#allocation143_spill] sm:$0xff] }
 0x109   :  { %1059 = vmatpush.msra.mxu2 %v9174_v59  ;;  %1079 = vmatpush.msra.mxu3 %v9175_v60  ;;  %v9221_v59 = vld [vmem:[#allocation145_spill] sm:$0xff]  ;;  %v9222_v60 = vld [vmem:[#allocation146_spill] sm:$0xff] }
 0x10a   :  { %1020 = vmatpush.msrb.mxu0 %v9176_v61  ;;  %1040 = vmatpush.msrb.mxu1 %v9177_v9  ;;  %v562_v61 = vpop.f32.mrf.mxu0  ;;  %v582_v9 = vpop.f32.mrf.mxu1 }
 0x10b   :  { %1060 = vmatpush.msra.mxu2 %v9178_v6  ;;  %1080 = vmatpush.msra.mxu3 %v9179_v10  ;;  %v196_v6 = vld [vmem:[%s8295_s6] sm:$0xf]  ;;  %v622_v10 = vpop.f32.mrf.mxu3 }
 0x10c   :  { %1021 = vmatpush.msrb.mxu0 %v9180_v11  ;;  %1041 = vmatpush.msrb.mxu1 %v9181_v13  ;;  %v5469_v11 = vperm.slane %v196_v6, 0 }
 0x10d   :  { %1061 = vmatpush.msra.mxu2 %v9182_v14  ;;  %1081 = vmatpush.msra.mxu3 %v9183_v15 }
 0x10e   :  { %1022 = vmatpush.msrb.mxu0 %v9184_v17  ;;  %1042 = vmatpush.msrb.mxu1 %v9185_v19  ;;  %9223 = vst [vmem:[#allocation10_spill] sm:$0xff] %v5469_v11 }
 0x10f   :  { %1062 = vmatpush.msra.mxu2 %v9186_v21  ;;  %1082 = vmatpush.msra.mxu3 %v9187_v22  ;;  %v5475_v21 = vperm.slane %v196_v6, 3 }
 0x110   :  { %1023 = vmatpush.msrb.mxu0 %v9188_v24  ;;  %1043 = vmatpush.msrb.mxu1 %v9189_v26 }
 0x111   :  { %1063 = vmatpush.msra.mxu2 %v9190_v28  ;;  %1083 = vmatpush.msra.mxu3 %v9191_v29  ;;  %9225 = vst [vmem:[#allocation14_spill] sm:$0xff] %v5475_v21 }
 0x112   :  { %1024 = vmatpush.msrb.mxu0 %v9192_v30  ;;  %1044 = vmatpush.msrb.mxu1 %v9193_v32 }
 0x113   :  { %1064 = vmatpush.msra.mxu2 %v9194_v33  ;;  %1084 = vmatpush.msra.mxu3 %v9195_v34 }
 0x114   :  { %1025 = vmatpush.msrb.mxu0 %v9196_v35  ;;  %1045 = vmatpush.msrb.mxu1 %v9197_v36 }
 0x115   :  { %1065 = vmatpush.msra.mxu2 %v9198_v31  ;;  %1085 = vmatpush.msra.mxu3 %v9199_v37  ;;  %v5480_v37 = vperm.slane %v196_v6, 2 }
 0x116   :  { %1026 = vmatpush.msrb.mxu0 %v9200_v38  ;;  %1046 = vmatpush.msrb.mxu1 %v9201_v39 }
 0x117   :  { %1066 = vmatpush.msra.mxu2 %v9202_v40  ;;  %1086 = vmatpush.msra.mxu3 %v9203_v41  ;;  %9226 = vst [vmem:[#allocation11_spill] sm:$0xff] %v5480_v37 }
 0x118   :  { %1027 = vmatpush.msrb.mxu0 %v9204_v42  ;;  %1047 = vmatpush.msrb.mxu1 %v9205_v43 }
 0x119   :  { %1067 = vmatpush.msra.mxu2 %v9206_v44  ;;  %1087 = vmatpush.msra.mxu3 %v9207_v45 }
 0x11a   :  { %1028 = vmatpush.msrb.mxu0 %v9208_v46  ;;  %1048 = vmatpush.msrb.mxu1 %v9209_v47 }
 0x11b   :  { %1068 = vmatpush.msra.mxu2 %v9210_v48  ;;  %1088 = vmatpush.msra.mxu3 %v9211_v49 }
 0x11c   :  { %1029 = vmatpush.msrb.mxu0 %v9212_v50  ;;  %1049 = vmatpush.msrb.mxu1 %v9213_v51 }
 0x11d   :  { %1069 = vmatpush.msra.mxu2 %v9214_v52  ;;  %1089 = vmatpush.msra.mxu3 %v9215_v53 }
 0x11e   :  { %1030 = vmatpush.msrb.mxu0 %v9216_v54  ;;  %1050 = vmatpush.msrb.mxu1 %v9217_v55 }
 0x11f   :  { %1070 = vmatpush.msra.mxu2 %v9218_v56  ;;  %1090 = vmatpush.msra.mxu3 %v9219_v57 }
 0x120   :  { %1031 = vmatpush.msrb.mxu0 %v9220_v58  ;;  %1051 = vmatpush.msrb.mxu1 %v5196_v2  ;;  %v602_v2 = vpop.f32.mrf.mxu2 }
 0x121   :  { %1071 = vmatpush.msra.mxu2 %v5198_v4  ;;  %1091 = vmatpush.msra.mxu3 %v9221_v59  ;;  %v5471_v4 = vperm.slane %v196_v6, 1 }
 0x122   :  { %1032 = vmatpush.msrb.mxu0 %v5211_v5  ;;  %1052 = vmatpush.msrb.mxu1 %v9222_v60 }
 0x123   :  { %1072 = vmatpush.msra.mxu2 %v5215_v63  ;;  %1092 = vmatpush.msra.mxu3 %v5221_v0  ;;  %9224 = vst [vmem:[#allocation13_spill] sm:$0xff] %v5471_v4 }
 0x15d   :  { %v642_v13 = vpop.f32.mrf.mxu0  ;;  %v662_v5 = vpop.f32.mrf.mxu1 }
 0x15e   :  { %v643_v14 = vadd.f32 %v642_v13, %v562_v61  ;;  %v663_v15 = vadd.f32 %v662_v5, %v582_v9 }
 0x160   :  { %v705_v63 = vadd.f32 %v643_v14, %v5469_v11  ;;  %v706_v0 = vadd.f32 %v663_v15, %v5471_v4 }
 0x162   :  { %v3560_v17 = vmul.f32 -1.442695, %v705_v63  ;;  %v3561_v19 = vmul.f32 -1.442695, %v706_v0 }
 0x164   :  { %3628 = vpow2.f32 %v3560_v17  ;;  %v702_v22 = vpop.f32.mrf.mxu3  ;;  %v682_v32 = vpop.f32.mrf.mxu2 }
 0x165   :  { %3630 = vpow2.f32 %v3561_v19  ;;  %v703_v24 = vadd.f32 %v702_v22, %v622_v10  ;;  %v789_v26 = vpop.f32.mrf.mxu0  ;;  %v809_v28 = vpop.f32.mrf.mxu1  ;;  %v683_v41 = vadd.f32 %v682_v32, %v602_v2 }
 0x166   :  { %v856_v29 = vrot.slane %v789_v26, 6  ;;  %v857_v30 = vrot.slane %v809_v28, 6 }
 0x167   :  { %v708_v33 = vadd.f32 %v703_v24, %v5475_v21  ;;  %v707_v45 = vadd.f32 %v683_v41, %v5480_v37 }
 0x168   :  { %v864_v34 = vadd.f32 %v856_v29, %v5240_v3  ;;  %v865_v35 = vadd.f32 %v857_v30, %v5249_v8 }
 0x169   :  { %v3562_v36 = vmul.f32 -1.442695, %v708_v33 }
 0x16a   :  { %v3629_v31 = vpop.eup %3628  ;;  %v3563_v38 = vmul.f32 -1.442695, %v864_v34  ;;  %v3564_v42 = vmul.f32 -1.442695, %v865_v35 }
 0x16b   :  { %v3631_v39 = vpop.eup %3630  ;;  %v712_v40 = vadd.f32 1.0, %v3629_v31  ;;  %3632 = vpow2.f32 %v3562_v36 }
 0x16c   :  { %v731_v43 = vadd.f32 1.0, %v3631_v39  ;;  %3634 = vpow2.f32 %v3563_v38  ;;  %v849_v44 = vpop.f32.mrf.mxu3  ;;  %v829_v48 = vpop.f32.mrf.mxu2 }
 0x16d   :  { %3636 = vrcp.f32 %v712_v40  ;;  %v859_v46 = vrot.slane %v849_v44, 6  ;;  %v858_v56 = vrot.slane %v829_v48, 6  ;;  %v722_v61 = vand.u32 2147483647, %v712_v40 }
 0x16e   :  { %3638 = vrcp.f32 %v731_v43  ;;  %v724_v9 = vand.u32 2147483648, %v712_v40  ;;  %v743_v2 = vand.u32 2147483648, %v731_v43  ;;  %v741_v13 = vand.u32 2147483647, %v731_v43 }
 0x16f   :  { %3640 = vpow2.f32 %v3564_v42  ;;  %v867_v51 = vadd.f32 %v859_v46, %v5269_v16  ;;  %v866_v14 = vadd.f32 %v858_v56, %v5305_v27  ;;  %vm737_vm15 = vweird.f32 %v731_v43 }
 0x170   :  { %3642 = vtanh.f32 %v707_v45  ;;  %vm718_vm0 = vweird.f32 %v712_v40  ;;  %vm723_vm1 = vcmp.eq.f32.partialorder %v722_v61, 8.507059e+37  ;;  %v744_v22 = vor.u32 1.1754944e-38, %v743_v2 }
 0x171   :  { %v3633_v47 = vpop.eup %3632  ;;  %v3565_v57 = vmul.f32 -1.442695, %v867_v51  ;;  %v725_v24 = vor.u32 1.1754944e-38, %v724_v9  ;;  %vm742_vm4 = vcmp.eq.f32.partialorder %v741_v13, 8.507059e+37 }
 0x172   :  { %v3635_v49 = vpop.eup %3634  ;;  %v5483_v50 = vadd.f32 1.0, %v3633_v47 }
 0x173   :  { %v3637_v52 = vpop.eup %3636  ;;  %v5486_v53 = vadd.f32 1.0, %v3635_v49 }
 0x174   :  { %v3639_v54 = vpop.eup %3638  ;;  %v714_v55 = vmul.f32 %v3637_v52, %v712_v40  ;;  %3644 = vrcp.f32 %v5483_v50  ;;  %vm719_vm13 = vweird.f32 %v3637_v52  ;;  %vm757_vm11 = vweird.f32 %v5483_v50 }
 0x175   :  { %v3641_v58 = vpop.eup %3640  ;;  %v733_v59 = vmul.f32 %v3639_v54, %v731_v43  ;;  %3646 = vrcp.f32 %v5486_v53  ;;  %vm738_vm14 = vweird.f32 %v3639_v54  ;;  %vm720_vm2 = vmor %vm718_vm0, %vm719_vm13  ;;  %v883_v36 = vand.u32 2147483648, %v5486_v53 }
 0x176   :  { %v715_v60 = vsub.f32 1.0, %v714_v55  ;;  %v5490_v6 = vadd.f32 1.0, %v3641_v58  ;;  %3648 = vpow2.f32 %v3565_v57  ;;  %v3643_v15 = vpop.eup %3642  ;;  %vm739_vm3 = vmor %vm737_vm15, %vm738_vm14  ;;  %vm877_vm5 = vweird.f32 %v5486_v53 }
 0x177   :  { %v734_v10 = vsub.f32 1.0, %v733_v59  ;;  %v881_v46 = vand.u32 2147483647, %v5486_v53  ;;  %v884_v51 = vor.u32 1.1754944e-38, %v883_v36  ;;  %v763_v58 = vand.u32 2147483648, %v5483_v50  ;;  %v5549_v36 = vld [vmem:[#allocation3 + $0x1f8] sm:$0xff] }
 0x178   :  { %v716_v5 = vmul.f32 %v3637_v52, %v715_v60  ;;  %3650 = vrcp.f32 %v5490_v6  ;;  %v902_v49 = vand.u32 2147483648, %v5490_v6  ;;  %v900_v55 = vand.u32 2147483647, %v5490_v6 }
 0x179   :  { %v735_v63 = vmul.f32 %v3639_v54, %v734_v10  ;;  %3652 = vtanh.f32 %v866_v14  ;;  %vm882_vm10 = vcmp.eq.f32.partialorder %v881_v46, 8.507059e+37  ;;  %v761_v60 = vand.u32 2147483647, %v5483_v50  ;;  %v5611_v10 = vld [vmem:[#allocation3 + $0x148] sm:$0xff] }
 0x17a   :  { %v5494_v0 = vpop.eup %3644  ;;  %v717_v17 = vadd.f32 %v3637_v52, %v716_v5  ;;  %vm896_vm12 = vweird.f32 %v5490_v6  ;;  %v903_v13 = vor.u32 1.1754944e-38, %v902_v49  ;;  %vm901_vm15 = vcmp.eq.f32.partialorder %v900_v55, 8.507059e+37  ;;  %v5575_v49 = vld [vmem:[#allocation3 + $0x1b8] sm:$0xff]  ;;  %v5584_v55 = vld [vmem:[#allocation3 + $0x190] sm:$0xff] }
 0x17b   :  { %v3647_v19 = vpop.eup %3646  ;;  %v736_v26 = vadd.f32 %v3639_v54, %v735_v63  ;;  %v753_v28 = vmul.f32 %v5494_v0, %v5483_v50  ;;  %vm758_vm7 = vweird.f32 %v5494_v0  ;;  %vm762_vm0 = vcmp.eq.f32.partialorder %v761_v60, 8.507059e+37  ;;  %v5598_v60 = vld [vmem:[#allocation3 + $0x170] sm:$0xff] }
 0x17c   :  { %v721_v29 = vsel %vm720_vm2, %v3637_v52, %v717_v17  ;;  %v873_v30 = vmul.f32 %v3647_v19, %v5486_v53  ;;  %v3649_v32 = vpop.eup %3648  ;;  %vm878_vm6 = vweird.f32 %v3647_v19  ;;  %vm5521_vm13 = vmor %vm757_vm11, %vm758_vm7  ;;  %v927_v53 = vrot.slane %v5335_v20, 6 }
 0x17d   :  { %v726_v33 = vsel %vm723_vm1, %v725_v24, %v721_v29  ;;  %v740_v34 = vsel %vm739_vm3, %v3639_v54, %v736_v26  ;;  %v754_v35 = vsub.f32 1.0, %v753_v28  ;;  %v5500_v41 = vadd.f32 1.0, %v3649_v32  ;;  %vm879_vm9 = vmor %vm877_vm5, %vm878_vm6  ;;  %v5536_v32 = vld [vmem:[#allocation3 + $0x1e0] sm:$0xff] }
 0x17e   :  { %v3651_v31 = vpop.eup %3650  ;;  %v745_v38 = vsel %vm742_vm4, %v744_v22, %v740_v34  ;;  %v768_v39 = vmul.f32 %v3643_v15, %v726_v33  ;;  %v874_v40 = vsub.f32 1.0, %v873_v30  ;;  %v764_v15 = vor.u32 1.1754944e-38, %v763_v58  ;;  %v5539_v33 = vld [vmem:[#allocation3 + $0x1e8] sm:$0xff]  ;;  %v5592_v58 = vld [vmem:[#allocation3 + $0x160] sm:$0xff] }
 0x17f   :  { %v767_v42 = vmul.f32 0.0, %v745_v38  ;;  %v892_v43 = vmul.f32 %v3651_v31, %v5490_v6  ;;  %v755_v44 = vmul.f32 %v5494_v0, %v754_v35  ;;  %3654 = vrcp.f32 %v5500_v41  ;;  %v3653_v52 = vpop.eup %3652  ;;  %v5546_v35 = vld [vmem:[#allocation3 + $0x1f0] sm:$0xff]  ;;  %v5554_v38 = vld [vmem:[#allocation3 + $0x1c0] sm:$0xff] }
 0x180   :  { %v875_v45 = vmul.f32 %v3647_v19, %v874_v40  ;;  %vm897_vm8 = vweird.f32 %v3651_v31  ;;  %v922_v29 = vand.u32 2147483648, %v5500_v41  ;;  %vm916_vm2 = vweird.f32 %v5500_v41  ;;  %v5668_v34 = vld [vmem:[#allocation3 + $0xa0] sm:$0xff] }
 0x181   :  { %v5507_v47 = vadd.f32 %v768_v39, %v767_v42  ;;  %v893_v48 = vsub.f32 1.0, %v892_v43  ;;  %v756_v56 = vadd.f32 %v5494_v0, %v755_v44  ;;  %vm898_vm14 = vmor %vm896_vm12, %vm897_vm8  ;;  %v920_v30 = vand.u32 2147483647, %v5500_v41  ;;  %v5557_v39 = vld [vmem:[#allocation3 + $0x1c8] sm:$0xff]  ;;  %v5563_v42 = vld [vmem:[#allocation3 + $0x1d8] sm:$0xff]  ;;  %9238 = vst [vmem:[#allocation19_spill] sm:$0xff] %v5668_v34 }
 0x182   :  { %v876_v54 = vadd.f32 %v3647_v19, %v875_v45  ;;  %v923_v40 = vor.u32 1.1754944e-38, %v922_v29  ;;  %v5566_v43 = vld [vmem:[#allocation3 + $0x1a0] sm:$0xff]  ;;  %v5569_v44 = vld [vmem:[#allocation3 + $0x1a8] sm:$0xff]  ;;  %v5662_v29 = vld [vmem:[#allocation3 + $0xd0] sm:$0xff] }
 0x183   :  { %3656 = vtanh.f32 %v5507_v47  ;;  %v894_v57 = vmul.f32 %v3651_v31, %v893_v48  ;;  %v760_v5 = vsel %vm5521_vm13, %v5494_v0, %v756_v56  ;;  %vm921_vm4 = vcmp.eq.f32.partialorder %v920_v30, 8.507059e+37  ;;  %v5572_v48 = vld [vmem:[#allocation3 + $0x1b0] sm:$0xff]  ;;  %v5587_v56 = vld [vmem:[#allocation3 + $0x198] sm:$0xff]  ;;  %9236 = vst [vmem:[#allocation20_spill] sm:$0xff] %v5662_v29 }
 0x184   :  { %v880_v59 = vsel %vm879_vm9, %v3647_v19, %v876_v54  ;;  %v765_v24 = vsel %vm762_vm0, %v764_v15, %v760_v5  ;;  %v5581_v54 = vld [vmem:[#allocation3 + $0x188] sm:$0xff]  ;;  %v5665_v30 = vld [vmem:[#allocation3 + $0xd8] sm:$0xff] }
 0x185   :  { %v885_v61 = vsel %vm882_vm10, %v884_v51, %v880_v59  ;;  %v895_v9 = vadd.f32 %v3651_v31, %v894_v57  ;;  %v3655_v2 = vpop.eup %3654  ;;  %v5595_v59 = vld [vmem:[#allocation3 + $0x168] sm:$0xff]  ;;  %9237 = vst [vmem:[#allocation21_spill] sm:$0xff] %v5665_v30 }
 0x186   :  { %v930_v50 = vmul.f32 %v3653_v52, %v885_v61  ;;  %v912_v6 = vmul.f32 %v3655_v2, %v5500_v41  ;;  %vm917_vm1 = vweird.f32 %v3655_v2  ;;  %v5560_v41 = vld [vmem:[#allocation3 + $0x1d0] sm:$0xff]  ;;  %v5578_v52 = vld [vmem:[#allocation3 + $0x180] sm:$0xff]  ;;  %v5601_v61 = vld [vmem:[#allocation3 + $0x178] sm:$0xff] }
 0x187   :  { %v899_v14 = vsel %vm898_vm14, %v3651_v31, %v895_v9  ;;  %vm5542_vm3 = vmor %vm916_vm2, %vm917_vm1  ;;  %v5608_v9 = vld [vmem:[#allocation3 + $0x140] sm:$0xff]  ;;  %v5623_v5 = vld [vmem:[#allocation3 + $0x128] sm:$0xff] }
 0x188   :  { %v904_v63 = vsel %vm901_vm15, %v903_v13, %v899_v14  ;;  %v913_v22 = vsub.f32 1.0, %v912_v6  ;;  %v5620_v13 = vld [vmem:[#allocation3 + $0x120] sm:$0xff]  ;;  %v5626_v14 = vld [vmem:[#allocation3 + $0x130] sm:$0xff]  ;;  %v5635_v15 = vld [vmem:[#allocation3 + $0x108] sm:$0xff] }
 0x189   :  { %v3657_v17 = vpop.eup %3656  ;;  %v929_v19 = vmul.f32 %v927_v53, %v904_v63  ;;  %v5617_v53 = vld [vmem:[#allocation3 + $0x158] sm:$0xff]  ;;  %v5632_v6 = vld [vmem:[#allocation3 + $0x100] sm:$0xff]  ;;  %v5638_v63 = vld [vmem:[#allocation3 + $0x110] sm:$0xff] }
 0x18a   :  { %v771_v26 = vmul.f32 %v3657_v17, %v765_v24  ;;  %v914_v28 = vmul.f32 %v3655_v2, %v913_v22  ;;  %v5641_v17 = vld [vmem:[#allocation3 + $0x118] sm:$0xff]  ;;  %v5647_v22 = vld [vmem:[#allocation3 + $0xe8] sm:$0xff]  ;;  %v5650_v24 = vld [vmem:[#allocation3 + $0xf0] sm:$0xff] }
 0x18b   :  { %v5530_v20 = vadd.f32 %v930_v50, %v929_v19  ;;  %v5629_v50 = vld [vmem:[#allocation3 + $0x138] sm:$0xff]  ;;  %v5644_v19 = vld [vmem:[#allocation3 + $0xe0] sm:$0xff]  ;;  %9231 = vst [vmem:[#allocation12_spill] sm:$0xff] %v5647_v22 }
 0x18c   :  { %950 = vmatmul.f32.vlgmr.msra.gmra.mxu0 %v771_v26  ;;  %970 = vmatmul.f32.vlgmr.msra.gmra.mxu1 %v771_v26  ;;  %v915_v0 = vadd.f32 %v3655_v2, %v914_v28  ;;  %9232 = vst [vmem:[#allocation17_spill] sm:$0xff] %v5650_v24  ;;  %v5656_v28 = vld [vmem:[#allocation3 + $0xc0] sm:$0xff] }
 0x18d   :  { %3658 = vtanh.f32 %v5530_v20  ;;  %990 = vmatmul.f32.vlgmr.msrb.gmra.mxu2 %v771_v26  ;;  %1010 = vmatmul.f32.vlgmr.msrb.gmra.mxu3 %v771_v26  ;;  %v5653_v26 = vld [vmem:[#allocation3 + $0xf8] sm:$0xff]  ;;  %9234 = vst [vmem:[#allocation15_spill] sm:$0xff] %v5656_v28 }
 0x18e   :  { %1164 = vmatpush.msra.mxu0 %v5536_v32  ;;  %1184 = vmatpush.msra.mxu1 %v5539_v33  ;;  %v919_v31 = vsel %vm5542_vm3, %v3655_v2, %v915_v0  ;;  %v5614_v2 = vld [vmem:[#allocation3 + $0x150] sm:$0xff]  ;;  %9233 = vst [vmem:[#allocation18_spill] sm:$0xff] %v5653_v26  ;;  %v5659_v0 = vld [vmem:[#allocation3 + $0xc8] sm:$0xff] }
 0x18f   :  { %1204 = vmatpush.msrb.mxu2 %v5546_v35  ;;  %1224 = vmatpush.msrb.mxu3 %v5549_v36  ;;  %v924_v46 = vsel %vm921_vm4, %v923_v40, %v919_v31  ;;  %9235 = vst [vmem:[#allocation16_spill] sm:$0xff] %v5659_v0  ;;  %v5671_v31 = vld [vmem:[#allocation3 + $0xa8] sm:$0xff]  ;;  %v5674_v40 = vld [vmem:[#allocation3 + $0xb0] sm:$0xff] }
 0x190   :  { %1165 = vmatpush.msra.mxu0 %v5554_v38  ;;  %1185 = vmatpush.msra.mxu1 %v5557_v39  ;;  %9239 = vst [vmem:[#allocation22_spill] sm:$0xff] %v5671_v31 }
 0x191   :  { %1205 = vmatpush.msrb.mxu2 %v5560_v41  ;;  %1225 = vmatpush.msrb.mxu3 %v5563_v42  ;;  %9240 = vst [vmem:[#allocation23_spill] sm:$0xff] %v5674_v40 }
 0x192   :  { %1166 = vmatpush.msra.mxu0 %v5566_v43  ;;  %1186 = vmatpush.msra.mxu1 %v5569_v44 }
 0x193   :  { %v3659_v45 = vpop.eup %3658  ;;  %1206 = vmatpush.msrb.mxu2 %v5572_v48  ;;  %1226 = vmatpush.msrb.mxu3 %v5575_v49 }
 0x194   :  { %v933_v51 = vmul.f32 %v3659_v45, %v924_v46  ;;  %1167 = vmatpush.msra.mxu0 %v5578_v52  ;;  %1187 = vmatpush.msra.mxu1 %v5581_v54  ;;  %v5677_v45 = vld [vmem:[#allocation3 + $0xb8] sm:$0xff]  ;;  %v5680_v46 = vld [vmem:[#allocation3 + $0x80] sm:$0xff] }
 0x195   :  { %1207 = vmatpush.msrb.mxu2 %v5584_v55  ;;  %1227 = vmatpush.msrb.mxu3 %v5587_v56  ;;  %9241 = vst [vmem:[#allocation24_spill] sm:$0xff] %v5677_v45 }
 0x196   :  { %v5590_v57 = vrot.slane %v933_v51, 2  ;;  %1168 = vmatpush.msra.mxu0 %v5592_v58  ;;  %1188 = vmatpush.msra.mxu1 %v5595_v59  ;;  %9242 = vst [vmem:[#allocation25_spill] sm:$0xff] %v5680_v46  ;;  %v5683_v51 = vld [vmem:[#allocation3 + $0x88] sm:$0xff] }
 0x197   :  { %1208 = vmatpush.msrb.mxu2 %v5598_v60  ;;  %1228 = vmatpush.msrb.mxu3 %v5601_v61  ;;  %9243 = vst [vmem:[#allocation26_spill] sm:$0xff] %v5683_v51 }
 0x198   :  { %1033 = vmatmul.f32.vlgmr.msrb.gmra.mxu0 %v5590_v57  ;;  %1053 = vmatmul.f32.vlgmr.msrb.gmra.mxu1 %v5590_v57 }
 0x199   :  { %1073 = vmatmul.f32.vlgmr.msra.gmra.mxu2 %v5590_v57  ;;  %1093 = vmatmul.f32.vlgmr.msra.gmra.mxu3 %v5590_v57 }
 0x19a   :  { %1169 = vmatpush.msra.mxu0 %v5608_v9  ;;  %1189 = vmatpush.msra.mxu1 %v5611_v10 }
 0x19b   :  { %1209 = vmatpush.msrb.mxu2 %v5614_v2  ;;  %1229 = vmatpush.msrb.mxu3 %v5617_v53 }
 0x19c   :  { %1170 = vmatpush.msra.mxu0 %v5620_v13  ;;  %1190 = vmatpush.msra.mxu1 %v5623_v5 }
 0x19d   :  { %1210 = vmatpush.msrb.mxu2 %v5626_v14  ;;  %1230 = vmatpush.msrb.mxu3 %v5629_v50 }
 0x19e   :  { %1171 = vmatpush.msra.mxu0 %v5632_v6  ;;  %1191 = vmatpush.msra.mxu1 %v5635_v15 }
 0x19f   :  { %1211 = vmatpush.msrb.mxu2 %v5638_v63  ;;  %1231 = vmatpush.msrb.mxu3 %v5641_v17 }
 0x1a0   :  { %1172 = vmatpush.msra.mxu0 %v5644_v19  ;;  %1192 = vmatpush.msra.mxu1 %v5647_v22 }
 0x1a1   :  { %1212 = vmatpush.msrb.mxu2 %v5650_v24  ;;  %1232 = vmatpush.msrb.mxu3 %v5653_v26 }
 0x1a2   :  { %1173 = vmatpush.msra.mxu0 %v5656_v28  ;;  %1193 = vmatpush.msra.mxu1 %v5659_v0 }
 0x1a3   :  { %1213 = vmatpush.msrb.mxu2 %v5662_v29  ;;  %1233 = vmatpush.msrb.mxu3 %v5665_v30 }
 0x1a4   :  { %1174 = vmatpush.msra.mxu0 %v5668_v34  ;;  %1194 = vmatpush.msra.mxu1 %v5671_v31 }
 0x1a5   :  { %1214 = vmatpush.msrb.mxu2 %v5674_v40  ;;  %1234 = vmatpush.msrb.mxu3 %v5677_v45 }
 0x1a6   :  { %1175 = vmatpush.msra.mxu0 %v5680_v46  ;;  %1195 = vmatpush.msra.mxu1 %v5683_v51 }
 0x1a7   :  { %1215 = vmatpush.msrb.mxu2 %v5686_v25  ;;  %1235 = vmatpush.msrb.mxu3 %v5689_v12  ;;  %v5707_v12 = vld [vmem:[#allocation3 + $0x48] sm:$0xff] }
 0x1a8   :  { %1176 = vmatpush.msra.mxu0 %v5692_v23  ;;  %1196 = vmatpush.msra.mxu1 %v5695_v1  ;;  %9251 = vst [vmem:[#allocation34_spill] sm:$0xff] %v5707_v12  ;;  %v5710_v23 = vld [vmem:[#allocation3 + $0x50] sm:$0xff]  ;;  %v5713_v1 = vld [vmem:[#allocation3 + $0x58] sm:$0xff] }
 0x1a9   :  { %1216 = vmatpush.msrb.mxu2 %v5698_v18  ;;  %1236 = vmatpush.msrb.mxu3 %v5701_v62  ;;  %9252 = vst [vmem:[#allocation35_spill] sm:$0xff] %v5710_v23  ;;  %v5716_v18 = vld [vmem:[#allocation3 + $0x20] sm:$0xff]  ;;  %v5719_v62 = vld [vmem:[#allocation3 + $0x28] sm:$0xff] }
 0x1aa   :  { %1177 = vmatpush.msra.mxu0 %v5704_v7  ;;  %1197 = vmatpush.msra.mxu1 %v5707_v12  ;;  %9253 = vst [vmem:[#allocation36_spill] sm:$0xff] %v5713_v1  ;;  %v5722_v7 = vld [vmem:[#allocation3 + $0x30] sm:$0xff]  ;;  %v5725_v12 = vld [vmem:[#allocation3 + $0x38] sm:$0xff] }
 0x1ab   :  { %1217 = vmatpush.msrb.mxu2 %v5710_v23  ;;  %1237 = vmatpush.msrb.mxu3 %v5713_v1  ;;  %9254 = vst [vmem:[#allocation37_spill] sm:$0xff] %v5716_v18  ;;  %v5728_v23 = vld [vmem:[#allocation3] sm:$0xff]  ;;  %v5731_v1 = vld [vmem:[#allocation3 + $0x8] sm:$0xff] }
 0x1ac   :  { %1178 = vmatpush.msra.mxu0 %v5716_v18  ;;  %9255 = vst [vmem:[#allocation38_spill] sm:$0xff] %v5719_v62  ;;  %1198 = vmatpush.msra.mxu1 %v5719_v62  ;;  %v5734_v18 = vld [vmem:[#allocation3 + $0x10] sm:$0xff]  ;;  %v5737_v62 = vld [vmem:[#allocation3 + $0x18] sm:$0xff] }
 0x1ad   :  { %9256 = vst [vmem:[#allocation39_spill] sm:$0xff] %v5722_v7  ;;  %1218 = vmatpush.msrb.mxu2 %v5722_v7  ;;  %1238 = vmatpush.msrb.mxu3 %v5725_v12 }
 0x1ae   :  { %9257 = vst [vmem:[#allocation40_spill] sm:$0xff] %v5725_v12  ;;  %1179 = vmatpush.msra.mxu0 %v5728_v23  ;;  %1199 = vmatpush.msra.mxu1 %v5731_v1  ;;  %v5756_v12 = vld [vmem:[#allocation7 + $0x1c0] sm:$0xff] }
 0x1af   :  { %9258 = vst [vmem:[#allocation41_spill] sm:$0xff] %v5728_v23  ;;  %1219 = vmatpush.msrb.mxu2 %v5734_v18  ;;  %1239 = vmatpush.msrb.mxu3 %v5737_v62  ;;  %v5744_v23 = vld [vmem:[#allocation7 + $0x1e0] sm:$0xff] }
 0x1b0   :  { %9259 = vst [vmem:[#allocation42_spill] sm:$0xff] %v5731_v1  ;;  %1180 = vmatmul.f32.vlgmr.msra.gmra.mxu0 %v5590_v57  ;;  %1200 = vmatmul.f32.vlgmr.msra.gmra.mxu1 %v5590_v57  ;;  %v5747_v1 = vld [vmem:[#allocation7 + $0x1e8] sm:$0xff] }
 0x1b1   :  { %9260 = vst [vmem:[#allocation43_spill] sm:$0xff] %v5734_v18  ;;  %1220 = vmatmul.f32.vlgmr.msrb.gmra.mxu2 %v5590_v57  ;;  %1240 = vmatmul.f32.vlgmr.msrb.gmra.mxu3 %v5590_v57  ;;  %v5750_v18 = vld [vmem:[#allocation7 + $0x1f0] sm:$0xff]  ;;  %v5759_v57 = vld [vmem:[#allocation7 + $0x1c8] sm:$0xff] }
 0x1b2   :  { %9261 = vst [vmem:[#allocation44_spill] sm:$0xff] %v5737_v62  ;;  %1326 = vmatpush.msrb.mxu0 %v5744_v23  ;;  %1346 = vmatpush.msrb.mxu1 %v5747_v1  ;;  %v5753_v62 = vld [vmem:[#allocation7 + $0x1f8] sm:$0xff] }
 0x1b3   :  { %9262 = vst [vmem:[#allocation45_spill] sm:$0xff] %v5744_v23  ;;  %1366 = vmatpush.msra.mxu2 %v5750_v18  ;;  %1386 = vmatpush.msra.mxu3 %v5753_v62  ;;  %v5762_v23 = vld [vmem:[#allocation7 + $0x1d0] sm:$0xff] }
 0x1b4   :  { %9263 = vst [vmem:[#allocation46_spill] sm:$0xff] %v5747_v1  ;;  %1327 = vmatpush.msrb.mxu0 %v5756_v12  ;;  %1347 = vmatpush.msrb.mxu1 %v5759_v57  ;;  %v5765_v1 = vld [vmem:[#allocation7 + $0x1d8] sm:$0xff] }
 0x1b5   :  { %9264 = vst [vmem:[#allocation47_spill] sm:$0xff] %v5750_v18  ;;  %1367 = vmatpush.msra.mxu2 %v5762_v23  ;;  %1387 = vmatpush.msra.mxu3 %v5765_v1  ;;  %v5768_v18 = vld [vmem:[#allocation7 + $0x1a0] sm:$0xff] }
 0x1b6   :  { %9265 = vst [vmem:[#allocation48_spill] sm:$0xff] %v5753_v62  ;;  %1328 = vmatpush.msrb.mxu0 %v5768_v18  ;;  %v5771_v62 = vld [vmem:[#allocation7 + $0x1a8] sm:$0xff] }
 0x1b7   :  { %9266 = vst [vmem:[#allocation49_spill] sm:$0xff] %v5756_v12  ;;  %1348 = vmatpush.msrb.mxu1 %v5771_v62  ;;  %v5774_v12 = vld [vmem:[#allocation7 + $0x1b0] sm:$0xff] }
 0x1b8   :  { %9267 = vst [vmem:[#allocation50_spill] sm:$0xff] %v5759_v57  ;;  %1368 = vmatpush.msra.mxu2 %v5774_v12  ;;  %v5777_v57 = vld [vmem:[#allocation7 + $0x1b8] sm:$0xff] }
 0x1b9   :  { %9268 = vst [vmem:[#allocation51_spill] sm:$0xff] %v5762_v23  ;;  %1388 = vmatpush.msra.mxu3 %v5777_v57  ;;  %v5780_v23 = vld [vmem:[#allocation7 + $0x180] sm:$0xff] }
 0x1ba   :  { %9269 = vst [vmem:[#allocation52_spill] sm:$0xff] %v5765_v1  ;;  %1329 = vmatpush.msrb.mxu0 %v5780_v23  ;;  %v5783_v1 = vld [vmem:[#allocation7 + $0x188] sm:$0xff] }
 0x1bb   :  { %9270 = vst [vmem:[#allocation53_spill] sm:$0xff] %v5768_v18  ;;  %1349 = vmatpush.msrb.mxu1 %v5783_v1  ;;  %v5786_v18 = vld [vmem:[#allocation7 + $0x190] sm:$0xff] }
 0x1bc   :  { %9271 = vst [vmem:[#allocation54_spill] sm:$0xff] %v5771_v62  ;;  %1369 = vmatpush.msra.mxu2 %v5786_v18  ;;  %v5789_v62 = vld [vmem:[#allocation7 + $0x198] sm:$0xff] }
 0x1bd   :  { %9272 = vst [vmem:[#allocation55_spill] sm:$0xff] %v5774_v12  ;;  %1389 = vmatpush.msra.mxu3 %v5789_v62  ;;  %v5792_v12 = vld [vmem:[#allocation7 + $0x160] sm:$0xff] }
 0x1be   :  { %9273 = vst [vmem:[#allocation56_spill] sm:$0xff] %v5777_v57  ;;  %1330 = vmatpush.msrb.mxu0 %v5792_v12  ;;  %v5795_v57 = vld [vmem:[#allocation7 + $0x168] sm:$0xff] }
 0x1bf   :  { %9274 = vst [vmem:[#allocation57_spill] sm:$0xff] %v5780_v23  ;;  %1350 = vmatpush.msrb.mxu1 %v5795_v57  ;;  %v5798_v23 = vld [vmem:[#allocation7 + $0x170] sm:$0xff] }
 0x1c0   :  { %9275 = vst [vmem:[#allocation58_spill] sm:$0xff] %v5783_v1  ;;  %1370 = vmatpush.msra.mxu2 %v5798_v23  ;;  %v5801_v1 = vld [vmem:[#allocation7 + $0x178] sm:$0xff] }
 0x1c1   :  { %9276 = vst [vmem:[#allocation59_spill] sm:$0xff] %v5786_v18  ;;  %1390 = vmatpush.msra.mxu3 %v5801_v1  ;;  %v5804_v18 = vld [vmem:[#allocation7 + $0x140] sm:$0xff] }
 0x1c2   :  { %9277 = vst [vmem:[#allocation60_spill] sm:$0xff] %v5789_v62  ;;  %1331 = vmatpush.msrb.mxu0 %v5804_v18  ;;  %v5807_v62 = vld [vmem:[#allocation7 + $0x148] sm:$0xff] }
 0x1c3   :  { %9278 = vst [vmem:[#allocation61_spill] sm:$0xff] %v5792_v12  ;;  %1351 = vmatpush.msrb.mxu1 %v5807_v62  ;;  %v5810_v12 = vld [vmem:[#allocation7 + $0x150] sm:$0xff] }
 0x1c4   :  { %9279 = vst [vmem:[#allocation62_spill] sm:$0xff] %v5795_v57  ;;  %1371 = vmatpush.msra.mxu2 %v5810_v12  ;;  %v5813_v57 = vld [vmem:[#allocation7 + $0x158] sm:$0xff] }
 0x1c5   :  { %9280 = vst [vmem:[#allocation63_spill] sm:$0xff] %v5798_v23  ;;  %1391 = vmatpush.msra.mxu3 %v5813_v57  ;;  %v5816_v23 = vld [vmem:[#allocation7 + $0x120] sm:$0xff] }
 0x1c6   :  { %9281 = vst [vmem:[#allocation64_spill] sm:$0xff] %v5801_v1  ;;  %1332 = vmatpush.msrb.mxu0 %v5816_v23  ;;  %v5819_v1 = vld [vmem:[#allocation7 + $0x128] sm:$0xff] }
 0x1c7   :  { %9282 = vst [vmem:[#allocation65_spill] sm:$0xff] %v5804_v18  ;;  %1352 = vmatpush.msrb.mxu1 %v5819_v1  ;;  %v5822_v18 = vld [vmem:[#allocation7 + $0x130] sm:$0xff] }
 0x1c8   :  { %9283 = vst [vmem:[#allocation66_spill] sm:$0xff] %v5807_v62  ;;  %1372 = vmatpush.msra.mxu2 %v5822_v18  ;;  %v5825_v62 = vld [vmem:[#allocation7 + $0x138] sm:$0xff] }
 0x1c9   :  { %9284 = vst [vmem:[#allocation67_spill] sm:$0xff] %v5810_v12  ;;  %1392 = vmatpush.msra.mxu3 %v5825_v62  ;;  %v5828_v12 = vld [vmem:[#allocation7 + $0x100] sm:$0xff] }
 0x1ca   :  { %9285 = vst [vmem:[#allocation68_spill] sm:$0xff] %v5813_v57  ;;  %1333 = vmatpush.msrb.mxu0 %v5828_v12  ;;  %v5831_v57 = vld [vmem:[#allocation7 + $0x108] sm:$0xff] }
 0x1cb   :  { %9286 = vst [vmem:[#allocation69_spill] sm:$0xff] %v5816_v23  ;;  %1353 = vmatpush.msrb.mxu1 %v5831_v57  ;;  %v5834_v23 = vld [vmem:[#allocation7 + $0x110] sm:$0xff] }
 0x1cc   :  { %9287 = vst [vmem:[#allocation70_spill] sm:$0xff] %v5819_v1  ;;  %1373 = vmatpush.msra.mxu2 %v5834_v23  ;;  %v5837_v1 = vld [vmem:[#allocation7 + $0x118] sm:$0xff] }
 0x1cd   :  { %9288 = vst [vmem:[#allocation71_spill] sm:$0xff] %v5822_v18  ;;  %1393 = vmatpush.msra.mxu3 %v5837_v1  ;;  %v5840_v18 = vld [vmem:[#allocation7 + $0xe0] sm:$0xff] }
 0x1ce   :  { %9289 = vst [vmem:[#allocation72_spill] sm:$0xff] %v5825_v62  ;;  %1334 = vmatpush.msrb.mxu0 %v5840_v18  ;;  %v5843_v62 = vld [vmem:[#allocation7 + $0xe8] sm:$0xff] }
 0x1cf   :  { %9290 = vst [vmem:[#allocation73_spill] sm:$0xff] %v5828_v12  ;;  %1354 = vmatpush.msrb.mxu1 %v5843_v62  ;;  %v5846_v12 = vld [vmem:[#allocation7 + $0xf0] sm:$0xff] }
 0x1d0   :  { %9291 = vst [vmem:[#allocation74_spill] sm:$0xff] %v5831_v57  ;;  %1374 = vmatpush.msra.mxu2 %v5846_v12  ;;  %v5849_v57 = vld [vmem:[#allocation7 + $0xf8] sm:$0xff] }
 0x1d1   :  { %9292 = vst [vmem:[#allocation75_spill] sm:$0xff] %v5834_v23  ;;  %1394 = vmatpush.msra.mxu3 %v5849_v57  ;;  %v5852_v23 = vld [vmem:[#allocation7 + $0xc0] sm:$0xff] }
 0x1d2   :  { %9293 = vst [vmem:[#allocation76_spill] sm:$0xff] %v5837_v1  ;;  %1335 = vmatpush.msrb.mxu0 %v5852_v23  ;;  %v5855_v1 = vld [vmem:[#allocation7 + $0xc8] sm:$0xff] }
 0x1d3   :  { %9294 = vst [vmem:[#allocation77_spill] sm:$0xff] %v5840_v18  ;;  %1355 = vmatpush.msrb.mxu1 %v5855_v1  ;;  %v5858_v18 = vld [vmem:[#allocation7 + $0xd0] sm:$0xff] }
 0x1d4   :  { %9295 = vst [vmem:[#allocation78_spill] sm:$0xff] %v5843_v62  ;;  %1375 = vmatpush.msra.mxu2 %v5858_v18  ;;  %v5861_v62 = vld [vmem:[#allocation7 + $0xd8] sm:$0xff] }
 0x1d5   :  { %9296 = vst [vmem:[#allocation79_spill] sm:$0xff] %v5846_v12  ;;  %1395 = vmatpush.msra.mxu3 %v5861_v62  ;;  %v5864_v12 = vld [vmem:[#allocation7 + $0xa0] sm:$0xff] }
 0x1d6   :  { %9297 = vst [vmem:[#allocation80_spill] sm:$0xff] %v5849_v57  ;;  %1336 = vmatpush.msrb.mxu0 %v5864_v12  ;;  %v5867_v57 = vld [vmem:[#allocation7 + $0xa8] sm:$0xff] }
 0x1d7   :  { %9298 = vst [vmem:[#allocation81_spill] sm:$0xff] %v5852_v23  ;;  %1356 = vmatpush.msrb.mxu1 %v5867_v57  ;;  %v5870_v23 = vld [vmem:[#allocation7 + $0xb0] sm:$0xff] }
 0x1d8   :  { %9299 = vst [vmem:[#allocation82_spill] sm:$0xff] %v5855_v1  ;;  %1376 = vmatpush.msra.mxu2 %v5870_v23  ;;  %v5873_v1 = vld [vmem:[#allocation7 + $0xb8] sm:$0xff] }
 0x1d9   :  { %9300 = vst [vmem:[#allocation83_spill] sm:$0xff] %v5858_v18  ;;  %1396 = vmatpush.msra.mxu3 %v5873_v1  ;;  %v5876_v18 = vld [vmem:[#allocation7 + $0x80] sm:$0xff] }
 0x1da   :  { %9301 = vst [vmem:[#allocation84_spill] sm:$0xff] %v5861_v62  ;;  %1337 = vmatpush.msrb.mxu0 %v5876_v18  ;;  %v5879_v62 = vld [vmem:[#allocation7 + $0x88] sm:$0xff] }
 0x1db   :  { %9302 = vst [vmem:[#allocation85_spill] sm:$0xff] %v5864_v12  ;;  %1357 = vmatpush.msrb.mxu1 %v5879_v62  ;;  %v5882_v12 = vld [vmem:[#allocation7 + $0x90] sm:$0xff] }
 0x1dc   :  { %9303 = vst [vmem:[#allocation86_spill] sm:$0xff] %v5867_v57  ;;  %1377 = vmatpush.msra.mxu2 %v5882_v12  ;;  %v5885_v57 = vld [vmem:[#allocation7 + $0x98] sm:$0xff] }
 0x1dd   :  { %9304 = vst [vmem:[#allocation87_spill] sm:$0xff] %v5870_v23  ;;  %1397 = vmatpush.msra.mxu3 %v5885_v57  ;;  %v5888_v23 = vld [vmem:[#allocation7 + $0x60] sm:$0xff] }
 0x1de   :  { %9305 = vst [vmem:[#allocation88_spill] sm:$0xff] %v5873_v1  ;;  %1338 = vmatpush.msrb.mxu0 %v5888_v23  ;;  %v5891_v1 = vld [vmem:[#allocation7 + $0x68] sm:$0xff] }
 0x1df   :  { %9306 = vst [vmem:[#allocation89_spill] sm:$0xff] %v5876_v18  ;;  %1358 = vmatpush.msrb.mxu1 %v5891_v1  ;;  %v5894_v18 = vld [vmem:[#allocation7 + $0x70] sm:$0xff] }
 0x1e0   :  { %9307 = vst [vmem:[#allocation90_spill] sm:$0xff] %v5879_v62  ;;  %1378 = vmatpush.msra.mxu2 %v5894_v18  ;;  %v5897_v62 = vld [vmem:[#allocation7 + $0x78] sm:$0xff] }
 0x1e1   :  { %9308 = vst [vmem:[#allocation91_spill] sm:$0xff] %v5882_v12  ;;  %1398 = vmatpush.msra.mxu3 %v5897_v62  ;;  %v5900_v12 = vld [vmem:[#allocation7 + $0x40] sm:$0xff] }
 0x1e2   :  { %9309 = vst [vmem:[#allocation92_spill] sm:$0xff] %v5885_v57  ;;  %1339 = vmatpush.msrb.mxu0 %v5900_v12  ;;  %v5903_v57 = vld [vmem:[#allocation7 + $0x48] sm:$0xff] }
 0x1e3   :  { %9310 = vst [vmem:[#allocation93_spill] sm:$0xff] %v5888_v23  ;;  %1359 = vmatpush.msrb.mxu1 %v5903_v57  ;;  %v5906_v23 = vld [vmem:[#allocation7 + $0x50] sm:$0xff] }
 0x1e4   :  { %9311 = vst [vmem:[#allocation94_spill] sm:$0xff] %v5891_v1  ;;  %1379 = vmatpush.msra.mxu2 %v5906_v23  ;;  %v5909_v1 = vld [vmem:[#allocation7 + $0x58] sm:$0xff] }
 0x1e5   :  { %9312 = vst [vmem:[#allocation95_spill] sm:$0xff] %v5894_v18  ;;  %1399 = vmatpush.msra.mxu3 %v5909_v1  ;;  %v5912_v18 = vld [vmem:[#allocation7 + $0x20] sm:$0xff] }
 0x1e6   :  { %9313 = vst [vmem:[#allocation96_spill] sm:$0xff] %v5897_v62  ;;  %1340 = vmatpush.msrb.mxu0 %v5912_v18  ;;  %v5915_v62 = vld [vmem:[#allocation7 + $0x28] sm:$0xff] }
 0x1e7   :  { %9314 = vst [vmem:[#allocation97_spill] sm:$0xff] %v5900_v12  ;;  %1360 = vmatpush.msrb.mxu1 %v5915_v62  ;;  %v5918_v12 = vld [vmem:[#allocation7 + $0x30] sm:$0xff] }
 0x1e8   :  { %9315 = vst [vmem:[#allocation98_spill] sm:$0xff] %v5903_v57  ;;  %1380 = vmatpush.msra.mxu2 %v5918_v12  ;;  %v5921_v57 = vld [vmem:[#allocation7 + $0x38] sm:$0xff] }
 0x1e9   :  { %9316 = vst [vmem:[#allocation99_spill] sm:$0xff] %v5906_v23  ;;  %1400 = vmatpush.msra.mxu3 %v5921_v57  ;;  %v5924_v23 = vld [vmem:[#allocation7] sm:$0xff] }
 0x1ea   :  { %9317 = vst [vmem:[#allocation100_spill] sm:$0xff] %v5909_v1  ;;  %1341 = vmatpush.msrb.mxu0 %v5924_v23  ;;  %v5927_v1 = vld [vmem:[#allocation7 + $0x8] sm:$0xff] }
 0x1eb   :  { %9318 = vst [vmem:[#allocation101_spill] sm:$0xff] %v5912_v18  ;;  %1361 = vmatpush.msrb.mxu1 %v5927_v1  ;;  %v5930_v18 = vld [vmem:[#allocation7 + $0x10] sm:$0xff] }
 0x1ec   :  { %9319 = vst [vmem:[#allocation102_spill] sm:$0xff] %v5915_v62  ;;  %1381 = vmatpush.msra.mxu2 %v5930_v18  ;;  %v5933_v62 = vld [vmem:[#allocation7 + $0x18] sm:$0xff] }
 0x1ed   :  { %9320 = vst [vmem:[#allocation103_spill] sm:$0xff] %v5918_v12  ;;  %1401 = vmatpush.msra.mxu3 %v5933_v62  ;;  %v5936_v12 = vld [vmem:[#allocation5 + $0x1e0] sm:$0xff] }
 0x1ee   :  { %9321 = vst [vmem:[#allocation104_spill] sm:$0xff] %v5921_v57  ;;  %1409 = vmatpush.msra.mxu0 %v5936_v12  ;;  %v5939_v57 = vld [vmem:[#allocation5 + $0x1e8] sm:$0xff] }
 0x1ef   :  { %9322 = vst [vmem:[#allocation105_spill] sm:$0xff] %v5924_v23  ;;  %1429 = vmatpush.msra.mxu1 %v5939_v57  ;;  %v5942_v23 = vld [vmem:[#allocation5 + $0x1f0] sm:$0xff] }
 0x1f0   :  { %9323 = vst [vmem:[#allocation106_spill] sm:$0xff] %v5927_v1  ;;  %1449 = vmatpush.msrb.mxu2 %v5942_v23  ;;  %v5945_v1 = vld [vmem:[#allocation5 + $0x1f8] sm:$0xff] }
 0x1f1   :  { %9324 = vst [vmem:[#allocation107_spill] sm:$0xff] %v5930_v18  ;;  %1469 = vmatpush.msrb.mxu3 %v5945_v1  ;;  %v5948_v18 = vld [vmem:[#allocation5 + $0x1c0] sm:$0xff] }
 0x1f2   :  { %9325 = vst [vmem:[#allocation108_spill] sm:$0xff] %v5933_v62  ;;  %1410 = vmatpush.msra.mxu0 %v5948_v18  ;;  %v5951_v62 = vld [vmem:[#allocation5 + $0x1c8] sm:$0xff] }
 0x1f3   :  { %9326 = vst [vmem:[#allocation109_spill] sm:$0xff] %v5936_v12  ;;  %1430 = vmatpush.msra.mxu1 %v5951_v62  ;;  %v5954_v12 = vld [vmem:[#allocation5 + $0x1d0] sm:$0xff] }
 0x1f4   :  { %9327 = vst [vmem:[#allocation110_spill] sm:$0xff] %v5939_v57  ;;  %1450 = vmatpush.msrb.mxu2 %v5954_v12  ;;  %v5957_v57 = vld [vmem:[#allocation5 + $0x1d8] sm:$0xff] }
 0x1f5   :  { %9328 = vst [vmem:[#allocation111_spill] sm:$0xff] %v5942_v23  ;;  %1470 = vmatpush.msrb.mxu3 %v5957_v57  ;;  %v5960_v23 = vld [vmem:[#allocation5 + $0x1a0] sm:$0xff] }
 0x1f6   :  { %9329 = vst [vmem:[#allocation112_spill] sm:$0xff] %v5945_v1  ;;  %1411 = vmatpush.msra.mxu0 %v5960_v23  ;;  %v5963_v1 = vld [vmem:[#allocation5 + $0x1a8] sm:$0xff] }
 0x1f7   :  { %9330 = vst [vmem:[#allocation113_spill] sm:$0xff] %v5948_v18  ;;  %1431 = vmatpush.msra.mxu1 %v5963_v1  ;;  %v5966_v18 = vld [vmem:[#allocation5 + $0x1b0] sm:$0xff] }
 0x1f8   :  { %9331 = vst [vmem:[#allocation114_spill] sm:$0xff] %v5951_v62  ;;  %1451 = vmatpush.msrb.mxu2 %v5966_v18  ;;  %v5969_v62 = vld [vmem:[#allocation5 + $0x1b8] sm:$0xff] }
 0x1f9   :  { %9332 = vst [vmem:[#allocation115_spill] sm:$0xff] %v5954_v12  ;;  %1471 = vmatpush.msrb.mxu3 %v5969_v62  ;;  %v5972_v12 = vld [vmem:[#allocation5 + $0x180] sm:$0xff] }
 0x1fa   :  { %9333 = vst [vmem:[#allocation116_spill] sm:$0xff] %v5957_v57  ;;  %1412 = vmatpush.msra.mxu0 %v5972_v12  ;;  %v5975_v57 = vld [vmem:[#allocation5 + $0x188] sm:$0xff] }
 0x1fb   :  { %9334 = vst [vmem:[#allocation118_spill] sm:$0xff] %v5960_v23  ;;  %1432 = vmatpush.msra.mxu1 %v5975_v57  ;;  %v5978_v23 = vld [vmem:[#allocation5 + $0x190] sm:$0xff] }
 0x1fc   :  { %9335 = vst [vmem:[#allocation119_spill] sm:$0xff] %v5963_v1  ;;  %1452 = vmatpush.msrb.mxu2 %v5978_v23  ;;  %v5981_v1 = vld [vmem:[#allocation5 + $0x198] sm:$0xff] }
 0x1fd   :  { %9336 = vst [vmem:[#allocation120_spill] sm:$0xff] %v5966_v18  ;;  %1472 = vmatpush.msrb.mxu3 %v5981_v1  ;;  %v5984_v18 = vld [vmem:[#allocation5 + $0x160] sm:$0xff] }
 0x1fe   :  { %9337 = vst [vmem:[#allocation121_spill] sm:$0xff] %v5969_v62  ;;  %1413 = vmatpush.msra.mxu0 %v5984_v18  ;;  %v5987_v62 = vld [vmem:[#allocation5 + $0x168] sm:$0xff] }
 0x1ff   :  { %9338 = vst [vmem:[#allocation122_spill] sm:$0xff] %v5972_v12  ;;  %1433 = vmatpush.msra.mxu1 %v5987_v62  ;;  %v5990_v12 = vld [vmem:[#allocation5 + $0x170] sm:$0xff] }
 0x200   :  { %9339 = vst [vmem:[#allocation123_spill] sm:$0xff] %v5975_v57  ;;  %1453 = vmatpush.msrb.mxu2 %v5990_v12  ;;  %v5993_v57 = vld [vmem:[#allocation5 + $0x178] sm:$0xff] }
 0x201   :  { %9340 = vst [vmem:[#allocation124_spill] sm:$0xff] %v5978_v23  ;;  %1473 = vmatpush.msrb.mxu3 %v5993_v57  ;;  %v5996_v23 = vld [vmem:[#allocation5 + $0x140] sm:$0xff] }
 0x202   :  { %9341 = vst [vmem:[#allocation125_spill] sm:$0xff] %v5981_v1  ;;  %1414 = vmatpush.msra.mxu0 %v5996_v23  ;;  %v5999_v1 = vld [vmem:[#allocation5 + $0x148] sm:$0xff] }
 0x203   :  { %9342 = vst [vmem:[#allocation126_spill] sm:$0xff] %v5984_v18  ;;  %1434 = vmatpush.msra.mxu1 %v5999_v1  ;;  %v6002_v18 = vld [vmem:[#allocation5 + $0x150] sm:$0xff] }
 0x204   :  { %9343 = vst [vmem:[#allocation127_spill] sm:$0xff] %v5987_v62  ;;  %1454 = vmatpush.msrb.mxu2 %v6002_v18  ;;  %v6005_v62 = vld [vmem:[#allocation5 + $0x158] sm:$0xff] }
 0x205   :  { %9344 = vst [vmem:[#allocation128_spill] sm:$0xff] %v5990_v12  ;;  %1474 = vmatpush.msrb.mxu3 %v6005_v62  ;;  %v6008_v12 = vld [vmem:[#allocation5 + $0x120] sm:$0xff] }
 0x206   :  { %9345 = vst [vmem:[#allocation129_spill] sm:$0xff] %v5993_v57  ;;  %1415 = vmatpush.msra.mxu0 %v6008_v12  ;;  %v6011_v57 = vld [vmem:[#allocation5 + $0x128] sm:$0xff] }
 0x207   :  { %9346 = vst [vmem:[#allocation130_spill] sm:$0xff] %v5996_v23  ;;  %1435 = vmatpush.msra.mxu1 %v6011_v57  ;;  %v6014_v23 = vld [vmem:[#allocation5 + $0x130] sm:$0xff] }
 0x208   :  { %9347 = vst [vmem:[#allocation131_spill] sm:$0xff] %v5999_v1  ;;  %1455 = vmatpush.msrb.mxu2 %v6014_v23  ;;  %v6017_v1 = vld [vmem:[#allocation5 + $0x138] sm:$0xff] }
 0x209   :  { %9348 = vst [vmem:[#allocation132_spill] sm:$0xff] %v6002_v18  ;;  %1475 = vmatpush.msrb.mxu3 %v6017_v1  ;;  %v6020_v18 = vld [vmem:[#allocation5 + $0x100] sm:$0xff]  ;;  %v971_v7 = vpop.f32.mrf.mxu1 }
 0x20a   :  { %9349 = vst [vmem:[#allocation133_spill] sm:$0xff] %v6005_v62  ;;  %1416 = vmatpush.msra.mxu0 %v6020_v18  ;;  %v6023_v62 = vld [vmem:[#allocation5 + $0x108] sm:$0xff] }
 0x20b   :  { %9350 = vst [vmem:[#allocation134_spill] sm:$0xff] %v6008_v12  ;;  %1436 = vmatpush.msra.mxu1 %v6023_v62  ;;  %v6026_v12 = vld [vmem:[#allocation5 + $0x110] sm:$0xff] }
 0x20c   :  { %9351 = vst [vmem:[#allocation135_spill] sm:$0xff] %v6011_v57  ;;  %1456 = vmatpush.msrb.mxu2 %v6026_v12  ;;  %v6029_v57 = vld [vmem:[#allocation5 + $0x118] sm:$0xff] }
 0x20d   :  { %9352 = vst [vmem:[#allocation136_spill] sm:$0xff] %v6014_v23  ;;  %1476 = vmatpush.msrb.mxu3 %v6029_v57  ;;  %v6032_v23 = vld [vmem:[#allocation5 + $0xe0] sm:$0xff] }
 0x20e   :  { %9353 = vst [vmem:[#allocation137_spill] sm:$0xff] %v6017_v1  ;;  %1417 = vmatpush.msra.mxu0 %v6032_v23  ;;  %v6035_v1 = vld [vmem:[#allocation5 + $0xe8] sm:$0xff] }
 0x20f   :  { %9354 = vst [vmem:[#allocation138_spill] sm:$0xff] %v6020_v18  ;;  %1437 = vmatpush.msra.mxu1 %v6035_v1  ;;  %v6038_v18 = vld [vmem:[#allocation5 + $0xf0] sm:$0xff] }
 0x210   :  { %9355 = vst [vmem:[#allocation139_spill] sm:$0xff] %v6023_v62  ;;  %1457 = vmatpush.msrb.mxu2 %v6038_v18  ;;  %v6041_v62 = vld [vmem:[#allocation5 + $0xf8] sm:$0xff]  ;;  %v1011_v25 = vpop.f32.mrf.mxu3 }
 0x211   :  { %9356 = vst [vmem:[#allocation140_spill] sm:$0xff] %v6026_v12  ;;  %1477 = vmatpush.msrb.mxu3 %v6041_v62  ;;  %v6044_v12 = vld [vmem:[#allocation5 + $0xc0] sm:$0xff] }
 0x212   :  { %9357 = vst [vmem:[#allocation141_spill] sm:$0xff] %v6029_v57  ;;  %1418 = vmatpush.msra.mxu0 %v6044_v12  ;;  %v6047_v57 = vld [vmem:[#allocation5 + $0xc8] sm:$0xff] }
 0x213   :  { %9358 = vst [vmem:[#allocation142_spill] sm:$0xff] %v6032_v23  ;;  %1438 = vmatpush.msra.mxu1 %v6047_v57  ;;  %v6050_v23 = vld [vmem:[#allocation5 + $0xd0] sm:$0xff] }
 0x214   :  { %9359 = vst [vmem:[#allocation143_spill] sm:$0xff] %v6035_v1  ;;  %1458 = vmatpush.msrb.mxu2 %v6050_v23  ;;  %v6053_v1 = vld [vmem:[#allocation5 + $0xd8] sm:$0xff] }
 0x215   :  { %9360 = vst [vmem:[#allocation145_spill] sm:$0xff] %v6038_v18  ;;  %1478 = vmatpush.msrb.mxu3 %v6053_v1  ;;  %v6056_v18 = vld [vmem:[#allocation5 + $0xa0] sm:$0xff]  ;;  %v1054_v51 = vpop.f32.mrf.mxu1 }
 0x216   :  { %9361 = vst [vmem:[#allocation146_spill] sm:$0xff] %v6041_v62  ;;  %1419 = vmatpush.msra.mxu0 %v6056_v18  ;;  %v6059_v62 = vld [vmem:[#allocation5 + $0xa8] sm:$0xff]  ;;  %v1055_v45 = vadd.f32 %v1054_v51, %v971_v7 }
 0x217   :  { %9362 = vst [vmem:[#allocation152_spill] sm:$0xff] %v6044_v12  ;;  %1439 = vmatpush.msra.mxu1 %v6059_v62  ;;  %v6062_v12 = vld [vmem:[#allocation5 + $0xb0] sm:$0xff] }
 0x218   :  { %9363 = vst [vmem:[#allocation153_spill] sm:$0xff] %v6047_v57  ;;  %1459 = vmatpush.msrb.mxu2 %v6062_v12  ;;  %v6065_v57 = vld [vmem:[#allocation5 + $0xb8] sm:$0xff]  ;;  %v1098_v40 = vadd.f32 %v1055_v45, %v5471_v4 }
 0x219   :  { %9364 = vst [vmem:[#allocation154_spill] sm:$0xff] %v6050_v23  ;;  %1479 = vmatpush.msrb.mxu3 %v6065_v57  ;;  %v6068_v23 = vld [vmem:[#allocation5 + $0x80] sm:$0xff] }
 0x21a   :  { %9365 = vst [vmem:[#allocation155_spill] sm:$0xff] %v6053_v1  ;;  %1420 = vmatpush.msra.mxu0 %v6068_v23  ;;  %v6071_v1 = vld [vmem:[#allocation5 + $0x88] sm:$0xff]  ;;  %v3567_v34 = vmul.f32 -1.442695, %v1098_v40 }
 0x21b   :  { %9366 = vst [vmem:[#allocation156_spill] sm:$0xff] %v6056_v18  ;;  %1440 = vmatpush.msra.mxu1 %v6071_v1  ;;  %v6074_v18 = vld [vmem:[#allocation5 + $0x90] sm:$0xff] }
 0x21c   :  { %9367 = vst [vmem:[#allocation157_spill] sm:$0xff] %v6059_v62  ;;  %1460 = vmatpush.msrb.mxu2 %v6074_v18  ;;  %v6077_v62 = vld [vmem:[#allocation5 + $0x98] sm:$0xff] }
 0x21d   :  { %9368 = vst [vmem:[#allocation158_spill] sm:$0xff] %v6062_v12  ;;  %1480 = vmatpush.msrb.mxu3 %v6077_v62  ;;  %v6080_v12 = vld [vmem:[#allocation5 + $0x60] sm:$0xff] }
 0x21e   :  { %9369 = vst [vmem:[#allocation159_spill] sm:$0xff] %v6065_v57  ;;  %1421 = vmatpush.msra.mxu0 %v6080_v12  ;;  %v6083_v57 = vld [vmem:[#allocation5 + $0x68] sm:$0xff] }
 0x21f   :  { %9370 = vst [vmem:[#allocation160_spill] sm:$0xff] %v6068_v23  ;;  %1441 = vmatpush.msra.mxu1 %v6083_v57  ;;  %v6086_v23 = vld [vmem:[#allocation5 + $0x70] sm:$0xff] }
 0x220   :  { %9371 = vst [vmem:[#allocation161_spill] sm:$0xff] %v6071_v1  ;;  %1461 = vmatpush.msrb.mxu2 %v6086_v23  ;;  %v6089_v1 = vld [vmem:[#allocation5 + $0x78] sm:$0xff] }
 0x221   :  { %9372 = vst [vmem:[#allocation162_spill] sm:$0xff] %v6074_v18  ;;  %1481 = vmatpush.msrb.mxu3 %v6089_v1  ;;  %v6092_v18 = vld [vmem:[#allocation5 + $0x40] sm:$0xff] }
 0x222   :  { %9373 = vst [vmem:[#allocation163_spill] sm:$0xff] %v6077_v62  ;;  %1422 = vmatpush.msra.mxu0 %v6092_v18  ;;  %v6095_v62 = vld [vmem:[#allocation5 + $0x48] sm:$0xff] }
 0x223   :  { %9374 = vst [vmem:[#allocation164_spill] sm:$0xff] %v6080_v12  ;;  %1442 = vmatpush.msra.mxu1 %v6095_v62  ;;  %v6098_v12 = vld [vmem:[#allocation5 + $0x50] sm:$0xff] }
 0x224   :  { %9375 = vst [vmem:[#allocation165_spill] sm:$0xff] %v6083_v57  ;;  %1462 = vmatpush.msrb.mxu2 %v6098_v12  ;;  %v6101_v57 = vld [vmem:[#allocation5 + $0x58] sm:$0xff] }
 0x225   :  { %9376 = vst [vmem:[#allocation166_spill] sm:$0xff] %v6086_v23  ;;  %1482 = vmatpush.msrb.mxu3 %v6101_v57  ;;  %v6104_v23 = vld [vmem:[#allocation5 + $0x20] sm:$0xff] }
 0x226   :  { %9377 = vst [vmem:[#allocation167_spill] sm:$0xff] %v6089_v1  ;;  %1423 = vmatpush.msra.mxu0 %v6104_v23  ;;  %v6107_v1 = vld [vmem:[#allocation5 + $0x28] sm:$0xff] }
 0x227   :  { %9378 = vst [vmem:[#allocation168_spill] sm:$0xff] %v6092_v18  ;;  %1443 = vmatpush.msra.mxu1 %v6107_v1  ;;  %v6110_v18 = vld [vmem:[#allocation5 + $0x30] sm:$0xff] }
 0x228   :  { %9379 = vst [vmem:[#allocation169_spill] sm:$0xff] %v6095_v62  ;;  %1463 = vmatpush.msrb.mxu2 %v6110_v18  ;;  %v6113_v62 = vld [vmem:[#allocation5 + $0x38] sm:$0xff] }
 0x229   :  { %9380 = vst [vmem:[#allocation170_spill] sm:$0xff] %v6098_v12  ;;  %1483 = vmatpush.msrb.mxu3 %v6113_v62  ;;  %v6116_v12 = vld [vmem:[#allocation5] sm:$0xff] }
 0x22a   :  { %9381 = vst [vmem:[#allocation171_spill] sm:$0xff] %v6101_v57  ;;  %1424 = vmatpush.msra.mxu0 %v6116_v12  ;;  %v6119_v57 = vld [vmem:[#allocation5 + $0x8] sm:$0xff] }
 0x22b   :  { %9382 = vst [vmem:[#allocation172_spill] sm:$0xff] %v6104_v23  ;;  %1444 = vmatpush.msra.mxu1 %v6119_v57  ;;  %v6122_v23 = vld [vmem:[#allocation5 + $0x10] sm:$0xff] }
 0x22c   :  { %9383 = vst [vmem:[#allocation173_spill] sm:$0xff] %v6107_v1  ;;  %1464 = vmatpush.msrb.mxu2 %v6122_v23  ;;  %v6125_v1 = vld [vmem:[#allocation5 + $0x18] sm:$0xff] }
 0x22d   :  { %9384 = vst [vmem:[#allocation174_spill] sm:$0xff] %v6110_v18  ;;  %1484 = vmatpush.msrb.mxu3 %v6125_v1  ;;  %v951_v18 = vpop.f32.mrf.mxu0 }
 0x22e   :  { %9385 = vst [vmem:[#allocation175_spill] sm:$0xff] %v6113_v62 }
 0x22f   :  { %9386 = vst [vmem:[#allocation176_spill] sm:$0xff] %v6116_v12 }
 0x230   :  { %9387 = vst [vmem:[#allocation177_spill] sm:$0xff] %v6119_v57  ;;  %v991_v57 = vpop.f32.mrf.mxu2 }
 0x231   :  { %9388 = vst [vmem:[#allocation178_spill] sm:$0xff] %v6122_v23  ;;  %v1094_v23 = vpop.f32.mrf.mxu3 }
 0x232   :  { %9389 = vst [vmem:[#allocation179_spill] sm:$0xff] %v6125_v1  ;;  %v1095_v30 = vadd.f32 %v1094_v23, %v1011_v25 }
 0x234   :  { %v1100_v1 = vadd.f32 %v1095_v30, %v5475_v21  ;;  %v1201_v30 = vpop.f32.mrf.mxu1 }
 0x235   :  { %v1034_v62 = vpop.f32.mrf.mxu0  ;;  %v1249_v45 = vrot.slane %v1201_v30, 4 }
 0x236   :  { %v1035_v46 = vadd.f32 %v1034_v62, %v951_v18  ;;  %v3568_v29 = vmul.f32 -1.442695, %v1100_v1 }
 0x238   :  { %v1097_v12 = vadd.f32 %v1035_v46, %v5469_v11  ;;  %v1074_v28 = vpop.f32.mrf.mxu2 }
 0x239   :  { %v1075_v7 = vadd.f32 %v1074_v28, %v991_v57 }
 0x23a   :  { %v3566_v31 = vmul.f32 -1.442695, %v1097_v12 }
 0x23b   :  { %v1099_v12 = vadd.f32 %v1075_v7, %v5480_v37  ;;  %v1257_v37 = vadd.f32 %v1249_v45, %v5249_v8  ;;  %v1241_v45 = vpop.f32.mrf.mxu3 }
 0x23c   :  { %3660 = vpow2.f32 %v3566_v31 }
 0x23d   :  { %3662 = vpow2.f32 %v3567_v34  ;;  %v1181_v25 = vpop.f32.mrf.mxu0  ;;  %v3570_v11 = vmul.f32 -1.442695, %v1257_v37  ;;  %v1251_v37 = vrot.slane %v1241_v45, 4 }
 0x23e   :  { %3664 = vpow2.f32 %v3568_v29 }
 0x242   :  { %v3661_v0 = vpop.eup %3660 }
 0x243   :  { %v3663_v26 = vpop.eup %3662  ;;  %v1104_v24 = vadd.f32 1.0, %v3661_v0 }
 0x244   :  { %v1123_v62 = vadd.f32 1.0, %v3663_v26  ;;  %v3665_v18 = vpop.eup %3664  ;;  %v1248_v26 = vrot.slane %v1181_v25, 4 }
 0x245   :  { %3666 = vrcp.f32 %v1104_v24  ;;  %v6132_v40 = vadd.f32 1.0, %v3665_v18  ;;  %v1114_v29 = vand.u32 2147483647, %v1104_v24  ;;  %v1116_v51 = vand.u32 2147483648, %v1104_v24 }
 0x246   :  { %3668 = vrcp.f32 %v1123_v62  ;;  %v1135_v46 = vand.u32 2147483648, %v1123_v62  ;;  %v1133_v57 = vand.u32 2147483647, %v1123_v62  ;;  %v1256_v18 = vadd.f32 %v1248_v26, %v5240_v3 }
 0x247   :  { %3670 = vrcp.f32 %v6132_v40  ;;  %vm1110_vm7 = vweird.f32 %v1104_v24  ;;  %vm1129_vm8 = vweird.f32 %v1123_v62  ;;  %vm1115_vm10 = vcmp.eq.f32.partialorder %v1114_v29, 8.507059e+37 }
 0x248   :  { %3672 = vtanh.f32 %v1099_v12  ;;  %v1136_v22 = vor.u32 1.1754944e-38, %v1135_v46  ;;  %vm1134_vm12 = vcmp.eq.f32.partialorder %v1133_v57, 8.507059e+37  ;;  %v1221_v57 = vpop.f32.mrf.mxu2  ;;  %vm1149_vm14 = vweird.f32 %v6132_v40 }
 0x24b   :  { %v3667_v31 = vpop.eup %3666 }
 0x24c   :  { %v3669_v34 = vpop.eup %3668  ;;  %v1106_v23 = vmul.f32 %v3667_v31, %v1104_v24  ;;  %vm1111_vm5 = vweird.f32 %v3667_v31 }
 0x24d   :  { %v1125_v1 = vmul.f32 %v3669_v34, %v1123_v62  ;;  %vm1130_vm6 = vweird.f32 %v3669_v34  ;;  %v3671_v12 = vpop.eup %3670  ;;  %vm1112_vm9 = vmor %vm1110_vm7, %vm1111_vm5 }
 0x24e   :  { %v1107_v0 = vsub.f32 1.0, %v1106_v23  ;;  %v3569_v23 = vmul.f32 -1.442695, %v1256_v18  ;;  %v3673_v25 = vpop.eup %3672  ;;  %vm1131_vm11 = vmor %vm1129_vm8, %vm1130_vm6  ;;  %vm1150_vm13 = vweird.f32 %v3671_v12 }
 0x24f   :  { %v1126_v28 = vsub.f32 1.0, %v1125_v1  ;;  %v1117_v1 = vor.u32 1.1754944e-38, %v1116_v51  ;;  %vm1151_vm15 = vmor %vm1149_vm14, %vm1150_vm13 }
 0x250   :  { %v1108_v7 = vmul.f32 %v3667_v31, %v1107_v0  ;;  %v1145_v0 = vmul.f32 %v3671_v12, %v6132_v40  ;;  %3674 = vpow2.f32 %v3569_v23  ;;  %v1250_v23 = vrot.slane %v1221_v57, 4  ;;  %v9402_v57 = vld [vmem:[#allocation26_spill] sm:$0xff] }
 0x251   :  { %v1127_v21 = vmul.f32 %v3669_v34, %v1126_v28  ;;  %3676 = vpow2.f32 %v3570_v11  ;;  %v1155_v11 = vand.u32 2147483648, %v6132_v40 }
 0x252   :  { %v1109_v4 = vadd.f32 %v3667_v31, %v1108_v7  ;;  %v1146_v8 = vsub.f32 1.0, %v1145_v0  ;;  %v1258_v45 = vadd.f32 %v1250_v23, %v5305_v27  ;;  %v9405_v23 = vld [vmem:[#allocation29_spill] sm:$0xff] }
 0x253   :  { %v1128_v30 = vadd.f32 %v3669_v34, %v1127_v21  ;;  %v1259_v21 = vadd.f32 %v1251_v37, %v5269_v16 }
 0x254   :  { %v1113_v26 = vsel %vm1112_vm9, %v3667_v31, %v1109_v4  ;;  %v1147_v29 = vmul.f32 %v3671_v12, %v1146_v8  ;;  %v1153_v8 = vand.u32 2147483647, %v6132_v40 }
 0x255   :  { %v1118_v28 = vsel %vm1115_vm10, %v1117_v1, %v1113_v26  ;;  %v1132_v24 = vsel %vm1131_vm11, %v3669_v34, %v1128_v30  ;;  %v3571_v46 = vmul.f32 -1.442695, %v1259_v21 }
 0x256   :  { %v1137_v62 = vsel %vm1134_vm12, %v1136_v22, %v1132_v24  ;;  %v1160_v7 = vmul.f32 %v3673_v25, %v1118_v28  ;;  %v3675_v3 = vpop.eup %3674  ;;  %v1148_v4 = vadd.f32 %v3671_v12, %v1147_v29  ;;  %v1156_v25 = vor.u32 1.1754944e-38, %v1155_v11 }
 0x257   :  { %v1159_v18 = vmul.f32 %v1137_v62, %v5507_v47  ;;  %v3677_v31 = vpop.eup %3676  ;;  %v6143_v34 = vadd.f32 1.0, %v3675_v3  ;;  %vm1154_vm0 = vcmp.eq.f32.partialorder %v1153_v8, 8.507059e+37  ;;  %v9403_v8 = vld [vmem:[#allocation27_spill] sm:$0xff] }
 0x258   :  { %v6146_v22 = vadd.f32 1.0, %v3677_v31  ;;  %v1152_v47 = vsel %vm1151_vm15, %v3671_v12, %v1148_v4 }
 0x259   :  { %v6140_v51 = vadd.f32 %v1160_v7, %v1159_v18  ;;  %v1157_v1 = vsel %vm1154_vm0, %v1156_v25, %v1152_v47  ;;  %v1275_v37 = vand.u32 2147483648, %v6143_v34  ;;  %v1273_v21 = vand.u32 2147483647, %v6143_v34  ;;  %v9404_v47 = vld [vmem:[#allocation28_spill] sm:$0xff]  ;;  %v9406_v25 = vld [vmem:[#allocation30_spill] sm:$0xff] }
 0x25a   :  { %v1294_v18 = vand.u32 2147483648, %v6146_v22  ;;  %vm1269_vm3 = vweird.f32 %v6143_v34  ;;  %vm1288_vm4 = vweird.f32 %v6146_v22 }
 0x25b   :  { %3678 = vtanh.f32 %v6140_v51  ;;  %vm1274_vm7 = vcmp.eq.f32.partialorder %v1273_v21, 8.507059e+37  ;;  %v9422_v21 = vld [vmem:[#allocation46_spill] sm:$0xff] }
 0x25c   :  { %3680 = vpow2.f32 %v3571_v46  ;;  %v1319_v46 = vrot.slane %v5530_v20, 6 }
 0x25d   :  { %3682 = vrcp.f32 %v6143_v34 }
 0x25e   :  { %3684 = vrcp.f32 %v6146_v22 }
 0x261   :  { %v3679_v3 = vpop.eup %3678 }
 0x262   :  { %v3681_v30 = vpop.eup %3680  ;;  %v1163_v0 = vmul.f32 %v3679_v3, %v1157_v1  ;;  %v9407_v3 = vld [vmem:[#allocation31_spill] sm:$0xff]  ;;  %v9408_v1 = vld [vmem:[#allocation32_spill] sm:$0xff] }
 0x263   :  { %v3683_v26 = vpop.eup %3682  ;;  %v6153_v28 = vadd.f32 1.0, %v3681_v30  ;;  %v9409_v30 = vld [vmem:[#allocation33_spill] sm:$0xff] }
 0x264   :  { %v3685_v24 = vpop.eup %3684  ;;  %v1265_v40 = vmul.f32 %v3683_v26, %v6143_v34  ;;  %1342 = vmatmul.f32.vlgmr.msrb.gmra.mxu0 %v1163_v0  ;;  %1362 = vmatmul.f32.vlgmr.msrb.gmra.mxu1 %v1163_v0  ;;  %vm1270_vm1 = vweird.f32 %v3683_v26 }
 0x265   :  { %v1284_v62 = vmul.f32 %v3685_v24, %v6146_v22  ;;  %3686 = vrcp.f32 %v6153_v28  ;;  %1382 = vmatmul.f32.vlgmr.msra.gmra.mxu2 %v1163_v0  ;;  %1402 = vmatmul.f32.vlgmr.msra.gmra.mxu3 %v1163_v0  ;;  %vm1289_vm2 = vweird.f32 %v3685_v24  ;;  %vm1271_vm5 = vmor %vm1269_vm3, %vm1270_vm1  ;;  %vm1308_vm10 = vweird.f32 %v6153_v28  ;;  %v9410_v0 = vld [vmem:[#allocation34_spill] sm:$0xff] }
 0x266   :  { %v1266_v12 = vsub.f32 1.0, %v1265_v40  ;;  %1556 = vmatpush.msrb.mxu0 %v5536_v32  ;;  %1576 = vmatpush.msrb.mxu1 %v5539_v33  ;;  %3688 = vtanh.f32 %v1258_v45  ;;  %v1292_v33 = vand.u32 2147483647, %v6146_v22  ;;  %vm1290_vm6 = vmor %vm1288_vm4, %vm1289_vm2  ;;  %v9401_v22 = vld [vmem:[#allocation25_spill] sm:$0xff]  ;;  %v9412_v45 = vld [vmem:[#allocation36_spill] sm:$0xff] }
 0x267   :  { %v1285_v7 = vsub.f32 1.0, %v1284_v62  ;;  %1596 = vmatpush.msra.mxu2 %v5546_v35  ;;  %1616 = vmatpush.msra.mxu3 %v5549_v36  ;;  %v9415_v40 = vld [vmem:[#allocation39_spill] sm:$0xff]  ;;  %v9416_v62 = vld [vmem:[#allocation40_spill] sm:$0xff] }
 0x268   :  { %v1267_v29 = vmul.f32 %v3683_v26, %v1266_v12  ;;  %1557 = vmatpush.msrb.mxu0 %v5554_v38  ;;  %1577 = vmatpush.msrb.mxu1 %v5557_v39  ;;  %v1276_v38 = vor.u32 1.1754944e-38, %v1275_v37  ;;  %vm1293_vm8 = vcmp.eq.f32.partialorder %v1292_v33, 8.507059e+37  ;;  %v9417_v12 = vld [vmem:[#allocation41_spill] sm:$0xff]  ;;  %v9419_v37 = vld [vmem:[#allocation43_spill] sm:$0xff]  ;;  %v9424_v33 = vld [vmem:[#allocation48_spill] sm:$0xff] }
 0x269   :  { %v1286_v32 = vmul.f32 %v3685_v24, %v1285_v7  ;;  %1597 = vmatpush.msra.mxu2 %v5560_v41  ;;  %1617 = vmatpush.msra.mxu3 %v5563_v42  ;;  %v1295_v41 = vor.u32 1.1754944e-38, %v1294_v18  ;;  %v9418_v7 = vld [vmem:[#allocation42_spill] sm:$0xff]  ;;  %v9420_v18 = vld [vmem:[#allocation44_spill] sm:$0xff] }
 0x26a   :  { %v1268_v35 = vadd.f32 %v3683_v26, %v1267_v29  ;;  %1558 = vmatpush.msrb.mxu0 %v5566_v43  ;;  %1578 = vmatpush.msrb.mxu1 %v5569_v44  ;;  %v9421_v29 = vld [vmem:[#allocation45_spill] sm:$0xff] }
 0x26b   :  { %v3687_v36 = vpop.eup %3686  ;;  %v1287_v39 = vadd.f32 %v3685_v24, %v1286_v32  ;;  %1598 = vmatpush.msra.mxu2 %v5572_v48  ;;  %1618 = vmatpush.msra.mxu3 %v5575_v49  ;;  %v9423_v32 = vld [vmem:[#allocation47_spill] sm:$0xff] }
 0x26c   :  { %v1272_v42 = vsel %vm1271_vm5, %v3683_v26, %v1268_v35  ;;  %v1304_v43 = vmul.f32 %v3687_v36, %v6153_v28  ;;  %1559 = vmatpush.msrb.mxu0 %v5578_v52  ;;  %1579 = vmatpush.msrb.mxu1 %v5581_v54  ;;  %v3689_v44 = vpop.eup %3688  ;;  %vm1309_vm9 = vweird.f32 %v3687_v36  ;;  %v9411_v26 = vld [vmem:[#allocation35_spill] sm:$0xff]  ;;  %v9425_v35 = vld [vmem:[#allocation49_spill] sm:$0xff] }
 0x26d   :  { %v1277_v4 = vsel %vm1274_vm7, %v1276_v38, %v1272_v42  ;;  %v1291_v31 = vsel %vm1290_vm6, %v3685_v24, %v1287_v39  ;;  %1599 = vmatpush.msra.mxu2 %v5584_v55  ;;  %1619 = vmatpush.msra.mxu3 %v5587_v56  ;;  %v1314_v56 = vand.u32 2147483648, %v6153_v28  ;;  %vm1310_vm11 = vmor %vm1308_vm10, %vm1309_vm9  ;;  %v9414_v24 = vld [vmem:[#allocation38_spill] sm:$0xff]  ;;  %v9427_v38 = vld [vmem:[#allocation51_spill] sm:$0xff] }
 0x26e   :  { %v1296_v48 = vsel %vm1293_vm8, %v1295_v41, %v1291_v31  ;;  %v1322_v49 = vmul.f32 %v3689_v44, %v1277_v4  ;;  %v1305_v34 = vsub.f32 1.0, %v1304_v43  ;;  %1560 = vmatpush.msrb.mxu0 %v5592_v58  ;;  %1580 = vmatpush.msrb.mxu1 %v5595_v59  ;;  %v1312_v58 = vand.u32 2147483647, %v6153_v28  ;;  %v9413_v28 = vld [vmem:[#allocation37_spill] sm:$0xff]  ;;  %v9428_v39 = vld [vmem:[#allocation52_spill] sm:$0xff]  ;;  %v9430_v42 = vld [vmem:[#allocation54_spill] sm:$0xff] }
 0x26f   :  { %v1321_v52 = vmul.f32 %v1319_v46, %v1296_v48  ;;  %1600 = vmatpush.msra.mxu2 %v5598_v60  ;;  %1620 = vmatpush.msra.mxu3 %v5601_v61  ;;  %v9390_v60 = vld [vmem:[#allocation12_spill] sm:$0xff]  ;;  %v1315_v61 = vor.u32 1.1754944e-38, %v1314_v56  ;;  %v9429_v41 = vld [vmem:[#allocation53_spill] sm:$0xff]  ;;  %v9431_v43 = vld [vmem:[#allocation55_spill] sm:$0xff] }
 0x270   :  { %v1306_v20 = vmul.f32 %v3687_v36, %v1305_v34  ;;  %1561 = vmatpush.msrb.mxu0 %v5608_v9  ;;  %1581 = vmatpush.msrb.mxu1 %v5611_v10  ;;  %v9391_v9 = vld [vmem:[#allocation17_spill] sm:$0xff]  ;;  %v9392_v10 = vld [vmem:[#allocation18_spill] sm:$0xff]  ;;  %vm1313_vm12 = vcmp.eq.f32.partialorder %v1312_v58, 8.507059e+37  ;;  %v9432_v44 = vld [vmem:[#allocation56_spill] sm:$0xff] }
 0x271   :  { %v6190_v54 = vadd.f32 %v1322_v49, %v1321_v52  ;;  %1601 = vmatpush.msra.mxu2 %v5614_v2  ;;  %1621 = vmatpush.msra.mxu3 %v5617_v53  ;;  %v9393_v2 = vld [vmem:[#allocation15_spill] sm:$0xff]  ;;  %v9394_v53 = vld [vmem:[#allocation16_spill] sm:$0xff]  ;;  %v9433_v46 = vld [vmem:[#allocation57_spill] sm:$0xff] }
 0x272   :  { %v1307_v55 = vadd.f32 %v3687_v36, %v1306_v20  ;;  %1562 = vmatpush.msrb.mxu0 %v5620_v13  ;;  %1582 = vmatpush.msrb.mxu1 %v5623_v5  ;;  %v9434_v4 = vld [vmem:[#allocation58_spill] sm:$0xff]  ;;  %v9435_v31 = vld [vmem:[#allocation59_spill] sm:$0xff]  ;;  %v9436_v48 = vld [vmem:[#allocation60_spill] sm:$0xff] }
 0x273   :  { %3690 = vtanh.f32 %v6190_v54  ;;  %1602 = vmatpush.msra.mxu2 %v5626_v14  ;;  %1622 = vmatpush.msra.mxu3 %v5629_v50  ;;  %v9395_v14 = vld [vmem:[#allocation20_spill] sm:$0xff]  ;;  %v9396_v50 = vld [vmem:[#allocation21_spill] sm:$0xff]  ;;  %v9438_v34 = vld [vmem:[#allocation62_spill] sm:$0xff] }
 0x274   :  { %1563 = vmatpush.msrb.mxu0 %v5632_v6  ;;  %1583 = vmatpush.msrb.mxu1 %v5635_v15  ;;  %v1311_v59 = vsel %vm1310_vm11, %v3687_v36, %v1307_v55  ;;  %v9397_v15 = vld [vmem:[#allocation19_spill] sm:$0xff]  ;;  %v9426_v36 = vld [vmem:[#allocation50_spill] sm:$0xff]  ;;  %v9437_v49 = vld [vmem:[#allocation61_spill] sm:$0xff] }
 0x275   :  { %1603 = vmatpush.msra.mxu2 %v5638_v63  ;;  %1623 = vmatpush.msra.mxu3 %v5641_v17  ;;  %v1316_v5 = vsel %vm1313_vm12, %v1315_v61, %v1311_v59  ;;  %v9398_v63 = vld [vmem:[#allocation22_spill] sm:$0xff]  ;;  %v9399_v17 = vld [vmem:[#allocation23_spill] sm:$0xff]  ;;  %v9440_v20 = vld [vmem:[#allocation64_spill] sm:$0xff] }
 0x276   :  { %1564 = vmatpush.msrb.mxu0 %v5644_v19  ;;  %1584 = vmatpush.msrb.mxu1 %v9390_v60  ;;  %v9400_v19 = vld [vmem:[#allocation24_spill] sm:$0xff]  ;;  %v9439_v52 = vld [vmem:[#allocation63_spill] sm:$0xff]  ;;  %v9441_v55 = vld [vmem:[#allocation65_spill] sm:$0xff] }
 0x277   :  { %1604 = vmatpush.msra.mxu2 %v9391_v9  ;;  %1624 = vmatpush.msra.mxu3 %v9392_v10  ;;  %v9442_v56 = vld [vmem:[#allocation66_spill] sm:$0xff]  ;;  %v9443_v58 = vld [vmem:[#allocation67_spill] sm:$0xff]  ;;  %v9444_v59 = vld [vmem:[#allocation68_spill] sm:$0xff] }
 0x278   :  { %1565 = vmatpush.msrb.mxu0 %v9393_v2  ;;  %1585 = vmatpush.msrb.mxu1 %v9394_v53  ;;  %v9445_v60 = vld [vmem:[#allocation69_spill] sm:$0xff]  ;;  %v9446_v61 = vld [vmem:[#allocation70_spill] sm:$0xff]  ;;  %v9447_v9 = vld [vmem:[#allocation71_spill] sm:$0xff] }
 0x279   :  { %v3691_v13 = vpop.eup %3690  ;;  %1605 = vmatpush.msra.mxu2 %v9395_v14  ;;  %1625 = vmatpush.msra.mxu3 %v9396_v50  ;;  %v9448_v10 = vld [vmem:[#allocation72_spill] sm:$0xff]  ;;  %v9449_v2 = vld [vmem:[#allocation73_spill] sm:$0xff]  ;;  %v9450_v53 = vld [vmem:[#allocation74_spill] sm:$0xff] }
 0x27a   :  { %v1325_v6 = vmul.f32 %v3691_v13, %v1316_v5  ;;  %1566 = vmatpush.msrb.mxu0 %v9397_v15  ;;  %1586 = vmatpush.msrb.mxu1 %v9398_v63  ;;  %v9451_v13 = vld [vmem:[#allocation75_spill] sm:$0xff]  ;;  %v9452_v5 = vld [vmem:[#allocation76_spill] sm:$0xff]  ;;  %v9453_v14 = vld [vmem:[#allocation77_spill] sm:$0xff] }
 0x27b   :  { %1606 = vmatpush.msra.mxu2 %v9399_v17  ;;  %1626 = vmatpush.msra.mxu3 %v9400_v19  ;;  %v9454_v50 = vld [vmem:[#allocation78_spill] sm:$0xff]  ;;  %v9456_v15 = vld [vmem:[#allocation80_spill] sm:$0xff]  ;;  %v9457_v63 = vld [vmem:[#allocation81_spill] sm:$0xff] }
 0x27c   :  { %v1407_v11 = vrot.slane %v1325_v6, 4  ;;  %1567 = vmatpush.msrb.mxu0 %v9401_v22  ;;  %1587 = vmatpush.msrb.mxu1 %v9402_v57  ;;  %v9455_v6 = vld [vmem:[#allocation79_spill] sm:$0xff]  ;;  %v9458_v17 = vld [vmem:[#allocation82_spill] sm:$0xff]  ;;  %v9461_v22 = vld [vmem:[#allocation85_spill] sm:$0xff] }
 0x27d   :  { %1607 = vmatpush.msra.mxu2 %v9403_v8  ;;  %1627 = vmatpush.msra.mxu3 %v9404_v47  ;;  %v9459_v19 = vld [vmem:[#allocation83_spill] sm:$0xff]  ;;  %v9462_v57 = vld [vmem:[#allocation86_spill] sm:$0xff]  ;;  %v9464_v47 = vld [vmem:[#allocation88_spill] sm:$0xff] }
 0x27e   :  { %1425 = vmatmul.f32.vlgmr.msra.gmra.mxu0 %v1407_v11  ;;  %1445 = vmatmul.f32.vlgmr.msra.gmra.mxu1 %v1407_v11  ;;  %v9463_v8 = vld [vmem:[#allocation87_spill] sm:$0xff] }
 0x27f   :  { %1465 = vmatmul.f32.vlgmr.msrb.gmra.mxu2 %v1407_v11  ;;  %1485 = vmatmul.f32.vlgmr.msrb.gmra.mxu3 %v1407_v11 }
 0x280   :  { %1568 = vmatpush.msrb.mxu0 %v9405_v23  ;;  %1588 = vmatpush.msrb.mxu1 %v9406_v25  ;;  %v9465_v23 = vld [vmem:[#allocation89_spill] sm:$0xff]  ;;  %v9466_v25 = vld [vmem:[#allocation90_spill] sm:$0xff] }
 0x281   :  { %1608 = vmatpush.msra.mxu2 %v9407_v3  ;;  %1628 = vmatpush.msra.mxu3 %v9408_v1  ;;  %v9467_v3 = vld [vmem:[#allocation91_spill] sm:$0xff]  ;;  %v9468_v1 = vld [vmem:[#allocation92_spill] sm:$0xff] }
 0x282   :  { %1569 = vmatpush.msrb.mxu0 %v9409_v30  ;;  %1589 = vmatpush.msrb.mxu1 %v9410_v0  ;;  %v9469_v30 = vld [vmem:[#allocation93_spill] sm:$0xff]  ;;  %v9470_v0 = vld [vmem:[#allocation94_spill] sm:$0xff] }
 0x283   :  { %1609 = vmatpush.msra.mxu2 %v9411_v26  ;;  %1629 = vmatpush.msra.mxu3 %v9412_v45  ;;  %v9471_v26 = vld [vmem:[#allocation95_spill] sm:$0xff]  ;;  %v9472_v45 = vld [vmem:[#allocation96_spill] sm:$0xff] }
 0x284   :  { %1570 = vmatpush.msrb.mxu0 %v9413_v28  ;;  %1590 = vmatpush.msrb.mxu1 %v9414_v24  ;;  %v9473_v28 = vld [vmem:[#allocation97_spill] sm:$0xff]  ;;  %v9474_v24 = vld [vmem:[#allocation98_spill] sm:$0xff] }
 0x285   :  { %1610 = vmatpush.msra.mxu2 %v9415_v40  ;;  %1630 = vmatpush.msra.mxu3 %v9416_v62  ;;  %v9475_v40 = vld [vmem:[#allocation99_spill] sm:$0xff]  ;;  %v9476_v62 = vld [vmem:[#allocation100_spill] sm:$0xff] }
 0x286   :  { %1571 = vmatpush.msrb.mxu0 %v9417_v12  ;;  %1591 = vmatpush.msrb.mxu1 %v9418_v7  ;;  %v9477_v12 = vld [vmem:[#allocation101_spill] sm:$0xff]  ;;  %v9478_v7 = vld [vmem:[#allocation102_spill] sm:$0xff] }
 0x287   :  { %1611 = vmatpush.msra.mxu2 %v9419_v37  ;;  %1631 = vmatpush.msra.mxu3 %v9420_v18  ;;  %v9479_v37 = vld [vmem:[#allocation103_spill] sm:$0xff]  ;;  %v9480_v18 = vld [vmem:[#allocation104_spill] sm:$0xff] }
 0x288   :  { %1572 = vmatmul.f32.vlgmr.msrb.gmra.mxu0 %v1407_v11  ;;  %1592 = vmatmul.f32.vlgmr.msrb.gmra.mxu1 %v1407_v11 }
 0x289   :  { %1612 = vmatmul.f32.vlgmr.msra.gmra.mxu2 %v1407_v11  ;;  %1632 = vmatmul.f32.vlgmr.msra.gmra.mxu3 %v1407_v11  ;;  %v9460_v11 = vld [vmem:[#allocation84_spill] sm:$0xff] }
 0x28a   :  { %1718 = vmatpush.msra.mxu0 %v9421_v29  ;;  %1738 = vmatpush.msra.mxu1 %v9422_v21  ;;  %v9481_v29 = vld [vmem:[#allocation105_spill] sm:$0xff]  ;;  %v9482_v21 = vld [vmem:[#allocation106_spill] sm:$0xff] }
 0x28b   :  { %1758 = vmatpush.msrb.mxu2 %v9423_v32  ;;  %1778 = vmatpush.msrb.mxu3 %v9424_v33  ;;  %v9483_v32 = vld [vmem:[#allocation107_spill] sm:$0xff]  ;;  %v9484_v33 = vld [vmem:[#allocation108_spill] sm:$0xff] }
 0x28c   :  { %1719 = vmatpush.msra.mxu0 %v9425_v35  ;;  %1739 = vmatpush.msra.mxu1 %v9426_v36  ;;  %v9485_v35 = vld [vmem:[#allocation109_spill] sm:$0xff]  ;;  %v9486_v36 = vld [vmem:[#allocation110_spill] sm:$0xff] }
 0x28d   :  { %1759 = vmatpush.msrb.mxu2 %v9427_v38  ;;  %1779 = vmatpush.msrb.mxu3 %v9428_v39  ;;  %v9487_v38 = vld [vmem:[#allocation111_spill] sm:$0xff]  ;;  %v9488_v39 = vld [vmem:[#allocation112_spill] sm:$0xff] }
 0x28e   :  { %1720 = vmatpush.msra.mxu0 %v9429_v41  ;;  %1740 = vmatpush.msra.mxu1 %v9430_v42  ;;  %v9489_v41 = vld [vmem:[#allocation113_spill] sm:$0xff]  ;;  %v9490_v42 = vld [vmem:[#allocation114_spill] sm:$0xff] }
 0x28f   :  { %1760 = vmatpush.msrb.mxu2 %v9431_v43  ;;  %1780 = vmatpush.msrb.mxu3 %v9432_v44  ;;  %v9491_v43 = vld [vmem:[#allocation115_spill] sm:$0xff]  ;;  %v9492_v44 = vld [vmem:[#allocation116_spill] sm:$0xff] }
 0x290   :  { %1721 = vmatpush.msra.mxu0 %v9433_v46  ;;  %1741 = vmatpush.msra.mxu1 %v9434_v4  ;;  %v9493_v46 = vld [vmem:[#allocation118_spill] sm:$0xff]  ;;  %v9494_v4 = vld [vmem:[#allocation119_spill] sm:$0xff] }
 0x291   :  { %1761 = vmatpush.msrb.mxu2 %v9435_v31  ;;  %1781 = vmatpush.msrb.mxu3 %v9436_v48  ;;  %v9495_v31 = vld [vmem:[#allocation120_spill] sm:$0xff]  ;;  %v9496_v48 = vld [vmem:[#allocation121_spill] sm:$0xff] }
 0x292   :  { %1722 = vmatpush.msra.mxu0 %v9437_v49  ;;  %1742 = vmatpush.msra.mxu1 %v9438_v34  ;;  %v9497_v49 = vld [vmem:[#allocation122_spill] sm:$0xff]  ;;  %v9498_v34 = vld [vmem:[#allocation123_spill] sm:$0xff] }
 0x293   :  { %1762 = vmatpush.msrb.mxu2 %v9439_v52  ;;  %1782 = vmatpush.msrb.mxu3 %v9440_v20  ;;  %v9499_v52 = vld [vmem:[#allocation124_spill] sm:$0xff]  ;;  %v9500_v20 = vld [vmem:[#allocation125_spill] sm:$0xff] }
 0x294   :  { %1723 = vmatpush.msra.mxu0 %v9441_v55  ;;  %1743 = vmatpush.msra.mxu1 %v9442_v56  ;;  %v9501_v55 = vld [vmem:[#allocation126_spill] sm:$0xff]  ;;  %v9502_v56 = vld [vmem:[#allocation127_spill] sm:$0xff] }
 0x295   :  { %1763 = vmatpush.msrb.mxu2 %v9443_v58  ;;  %1783 = vmatpush.msrb.mxu3 %v9444_v59  ;;  %v9503_v58 = vld [vmem:[#allocation128_spill] sm:$0xff]  ;;  %v9504_v59 = vld [vmem:[#allocation129_spill] sm:$0xff] }
 0x296   :  { %1724 = vmatpush.msra.mxu0 %v9445_v60  ;;  %1744 = vmatpush.msra.mxu1 %v9446_v61  ;;  %v9505_v60 = vld [vmem:[#allocation130_spill] sm:$0xff]  ;;  %v9506_v61 = vld [vmem:[#allocation131_spill] sm:$0xff] }
 0x297   :  { %1764 = vmatpush.msrb.mxu2 %v9447_v9  ;;  %1784 = vmatpush.msrb.mxu3 %v9448_v10  ;;  %v9507_v9 = vld [vmem:[#allocation132_spill] sm:$0xff]  ;;  %v9508_v10 = vld [vmem:[#allocation133_spill] sm:$0xff] }
 0x298   :  { %1725 = vmatpush.msra.mxu0 %v9449_v2  ;;  %1745 = vmatpush.msra.mxu1 %v9450_v53  ;;  %v9509_v2 = vld [vmem:[#allocation134_spill] sm:$0xff]  ;;  %v9510_v53 = vld [vmem:[#allocation135_spill] sm:$0xff] }
 0x299   :  { %1765 = vmatpush.msrb.mxu2 %v9451_v13  ;;  %1785 = vmatpush.msrb.mxu3 %v9452_v5  ;;  %v9511_v13 = vld [vmem:[#allocation136_spill] sm:$0xff]  ;;  %v9512_v5 = vld [vmem:[#allocation137_spill] sm:$0xff] }
 0x29a   :  { %1726 = vmatpush.msra.mxu0 %v9453_v14  ;;  %1746 = vmatpush.msra.mxu1 %v9454_v50  ;;  %v9513_v14 = vld [vmem:[#allocation138_spill] sm:$0xff]  ;;  %v9514_v50 = vld [vmem:[#allocation139_spill] sm:$0xff] }
 0x29b   :  { %1766 = vmatpush.msrb.mxu2 %v9455_v6  ;;  %1786 = vmatpush.msrb.mxu3 %v9456_v15  ;;  %v9515_v6 = vld [vmem:[#allocation140_spill] sm:$0xff]  ;;  %v9516_v15 = vld [vmem:[#allocation141_spill] sm:$0xff] }
 0x29c   :  { %1727 = vmatpush.msra.mxu0 %v9457_v63  ;;  %1747 = vmatpush.msra.mxu1 %v9458_v17  ;;  %v9517_v63 = vld [vmem:[#allocation142_spill] sm:$0xff]  ;;  %v9518_v17 = vld [vmem:[#allocation143_spill] sm:$0xff] }
 0x29d   :  { %1767 = vmatpush.msrb.mxu2 %v9459_v19  ;;  %1787 = vmatpush.msrb.mxu3 %v9460_v11  ;;  %v9519_v19 = vld [vmem:[#allocation145_spill] sm:$0xff]  ;;  %v9520_v11 = vld [vmem:[#allocation146_spill] sm:$0xff] }
 0x29e   :  { %1728 = vmatpush.msra.mxu0 %v9461_v22  ;;  %1748 = vmatpush.msra.mxu1 %v9462_v57  ;;  %v9521_v22 = vld [vmem:[#allocation152_spill] sm:$0xff]  ;;  %v9522_v57 = vld [vmem:[#allocation153_spill] sm:$0xff] }
 0x29f   :  { %1768 = vmatpush.msrb.mxu2 %v9463_v8  ;;  %1788 = vmatpush.msrb.mxu3 %v9464_v47  ;;  %v9523_v8 = vld [vmem:[#allocation154_spill] sm:$0xff]  ;;  %v9524_v47 = vld [vmem:[#allocation155_spill] sm:$0xff] }
 0x2a0   :  { %1729 = vmatpush.msra.mxu0 %v9465_v23  ;;  %1749 = vmatpush.msra.mxu1 %v9466_v25  ;;  %v9525_v23 = vld [vmem:[#allocation156_spill] sm:$0xff]  ;;  %v9526_v25 = vld [vmem:[#allocation157_spill] sm:$0xff] }
 0x2a1   :  { %1769 = vmatpush.msrb.mxu2 %v9467_v3  ;;  %1789 = vmatpush.msrb.mxu3 %v9468_v1  ;;  %v9527_v3 = vld [vmem:[#allocation158_spill] sm:$0xff]  ;;  %v9528_v1 = vld [vmem:[#allocation159_spill] sm:$0xff] }
 0x2a2   :  { %1730 = vmatpush.msra.mxu0 %v9469_v30  ;;  %1750 = vmatpush.msra.mxu1 %v9470_v0  ;;  %v9529_v30 = vld [vmem:[#allocation160_spill] sm:$0xff]  ;;  %v9530_v0 = vld [vmem:[#allocation161_spill] sm:$0xff] }
 0x2a3   :  { %1770 = vmatpush.msrb.mxu2 %v9471_v26  ;;  %1790 = vmatpush.msrb.mxu3 %v9472_v45  ;;  %v9531_v26 = vld [vmem:[#allocation162_spill] sm:$0xff]  ;;  %v9532_v45 = vld [vmem:[#allocation163_spill] sm:$0xff] }
 0x2a4   :  { %1731 = vmatpush.msra.mxu0 %v9473_v28  ;;  %1751 = vmatpush.msra.mxu1 %v9474_v24  ;;  %v9533_v28 = vld [vmem:[#allocation164_spill] sm:$0xff]  ;;  %v9534_v24 = vld [vmem:[#allocation165_spill] sm:$0xff] }
 0x2a5   :  { %1771 = vmatpush.msrb.mxu2 %v9475_v40  ;;  %1791 = vmatpush.msrb.mxu3 %v9476_v62  ;;  %v9535_v40 = vld [vmem:[#allocation166_spill] sm:$0xff]  ;;  %v9536_v62 = vld [vmem:[#allocation167_spill] sm:$0xff] }
 0x2a6   :  { %1732 = vmatpush.msra.mxu0 %v9477_v12  ;;  %1752 = vmatpush.msra.mxu1 %v9478_v7  ;;  %v9537_v12 = vld [vmem:[#allocation168_spill] sm:$0xff]  ;;  %v9538_v7 = vld [vmem:[#allocation169_spill] sm:$0xff] }
 0x2a7   :  { %1772 = vmatpush.msrb.mxu2 %v9479_v37  ;;  %1792 = vmatpush.msrb.mxu3 %v9480_v18  ;;  %v9539_v37 = vld [vmem:[#allocation170_spill] sm:$0xff]  ;;  %v9540_v18 = vld [vmem:[#allocation171_spill] sm:$0xff] }
 0x2a8   :  { %1733 = vmatpush.msra.mxu0 %v9481_v29  ;;  %1753 = vmatpush.msra.mxu1 %v9482_v21  ;;  %v9541_v29 = vld [vmem:[#allocation172_spill] sm:$0xff]  ;;  %v9542_v21 = vld [vmem:[#allocation173_spill] sm:$0xff] }
 0x2a9   :  { %1773 = vmatpush.msrb.mxu2 %v9483_v32  ;;  %1793 = vmatpush.msrb.mxu3 %v9484_v33  ;;  %v9543_v32 = vld [vmem:[#allocation174_spill] sm:$0xff]  ;;  %v9544_v33 = vld [vmem:[#allocation175_spill] sm:$0xff] }
 0x2aa   :  { %1801 = vmatpush.msrb.mxu0 %v9485_v35  ;;  %1821 = vmatpush.msrb.mxu1 %v9486_v36  ;;  %v9545_v35 = vld [vmem:[#allocation176_spill] sm:$0xff]  ;;  %v9546_v36 = vld [vmem:[#allocation177_spill] sm:$0xff] }
 0x2ab   :  { %1841 = vmatpush.msra.mxu2 %v9487_v38  ;;  %1861 = vmatpush.msra.mxu3 %v9488_v39  ;;  %v9547_v38 = vld [vmem:[#allocation178_spill] sm:$0xff]  ;;  %v9548_v39 = vld [vmem:[#allocation179_spill] sm:$0xff] }
 0x2ac   :  { %1802 = vmatpush.msrb.mxu0 %v9489_v41  ;;  %1822 = vmatpush.msrb.mxu1 %v9490_v42 }
 0x2ad   :  { %1842 = vmatpush.msra.mxu2 %v9491_v43  ;;  %1862 = vmatpush.msra.mxu3 %v9492_v44 }
 0x2ae   :  { %1803 = vmatpush.msrb.mxu0 %v9493_v46  ;;  %1823 = vmatpush.msrb.mxu1 %v9494_v4 }
 0x2af   :  { %1843 = vmatpush.msra.mxu2 %v9495_v31  ;;  %1863 = vmatpush.msra.mxu3 %v9496_v48  ;;  %v9549_v48 = vld [vmem:[#allocation10_spill] sm:$0xff] }
 0x2b0   :  { %1804 = vmatpush.msrb.mxu0 %v9497_v49  ;;  %1824 = vmatpush.msrb.mxu1 %v9498_v34  ;;  %v9550_v34 = vld [vmem:[#allocation13_spill] sm:$0xff] }
 0x2b1   :  { %1844 = vmatpush.msra.mxu2 %v9499_v52  ;;  %1864 = vmatpush.msra.mxu3 %v9500_v20 }
 0x2b2   :  { %1805 = vmatpush.msrb.mxu0 %v9501_v55  ;;  %1825 = vmatpush.msrb.mxu1 %v9502_v56 }
 0x2b3   :  { %1845 = vmatpush.msra.mxu2 %v9503_v58  ;;  %1865 = vmatpush.msra.mxu3 %v9504_v59 }
 0x2b4   :  { %1806 = vmatpush.msrb.mxu0 %v9505_v60  ;;  %1826 = vmatpush.msrb.mxu1 %v9506_v61  ;;  %v9551_v60 = vld [vmem:[#allocation14_spill] sm:$0xff] }
 0x2b5   :  { %1846 = vmatpush.msra.mxu2 %v9507_v9  ;;  %1866 = vmatpush.msra.mxu3 %v9508_v10 }
 0x2b6   :  { %1807 = vmatpush.msrb.mxu0 %v9509_v2  ;;  %1827 = vmatpush.msrb.mxu1 %v9510_v53 }
 0x2b7   :  { %1847 = vmatpush.msra.mxu2 %v9511_v13  ;;  %1867 = vmatpush.msra.mxu3 %v9512_v5 }
 0x2b8   :  { %1808 = vmatpush.msrb.mxu0 %v9513_v14  ;;  %1828 = vmatpush.msrb.mxu1 %v9514_v50  ;;  %v9552_v50 = vld [vmem:[#allocation149_spill] sm:$0xff] }
 0x2b9   :  { %1848 = vmatpush.msra.mxu2 %v9515_v6  ;;  %1868 = vmatpush.msra.mxu3 %v9516_v15  ;;  %v9553_v15 = vld [vmem:[#allocation150_spill] sm:$0xff] }
 0x2ba   :  { %1809 = vmatpush.msrb.mxu0 %v9517_v63  ;;  %1829 = vmatpush.msrb.mxu1 %v9518_v17 }
 0x2bb   :  { %1849 = vmatpush.msra.mxu2 %v9519_v19  ;;  %1869 = vmatpush.msra.mxu3 %v9520_v11 }
 0x2bc   :  { %1810 = vmatpush.msrb.mxu0 %v9521_v22  ;;  %1830 = vmatpush.msrb.mxu1 %v9522_v57 }
 0x2bd   :  { %1850 = vmatpush.msra.mxu2 %v9523_v8  ;;  %1870 = vmatpush.msra.mxu3 %v9524_v47 }
 0x2be   :  { %1811 = vmatpush.msrb.mxu0 %v9525_v23  ;;  %1831 = vmatpush.msrb.mxu1 %v9526_v25 }
 0x2bf   :  { %1851 = vmatpush.msra.mxu2 %v9527_v3  ;;  %1871 = vmatpush.msra.mxu3 %v9528_v1  ;;  %v9554_v3 = vld [vmem:[#allocation11_spill] sm:$0xff] }
 0x2c0   :  { %1812 = vmatpush.msrb.mxu0 %v9529_v30  ;;  %1832 = vmatpush.msrb.mxu1 %v9530_v0 }
 0x2c1   :  { %1852 = vmatpush.msra.mxu2 %v9531_v26  ;;  %1872 = vmatpush.msra.mxu3 %v9532_v45 }
 0x2c2   :  { %1813 = vmatpush.msrb.mxu0 %v9533_v28  ;;  %1833 = vmatpush.msrb.mxu1 %v9534_v24 }
 0x2c3   :  { %1853 = vmatpush.msra.mxu2 %v9535_v40  ;;  %1873 = vmatpush.msra.mxu3 %v9536_v62 }
 0x2c4   :  { %1814 = vmatpush.msrb.mxu0 %v9537_v12  ;;  %1834 = vmatpush.msrb.mxu1 %v9538_v7 }
 0x2c5   :  { %1854 = vmatpush.msra.mxu2 %v9539_v37  ;;  %1874 = vmatpush.msra.mxu3 %v9540_v18 }
 0x2c6   :  { %1815 = vmatpush.msrb.mxu0 %v9541_v29  ;;  %1835 = vmatpush.msrb.mxu1 %v9542_v21 }
 0x2c7   :  { %1855 = vmatpush.msra.mxu2 %v9543_v32  ;;  %1875 = vmatpush.msra.mxu3 %v9544_v33 }
 0x2c8   :  { %1816 = vmatpush.msrb.mxu0 %v9545_v35  ;;  %1836 = vmatpush.msrb.mxu1 %v9546_v36 }
 0x2c9   :  { %1856 = vmatpush.msra.mxu2 %v9547_v38  ;;  %1876 = vmatpush.msra.mxu3 %v9548_v39 }
 0x2e1   :  { %v1343_v41 = vpop.f32.mrf.mxu0  ;;  %v1363_v42 = vpop.f32.mrf.mxu1 }
 0x2e8   :  { %v1403_v43 = vpop.f32.mrf.mxu3  ;;  %v1383_v20 = vpop.f32.mrf.mxu2 }
 0x2fb   :  { %v1426_v44 = vpop.f32.mrf.mxu0  ;;  %v1446_v46 = vpop.f32.mrf.mxu1 }
 0x2fc   :  { %v1427_v4 = vadd.f32 %v1426_v44, %v1343_v41  ;;  %v1447_v31 = vadd.f32 %v1446_v46, %v1363_v42 }
 0x2fe   :  { %v1489_v49 = vadd.f32 %v1427_v4, %v9549_v48  ;;  %v1490_v52 = vadd.f32 %v1447_v31, %v9550_v34 }
 0x300   :  { %v3572_v55 = vmul.f32 -1.442695, %v1489_v49  ;;  %v3573_v56 = vmul.f32 -1.442695, %v1490_v52 }
 0x302   :  { %3692 = vpow2.f32 %v3572_v55  ;;  %v1486_v58 = vpop.f32.mrf.mxu3  ;;  %v1466_v14 = vpop.f32.mrf.mxu2 }
 0x303   :  { %3694 = vpow2.f32 %v3573_v56  ;;  %v1487_v59 = vadd.f32 %v1486_v58, %v1403_v43  ;;  %v1467_v8 = vadd.f32 %v1466_v14, %v1383_v20 }
 0x305   :  { %v1492_v61 = vadd.f32 %v1487_v59, %v9551_v60  ;;  %v1573_v9 = vpop.f32.mrf.mxu0  ;;  %v1593_v10 = vpop.f32.mrf.mxu1  ;;  %v1491_v1 = vadd.f32 %v1467_v8, %v9554_v3 }
 0x306   :  { %v1640_v2 = vrot.slane %v1573_v9, 2  ;;  %v1641_v53 = vrot.slane %v1593_v10, 2 }
 0x307   :  { %v3574_v13 = vmul.f32 -1.442695, %v1492_v61 }
 0x308   :  { %v3693_v5 = vpop.eup %3692  ;;  %v1648_v6 = vadd.f32 %v1640_v2, %v9552_v50  ;;  %v1649_v63 = vadd.f32 %v1641_v53, %v9553_v15  ;;  %v1711_v53 = vrot.slane %v6190_v54, 6 }
 0x309   :  { %v3695_v17 = vpop.eup %3694  ;;  %v1496_v19 = vadd.f32 1.0, %v3693_v5  ;;  %3696 = vpow2.f32 %v3574_v13 }
 0x30a   :  { %v1515_v11 = vadd.f32 1.0, %v3695_v17  ;;  %v3575_v22 = vmul.f32 -1.442695, %v1648_v6  ;;  %v3576_v57 = vmul.f32 -1.442695, %v1649_v63 }
 0x30b   :  { %3698 = vrcp.f32 %v1496_v19  ;;  %v1506_v12 = vand.u32 2147483647, %v1496_v19  ;;  %v1508_v29 = vand.u32 2147483648, %v1496_v19  ;;  %vm1502_vm0 = vweird.f32 %v1496_v19 }
 0x30c   :  { %3700 = vrcp.f32 %v1515_v11  ;;  %v1633_v47 = vpop.f32.mrf.mxu3  ;;  %v1613_v7 = vpop.f32.mrf.mxu2  ;;  %v1527_v33 = vand.u32 2147483648, %v1515_v11  ;;  %vm1521_vm15 = vweird.f32 %v1515_v11 }
 0x30d   :  { %3702 = vpow2.f32 %v3575_v22  ;;  %v1643_v23 = vrot.slane %v1633_v47, 2  ;;  %v1642_v38 = vrot.slane %v1613_v7, 2  ;;  %vm1507_vm2 = vcmp.eq.f32.partialorder %v1506_v12, 8.507059e+37 }
 0x30e   :  { %3704 = vpow2.f32 %v3576_v57  ;;  %v1509_v44 = vor.u32 1.1754944e-38, %v1508_v29  ;;  %v1528_v49 = vor.u32 1.1754944e-38, %v1527_v33 }
 0x30f   :  { %v3697_v25 = vpop.eup %3696  ;;  %v1651_v0 = vadd.f32 %v1643_v23, %v5269_v16  ;;  %v1525_v16 = vand.u32 2147483647, %v1515_v11  ;;  %v1650_v20 = vadd.f32 %v1642_v38, %v5305_v27 }
 0x310   :  { %v6372_v30 = vadd.f32 1.0, %v3697_v25  ;;  %v6535_v25 = vld [vmem:[#allocation3 + $0x100] sm:$0xff] }
 0x311   :  { %v3699_v26 = vpop.eup %3698  ;;  %v3577_v24 = vmul.f32 -1.442695, %v1651_v0  ;;  %vm1526_vm4 = vcmp.eq.f32.partialorder %v1525_v16, 8.507059e+37 }
 0x312   :  { %v3701_v45 = vpop.eup %3700  ;;  %v1498_v28 = vmul.f32 %v3699_v26, %v1496_v19  ;;  %3706 = vrcp.f32 %v6372_v30  ;;  %vm1503_vm13 = vweird.f32 %v3699_v26  ;;  %v1545_v27 = vand.u32 2147483647, %v6372_v30 }
 0x313   :  { %v3703_v40 = vpop.eup %3702  ;;  %v1517_v62 = vmul.f32 %v3701_v45, %v1515_v11  ;;  %3708 = vtanh.f32 %v1491_v1  ;;  %vm1522_vm14 = vweird.f32 %v3701_v45  ;;  %vm1504_vm1 = vmor %vm1502_vm0, %vm1503_vm13  ;;  %v1547_v50 = vand.u32 2147483648, %v6372_v30  ;;  %v6538_v1 = vld [vmem:[#allocation3 + $0x108] sm:$0xff] }
 0x314   :  { %v3705_v37 = vpop.eup %3704  ;;  %v1499_v18 = vsub.f32 1.0, %v1498_v28  ;;  %v6376_v21 = vadd.f32 1.0, %v3703_v40  ;;  %3710 = vpow2.f32 %v3577_v24  ;;  %vm1523_vm3 = vmor %vm1521_vm15, %vm1522_vm14  ;;  %vm1541_vm8 = vweird.f32 %v6372_v30 }
 0x315   :  { %v1518_v32 = vsub.f32 1.0, %v1517_v62  ;;  %v6378_v35 = vadd.f32 1.0, %v3705_v37  ;;  %vm6415_vm12 = vcmp.eq.f32.partialorder %v1545_v27, 8.507059e+37  ;;  %v1548_v62 = vor.u32 1.1754944e-38, %v1547_v50  ;;  %v6490_v27 = vld [vmem:[#allocation3 + $0x198] sm:$0xff]  ;;  %v6493_v50 = vld [vmem:[#allocation3 + $0x160] sm:$0xff] }
 0x316   :  { %v1500_v36 = vmul.f32 %v3699_v26, %v1499_v18  ;;  %3712 = vrcp.f32 %v6376_v21  ;;  %v1665_v63 = vand.u32 2147483647, %v6376_v21  ;;  %v1667_v19 = vand.u32 2147483648, %v6376_v21 }
 0x317   :  { %v1519_v39 = vmul.f32 %v3701_v45, %v1518_v32  ;;  %3714 = vrcp.f32 %v6378_v35  ;;  %v1684_v8 = vand.u32 2147483647, %v6378_v35  ;;  %vm1680_vm9 = vweird.f32 %v6378_v35 }
 0x318   :  { %v6382_v41 = vpop.eup %3706  ;;  %v1501_v42 = vadd.f32 %v3699_v26, %v1500_v36  ;;  %vm1661_vm10 = vweird.f32 %v6376_v21  ;;  %vm1666_vm15 = vcmp.eq.f32.partialorder %v1665_v63, 8.507059e+37 }
 0x319   :  { %v3709_v43 = vpop.eup %3708  ;;  %v1520_v46 = vadd.f32 %v3701_v45, %v1519_v39  ;;  %v1537_v4 = vmul.f32 %v6382_v41, %v6372_v30  ;;  %vm1542_vm5 = vweird.f32 %v6382_v41  ;;  %vm1685_vm0 = vcmp.eq.f32.partialorder %v1684_v8, 8.507059e+37  ;;  %v6526_v8 = vld [vmem:[#allocation3 + $0x128] sm:$0xff] }
 0x31a   :  { %v3711_v31 = vpop.eup %3710  ;;  %v1505_v52 = vsel %vm1504_vm1, %v3699_v26, %v1501_v42  ;;  %vm6411_vm11 = vmor %vm1541_vm8, %vm1542_vm5  ;;  %v1668_v26 = vor.u32 1.1754944e-38, %v1667_v19  ;;  %v6437_v42 = vld [vmem:[#allocation3 + $0x1e8] sm:$0xff] }
 0x31b   :  { %v1510_v55 = vsel %vm1507_vm2, %v1509_v44, %v1505_v52  ;;  %v1524_v56 = vsel %vm1523_vm3, %v3701_v45, %v1520_v46  ;;  %v1538_v58 = vsub.f32 1.0, %v1537_v4  ;;  %v6387_v59 = vadd.f32 1.0, %v3711_v31  ;;  %v6442_v44 = vld [vmem:[#allocation3 + $0x1f0] sm:$0xff]  ;;  %v6445_v46 = vld [vmem:[#allocation3 + $0x1f8] sm:$0xff]  ;;  %v6454_v31 = vld [vmem:[#allocation3 + $0x1c0] sm:$0xff] }
 0x31c   :  { %v3713_v61 = vpop.eup %3712  ;;  %v1529_v9 = vsel %vm1526_vm4, %v1528_v49, %v1524_v56  ;;  %v1552_v10 = vmul.f32 %v3709_v43, %v1510_v55  ;;  %v6457_v49 = vld [vmem:[#allocation3 + $0x1c8] sm:$0xff]  ;;  %v6466_v55 = vld [vmem:[#allocation3 + $0x1d8] sm:$0xff] }
 0x31d   :  { %v3715_v2 = vpop.eup %3714  ;;  %v1551_v13 = vmul.f32 %v1529_v9, %v6140_v51  ;;  %v1657_v5 = vmul.f32 %v3713_v61, %v6376_v21  ;;  %3716 = vrcp.f32 %v6387_v59  ;;  %v1539_v54 = vmul.f32 %v6382_v41, %v1538_v58  ;;  %v6469_v58 = vld [vmem:[#allocation3 + $0x1a0] sm:$0xff]  ;;  %v6478_v9 = vld [vmem:[#allocation3 + $0x1b8] sm:$0xff]  ;;  %v6510_v19 = vld [vmem:[#allocation3 + $0x148] sm:$0xff] }
 0x31e   :  { %v1676_v14 = vmul.f32 %v3715_v2, %v6378_v35  ;;  %3718 = vtanh.f32 %v1650_v20  ;;  %v1686_v51 = vand.u32 2147483648, %v6378_v35  ;;  %vm1662_vm6 = vweird.f32 %v3713_v61  ;;  %v6463_v20 = vld [vmem:[#allocation3 + $0x1d0] sm:$0xff]  ;;  %v6604_v4 = vld [vmem:[#allocation3 + $0x78] sm:$0xff] }
 0x31f   :  { %v6396_v6 = vadd.f32 %v1552_v10, %v1551_v13  ;;  %v1658_v15 = vsub.f32 1.0, %v1657_v5  ;;  %v1540_v22 = vadd.f32 %v6382_v41, %v1539_v54  ;;  %vm1681_vm7 = vweird.f32 %v3715_v2  ;;  %vm1663_vm13 = vmor %vm1661_vm10, %vm1662_vm6  ;;  %v6484_v13 = vld [vmem:[#allocation3 + $0x188] sm:$0xff]  ;;  %v6501_v54 = vld [vmem:[#allocation3 + $0x170] sm:$0xff]  ;;  %9580 = vst [vmem:[#allocation33_spill] sm:$0xff] %v6604_v4 }
 0x320   :  { %v1677_v17 = vsub.f32 1.0, %v1676_v14  ;;  %vm1682_vm14 = vmor %vm1680_vm9, %vm1681_vm7  ;;  %v1687_v24 = vor.u32 1.1754944e-38, %v1686_v51  ;;  %v1706_v39 = vand.u32 2147483648, %v6387_v59  ;;  %vm1700_vm2 = vweird.f32 %v6387_v59  ;;  %v6487_v14 = vld [vmem:[#allocation3 + $0x190] sm:$0xff]  ;;  %v6507_v51 = vld [vmem:[#allocation3 + $0x140] sm:$0xff] }
 0x321   :  { %3720 = vtanh.f32 %v6396_v6  ;;  %v1659_v11 = vmul.f32 %v3713_v61, %v1658_v15  ;;  %v1544_v28 = vsel %vm6411_vm11, %v6382_v41, %v1540_v22  ;;  %v6434_v41 = vld [vmem:[#allocation3 + $0x1e0] sm:$0xff]  ;;  %v1704_v43 = vand.u32 2147483647, %v6387_v59  ;;  %v6496_v15 = vld [vmem:[#allocation3 + $0x168] sm:$0xff]  ;;  %v6520_v22 = vld [vmem:[#allocation3 + $0x158] sm:$0xff] }
 0x322   :  { %v1678_v57 = vmul.f32 %v3715_v2, %v1677_v17  ;;  %v1549_v32 = vsel %vm6415_vm12, %v1548_v62, %v1544_v28  ;;  %v1707_v56 = vor.u32 1.1754944e-38, %v1706_v39  ;;  %v6504_v17 = vld [vmem:[#allocation3 + $0x178] sm:$0xff]  ;;  %v6553_v28 = vld [vmem:[#allocation3 + $0xf0] sm:$0xff]  ;;  %v6562_v62 = vld [vmem:[#allocation3 + $0xc8] sm:$0xff] }
 0x323   :  { %v6407_v47 = vpop.eup %3716  ;;  %v1660_v23 = vadd.f32 %v3713_v61, %v1659_v11  ;;  %vm1705_vm4 = vcmp.eq.f32.partialorder %v1704_v43, 8.507059e+37  ;;  %v6517_v11 = vld [vmem:[#allocation3 + $0x150] sm:$0xff]  ;;  %9563 = vst [vmem:[#allocation18_spill] sm:$0xff] %v6553_v28  ;;  %v6598_v39 = vld [vmem:[#allocation3 + $0x68] sm:$0xff] }
 0x324   :  { %v3719_v0 = vpop.eup %3718  ;;  %v1679_v45 = vadd.f32 %v3715_v2, %v1678_v57  ;;  %v1696_v30 = vmul.f32 %v6407_v47, %v6387_v59  ;;  %vm1701_vm1 = vweird.f32 %v6407_v47  ;;  %v6472_v59 = vld [vmem:[#allocation3 + $0x1a8] sm:$0xff]  ;;  %v6523_v57 = vld [vmem:[#allocation3 + $0x120] sm:$0xff]  ;;  %9566 = vst [vmem:[#allocation20_spill] sm:$0xff] %v6562_v62  ;;  %v6601_v43 = vld [vmem:[#allocation3 + $0x70] sm:$0xff] }
 0x325   :  { %v1664_v40 = vsel %vm1663_vm13, %v3713_v61, %v1660_v23  ;;  %vm6450_vm3 = vmor %vm1700_vm2, %vm1701_vm1  ;;  %v6475_v61 = vld [vmem:[#allocation3 + $0x1b0] sm:$0xff]  ;;  %v6532_v23 = vld [vmem:[#allocation3 + $0x138] sm:$0xff]  ;;  %9578 = vst [vmem:[#allocation31_spill] sm:$0xff] %v6598_v39 }
 0x326   :  { %v1669_v12 = vsel %vm1666_vm15, %v1668_v26, %v1664_v40  ;;  %v1683_v7 = vsel %vm1682_vm14, %v3715_v2, %v1679_v45  ;;  %v1697_v37 = vsub.f32 1.0, %v1696_v30  ;;  %v6544_v26 = vld [vmem:[#allocation3 + $0x118] sm:$0xff]  ;;  %v6547_v45 = vld [vmem:[#allocation3 + $0xe0] sm:$0xff]  ;;  %v6550_v30 = vld [vmem:[#allocation3 + $0xe8] sm:$0xff]  ;;  %9579 = vst [vmem:[#allocation32_spill] sm:$0xff] %v6601_v43 }
 0x327   :  { %v3721_v18 = vpop.eup %3720  ;;  %v1688_v29 = vsel %vm1685_vm0, %v1687_v24, %v1683_v7  ;;  %v1714_v21 = vmul.f32 %v3719_v0, %v1669_v12  ;;  %v6541_v0 = vld [vmem:[#allocation3 + $0x110] sm:$0xff]  ;;  %9561 = vst [vmem:[#allocation12_spill] sm:$0xff] %v6547_v45  ;;  %v6556_v24 = vld [vmem:[#allocation3 + $0xf8] sm:$0xff]  ;;  %v6559_v40 = vld [vmem:[#allocation3 + $0xc0] sm:$0xff] }
 0x328   :  { %v1713_v33 = vmul.f32 %v1711_v53, %v1688_v29  ;;  %v1698_v16 = vmul.f32 %v6407_v47, %v1697_v37  ;;  %v1555_v35 = vmul.f32 %v3721_v18, %v1549_v32  ;;  %v6481_v53 = vld [vmem:[#allocation3 + $0x180] sm:$0xff]  ;;  %9562 = vst [vmem:[#allocation17_spill] sm:$0xff] %v6550_v30  ;;  %v6565_v12 = vld [vmem:[#allocation3 + $0xd0] sm:$0xff]  ;;  %v6568_v7 = vld [vmem:[#allocation3 + $0xd8] sm:$0xff] }
 0x329   :  { %9564 = vst [vmem:[#allocation15_spill] sm:$0xff] %v6556_v24  ;;  %v6571_v37 = vld [vmem:[#allocation3 + $0xa0] sm:$0xff]  ;;  %v6574_v18 = vld [vmem:[#allocation3 + $0xa8] sm:$0xff]  ;;  %v6577_v29 = vld [vmem:[#allocation3 + $0xb0] sm:$0xff] }
 0x32a   :  { %v6428_v36 = vadd.f32 %v1714_v21, %v1713_v33  ;;  %1734 = vmatmul.f32.vlgmr.msra.gmra.mxu0 %v1555_v35  ;;  %1754 = vmatmul.f32.vlgmr.msra.gmra.mxu1 %v1555_v35  ;;  %v1699_v38 = vadd.f32 %v6407_v47, %v1698_v16  ;;  %9565 = vst [vmem:[#allocation16_spill] sm:$0xff] %v6559_v40  ;;  %v6580_v21 = vld [vmem:[#allocation3 + $0xb8] sm:$0xff]  ;;  %v6583_v32 = vld [vmem:[#allocation3 + $0x80] sm:$0xff]  ;;  %v6586_v33 = vld [vmem:[#allocation3 + $0x88] sm:$0xff] }
 0x32b   :  { %1774 = vmatmul.f32.vlgmr.msrb.gmra.mxu2 %v1555_v35  ;;  %1794 = vmatmul.f32.vlgmr.msrb.gmra.mxu3 %v1555_v35  ;;  %9567 = vst [vmem:[#allocation21_spill] sm:$0xff] %v6565_v12  ;;  %v6589_v16 = vld [vmem:[#allocation3 + $0x90] sm:$0xff]  ;;  %v6592_v35 = vld [vmem:[#allocation3 + $0x98] sm:$0xff] }
 0x32c   :  { %3722 = vtanh.f32 %v6428_v36  ;;  %1948 = vmatpush.msra.mxu0 %v6434_v41  ;;  %1968 = vmatpush.msra.mxu1 %v6437_v42  ;;  %v1703_v52 = vsel %vm6450_vm3, %v6407_v47, %v1699_v38  ;;  %v6529_v47 = vld [vmem:[#allocation3 + $0x130] sm:$0xff]  ;;  %9568 = vst [vmem:[#allocation19_spill] sm:$0xff] %v6568_v7  ;;  %v6595_v38 = vld [vmem:[#allocation3 + $0x60] sm:$0xff] }
 0x32d   :  { %1988 = vmatpush.msrb.mxu2 %v6442_v44  ;;  %2008 = vmatpush.msrb.mxu3 %v6445_v46  ;;  %v1708_v2 = vsel %vm1705_vm4, %v1707_v56, %v1703_v52  ;;  %9569 = vst [vmem:[#allocation22_spill] sm:$0xff] %v6571_v37  ;;  %v6607_v52 = vld [vmem:[#allocation3 + $0x40] sm:$0xff]  ;;  %v6610_v56 = vld [vmem:[#allocation3 + $0x48] sm:$0xff] }
 0x32e   :  { %1949 = vmatpush.msra.mxu0 %v6454_v31  ;;  %1969 = vmatpush.msra.mxu1 %v6457_v49  ;;  %9570 = vst [vmem:[#allocation23_spill] sm:$0xff] %v6574_v18 }
 0x32f   :  { %1989 = vmatpush.msrb.mxu2 %v6463_v20  ;;  %2009 = vmatpush.msrb.mxu3 %v6466_v55  ;;  %9571 = vst [vmem:[#allocation24_spill] sm:$0xff] %v6577_v29 }
 0x330   :  { %1950 = vmatpush.msra.mxu0 %v6469_v58  ;;  %1970 = vmatpush.msra.mxu1 %v6472_v59  ;;  %9572 = vst [vmem:[#allocation25_spill] sm:$0xff] %v6580_v21 }
 0x331   :  { %1990 = vmatpush.msrb.mxu2 %v6475_v61  ;;  %2010 = vmatpush.msrb.mxu3 %v6478_v9  ;;  %9573 = vst [vmem:[#allocation26_spill] sm:$0xff] %v6583_v32 }
 0x332   :  { %v3723_v10 = vpop.eup %3722  ;;  %1951 = vmatpush.msra.mxu0 %v6481_v53  ;;  %1971 = vmatpush.msra.mxu1 %v6484_v13  ;;  %9574 = vst [vmem:[#allocation27_spill] sm:$0xff] %v6586_v33 }
 0x333   :  { %v1717_v5 = vmul.f32 %v3723_v10, %v1708_v2  ;;  %1991 = vmatpush.msrb.mxu2 %v6487_v14  ;;  %2011 = vmatpush.msrb.mxu3 %v6490_v27  ;;  %9575 = vst [vmem:[#allocation28_spill] sm:$0xff] %v6589_v16  ;;  %v6613_v10 = vld [vmem:[#allocation3 + $0x50] sm:$0xff]  ;;  %v6616_v2 = vld [vmem:[#allocation3 + $0x58] sm:$0xff] }
 0x334   :  { %1952 = vmatpush.msra.mxu0 %v6493_v50  ;;  %1972 = vmatpush.msra.mxu1 %v6496_v15  ;;  %9576 = vst [vmem:[#allocation29_spill] sm:$0xff] %v6592_v35 }
 0x335   :  { %v6499_v63 = vrot.slane %v1717_v5, 6  ;;  %1992 = vmatpush.msrb.mxu2 %v6501_v54  ;;  %2012 = vmatpush.msrb.mxu3 %v6504_v17  ;;  %9577 = vst [vmem:[#allocation30_spill] sm:$0xff] %v6595_v38  ;;  %v6619_v5 = vld [vmem:[#allocation3 + $0x20] sm:$0xff] }
 0x336   :  { %1953 = vmatpush.msra.mxu0 %v6507_v51  ;;  %1973 = vmatpush.msra.mxu1 %v6510_v19  ;;  %9581 = vst [vmem:[#allocation34_spill] sm:$0xff] %v6607_v52 }
 0x337   :  { %1817 = vmatmul.f32.vlgmr.msrb.gmra.mxu0 %v6499_v63  ;;  %1837 = vmatmul.f32.vlgmr.msrb.gmra.mxu1 %v6499_v63  ;;  %9582 = vst [vmem:[#allocation35_spill] sm:$0xff] %v6610_v56 }
 0x338   :  { %1857 = vmatmul.f32.vlgmr.msra.gmra.mxu2 %v6499_v63  ;;  %1877 = vmatmul.f32.vlgmr.msra.gmra.mxu3 %v6499_v63  ;;  %9583 = vst [vmem:[#allocation36_spill] sm:$0xff] %v6613_v10 }
 0x339   :  { %1993 = vmatpush.msrb.mxu2 %v6517_v11  ;;  %2013 = vmatpush.msrb.mxu3 %v6520_v22  ;;  %9584 = vst [vmem:[#allocation37_spill] sm:$0xff] %v6616_v2 }
 0x33a   :  { %1954 = vmatpush.msra.mxu0 %v6523_v57  ;;  %1974 = vmatpush.msra.mxu1 %v6526_v8  ;;  %9585 = vst [vmem:[#allocation38_spill] sm:$0xff] %v6619_v5 }
 0x33b   :  { %1994 = vmatpush.msrb.mxu2 %v6529_v47  ;;  %2014 = vmatpush.msrb.mxu3 %v6532_v23 }
 0x33c   :  { %1955 = vmatpush.msra.mxu0 %v6535_v25  ;;  %1975 = vmatpush.msra.mxu1 %v6538_v1 }
 0x33d   :  { %1995 = vmatpush.msrb.mxu2 %v6541_v0  ;;  %2015 = vmatpush.msrb.mxu3 %v6544_v26 }
 0x33e   :  { %1956 = vmatpush.msra.mxu0 %v6547_v45  ;;  %1976 = vmatpush.msra.mxu1 %v6550_v30 }
 0x33f   :  { %1996 = vmatpush.msrb.mxu2 %v6553_v28  ;;  %2016 = vmatpush.msrb.mxu3 %v6556_v24 }
 0x340   :  { %1957 = vmatpush.msra.mxu0 %v6559_v40  ;;  %1977 = vmatpush.msra.mxu1 %v6562_v62 }
 0x341   :  { %1997 = vmatpush.msrb.mxu2 %v6565_v12  ;;  %2017 = vmatpush.msrb.mxu3 %v6568_v7 }
 0x342   :  { %1958 = vmatpush.msra.mxu0 %v6571_v37  ;;  %1978 = vmatpush.msra.mxu1 %v6574_v18 }
 0x343   :  { %1998 = vmatpush.msrb.mxu2 %v6577_v29  ;;  %2018 = vmatpush.msrb.mxu3 %v6580_v21 }
 0x344   :  { %1959 = vmatpush.msra.mxu0 %v6583_v32  ;;  %1979 = vmatpush.msra.mxu1 %v6586_v33 }
 0x345   :  { %1999 = vmatpush.msrb.mxu2 %v6589_v16  ;;  %2019 = vmatpush.msrb.mxu3 %v6592_v35 }
 0x346   :  { %1960 = vmatpush.msra.mxu0 %v6595_v38  ;;  %1980 = vmatpush.msra.mxu1 %v6598_v39 }
 0x347   :  { %2000 = vmatpush.msrb.mxu2 %v6601_v43  ;;  %2020 = vmatpush.msrb.mxu3 %v6604_v4  ;;  %v6622_v4 = vld [vmem:[#allocation3 + $0x28] sm:$0xff] }
 0x348   :  { %1961 = vmatpush.msra.mxu0 %v6607_v52  ;;  %1981 = vmatpush.msra.mxu1 %v6610_v56  ;;  %9586 = vst [vmem:[#allocation39_spill] sm:$0xff] %v6622_v4  ;;  %v6625_v52 = vld [vmem:[#allocation3 + $0x30] sm:$0xff]  ;;  %v6628_v56 = vld [vmem:[#allocation3 + $0x38] sm:$0xff] }
 0x349   :  { %2001 = vmatpush.msrb.mxu2 %v6613_v10  ;;  %2021 = vmatpush.msrb.mxu3 %v6616_v2  ;;  %9587 = vst [vmem:[#allocation40_spill] sm:$0xff] %v6625_v52  ;;  %v6631_v10 = vld [vmem:[#allocation3] sm:$0xff]  ;;  %v6634_v2 = vld [vmem:[#allocation3 + $0x8] sm:$0xff] }
 0x34a   :  { %1962 = vmatpush.msra.mxu0 %v6619_v5  ;;  %1982 = vmatpush.msra.mxu1 %v6622_v4  ;;  %9588 = vst [vmem:[#allocation41_spill] sm:$0xff] %v6628_v56  ;;  %v6637_v5 = vld [vmem:[#allocation3 + $0x10] sm:$0xff]  ;;  %v6640_v4 = vld [vmem:[#allocation3 + $0x18] sm:$0xff] }
 0x34b   :  { %2002 = vmatpush.msrb.mxu2 %v6625_v52  ;;  %2022 = vmatpush.msrb.mxu3 %v6628_v56  ;;  %9589 = vst [vmem:[#allocation42_spill] sm:$0xff] %v6631_v10  ;;  %v6659_v56 = vld [vmem:[#allocation7 + $0x1c0] sm:$0xff] }
 0x34c   :  { %1963 = vmatpush.msra.mxu0 %v6631_v10  ;;  %9590 = vst [vmem:[#allocation43_spill] sm:$0xff] %v6634_v2  ;;  %1983 = vmatpush.msra.mxu1 %v6634_v2  ;;  %v6647_v10 = vld [vmem:[#allocation7 + $0x1e0] sm:$0xff]  ;;  %v6650_v2 = vld [vmem:[#allocation7 + $0x1e8] sm:$0xff] }
 0x34d   :  { %9591 = vst [vmem:[#allocation44_spill] sm:$0xff] %v6637_v5  ;;  %2003 = vmatpush.msrb.mxu2 %v6637_v5  ;;  %2023 = vmatpush.msrb.mxu3 %v6640_v4  ;;  %v6653_v5 = vld [vmem:[#allocation7 + $0x1f0] sm:$0xff] }
 0x34e   :  { %9592 = vst [vmem:[#allocation45_spill] sm:$0xff] %v6640_v4  ;;  %1964 = vmatmul.f32.vlgmr.msra.gmra.mxu0 %v6499_v63  ;;  %1984 = vmatmul.f32.vlgmr.msra.gmra.mxu1 %v6499_v63  ;;  %v6656_v4 = vld [vmem:[#allocation7 + $0x1f8] sm:$0xff] }
 0x34f   :  { %2004 = vmatmul.f32.vlgmr.msrb.gmra.mxu2 %v6499_v63  ;;  %2024 = vmatmul.f32.vlgmr.msrb.gmra.mxu3 %v6499_v63  ;;  %9593 = vst [vmem:[#allocation46_spill] sm:$0xff] %v6647_v10  ;;  %v6662_v63 = vld [vmem:[#allocation7 + $0x1c8] sm:$0xff] }
 0x350   :  { %2098 = vmatpush.msrb.mxu0 %v6647_v10  ;;  %9594 = vst [vmem:[#allocation47_spill] sm:$0xff] %v6650_v2  ;;  %2118 = vmatpush.msrb.mxu1 %v6650_v2  ;;  %v6665_v10 = vld [vmem:[#allocation7 + $0x1d0] sm:$0xff]  ;;  %v6668_v2 = vld [vmem:[#allocation7 + $0x1d8] sm:$0xff] }
 0x351   :  { %9595 = vst [vmem:[#allocation48_spill] sm:$0xff] %v6653_v5  ;;  %2138 = vmatpush.msra.mxu2 %v6653_v5  ;;  %2158 = vmatpush.msra.mxu3 %v6656_v4  ;;  %v6671_v5 = vld [vmem:[#allocation7 + $0x1a0] sm:$0xff] }
 0x352   :  { %9596 = vst [vmem:[#allocation49_spill] sm:$0xff] %v6656_v4  ;;  %2099 = vmatpush.msrb.mxu0 %v6659_v56  ;;  %2119 = vmatpush.msrb.mxu1 %v6662_v63  ;;  %v6674_v4 = vld [vmem:[#allocation7 + $0x1a8] sm:$0xff] }
 0x353   :  { %9597 = vst [vmem:[#allocation50_spill] sm:$0xff] %v6659_v56  ;;  %2139 = vmatpush.msra.mxu2 %v6665_v10  ;;  %2159 = vmatpush.msra.mxu3 %v6668_v2  ;;  %v6677_v56 = vld [vmem:[#allocation7 + $0x1b0] sm:$0xff] }
 0x354   :  { %9598 = vst [vmem:[#allocation51_spill] sm:$0xff] %v6662_v63  ;;  %2100 = vmatpush.msrb.mxu0 %v6671_v5  ;;  %2120 = vmatpush.msrb.mxu1 %v6674_v4  ;;  %v6680_v63 = vld [vmem:[#allocation7 + $0x1b8] sm:$0xff] }
 0x355   :  { %9599 = vst [vmem:[#allocation52_spill] sm:$0xff] %v6665_v10  ;;  %2140 = vmatpush.msra.mxu2 %v6677_v56  ;;  %2160 = vmatpush.msra.mxu3 %v6680_v63  ;;  %v6683_v10 = vld [vmem:[#allocation7 + $0x180] sm:$0xff] }
 0x356   :  { %9600 = vst [vmem:[#allocation53_spill] sm:$0xff] %v6668_v2  ;;  %2101 = vmatpush.msrb.mxu0 %v6683_v10  ;;  %v6686_v2 = vld [vmem:[#allocation7 + $0x188] sm:$0xff] }
 0x357   :  { %9601 = vst [vmem:[#allocation54_spill] sm:$0xff] %v6671_v5  ;;  %2121 = vmatpush.msrb.mxu1 %v6686_v2  ;;  %v6689_v5 = vld [vmem:[#allocation7 + $0x190] sm:$0xff] }
 0x358   :  { %9602 = vst [vmem:[#allocation55_spill] sm:$0xff] %v6674_v4  ;;  %2141 = vmatpush.msra.mxu2 %v6689_v5  ;;  %v6692_v4 = vld [vmem:[#allocation7 + $0x198] sm:$0xff] }
 0x359   :  { %9603 = vst [vmem:[#allocation56_spill] sm:$0xff] %v6677_v56  ;;  %2161 = vmatpush.msra.mxu3 %v6692_v4  ;;  %v6695_v56 = vld [vmem:[#allocation7 + $0x160] sm:$0xff] }
 0x35a   :  { %9604 = vst [vmem:[#allocation57_spill] sm:$0xff] %v6680_v63  ;;  %2102 = vmatpush.msrb.mxu0 %v6695_v56  ;;  %v6698_v63 = vld [vmem:[#allocation7 + $0x168] sm:$0xff] }
 0x35b   :  { %9605 = vst [vmem:[#allocation58_spill] sm:$0xff] %v6683_v10  ;;  %2122 = vmatpush.msrb.mxu1 %v6698_v63  ;;  %v6701_v10 = vld [vmem:[#allocation7 + $0x170] sm:$0xff] }
 0x35c   :  { %9606 = vst [vmem:[#allocation59_spill] sm:$0xff] %v6686_v2  ;;  %2142 = vmatpush.msra.mxu2 %v6701_v10  ;;  %v6704_v2 = vld [vmem:[#allocation7 + $0x178] sm:$0xff] }
 0x35d   :  { %9607 = vst [vmem:[#allocation60_spill] sm:$0xff] %v6689_v5  ;;  %2162 = vmatpush.msra.mxu3 %v6704_v2  ;;  %v6707_v5 = vld [vmem:[#allocation7 + $0x140] sm:$0xff] }
 0x35e   :  { %9608 = vst [vmem:[#allocation61_spill] sm:$0xff] %v6692_v4  ;;  %2103 = vmatpush.msrb.mxu0 %v6707_v5  ;;  %v6710_v4 = vld [vmem:[#allocation7 + $0x148] sm:$0xff] }
 0x35f   :  { %9609 = vst [vmem:[#allocation62_spill] sm:$0xff] %v6695_v56  ;;  %2123 = vmatpush.msrb.mxu1 %v6710_v4  ;;  %v6713_v56 = vld [vmem:[#allocation7 + $0x150] sm:$0xff] }
 0x360   :  { %9610 = vst [vmem:[#allocation63_spill] sm:$0xff] %v6698_v63  ;;  %2143 = vmatpush.msra.mxu2 %v6713_v56  ;;  %v6716_v63 = vld [vmem:[#allocation7 + $0x158] sm:$0xff] }
 0x361   :  { %9611 = vst [vmem:[#allocation64_spill] sm:$0xff] %v6701_v10  ;;  %2163 = vmatpush.msra.mxu3 %v6716_v63  ;;  %v6719_v10 = vld [vmem:[#allocation7 + $0x120] sm:$0xff] }
 0x362   :  { %9612 = vst [vmem:[#allocation65_spill] sm:$0xff] %v6704_v2  ;;  %2104 = vmatpush.msrb.mxu0 %v6719_v10  ;;  %v6722_v2 = vld [vmem:[#allocation7 + $0x128] sm:$0xff] }
 0x363   :  { %9613 = vst [vmem:[#allocation66_spill] sm:$0xff] %v6707_v5  ;;  %2124 = vmatpush.msrb.mxu1 %v6722_v2  ;;  %v6725_v5 = vld [vmem:[#allocation7 + $0x130] sm:$0xff] }
 0x364   :  { %9614 = vst [vmem:[#allocation67_spill] sm:$0xff] %v6710_v4  ;;  %2144 = vmatpush.msra.mxu2 %v6725_v5  ;;  %v6728_v4 = vld [vmem:[#allocation7 + $0x138] sm:$0xff] }
 0x365   :  { %9615 = vst [vmem:[#allocation68_spill] sm:$0xff] %v6713_v56  ;;  %2164 = vmatpush.msra.mxu3 %v6728_v4  ;;  %v6731_v56 = vld [vmem:[#allocation7 + $0x100] sm:$0xff] }
 0x366   :  { %9616 = vst [vmem:[#allocation69_spill] sm:$0xff] %v6716_v63  ;;  %2105 = vmatpush.msrb.mxu0 %v6731_v56  ;;  %v6734_v63 = vld [vmem:[#allocation7 + $0x108] sm:$0xff] }
 0x367   :  { %9617 = vst [vmem:[#allocation70_spill] sm:$0xff] %v6719_v10  ;;  %2125 = vmatpush.msrb.mxu1 %v6734_v63  ;;  %v6737_v10 = vld [vmem:[#allocation7 + $0x110] sm:$0xff] }
 0x368   :  { %9618 = vst [vmem:[#allocation71_spill] sm:$0xff] %v6722_v2  ;;  %2145 = vmatpush.msra.mxu2 %v6737_v10  ;;  %v6740_v2 = vld [vmem:[#allocation7 + $0x118] sm:$0xff] }
 0x369   :  { %9619 = vst [vmem:[#allocation72_spill] sm:$0xff] %v6725_v5  ;;  %2165 = vmatpush.msra.mxu3 %v6740_v2  ;;  %v6743_v5 = vld [vmem:[#allocation7 + $0xe0] sm:$0xff] }
 0x36a   :  { %9620 = vst [vmem:[#allocation73_spill] sm:$0xff] %v6728_v4  ;;  %2106 = vmatpush.msrb.mxu0 %v6743_v5  ;;  %v6746_v4 = vld [vmem:[#allocation7 + $0xe8] sm:$0xff] }
 0x36b   :  { %9621 = vst [vmem:[#allocation74_spill] sm:$0xff] %v6731_v56  ;;  %2126 = vmatpush.msrb.mxu1 %v6746_v4  ;;  %v6749_v56 = vld [vmem:[#allocation7 + $0xf0] sm:$0xff] }
 0x36c   :  { %9622 = vst [vmem:[#allocation75_spill] sm:$0xff] %v6734_v63  ;;  %2146 = vmatpush.msra.mxu2 %v6749_v56  ;;  %v6752_v63 = vld [vmem:[#allocation7 + $0xf8] sm:$0xff] }
 0x36d   :  { %9623 = vst [vmem:[#allocation76_spill] sm:$0xff] %v6737_v10  ;;  %2166 = vmatpush.msra.mxu3 %v6752_v63  ;;  %v6755_v10 = vld [vmem:[#allocation7 + $0xc0] sm:$0xff] }
 0x36e   :  { %9624 = vst [vmem:[#allocation77_spill] sm:$0xff] %v6740_v2  ;;  %2107 = vmatpush.msrb.mxu0 %v6755_v10  ;;  %v6758_v2 = vld [vmem:[#allocation7 + $0xc8] sm:$0xff] }
 0x36f   :  { %9625 = vst [vmem:[#allocation78_spill] sm:$0xff] %v6743_v5  ;;  %2127 = vmatpush.msrb.mxu1 %v6758_v2  ;;  %v6761_v5 = vld [vmem:[#allocation7 + $0xd0] sm:$0xff] }
 0x370   :  { %9626 = vst [vmem:[#allocation79_spill] sm:$0xff] %v6746_v4  ;;  %2147 = vmatpush.msra.mxu2 %v6761_v5  ;;  %v6764_v4 = vld [vmem:[#allocation7 + $0xd8] sm:$0xff] }
 0x371   :  { %9627 = vst [vmem:[#allocation80_spill] sm:$0xff] %v6749_v56  ;;  %2167 = vmatpush.msra.mxu3 %v6764_v4  ;;  %v6767_v56 = vld [vmem:[#allocation7 + $0xa0] sm:$0xff] }
 0x372   :  { %9628 = vst [vmem:[#allocation81_spill] sm:$0xff] %v6752_v63  ;;  %2108 = vmatpush.msrb.mxu0 %v6767_v56  ;;  %v6770_v63 = vld [vmem:[#allocation7 + $0xa8] sm:$0xff] }
 0x373   :  { %9629 = vst [vmem:[#allocation82_spill] sm:$0xff] %v6755_v10  ;;  %2128 = vmatpush.msrb.mxu1 %v6770_v63  ;;  %v6773_v10 = vld [vmem:[#allocation7 + $0xb0] sm:$0xff] }
 0x374   :  { %9630 = vst [vmem:[#allocation83_spill] sm:$0xff] %v6758_v2  ;;  %2148 = vmatpush.msra.mxu2 %v6773_v10  ;;  %v6776_v2 = vld [vmem:[#allocation7 + $0xb8] sm:$0xff] }
 0x375   :  { %9631 = vst [vmem:[#allocation84_spill] sm:$0xff] %v6761_v5  ;;  %2168 = vmatpush.msra.mxu3 %v6776_v2  ;;  %v6779_v5 = vld [vmem:[#allocation7 + $0x80] sm:$0xff] }
 0x376   :  { %9632 = vst [vmem:[#allocation85_spill] sm:$0xff] %v6764_v4  ;;  %2109 = vmatpush.msrb.mxu0 %v6779_v5  ;;  %v6782_v4 = vld [vmem:[#allocation7 + $0x88] sm:$0xff] }
 0x377   :  { %9633 = vst [vmem:[#allocation86_spill] sm:$0xff] %v6767_v56  ;;  %2129 = vmatpush.msrb.mxu1 %v6782_v4  ;;  %v6785_v56 = vld [vmem:[#allocation7 + $0x90] sm:$0xff] }
 0x378   :  { %9634 = vst [vmem:[#allocation87_spill] sm:$0xff] %v6770_v63  ;;  %2149 = vmatpush.msra.mxu2 %v6785_v56  ;;  %v6788_v63 = vld [vmem:[#allocation7 + $0x98] sm:$0xff] }
 0x379   :  { %9635 = vst [vmem:[#allocation88_spill] sm:$0xff] %v6773_v10  ;;  %2169 = vmatpush.msra.mxu3 %v6788_v63  ;;  %v6791_v10 = vld [vmem:[#allocation7 + $0x60] sm:$0xff] }
 0x37a   :  { %9636 = vst [vmem:[#allocation89_spill] sm:$0xff] %v6776_v2  ;;  %2110 = vmatpush.msrb.mxu0 %v6791_v10  ;;  %v6794_v2 = vld [vmem:[#allocation7 + $0x68] sm:$0xff] }
 0x37b   :  { %9637 = vst [vmem:[#allocation90_spill] sm:$0xff] %v6779_v5  ;;  %2130 = vmatpush.msrb.mxu1 %v6794_v2  ;;  %v6797_v5 = vld [vmem:[#allocation7 + $0x70] sm:$0xff] }
 0x37c   :  { %9638 = vst [vmem:[#allocation91_spill] sm:$0xff] %v6782_v4  ;;  %2150 = vmatpush.msra.mxu2 %v6797_v5  ;;  %v6800_v4 = vld [vmem:[#allocation7 + $0x78] sm:$0xff] }
 0x37d   :  { %9639 = vst [vmem:[#allocation92_spill] sm:$0xff] %v6785_v56  ;;  %2170 = vmatpush.msra.mxu3 %v6800_v4  ;;  %v6803_v56 = vld [vmem:[#allocation7 + $0x40] sm:$0xff] }
 0x37e   :  { %9640 = vst [vmem:[#allocation93_spill] sm:$0xff] %v6788_v63  ;;  %2111 = vmatpush.msrb.mxu0 %v6803_v56  ;;  %v6806_v63 = vld [vmem:[#allocation7 + $0x48] sm:$0xff] }
 0x37f   :  { %9641 = vst [vmem:[#allocation94_spill] sm:$0xff] %v6791_v10  ;;  %2131 = vmatpush.msrb.mxu1 %v6806_v63  ;;  %v6809_v10 = vld [vmem:[#allocation7 + $0x50] sm:$0xff] }
 0x380   :  { %9642 = vst [vmem:[#allocation95_spill] sm:$0xff] %v6794_v2  ;;  %2151 = vmatpush.msra.mxu2 %v6809_v10  ;;  %v6812_v2 = vld [vmem:[#allocation7 + $0x58] sm:$0xff] }
 0x381   :  { %9643 = vst [vmem:[#allocation96_spill] sm:$0xff] %v6797_v5  ;;  %2171 = vmatpush.msra.mxu3 %v6812_v2  ;;  %v6815_v5 = vld [vmem:[#allocation7 + $0x20] sm:$0xff] }
 0x382   :  { %9644 = vst [vmem:[#allocation97_spill] sm:$0xff] %v6800_v4  ;;  %2112 = vmatpush.msrb.mxu0 %v6815_v5  ;;  %v6818_v4 = vld [vmem:[#allocation7 + $0x28] sm:$0xff] }
 0x383   :  { %9645 = vst [vmem:[#allocation98_spill] sm:$0xff] %v6803_v56  ;;  %2132 = vmatpush.msrb.mxu1 %v6818_v4  ;;  %v6821_v56 = vld [vmem:[#allocation7 + $0x30] sm:$0xff] }
 0x384   :  { %9646 = vst [vmem:[#allocation99_spill] sm:$0xff] %v6806_v63  ;;  %2152 = vmatpush.msra.mxu2 %v6821_v56  ;;  %v6824_v63 = vld [vmem:[#allocation7 + $0x38] sm:$0xff] }
 0x385   :  { %9647 = vst [vmem:[#allocation100_spill] sm:$0xff] %v6809_v10  ;;  %2172 = vmatpush.msra.mxu3 %v6824_v63  ;;  %v6827_v10 = vld [vmem:[#allocation7] sm:$0xff] }
 0x386   :  { %9648 = vst [vmem:[#allocation101_spill] sm:$0xff] %v6812_v2  ;;  %2113 = vmatpush.msrb.mxu0 %v6827_v10  ;;  %v6830_v2 = vld [vmem:[#allocation7 + $0x8] sm:$0xff] }
 0x387   :  { %9649 = vst [vmem:[#allocation102_spill] sm:$0xff] %v6815_v5  ;;  %2133 = vmatpush.msrb.mxu1 %v6830_v2  ;;  %v6833_v5 = vld [vmem:[#allocation7 + $0x10] sm:$0xff] }
 0x388   :  { %9650 = vst [vmem:[#allocation103_spill] sm:$0xff] %v6818_v4  ;;  %2153 = vmatpush.msra.mxu2 %v6833_v5  ;;  %v6836_v4 = vld [vmem:[#allocation7 + $0x18] sm:$0xff] }
 0x389   :  { %9651 = vst [vmem:[#allocation104_spill] sm:$0xff] %v6821_v56  ;;  %2173 = vmatpush.msra.mxu3 %v6836_v4  ;;  %v6839_v56 = vld [vmem:[#allocation5 + $0x1e0] sm:$0xff] }
 0x38a   :  { %9652 = vst [vmem:[#allocation105_spill] sm:$0xff] %v6824_v63  ;;  %2178 = vmatpush.msra.mxu0 %v6839_v56  ;;  %v6842_v63 = vld [vmem:[#allocation5 + $0x1e8] sm:$0xff] }
 0x38b   :  { %9653 = vst [vmem:[#allocation106_spill] sm:$0xff] %v6827_v10  ;;  %2198 = vmatpush.msra.mxu1 %v6842_v63  ;;  %v6845_v10 = vld [vmem:[#allocation5 + $0x1f0] sm:$0xff] }
 0x38c   :  { %9654 = vst [vmem:[#allocation107_spill] sm:$0xff] %v6830_v2  ;;  %2218 = vmatpush.msrb.mxu2 %v6845_v10  ;;  %v6848_v2 = vld [vmem:[#allocation5 + $0x1f8] sm:$0xff] }
 0x38d   :  { %9655 = vst [vmem:[#allocation108_spill] sm:$0xff] %v6833_v5  ;;  %2238 = vmatpush.msrb.mxu3 %v6848_v2  ;;  %v6851_v5 = vld [vmem:[#allocation5 + $0x1c0] sm:$0xff] }
 0x38e   :  { %9656 = vst [vmem:[#allocation109_spill] sm:$0xff] %v6836_v4  ;;  %2179 = vmatpush.msra.mxu0 %v6851_v5  ;;  %v6854_v4 = vld [vmem:[#allocation5 + $0x1c8] sm:$0xff] }
 0x38f   :  { %9657 = vst [vmem:[#allocation110_spill] sm:$0xff] %v6839_v56  ;;  %2199 = vmatpush.msra.mxu1 %v6854_v4  ;;  %v6857_v56 = vld [vmem:[#allocation5 + $0x1d0] sm:$0xff] }
 0x390   :  { %9658 = vst [vmem:[#allocation111_spill] sm:$0xff] %v6842_v63  ;;  %2219 = vmatpush.msrb.mxu2 %v6857_v56  ;;  %v6860_v63 = vld [vmem:[#allocation5 + $0x1d8] sm:$0xff] }
 0x391   :  { %9659 = vst [vmem:[#allocation112_spill] sm:$0xff] %v6845_v10  ;;  %2239 = vmatpush.msrb.mxu3 %v6860_v63  ;;  %v6863_v10 = vld [vmem:[#allocation5 + $0x1a0] sm:$0xff] }
 0x392   :  { %9660 = vst [vmem:[#allocation113_spill] sm:$0xff] %v6848_v2  ;;  %2180 = vmatpush.msra.mxu0 %v6863_v10  ;;  %v6866_v2 = vld [vmem:[#allocation5 + $0x1a8] sm:$0xff] }
 0x393   :  { %9661 = vst [vmem:[#allocation114_spill] sm:$0xff] %v6851_v5  ;;  %2200 = vmatpush.msra.mxu1 %v6866_v2  ;;  %v6869_v5 = vld [vmem:[#allocation5 + $0x1b0] sm:$0xff] }
 0x394   :  { %9662 = vst [vmem:[#allocation115_spill] sm:$0xff] %v6854_v4  ;;  %2220 = vmatpush.msrb.mxu2 %v6869_v5  ;;  %v6872_v4 = vld [vmem:[#allocation5 + $0x1b8] sm:$0xff] }
 0x395   :  { %9663 = vst [vmem:[#allocation116_spill] sm:$0xff] %v6857_v56  ;;  %2240 = vmatpush.msrb.mxu3 %v6872_v4  ;;  %v6875_v56 = vld [vmem:[#allocation5 + $0x180] sm:$0xff] }
 0x396   :  { %9664 = vst [vmem:[#allocation118_spill] sm:$0xff] %v6860_v63  ;;  %2181 = vmatpush.msra.mxu0 %v6875_v56  ;;  %v6878_v63 = vld [vmem:[#allocation5 + $0x188] sm:$0xff] }
 0x397   :  { %9665 = vst [vmem:[#allocation119_spill] sm:$0xff] %v6863_v10  ;;  %2201 = vmatpush.msra.mxu1 %v6878_v63  ;;  %v6881_v10 = vld [vmem:[#allocation5 + $0x190] sm:$0xff] }
 0x398   :  { %9666 = vst [vmem:[#allocation120_spill] sm:$0xff] %v6866_v2  ;;  %2221 = vmatpush.msrb.mxu2 %v6881_v10  ;;  %v6884_v2 = vld [vmem:[#allocation5 + $0x198] sm:$0xff] }
 0x399   :  { %9667 = vst [vmem:[#allocation121_spill] sm:$0xff] %v6869_v5  ;;  %2241 = vmatpush.msrb.mxu3 %v6884_v2  ;;  %v6887_v5 = vld [vmem:[#allocation5 + $0x160] sm:$0xff] }
 0x39a   :  { %9668 = vst [vmem:[#allocation122_spill] sm:$0xff] %v6872_v4  ;;  %2182 = vmatpush.msra.mxu0 %v6887_v5  ;;  %v6890_v4 = vld [vmem:[#allocation5 + $0x168] sm:$0xff] }
 0x39b   :  { %9669 = vst [vmem:[#allocation123_spill] sm:$0xff] %v6875_v56  ;;  %2202 = vmatpush.msra.mxu1 %v6890_v4  ;;  %v6893_v56 = vld [vmem:[#allocation5 + $0x170] sm:$0xff] }
 0x39c   :  { %9670 = vst [vmem:[#allocation124_spill] sm:$0xff] %v6878_v63  ;;  %2222 = vmatpush.msrb.mxu2 %v6893_v56  ;;  %v6896_v63 = vld [vmem:[#allocation5 + $0x178] sm:$0xff] }
 0x39d   :  { %9671 = vst [vmem:[#allocation125_spill] sm:$0xff] %v6881_v10  ;;  %2242 = vmatpush.msrb.mxu3 %v6896_v63  ;;  %v6899_v10 = vld [vmem:[#allocation5 + $0x140] sm:$0xff] }
 0x39e   :  { %9672 = vst [vmem:[#allocation126_spill] sm:$0xff] %v6884_v2  ;;  %2183 = vmatpush.msra.mxu0 %v6899_v10  ;;  %v6902_v2 = vld [vmem:[#allocation5 + $0x148] sm:$0xff] }
 0x39f   :  { %9673 = vst [vmem:[#allocation127_spill] sm:$0xff] %v6887_v5  ;;  %2203 = vmatpush.msra.mxu1 %v6902_v2  ;;  %v6905_v5 = vld [vmem:[#allocation5 + $0x150] sm:$0xff] }
 0x3a0   :  { %9674 = vst [vmem:[#allocation128_spill] sm:$0xff] %v6890_v4  ;;  %2223 = vmatpush.msrb.mxu2 %v6905_v5  ;;  %v6908_v4 = vld [vmem:[#allocation5 + $0x158] sm:$0xff] }
 0x3a1   :  { %9675 = vst [vmem:[#allocation129_spill] sm:$0xff] %v6893_v56  ;;  %2243 = vmatpush.msrb.mxu3 %v6908_v4  ;;  %v6911_v56 = vld [vmem:[#allocation5 + $0x120] sm:$0xff] }
 0x3a2   :  { %9676 = vst [vmem:[#allocation130_spill] sm:$0xff] %v6896_v63  ;;  %2184 = vmatpush.msra.mxu0 %v6911_v56  ;;  %v6914_v63 = vld [vmem:[#allocation5 + $0x128] sm:$0xff] }
 0x3a3   :  { %9677 = vst [vmem:[#allocation131_spill] sm:$0xff] %v6899_v10  ;;  %2204 = vmatpush.msra.mxu1 %v6914_v63  ;;  %v6917_v10 = vld [vmem:[#allocation5 + $0x130] sm:$0xff] }
 0x3a4   :  { %9678 = vst [vmem:[#allocation132_spill] sm:$0xff] %v6902_v2  ;;  %2224 = vmatpush.msrb.mxu2 %v6917_v10  ;;  %v6920_v2 = vld [vmem:[#allocation5 + $0x138] sm:$0xff] }
 0x3a5   :  { %9679 = vst [vmem:[#allocation133_spill] sm:$0xff] %v6905_v5  ;;  %2244 = vmatpush.msrb.mxu3 %v6920_v2  ;;  %v6923_v5 = vld [vmem:[#allocation5 + $0x100] sm:$0xff] }
 0x3a6   :  { %9680 = vst [vmem:[#allocation134_spill] sm:$0xff] %v6908_v4  ;;  %2185 = vmatpush.msra.mxu0 %v6923_v5  ;;  %v6926_v4 = vld [vmem:[#allocation5 + $0x108] sm:$0xff] }
 0x3a7   :  { %9681 = vst [vmem:[#allocation135_spill] sm:$0xff] %v6911_v56  ;;  %2205 = vmatpush.msra.mxu1 %v6926_v4  ;;  %v6929_v56 = vld [vmem:[#allocation5 + $0x110] sm:$0xff]  ;;  %v1755_v52 = vpop.f32.mrf.mxu1 }
 0x3a8   :  { %9682 = vst [vmem:[#allocation136_spill] sm:$0xff] %v6914_v63  ;;  %2225 = vmatpush.msrb.mxu2 %v6929_v56  ;;  %v6932_v63 = vld [vmem:[#allocation5 + $0x118] sm:$0xff] }
 0x3a9   :  { %9683 = vst [vmem:[#allocation137_spill] sm:$0xff] %v6917_v10  ;;  %2245 = vmatpush.msrb.mxu3 %v6932_v63  ;;  %v6935_v10 = vld [vmem:[#allocation5 + $0xe0] sm:$0xff] }
 0x3aa   :  { %9684 = vst [vmem:[#allocation138_spill] sm:$0xff] %v6920_v2  ;;  %2186 = vmatpush.msra.mxu0 %v6935_v10  ;;  %v6938_v2 = vld [vmem:[#allocation5 + $0xe8] sm:$0xff] }
 0x3ab   :  { %9685 = vst [vmem:[#allocation139_spill] sm:$0xff] %v6923_v5  ;;  %2206 = vmatpush.msra.mxu1 %v6938_v2  ;;  %v6941_v5 = vld [vmem:[#allocation5 + $0xf0] sm:$0xff] }
 0x3ac   :  { %9686 = vst [vmem:[#allocation140_spill] sm:$0xff] %v6926_v4  ;;  %2226 = vmatpush.msrb.mxu2 %v6941_v5  ;;  %v6944_v4 = vld [vmem:[#allocation5 + $0xf8] sm:$0xff] }
 0x3ad   :  { %9687 = vst [vmem:[#allocation141_spill] sm:$0xff] %v6929_v56  ;;  %2246 = vmatpush.msrb.mxu3 %v6944_v4  ;;  %v6947_v56 = vld [vmem:[#allocation5 + $0xc0] sm:$0xff] }
 0x3ae   :  { %9688 = vst [vmem:[#allocation142_spill] sm:$0xff] %v6932_v63  ;;  %2187 = vmatpush.msra.mxu0 %v6947_v56  ;;  %v6950_v63 = vld [vmem:[#allocation5 + $0xc8] sm:$0xff]  ;;  %v1795_v43 = vpop.f32.mrf.mxu3  ;;  %v1775_v32 = vpop.f32.mrf.mxu2 }
 0x3af   :  { %9689 = vst [vmem:[#allocation143_spill] sm:$0xff] %v6935_v10  ;;  %2207 = vmatpush.msra.mxu1 %v6950_v63  ;;  %v6953_v10 = vld [vmem:[#allocation5 + $0xd0] sm:$0xff] }
 0x3b0   :  { %9690 = vst [vmem:[#allocation145_spill] sm:$0xff] %v6938_v2  ;;  %2227 = vmatpush.msrb.mxu2 %v6953_v10  ;;  %v6956_v2 = vld [vmem:[#allocation5 + $0xd8] sm:$0xff] }
 0x3b1   :  { %9691 = vst [vmem:[#allocation146_spill] sm:$0xff] %v6941_v5  ;;  %2247 = vmatpush.msrb.mxu3 %v6956_v2  ;;  %v6959_v5 = vld [vmem:[#allocation5 + $0xa0] sm:$0xff] }
 0x3b2   :  { %9692 = vst [vmem:[#allocation152_spill] sm:$0xff] %v6944_v4  ;;  %2188 = vmatpush.msra.mxu0 %v6959_v5  ;;  %v6962_v4 = vld [vmem:[#allocation5 + $0xa8] sm:$0xff] }
 0x3b3   :  { %9693 = vst [vmem:[#allocation153_spill] sm:$0xff] %v6947_v56  ;;  %2208 = vmatpush.msra.mxu1 %v6962_v4  ;;  %v6965_v56 = vld [vmem:[#allocation5 + $0xb0] sm:$0xff] }
 0x3b4   :  { %9694 = vst [vmem:[#allocation154_spill] sm:$0xff] %v6950_v63  ;;  %2228 = vmatpush.msrb.mxu2 %v6965_v56  ;;  %v6968_v63 = vld [vmem:[#allocation5 + $0xb8] sm:$0xff]  ;;  %v1838_v39 = vpop.f32.mrf.mxu1 }
 0x3b5   :  { %9695 = vst [vmem:[#allocation155_spill] sm:$0xff] %v6953_v10  ;;  %2248 = vmatpush.msrb.mxu3 %v6968_v63  ;;  %v6971_v10 = vld [vmem:[#allocation5 + $0x80] sm:$0xff]  ;;  %v1839_v35 = vadd.f32 %v1838_v39, %v1755_v52 }
 0x3b6   :  { %9696 = vst [vmem:[#allocation156_spill] sm:$0xff] %v6956_v2  ;;  %2189 = vmatpush.msra.mxu0 %v6971_v10  ;;  %v6974_v2 = vld [vmem:[#allocation5 + $0x88] sm:$0xff] }
 0x3b7   :  { %9697 = vst [vmem:[#allocation157_spill] sm:$0xff] %v6959_v5  ;;  %2209 = vmatpush.msra.mxu1 %v6974_v2  ;;  %v6977_v5 = vld [vmem:[#allocation5 + $0x90] sm:$0xff]  ;;  %v1882_v16 = vadd.f32 %v1839_v35, %v9550_v34 }
 0x3b8   :  { %9698 = vst [vmem:[#allocation158_spill] sm:$0xff] %v6962_v4  ;;  %2229 = vmatpush.msrb.mxu2 %v6977_v5  ;;  %v6980_v4 = vld [vmem:[#allocation5 + $0x98] sm:$0xff] }
 0x3b9   :  { %9699 = vst [vmem:[#allocation159_spill] sm:$0xff] %v6965_v56  ;;  %2249 = vmatpush.msrb.mxu3 %v6980_v4  ;;  %v6983_v56 = vld [vmem:[#allocation5 + $0x60] sm:$0xff]  ;;  %v3579_v33 = vmul.f32 -1.442695, %v1882_v16 }
 0x3ba   :  { %9700 = vst [vmem:[#allocation160_spill] sm:$0xff] %v6968_v63  ;;  %2190 = vmatpush.msra.mxu0 %v6983_v56  ;;  %v6986_v63 = vld [vmem:[#allocation5 + $0x68] sm:$0xff] }
 0x3bb   :  { %9701 = vst [vmem:[#allocation161_spill] sm:$0xff] %v6971_v10  ;;  %2210 = vmatpush.msra.mxu1 %v6986_v63  ;;  %v6989_v10 = vld [vmem:[#allocation5 + $0x70] sm:$0xff]  ;;  %v1858_v12 = vpop.f32.mrf.mxu2 }
 0x3bc   :  { %9702 = vst [vmem:[#allocation162_spill] sm:$0xff] %v6974_v2  ;;  %2230 = vmatpush.msrb.mxu2 %v6989_v10  ;;  %v6992_v2 = vld [vmem:[#allocation5 + $0x78] sm:$0xff] }
 0x3bd   :  { %9703 = vst [vmem:[#allocation163_spill] sm:$0xff] %v6977_v5  ;;  %2250 = vmatpush.msrb.mxu3 %v6992_v2  ;;  %v6995_v5 = vld [vmem:[#allocation5 + $0x40] sm:$0xff] }
 0x3be   :  { %9704 = vst [vmem:[#allocation164_spill] sm:$0xff] %v6980_v4  ;;  %2191 = vmatpush.msra.mxu0 %v6995_v5  ;;  %v6998_v4 = vld [vmem:[#allocation5 + $0x48] sm:$0xff] }
 0x3bf   :  { %9705 = vst [vmem:[#allocation165_spill] sm:$0xff] %v6983_v56  ;;  %2211 = vmatpush.msra.mxu1 %v6998_v4  ;;  %v7001_v56 = vld [vmem:[#allocation5 + $0x50] sm:$0xff] }
 0x3c0   :  { %9706 = vst [vmem:[#allocation166_spill] sm:$0xff] %v6986_v63  ;;  %2231 = vmatpush.msrb.mxu2 %v7001_v56  ;;  %v7004_v63 = vld [vmem:[#allocation5 + $0x58] sm:$0xff] }
 0x3c1   :  { %9707 = vst [vmem:[#allocation167_spill] sm:$0xff] %v6989_v10  ;;  %2251 = vmatpush.msrb.mxu3 %v7004_v63  ;;  %v7007_v10 = vld [vmem:[#allocation5 + $0x20] sm:$0xff] }
 0x3c2   :  { %9708 = vst [vmem:[#allocation168_spill] sm:$0xff] %v6992_v2  ;;  %2192 = vmatpush.msra.mxu0 %v7007_v10  ;;  %v7010_v2 = vld [vmem:[#allocation5 + $0x28] sm:$0xff] }
 0x3c3   :  { %9709 = vst [vmem:[#allocation169_spill] sm:$0xff] %v6995_v5  ;;  %2212 = vmatpush.msra.mxu1 %v7010_v2  ;;  %v7013_v5 = vld [vmem:[#allocation5 + $0x30] sm:$0xff] }
 0x3c4   :  { %9710 = vst [vmem:[#allocation170_spill] sm:$0xff] %v6998_v4  ;;  %2232 = vmatpush.msrb.mxu2 %v7013_v5  ;;  %v7016_v4 = vld [vmem:[#allocation5 + $0x38] sm:$0xff] }
 0x3c5   :  { %9711 = vst [vmem:[#allocation171_spill] sm:$0xff] %v7001_v56  ;;  %2252 = vmatpush.msrb.mxu3 %v7016_v4  ;;  %v7019_v56 = vld [vmem:[#allocation5] sm:$0xff] }
 0x3c6   :  { %9712 = vst [vmem:[#allocation172_spill] sm:$0xff] %v7004_v63  ;;  %2193 = vmatpush.msra.mxu0 %v7019_v56  ;;  %v7022_v63 = vld [vmem:[#allocation5 + $0x8] sm:$0xff] }
 0x3c7   :  { %9713 = vst [vmem:[#allocation173_spill] sm:$0xff] %v7007_v10  ;;  %2213 = vmatpush.msra.mxu1 %v7022_v63  ;;  %v7025_v10 = vld [vmem:[#allocation5 + $0x10] sm:$0xff] }
 0x3c8   :  { %9714 = vst [vmem:[#allocation174_spill] sm:$0xff] %v7010_v2  ;;  %2233 = vmatpush.msrb.mxu2 %v7025_v10  ;;  %v7028_v2 = vld [vmem:[#allocation5 + $0x18] sm:$0xff] }
 0x3c9   :  { %9715 = vst [vmem:[#allocation175_spill] sm:$0xff] %v7013_v5  ;;  %2253 = vmatpush.msrb.mxu3 %v7028_v2  ;;  %v1735_v5 = vpop.f32.mrf.mxu0 }
 0x3ca   :  { %9716 = vst [vmem:[#allocation176_spill] sm:$0xff] %v7016_v4 }
 0x3cb   :  { %9717 = vst [vmem:[#allocation177_spill] sm:$0xff] %v7019_v56 }
 0x3cc   :  { %9718 = vst [vmem:[#allocation178_spill] sm:$0xff] %v7022_v63 }
 0x3cd   :  { %9719 = vst [vmem:[#allocation179_spill] sm:$0xff] %v7025_v10  ;;  %v1878_v10 = vpop.f32.mrf.mxu3 }
 0x3ce   :  { %9720 = vst [vmem:[#allocation149_spill] sm:$0xff] %v7028_v2  ;;  %v1879_v21 = vadd.f32 %v1878_v10, %v1795_v43 }
 0x3d0   :  { %v1884_v2 = vadd.f32 %v1879_v21, %v9551_v60 }
 0x3d1   :  { %v1818_v4 = vpop.f32.mrf.mxu0 }
 0x3d2   :  { %v1819_v38 = vadd.f32 %v1818_v4, %v1735_v5  ;;  %v3580_v29 = vmul.f32 -1.442695, %v1884_v2 }
 0x3d4   :  { %v1881_v56 = vadd.f32 %v1819_v38, %v9549_v48  ;;  %v1859_v38 = vadd.f32 %v1858_v12, %v1775_v32  ;;  %v1985_v32 = vpop.f32.mrf.mxu1 }
 0x3d6   :  { %v3578_v63 = vmul.f32 -1.442695, %v1881_v56  ;;  %v1883_v16 = vadd.f32 %v1859_v38, %v9554_v3  ;;  %v9723_v56 = vld [vmem:[#allocation117_spill] sm:$0xff] }
 0x3d8   :  { %3724 = vpow2.f32 %v3578_v63 }
 0x3d9   :  { %3726 = vpow2.f32 %v3579_v33  ;;  %v9721_v33 = vld [vmem:[#allocation144_spill] sm:$0xff]  ;;  %v1965_v12 = vpop.f32.mrf.mxu0 }
 0x3da   :  { %3728 = vpow2.f32 %v3580_v29  ;;  %v9722_v43 = vperm.slane %v9721_v33, 0  ;;  %v9725_v10 = vperm.slane %v9721_v33, 1  ;;  %v9728_v24 = vperm.slane %v9721_v33, 3 }
 0x3dc   :  { %v7040_v21 = vadd.f32 %v9723_v56, %v9722_v43 }
 0x3de   :  { %v3725_v18 = vpop.eup %3724  ;;  %9724 = vst [vmem:[#allocation150_spill] sm:$0xff] %v7040_v21  ;;  %v2028_v63 = vadd.f32 %v1965_v12, %v7040_v21  ;;  %v9729_v12 = vld [vmem:[#allocation148_spill] sm:$0xff] }
 0x3df   :  { %v3727_v37 = vpop.eup %3726  ;;  %v1888_v7 = vadd.f32 1.0, %v3725_v18  ;;  %v9726_v18 = vld [vmem:[#allocation147_spill] sm:$0xff]  ;;  %v7053_v21 = vadd.f32 %v9729_v12, %v9728_v24 }
 0x3e0   :  { %v1907_v39 = vadd.f32 1.0, %v3727_v37  ;;  %v3729_v35 = vpop.eup %3728  ;;  %v7045_v2 = vadd.f32 %v9726_v18, %v9725_v10  ;;  %v3581_v3 = vmul.f32 -1.442695, %v2028_v63  ;;  %v2025_v63 = vpop.f32.mrf.mxu3 }
 0x3e1   :  { %3730 = vrcp.f32 %v1888_v7  ;;  %v7035_v4 = vadd.f32 1.0, %v3729_v35  ;;  %v1900_v56 = vand.u32 2147483648, %v1888_v7  ;;  %v1898_v18 = vand.u32 2147483647, %v1888_v7  ;;  %9730 = vst [vmem:[#allocation117_spill] sm:$0xff] %v7053_v21 }
 0x3e2   :  { %3732 = vrcp.f32 %v1907_v39  ;;  %9727 = vst [vmem:[#allocation144_spill] sm:$0xff] %v7045_v2  ;;  %v2029_v38 = vadd.f32 %v1985_v32, %v7045_v2  ;;  %v1919_v34 = vand.u32 2147483648, %v1907_v39  ;;  %v1917_v62 = vand.u32 2147483647, %v1907_v39 }
 0x3e3   :  { %3734 = vrcp.f32 %v7035_v4  ;;  %vm1894_vm7 = vweird.f32 %v1888_v7  ;;  %vm1913_vm8 = vweird.f32 %v1907_v39  ;;  %vm1899_vm11 = vcmp.eq.f32.partialorder %v1898_v18, 8.507059e+37 }
 0x3e4   :  { %3736 = vtanh.f32 %v1883_v16  ;;  %v3582_v60 = vmul.f32 -1.442695, %v2029_v38  ;;  %v1901_v16 = vor.u32 1.1754944e-38, %v1900_v56  ;;  %vm1918_vm12 = vcmp.eq.f32.partialorder %v1917_v62, 8.507059e+37 }
 0x3e5   :  { %3738 = vpow2.f32 %v3581_v3  ;;  %v1920_v3 = vor.u32 1.1754944e-38, %v1919_v34  ;;  %v1939_v62 = vand.u32 2147483648, %v7035_v4  ;;  %vm1933_vm14 = vweird.f32 %v7035_v4 }
 0x3e6   :  { %3740 = vpow2.f32 %v3582_v60 }
 0x3e7   :  { %v3731_v52 = vpop.eup %3730 }
 0x3e8   :  { %v3733_v37 = vpop.eup %3732  ;;  %v1890_v29 = vmul.f32 %v3731_v52, %v1888_v7  ;;  %vm1895_vm5 = vweird.f32 %v3731_v52 }
 0x3e9   :  { %v1909_v5 = vmul.f32 %v3733_v37, %v1907_v39  ;;  %vm1914_vm6 = vweird.f32 %v3733_v37  ;;  %v3735_v40 = vpop.eup %3734  ;;  %vm1896_vm9 = vmor %vm1894_vm7, %vm1895_vm5 }
 0x3ea   :  { %v1891_v35 = vsub.f32 1.0, %v1890_v29  ;;  %v3737_v38 = vpop.eup %3736  ;;  %vm1915_vm10 = vmor %vm1913_vm8, %vm1914_vm6  ;;  %vm1934_vm13 = vweird.f32 %v3735_v40 }
 0x3eb   :  { %v1910_v43 = vsub.f32 1.0, %v1909_v5  ;;  %v1929_v5 = vmul.f32 %v3735_v40, %v7035_v4  ;;  %v3739_v56 = vpop.eup %3738  ;;  %vm1935_vm15 = vmor %vm1933_vm14, %vm1934_vm13 }
 0x3ec   :  { %v1892_v10 = vmul.f32 %v3731_v52, %v1891_v35  ;;  %v3741_v28 = vpop.eup %3740  ;;  %v2035_v30 = vadd.f32 1.0, %v3739_v56 }
 0x3ed   :  { %v1911_v48 = vmul.f32 %v3733_v37, %v1910_v43  ;;  %v2031_v43 = vadd.f32 %v2025_v63, %v7053_v21  ;;  %v1930_v7 = vsub.f32 1.0, %v1929_v5  ;;  %v7061_v34 = vadd.f32 1.0, %v3741_v28  ;;  %v9732_v28 = vld [vmem:[#allocation151_spill] sm:$0xff] }
 0x3ee   :  { %v1893_v29 = vadd.f32 %v3731_v52, %v1892_v10  ;;  %v1940_v5 = vor.u32 1.1754944e-38, %v1939_v62  ;;  %vm2041_vm2 = vweird.f32 %v2035_v30 }
 0x3ef   :  { %v1912_v32 = vadd.f32 %v3733_v37, %v1911_v48  ;;  %v3583_v10 = vmul.f32 -1.442695, %v2031_v43  ;;  %v1931_v2 = vmul.f32 %v3735_v40, %v1930_v7  ;;  %v2047_v7 = vand.u32 2147483648, %v2035_v30 }
 0x3f0   :  { %v1897_v35 = vsel %vm1896_vm9, %v3731_v52, %v1893_v29  ;;  %v9731_v29 = vperm.slane %v9721_v33, 2  ;;  %v2064_v62 = vand.u32 2147483647, %v7061_v34  ;;  %vm2060_vm5 = vweird.f32 %v7061_v34 }
 0x3f1   :  { %v1902_v24 = vsel %vm1899_vm11, %v1901_v16, %v1897_v35  ;;  %v1916_v12 = vsel %vm1915_vm10, %v3733_v37, %v1912_v32  ;;  %3742 = vpow2.f32 %v3583_v10  ;;  %v1932_v52 = vadd.f32 %v3735_v40, %v1931_v2  ;;  %v2005_v37 = vpop.f32.mrf.mxu2 }
 0x3f2   :  { %v1921_v60 = vsel %vm1918_vm12, %v1920_v3, %v1916_v12  ;;  %v1944_v39 = vmul.f32 %v3737_v38, %v1902_v24  ;;  %3744 = vrcp.f32 %v2035_v30  ;;  %v7071_v16 = vadd.f32 %v9732_v28, %v9731_v29  ;;  %v9749_v28 = vld [vmem:[#allocation30_spill] sm:$0xff] }
 0x3f3   :  { %v1943_v48 = vmul.f32 %v1921_v60, %v6396_v6  ;;  %v1937_v6 = vand.u32 2147483647, %v7035_v4  ;;  %v1936_v2 = vsel %vm1935_vm15, %v3735_v40, %v1932_v52  ;;  %v2066_v10 = vand.u32 2147483648, %v7061_v34 }
 0x3f4   :  { %v2030_v38 = vadd.f32 %v2005_v37, %v7071_v16  ;;  %vm2065_vm8 = vcmp.eq.f32.partialorder %v2064_v62, 8.507059e+37  ;;  %v9770_v62 = vld [vmem:[#allocation51_spill] sm:$0xff] }
 0x3f5   :  { %v7059_v45 = vadd.f32 %v1944_v39, %v1943_v48  ;;  %vm1938_vm0 = vcmp.eq.f32.partialorder %v1937_v6, 8.507059e+37  ;;  %v2045_v39 = vand.u32 2147483647, %v2035_v30  ;;  %v2048_v6 = vor.u32 1.1754944e-38, %v2047_v7  ;;  %v9762_v7 = vld [vmem:[#allocation43_spill] sm:$0xff] }
 0x3f6   :  { %v1941_v4 = vsel %vm1938_vm0, %v1940_v5, %v1936_v2  ;;  %v9750_v2 = vld [vmem:[#allocation31_spill] sm:$0xff]  ;;  %v9752_v5 = vld [vmem:[#allocation33_spill] sm:$0xff] }
 0x3f7   :  { %3746 = vtanh.f32 %v7059_v45  ;;  %v3743_v18 = vpop.eup %3742  ;;  %vm2046_vm6 = vcmp.eq.f32.partialorder %v2045_v39, 8.507059e+37  ;;  %v9765_v39 = vld [vmem:[#allocation46_spill] sm:$0xff] }
 0x3f8   :  { %3748 = vrcp.f32 %v7061_v34  ;;  %v7073_v32 = vadd.f32 1.0, %v3743_v18  ;;  %v3745_v63 = vpop.eup %3744 }
 0x3f9   :  { %v2037_v35 = vmul.f32 %v3745_v63, %v2035_v30  ;;  %vm2042_vm1 = vweird.f32 %v3745_v63 }
 0x3fa   :  { %3750 = vrcp.f32 %v7073_v32  ;;  %vm2043_vm4 = vmor %vm2041_vm2, %vm2042_vm1  ;;  %vm2080_vm10 = vweird.f32 %v7073_v32 }
 0x3fb   :  { %v2038_v12 = vsub.f32 1.0, %v2037_v35  ;;  %3752 = vtanh.f32 %v2030_v38  ;;  %v9754_v38 = vld [vmem:[#allocation35_spill] sm:$0xff]  ;;  %v9756_v35 = vld [vmem:[#allocation37_spill] sm:$0xff] }
 0x3fd   :  { %v3747_v3 = vpop.eup %3746  ;;  %v2039_v60 = vmul.f32 %v3745_v63, %v2038_v12  ;;  %v9760_v12 = vld [vmem:[#allocation41_spill] sm:$0xff] }
 0x3fe   :  { %v3749_v43 = vpop.eup %3748  ;;  %v1947_v24 = vmul.f32 %v3747_v3, %v1941_v4  ;;  %v9755_v3 = vld [vmem:[#allocation36_spill] sm:$0xff]  ;;  %v9757_v4 = vld [vmem:[#allocation38_spill] sm:$0xff] }
 0x3ff   :  { %v2056_v33 = vmul.f32 %v3749_v43, %v7061_v34  ;;  %vm2061_vm3 = vweird.f32 %v3749_v43  ;;  %v2040_v52 = vadd.f32 %v3745_v63, %v2039_v60  ;;  %v9764_v60 = vld [vmem:[#allocation45_spill] sm:$0xff] }
 0x400   :  { %2114 = vmatmul.f32.vlgmr.msrb.gmra.mxu0 %v1947_v24  ;;  %2134 = vmatmul.f32.vlgmr.msrb.gmra.mxu1 %v1947_v24  ;;  %v7081_v56 = vpop.eup %3750  ;;  %vm2062_vm7 = vmor %vm2060_vm5, %vm2061_vm3 }
 0x401   :  { %v2057_v40 = vsub.f32 1.0, %v2056_v33  ;;  %2154 = vmatmul.f32.vlgmr.msra.gmra.mxu2 %v1947_v24  ;;  %2174 = vmatmul.f32.vlgmr.msra.gmra.mxu3 %v1947_v24  ;;  %v2076_v30 = vmul.f32 %v7081_v56, %v7073_v32  ;;  %vm2081_vm9 = vweird.f32 %v7081_v56  ;;  %v9759_v24 = vld [vmem:[#allocation40_spill] sm:$0xff]  ;;  %v9761_v33 = vld [vmem:[#allocation42_spill] sm:$0xff] }
 0x402   :  { %2325 = vmatpush.msrb.mxu0 %v6434_v41  ;;  %2345 = vmatpush.msrb.mxu1 %v6437_v42  ;;  %v2044_v41 = vsel %vm2043_vm4, %v3745_v63, %v2040_v52  ;;  %vm2082_vm11 = vmor %vm2080_vm10, %vm2081_vm9  ;;  %v9753_v63 = vld [vmem:[#allocation34_spill] sm:$0xff] }
 0x403   :  { %v2058_v48 = vmul.f32 %v3749_v43, %v2057_v40  ;;  %2365 = vmatpush.msra.mxu2 %v6442_v44  ;;  %2385 = vmatpush.msra.mxu3 %v6445_v46  ;;  %v3753_v44 = vpop.eup %3752  ;;  %v2067_v46 = vor.u32 1.1754944e-38, %v2066_v10  ;;  %v2049_v37 = vsel %vm2046_vm6, %v2048_v6, %v2044_v41  ;;  %v2077_v18 = vsub.f32 1.0, %v2076_v30  ;;  %v9763_v40 = vld [vmem:[#allocation44_spill] sm:$0xff]  ;;  %v9766_v10 = vld [vmem:[#allocation47_spill] sm:$0xff]  ;;  %v9769_v52 = vld [vmem:[#allocation50_spill] sm:$0xff] }
 0x404   :  { %2326 = vmatpush.msrb.mxu0 %v6454_v31  ;;  %2346 = vmatpush.msrb.mxu1 %v6457_v49  ;;  %v2091_v49 = vrot.slane %v6428_v36, 6  ;;  %v2094_v34 = vmul.f32 %v3753_v44, %v2049_v37  ;;  %v9771_v6 = vld [vmem:[#allocation52_spill] sm:$0xff]  ;;  %v9772_v30 = vld [vmem:[#allocation53_spill] sm:$0xff]  ;;  %v9773_v41 = vld [vmem:[#allocation54_spill] sm:$0xff] }
 0x405   :  { %v2059_v42 = vadd.f32 %v3749_v43, %v2058_v48  ;;  %2366 = vmatpush.msra.mxu2 %v6463_v20  ;;  %2386 = vmatpush.msra.mxu3 %v6466_v55  ;;  %v2078_v55 = vmul.f32 %v7081_v56, %v2077_v18  ;;  %v9768_v48 = vld [vmem:[#allocation49_spill] sm:$0xff]  ;;  %v9775_v44 = vld [vmem:[#allocation56_spill] sm:$0xff]  ;;  %v9777_v37 = vld [vmem:[#allocation58_spill] sm:$0xff] }
 0x406   :  { %2327 = vmatpush.msrb.mxu0 %v6469_v58  ;;  %2347 = vmatpush.msrb.mxu1 %v6472_v59  ;;  %v2086_v59 = vand.u32 2147483648, %v7073_v32  ;;  %v9778_v18 = vld [vmem:[#allocation59_spill] sm:$0xff] }
 0x407   :  { %v2063_v31 = vsel %vm2062_vm7, %v3749_v43, %v2059_v42  ;;  %2367 = vmatpush.msra.mxu2 %v6475_v61  ;;  %2387 = vmatpush.msra.mxu3 %v6478_v9  ;;  %v2079_v58 = vadd.f32 %v7081_v56, %v2078_v55  ;;  %v2084_v61 = vand.u32 2147483647, %v7073_v32  ;;  %v9751_v32 = vld [vmem:[#allocation32_spill] sm:$0xff]  ;;  %v9758_v43 = vld [vmem:[#allocation39_spill] sm:$0xff] }
 0x408   :  { %v2068_v20 = vsel %vm2065_vm8, %v2067_v46, %v2063_v31  ;;  %2328 = vmatpush.msrb.mxu0 %v6481_v53  ;;  %2348 = vmatpush.msrb.mxu1 %v6484_v13  ;;  %v2087_v53 = vor.u32 1.1754944e-38, %v2086_v59  ;;  %v9733_v13 = vld [vmem:[#allocation12_spill] sm:$0xff]  ;;  %v9774_v42 = vld [vmem:[#allocation55_spill] sm:$0xff]  ;;  %v9776_v46 = vld [vmem:[#allocation57_spill] sm:$0xff] }
 0x409   :  { %v2093_v29 = vmul.f32 %v2091_v49, %v2068_v20  ;;  %2368 = vmatpush.msra.mxu2 %v6487_v14  ;;  %2388 = vmatpush.msra.mxu3 %v6490_v27  ;;  %v2083_v9 = vsel %vm2082_vm11, %v7081_v56, %v2079_v58  ;;  %vm2085_vm12 = vcmp.eq.f32.partialorder %v2084_v61, 8.507059e+37  ;;  %v9734_v14 = vld [vmem:[#allocation17_spill] sm:$0xff]  ;;  %v9767_v56 = vld [vmem:[#allocation48_spill] sm:$0xff]  ;;  %v9782_v20 = vld [vmem:[#allocation63_spill] sm:$0xff] }
 0x40a   :  { %2329 = vmatpush.msrb.mxu0 %v6493_v50  ;;  %2349 = vmatpush.msrb.mxu1 %v6496_v15  ;;  %v2088_v50 = vsel %vm2085_vm12, %v2087_v53, %v2083_v9  ;;  %v9735_v15 = vld [vmem:[#allocation18_spill] sm:$0xff]  ;;  %v9779_v31 = vld [vmem:[#allocation60_spill] sm:$0xff]  ;;  %v9780_v49 = vld [vmem:[#allocation61_spill] sm:$0xff] }
 0x40b   :  { %v7107_v36 = vadd.f32 %v2094_v34, %v2093_v29  ;;  %2369 = vmatpush.msra.mxu2 %v6501_v54  ;;  %2389 = vmatpush.msra.mxu3 %v6504_v17  ;;  %v9736_v54 = vld [vmem:[#allocation15_spill] sm:$0xff]  ;;  %v9781_v34 = vld [vmem:[#allocation62_spill] sm:$0xff]  ;;  %v9783_v55 = vld [vmem:[#allocation64_spill] sm:$0xff] }
 0x40c   :  { %2330 = vmatpush.msrb.mxu0 %v6507_v51  ;;  %2350 = vmatpush.msrb.mxu1 %v6510_v19  ;;  %v9737_v51 = vld [vmem:[#allocation16_spill] sm:$0xff]  ;;  %v9784_v29 = vld [vmem:[#allocation65_spill] sm:$0xff]  ;;  %v9785_v58 = vld [vmem:[#allocation66_spill] sm:$0xff] }
 0x40d   :  { %3754 = vtanh.f32 %v7107_v36  ;;  %2370 = vmatpush.msra.mxu2 %v6517_v11  ;;  %2390 = vmatpush.msra.mxu3 %v6520_v22  ;;  %v9738_v19 = vld [vmem:[#allocation20_spill] sm:$0xff]  ;;  %v9739_v11 = vld [vmem:[#allocation21_spill] sm:$0xff]  ;;  %v9740_v22 = vld [vmem:[#allocation19_spill] sm:$0xff] }
 0x40e   :  { %2331 = vmatpush.msrb.mxu0 %v6523_v57  ;;  %2351 = vmatpush.msrb.mxu1 %v6526_v8  ;;  %v9741_v57 = vld [vmem:[#allocation22_spill] sm:$0xff]  ;;  %v9742_v8 = vld [vmem:[#allocation23_spill] sm:$0xff]  ;;  %v9787_v61 = vld [vmem:[#allocation68_spill] sm:$0xff] }
 0x40f   :  { %2371 = vmatpush.msra.mxu2 %v6529_v47  ;;  %2391 = vmatpush.msra.mxu3 %v6532_v23  ;;  %v9743_v47 = vld [vmem:[#allocation24_spill] sm:$0xff]  ;;  %v9744_v23 = vld [vmem:[#allocation25_spill] sm:$0xff]  ;;  %v9786_v59 = vld [vmem:[#allocation67_spill] sm:$0xff] }
 0x410   :  { %2332 = vmatpush.msrb.mxu0 %v6535_v25  ;;  %2352 = vmatpush.msrb.mxu1 %v6538_v1  ;;  %v9745_v25 = vld [vmem:[#allocation26_spill] sm:$0xff]  ;;  %v9746_v1 = vld [vmem:[#allocation27_spill] sm:$0xff]  ;;  %v9788_v9 = vld [vmem:[#allocation69_spill] sm:$0xff] }
 0x411   :  { %2372 = vmatpush.msra.mxu2 %v6541_v0  ;;  %2392 = vmatpush.msra.mxu3 %v6544_v26  ;;  %v9747_v0 = vld [vmem:[#allocation28_spill] sm:$0xff]  ;;  %v9748_v26 = vld [vmem:[#allocation29_spill] sm:$0xff]  ;;  %v9789_v53 = vld [vmem:[#allocation70_spill] sm:$0xff] }
 0x412   :  { %2333 = vmatpush.msrb.mxu0 %v9733_v13  ;;  %2353 = vmatpush.msrb.mxu1 %v9734_v14  ;;  %v9790_v13 = vld [vmem:[#allocation71_spill] sm:$0xff]  ;;  %v9791_v14 = vld [vmem:[#allocation72_spill] sm:$0xff] }
 0x413   :  { %v3755_v27 = vpop.eup %3754  ;;  %2373 = vmatpush.msra.mxu2 %v9735_v15  ;;  %2393 = vmatpush.msra.mxu3 %v9736_v54  ;;  %v9794_v15 = vld [vmem:[#allocation75_spill] sm:$0xff]  ;;  %v9795_v54 = vld [vmem:[#allocation76_spill] sm:$0xff] }
 0x414   :  { %v2097_v17 = vmul.f32 %v3755_v27, %v2088_v50  ;;  %2334 = vmatpush.msrb.mxu0 %v9737_v51  ;;  %2354 = vmatpush.msrb.mxu1 %v9738_v19  ;;  %v9792_v27 = vld [vmem:[#allocation73_spill] sm:$0xff]  ;;  %v9793_v50 = vld [vmem:[#allocation74_spill] sm:$0xff]  ;;  %v9798_v19 = vld [vmem:[#allocation79_spill] sm:$0xff] }
 0x415   :  { %2374 = vmatpush.msra.mxu2 %v9739_v11  ;;  %2394 = vmatpush.msra.mxu3 %v9740_v22  ;;  %v9797_v51 = vld [vmem:[#allocation78_spill] sm:$0xff]  ;;  %v9799_v11 = vld [vmem:[#allocation80_spill] sm:$0xff]  ;;  %v9800_v22 = vld [vmem:[#allocation81_spill] sm:$0xff] }
 0x416   :  { %2194 = vmatmul.f32.vlgmr.msra.gmra.mxu0 %v2097_v17  ;;  %2214 = vmatmul.f32.vlgmr.msra.gmra.mxu1 %v2097_v17 }
 0x417   :  { %2234 = vmatmul.f32.vlgmr.msrb.gmra.mxu2 %v2097_v17  ;;  %2254 = vmatmul.f32.vlgmr.msrb.gmra.mxu3 %v2097_v17 }
 0x418   :  { %2335 = vmatpush.msrb.mxu0 %v9741_v57  ;;  %2355 = vmatpush.msrb.mxu1 %v9742_v8  ;;  %v9801_v57 = vld [vmem:[#allocation82_spill] sm:$0xff]  ;;  %v9802_v8 = vld [vmem:[#allocation83_spill] sm:$0xff] }
 0x419   :  { %2375 = vmatpush.msra.mxu2 %v9743_v47  ;;  %2395 = vmatpush.msra.mxu3 %v9744_v23  ;;  %v9803_v47 = vld [vmem:[#allocation84_spill] sm:$0xff]  ;;  %v9804_v23 = vld [vmem:[#allocation85_spill] sm:$0xff] }
 0x41a   :  { %2336 = vmatpush.msrb.mxu0 %v9745_v25  ;;  %2356 = vmatpush.msrb.mxu1 %v9746_v1  ;;  %v9805_v25 = vld [vmem:[#allocation86_spill] sm:$0xff]  ;;  %v9806_v1 = vld [vmem:[#allocation87_spill] sm:$0xff] }
 0x41b   :  { %2376 = vmatpush.msra.mxu2 %v9747_v0  ;;  %2396 = vmatpush.msra.mxu3 %v9748_v26  ;;  %v9807_v0 = vld [vmem:[#allocation88_spill] sm:$0xff]  ;;  %v9808_v26 = vld [vmem:[#allocation89_spill] sm:$0xff] }
 0x41c   :  { %2337 = vmatpush.msrb.mxu0 %v9749_v28  ;;  %2357 = vmatpush.msrb.mxu1 %v9750_v2  ;;  %v9809_v28 = vld [vmem:[#allocation90_spill] sm:$0xff]  ;;  %v9810_v2 = vld [vmem:[#allocation91_spill] sm:$0xff] }
 0x41d   :  { %2377 = vmatpush.msra.mxu2 %v9751_v32  ;;  %2397 = vmatpush.msra.mxu3 %v9752_v5  ;;  %v9811_v32 = vld [vmem:[#allocation92_spill] sm:$0xff]  ;;  %v9812_v5 = vld [vmem:[#allocation93_spill] sm:$0xff] }
 0x41e   :  { %2338 = vmatpush.msrb.mxu0 %v9753_v63  ;;  %2358 = vmatpush.msrb.mxu1 %v9754_v38  ;;  %v9813_v63 = vld [vmem:[#allocation94_spill] sm:$0xff]  ;;  %v9814_v38 = vld [vmem:[#allocation95_spill] sm:$0xff] }
 0x41f   :  { %2378 = vmatpush.msra.mxu2 %v9755_v3  ;;  %2398 = vmatpush.msra.mxu3 %v9756_v35  ;;  %v9815_v3 = vld [vmem:[#allocation96_spill] sm:$0xff]  ;;  %v9816_v35 = vld [vmem:[#allocation97_spill] sm:$0xff] }
 0x420   :  { %2339 = vmatpush.msrb.mxu0 %v9757_v4  ;;  %2359 = vmatpush.msrb.mxu1 %v9758_v43  ;;  %v9817_v4 = vld [vmem:[#allocation98_spill] sm:$0xff]  ;;  %v9818_v43 = vld [vmem:[#allocation99_spill] sm:$0xff] }
 0x421   :  { %2379 = vmatpush.msra.mxu2 %v9759_v24  ;;  %2399 = vmatpush.msra.mxu3 %v9760_v12  ;;  %v9819_v24 = vld [vmem:[#allocation100_spill] sm:$0xff]  ;;  %v9820_v12 = vld [vmem:[#allocation101_spill] sm:$0xff] }
 0x422   :  { %2340 = vmatpush.msrb.mxu0 %v9761_v33  ;;  %2360 = vmatpush.msrb.mxu1 %v9762_v7  ;;  %v9821_v33 = vld [vmem:[#allocation102_spill] sm:$0xff]  ;;  %v9822_v7 = vld [vmem:[#allocation103_spill] sm:$0xff] }
 0x423   :  { %2380 = vmatpush.msra.mxu2 %v9763_v40  ;;  %2400 = vmatpush.msra.mxu3 %v9764_v60  ;;  %v9823_v40 = vld [vmem:[#allocation104_spill] sm:$0xff]  ;;  %v9824_v60 = vld [vmem:[#allocation105_spill] sm:$0xff] }
 0x424   :  { %2341 = vmatmul.f32.vlgmr.msrb.gmra.mxu0 %v2097_v17  ;;  %2361 = vmatmul.f32.vlgmr.msrb.gmra.mxu1 %v2097_v17 }
 0x425   :  { %2381 = vmatmul.f32.vlgmr.msra.gmra.mxu2 %v2097_v17  ;;  %2401 = vmatmul.f32.vlgmr.msra.gmra.mxu3 %v2097_v17  ;;  %v9796_v17 = vld [vmem:[#allocation77_spill] sm:$0xff] }
 0x426   :  { %2487 = vmatpush.msra.mxu0 %v9765_v39  ;;  %2507 = vmatpush.msra.mxu1 %v9766_v10  ;;  %v9825_v39 = vld [vmem:[#allocation106_spill] sm:$0xff]  ;;  %v9826_v10 = vld [vmem:[#allocation107_spill] sm:$0xff] }
 0x427   :  { %2527 = vmatpush.msrb.mxu2 %v9767_v56  ;;  %2547 = vmatpush.msrb.mxu3 %v9768_v48  ;;  %v9827_v56 = vld [vmem:[#allocation108_spill] sm:$0xff]  ;;  %v9828_v48 = vld [vmem:[#allocation109_spill] sm:$0xff] }
 0x428   :  { %2488 = vmatpush.msra.mxu0 %v9769_v52  ;;  %2508 = vmatpush.msra.mxu1 %v9770_v62  ;;  %v9829_v52 = vld [vmem:[#allocation110_spill] sm:$0xff]  ;;  %v9830_v62 = vld [vmem:[#allocation111_spill] sm:$0xff] }
 0x429   :  { %2528 = vmatpush.msrb.mxu2 %v9771_v6  ;;  %2548 = vmatpush.msrb.mxu3 %v9772_v30  ;;  %v9831_v6 = vld [vmem:[#allocation112_spill] sm:$0xff]  ;;  %v9832_v30 = vld [vmem:[#allocation113_spill] sm:$0xff] }
 0x42a   :  { %2489 = vmatpush.msra.mxu0 %v9773_v41  ;;  %2509 = vmatpush.msra.mxu1 %v9774_v42  ;;  %v9833_v41 = vld [vmem:[#allocation114_spill] sm:$0xff]  ;;  %v9834_v42 = vld [vmem:[#allocation115_spill] sm:$0xff] }
 0x42b   :  { %2529 = vmatpush.msrb.mxu2 %v9775_v44  ;;  %2549 = vmatpush.msrb.mxu3 %v9776_v46  ;;  %v9835_v44 = vld [vmem:[#allocation116_spill] sm:$0xff]  ;;  %v9836_v46 = vld [vmem:[#allocation118_spill] sm:$0xff] }
 0x42c   :  { %2490 = vmatpush.msra.mxu0 %v9777_v37  ;;  %2510 = vmatpush.msra.mxu1 %v9778_v18  ;;  %v9837_v37 = vld [vmem:[#allocation119_spill] sm:$0xff]  ;;  %v9838_v18 = vld [vmem:[#allocation120_spill] sm:$0xff] }
 0x42d   :  { %2530 = vmatpush.msrb.mxu2 %v9779_v31  ;;  %2550 = vmatpush.msrb.mxu3 %v9780_v49  ;;  %v9839_v31 = vld [vmem:[#allocation121_spill] sm:$0xff]  ;;  %v9840_v49 = vld [vmem:[#allocation122_spill] sm:$0xff] }
 0x42e   :  { %2491 = vmatpush.msra.mxu0 %v9781_v34  ;;  %2511 = vmatpush.msra.mxu1 %v9782_v20  ;;  %v9841_v34 = vld [vmem:[#allocation123_spill] sm:$0xff]  ;;  %v9842_v20 = vld [vmem:[#allocation124_spill] sm:$0xff] }
 0x42f   :  { %2531 = vmatpush.msrb.mxu2 %v9783_v55  ;;  %2551 = vmatpush.msrb.mxu3 %v9784_v29  ;;  %v9843_v55 = vld [vmem:[#allocation125_spill] sm:$0xff]  ;;  %v9844_v29 = vld [vmem:[#allocation126_spill] sm:$0xff] }
 0x430   :  { %2492 = vmatpush.msra.mxu0 %v9785_v58  ;;  %2512 = vmatpush.msra.mxu1 %v9786_v59  ;;  %v9845_v58 = vld [vmem:[#allocation127_spill] sm:$0xff]  ;;  %v9846_v59 = vld [vmem:[#allocation128_spill] sm:$0xff] }
 0x431   :  { %2532 = vmatpush.msrb.mxu2 %v9787_v61  ;;  %2552 = vmatpush.msrb.mxu3 %v9788_v9  ;;  %v9847_v61 = vld [vmem:[#allocation129_spill] sm:$0xff]  ;;  %v9848_v9 = vld [vmem:[#allocation130_spill] sm:$0xff] }
 0x432   :  { %2493 = vmatpush.msra.mxu0 %v9789_v53  ;;  %2513 = vmatpush.msra.mxu1 %v9790_v13  ;;  %v9849_v53 = vld [vmem:[#allocation131_spill] sm:$0xff]  ;;  %v9850_v13 = vld [vmem:[#allocation132_spill] sm:$0xff] }
 0x433   :  { %2533 = vmatpush.msrb.mxu2 %v9791_v14  ;;  %2553 = vmatpush.msrb.mxu3 %v9792_v27  ;;  %v9851_v14 = vld [vmem:[#allocation133_spill] sm:$0xff]  ;;  %v9852_v27 = vld [vmem:[#allocation134_spill] sm:$0xff] }
 0x434   :  { %2494 = vmatpush.msra.mxu0 %v9793_v50  ;;  %2514 = vmatpush.msra.mxu1 %v9794_v15  ;;  %v9853_v50 = vld [vmem:[#allocation135_spill] sm:$0xff]  ;;  %v9854_v15 = vld [vmem:[#allocation136_spill] sm:$0xff] }
 0x435   :  { %2534 = vmatpush.msrb.mxu2 %v9795_v54  ;;  %2554 = vmatpush.msrb.mxu3 %v9796_v17  ;;  %v9855_v54 = vld [vmem:[#allocation137_spill] sm:$0xff]  ;;  %v9856_v17 = vld [vmem:[#allocation138_spill] sm:$0xff] }
 0x436   :  { %2495 = vmatpush.msra.mxu0 %v9797_v51  ;;  %2515 = vmatpush.msra.mxu1 %v9798_v19  ;;  %v9857_v51 = vld [vmem:[#allocation139_spill] sm:$0xff]  ;;  %v9858_v19 = vld [vmem:[#allocation140_spill] sm:$0xff] }
 0x437   :  { %2535 = vmatpush.msrb.mxu2 %v9799_v11  ;;  %2555 = vmatpush.msrb.mxu3 %v9800_v22  ;;  %v9859_v11 = vld [vmem:[#allocation141_spill] sm:$0xff]  ;;  %v9860_v22 = vld [vmem:[#allocation142_spill] sm:$0xff] }
 0x438   :  { %2496 = vmatpush.msra.mxu0 %v9801_v57  ;;  %2516 = vmatpush.msra.mxu1 %v9802_v8  ;;  %v9861_v57 = vld [vmem:[#allocation143_spill] sm:$0xff]  ;;  %v9862_v8 = vld [vmem:[#allocation145_spill] sm:$0xff] }
 0x439   :  { %2536 = vmatpush.msrb.mxu2 %v9803_v47  ;;  %2556 = vmatpush.msrb.mxu3 %v9804_v23  ;;  %v9863_v47 = vld [vmem:[#allocation146_spill] sm:$0xff]  ;;  %v9864_v23 = vld [vmem:[#allocation152_spill] sm:$0xff] }
 0x43a   :  { %2497 = vmatpush.msra.mxu0 %v9805_v25  ;;  %2517 = vmatpush.msra.mxu1 %v9806_v1  ;;  %v9865_v25 = vld [vmem:[#allocation153_spill] sm:$0xff]  ;;  %v9866_v1 = vld [vmem:[#allocation154_spill] sm:$0xff] }
 0x43b   :  { %2537 = vmatpush.msrb.mxu2 %v9807_v0  ;;  %2557 = vmatpush.msrb.mxu3 %v9808_v26  ;;  %v9867_v0 = vld [vmem:[#allocation155_spill] sm:$0xff]  ;;  %v9868_v26 = vld [vmem:[#allocation156_spill] sm:$0xff] }
 0x43c   :  { %2498 = vmatpush.msra.mxu0 %v9809_v28  ;;  %2518 = vmatpush.msra.mxu1 %v9810_v2  ;;  %v9869_v28 = vld [vmem:[#allocation157_spill] sm:$0xff]  ;;  %v9870_v2 = vld [vmem:[#allocation158_spill] sm:$0xff] }
 0x43d   :  { %2538 = vmatpush.msrb.mxu2 %v9811_v32  ;;  %2558 = vmatpush.msrb.mxu3 %v9812_v5  ;;  %v9871_v32 = vld [vmem:[#allocation159_spill] sm:$0xff]  ;;  %v9872_v5 = vld [vmem:[#allocation160_spill] sm:$0xff] }
 0x43e   :  { %2499 = vmatpush.msra.mxu0 %v9813_v63  ;;  %2519 = vmatpush.msra.mxu1 %v9814_v38  ;;  %v9873_v63 = vld [vmem:[#allocation161_spill] sm:$0xff]  ;;  %v9874_v38 = vld [vmem:[#allocation162_spill] sm:$0xff] }
 0x43f   :  { %2539 = vmatpush.msrb.mxu2 %v9815_v3  ;;  %2559 = vmatpush.msrb.mxu3 %v9816_v35  ;;  %v9875_v3 = vld [vmem:[#allocation163_spill] sm:$0xff]  ;;  %v9876_v35 = vld [vmem:[#allocation164_spill] sm:$0xff] }
 0x440   :  { %2500 = vmatpush.msra.mxu0 %v9817_v4  ;;  %2520 = vmatpush.msra.mxu1 %v9818_v43  ;;  %v9877_v4 = vld [vmem:[#allocation165_spill] sm:$0xff]  ;;  %v9878_v43 = vld [vmem:[#allocation166_spill] sm:$0xff] }
 0x441   :  { %2540 = vmatpush.msrb.mxu2 %v9819_v24  ;;  %2560 = vmatpush.msrb.mxu3 %v9820_v12  ;;  %v9879_v24 = vld [vmem:[#allocation167_spill] sm:$0xff]  ;;  %v9880_v12 = vld [vmem:[#allocation168_spill] sm:$0xff] }
 0x442   :  { %2501 = vmatpush.msra.mxu0 %v9821_v33  ;;  %2521 = vmatpush.msra.mxu1 %v9822_v7  ;;  %v9881_v33 = vld [vmem:[#allocation169_spill] sm:$0xff]  ;;  %v9882_v7 = vld [vmem:[#allocation170_spill] sm:$0xff] }
 0x443   :  { %2541 = vmatpush.msrb.mxu2 %v9823_v40  ;;  %2561 = vmatpush.msrb.mxu3 %v9824_v60  ;;  %v9883_v40 = vld [vmem:[#allocation171_spill] sm:$0xff]  ;;  %v9884_v60 = vld [vmem:[#allocation172_spill] sm:$0xff] }
 0x444   :  { %2502 = vmatpush.msra.mxu0 %v9825_v39  ;;  %2522 = vmatpush.msra.mxu1 %v9826_v10  ;;  %v9885_v39 = vld [vmem:[#allocation173_spill] sm:$0xff]  ;;  %v9886_v10 = vld [vmem:[#allocation174_spill] sm:$0xff] }
 0x445   :  { %2542 = vmatpush.msrb.mxu2 %v9827_v56  ;;  %2562 = vmatpush.msrb.mxu3 %v9828_v48  ;;  %v9887_v56 = vld [vmem:[#allocation175_spill] sm:$0xff]  ;;  %v9888_v48 = vld [vmem:[#allocation176_spill] sm:$0xff] }
 0x446   :  { %2570 = vmatpush.msrb.mxu0 %v9829_v52  ;;  %2590 = vmatpush.msrb.mxu1 %v9830_v62  ;;  %v9889_v52 = vld [vmem:[#allocation177_spill] sm:$0xff]  ;;  %v9890_v62 = vld [vmem:[#allocation178_spill] sm:$0xff] }
 0x447   :  { %2610 = vmatpush.msra.mxu2 %v9831_v6  ;;  %2630 = vmatpush.msra.mxu3 %v9832_v30  ;;  %v9891_v6 = vld [vmem:[#allocation179_spill] sm:$0xff]  ;;  %v9892_v30 = vld [vmem:[#allocation149_spill] sm:$0xff] }
 0x448   :  { %2571 = vmatpush.msrb.mxu0 %v9833_v41  ;;  %2591 = vmatpush.msrb.mxu1 %v9834_v42 }
 0x449   :  { %2611 = vmatpush.msra.mxu2 %v9835_v44  ;;  %2631 = vmatpush.msra.mxu3 %v9836_v46 }
 0x44a   :  { %2572 = vmatpush.msrb.mxu0 %v9837_v37  ;;  %2592 = vmatpush.msrb.mxu1 %v9838_v18 }
 0x44b   :  { %2612 = vmatpush.msra.mxu2 %v9839_v31  ;;  %2632 = vmatpush.msra.mxu3 %v9840_v49  ;;  %v9893_v49 = vld [vmem:[#allocation10_spill] sm:$0xff] }
 0x44c   :  { %2573 = vmatpush.msrb.mxu0 %v9841_v34  ;;  %2593 = vmatpush.msrb.mxu1 %v9842_v20  ;;  %v9894_v20 = vld [vmem:[#allocation13_spill] sm:$0xff] }
 0x44d   :  { %2613 = vmatpush.msra.mxu2 %v9843_v55  ;;  %2633 = vmatpush.msra.mxu3 %v9844_v29 }
 0x44e   :  { %2574 = vmatpush.msrb.mxu0 %v9845_v58  ;;  %2594 = vmatpush.msrb.mxu1 %v9846_v59 }
 0x44f   :  { %2614 = vmatpush.msra.mxu2 %v9847_v61  ;;  %2634 = vmatpush.msra.mxu3 %v9848_v9 }
 0x450   :  { %2575 = vmatpush.msrb.mxu0 %v9849_v53  ;;  %2595 = vmatpush.msrb.mxu1 %v9850_v13  ;;  %v9895_v53 = vld [vmem:[#allocation14_spill] sm:$0xff] }
 0x451   :  { %2615 = vmatpush.msra.mxu2 %v9851_v14  ;;  %2635 = vmatpush.msra.mxu3 %v9852_v27 }
 0x452   :  { %2576 = vmatpush.msrb.mxu0 %v9853_v50  ;;  %2596 = vmatpush.msrb.mxu1 %v9854_v15 }
 0x453   :  { %2616 = vmatpush.msra.mxu2 %v9855_v54  ;;  %2636 = vmatpush.msra.mxu3 %v9856_v17 }
 0x454   :  { %2577 = vmatpush.msrb.mxu0 %v9857_v51  ;;  %2597 = vmatpush.msrb.mxu1 %v9858_v19 }
 0x455   :  { %2617 = vmatpush.msra.mxu2 %v9859_v11  ;;  %2637 = vmatpush.msra.mxu3 %v9860_v22 }
 0x456   :  { %2578 = vmatpush.msrb.mxu0 %v9861_v57  ;;  %2598 = vmatpush.msrb.mxu1 %v9862_v8  ;;  %v9896_v8 = vld [vmem:[#allocation150_spill] sm:$0xff] }
 0x457   :  { %2618 = vmatpush.msra.mxu2 %v9863_v47  ;;  %2638 = vmatpush.msra.mxu3 %v9864_v23  ;;  %v9897_v23 = vld [vmem:[#allocation144_spill] sm:$0xff] }
 0x458   :  { %2579 = vmatpush.msrb.mxu0 %v9865_v25  ;;  %2599 = vmatpush.msrb.mxu1 %v9866_v1 }
 0x459   :  { %2619 = vmatpush.msra.mxu2 %v9867_v0  ;;  %2639 = vmatpush.msra.mxu3 %v9868_v26 }
 0x45a   :  { %2580 = vmatpush.msrb.mxu0 %v9869_v28  ;;  %2600 = vmatpush.msrb.mxu1 %v9870_v2 }
 0x45b   :  { %2620 = vmatpush.msra.mxu2 %v9871_v32  ;;  %2640 = vmatpush.msra.mxu3 %v9872_v5  ;;  %v9898_v5 = vld [vmem:[#allocation11_spill] sm:$0xff] }
 0x45c   :  { %2581 = vmatpush.msrb.mxu0 %v9873_v63  ;;  %2601 = vmatpush.msrb.mxu1 %v9874_v38 }
 0x45d   :  { %2621 = vmatpush.msra.mxu2 %v9875_v3  ;;  %2641 = vmatpush.msra.mxu3 %v9876_v35 }
 0x45e   :  { %2582 = vmatpush.msrb.mxu0 %v9877_v4  ;;  %2602 = vmatpush.msrb.mxu1 %v9878_v43 }
 0x45f   :  { %2622 = vmatpush.msra.mxu2 %v9879_v24  ;;  %2642 = vmatpush.msra.mxu3 %v9880_v12 }
 0x460   :  { %2583 = vmatpush.msrb.mxu0 %v9881_v33  ;;  %2603 = vmatpush.msrb.mxu1 %v9882_v7 }
 0x461   :  { %2623 = vmatpush.msra.mxu2 %v9883_v40  ;;  %2643 = vmatpush.msra.mxu3 %v9884_v60 }
 0x462   :  { %2584 = vmatpush.msrb.mxu0 %v9885_v39  ;;  %2604 = vmatpush.msrb.mxu1 %v9886_v10 }
 0x463   :  { %2624 = vmatpush.msra.mxu2 %v9887_v56  ;;  %2644 = vmatpush.msra.mxu3 %v9888_v48 }
 0x464   :  { %2585 = vmatpush.msrb.mxu0 %v9889_v52  ;;  %2605 = vmatpush.msrb.mxu1 %v9890_v62 }
 0x465   :  { %2625 = vmatpush.msra.mxu2 %v9891_v6  ;;  %2645 = vmatpush.msra.mxu3 %v9892_v30 }
 0x47d   :  { %v2115_v41 = vpop.f32.mrf.mxu0  ;;  %v2135_v42 = vpop.f32.mrf.mxu1 }
 0x484   :  { %v2175_v44 = vpop.f32.mrf.mxu3  ;;  %v2155_v59 = vpop.f32.mrf.mxu2 }
 0x493   :  { %v2195_v46 = vpop.f32.mrf.mxu0  ;;  %v2215_v37 = vpop.f32.mrf.mxu1 }
 0x494   :  { %v2196_v18 = vadd.f32 %v2195_v46, %v2115_v41  ;;  %v2216_v31 = vadd.f32 %v2215_v37, %v2135_v42 }
 0x496   :  { %v2258_v34 = vadd.f32 %v2196_v18, %v9893_v49  ;;  %v2259_v55 = vadd.f32 %v2216_v31, %v9894_v20 }
 0x498   :  { %v3584_v29 = vmul.f32 -1.442695, %v2258_v34  ;;  %v3585_v58 = vmul.f32 -1.442695, %v2259_v55 }
 0x49a   :  { %3756 = vpow2.f32 %v3584_v29  ;;  %v2255_v61 = vpop.f32.mrf.mxu3  ;;  %v2235_v19 = vpop.f32.mrf.mxu2 }
 0x49b   :  { %3758 = vpow2.f32 %v3585_v58  ;;  %v2256_v9 = vadd.f32 %v2255_v61, %v2175_v44  ;;  %v2236_v57 = vadd.f32 %v2235_v19, %v2155_v59 }
 0x49d   :  { %v2261_v13 = vadd.f32 %v2256_v9, %v9895_v53  ;;  %v2260_v63 = vadd.f32 %v2236_v57, %v9898_v5 }
 0x49f   :  { %v3586_v14 = vmul.f32 -1.442695, %v2261_v13 }
 0x4a0   :  { %v3757_v27 = vpop.eup %3756 }
 0x4a1   :  { %v3759_v50 = vpop.eup %3758  ;;  %v2265_v15 = vadd.f32 1.0, %v3757_v27  ;;  %3760 = vpow2.f32 %v3586_v14  ;;  %v2342_v54 = vpop.f32.mrf.mxu0 }
 0x4a2   :  { %v2362_v17 = vpop.f32.mrf.mxu1  ;;  %v2284_v51 = vadd.f32 1.0, %v3759_v50  ;;  %v2409_v11 = vrot.slane %v2342_v54, 6 }
 0x4a3   :  { %v2410_v22 = vrot.slane %v2362_v17, 6  ;;  %3762 = vrcp.f32 %v2265_v15  ;;  %v2275_v33 = vand.u32 2147483647, %v2265_v15  ;;  %v2277_v7 = vand.u32 2147483648, %v2265_v15 }
 0x4a4   :  { %3764 = vrcp.f32 %v2284_v51  ;;  %v2417_v47 = vadd.f32 %v2409_v11, %v9896_v8  ;;  %v2296_v40 = vand.u32 2147483648, %v2284_v51  ;;  %vm2271_vm15 = vweird.f32 %v2265_v15 }
 0x4a5   :  { %v2418_v25 = vadd.f32 %v2410_v22, %v9897_v23  ;;  %v2294_v48 = vand.u32 2147483647, %v2284_v51  ;;  %vm2290_vm0 = vweird.f32 %v2284_v51  ;;  %vm2276_vm2 = vcmp.eq.f32.partialorder %v2275_v33, 8.507059e+37 }
 0x4a6   :  { %v3587_v0 = vmul.f32 -1.442695, %v2417_v47  ;;  %v2278_v41 = vor.u32 1.1754944e-38, %v2277_v7  ;;  %v2297_v37 = vor.u32 1.1754944e-38, %v2296_v40 }
 0x4a7   :  { %v3761_v1 = vpop.eup %3760  ;;  %v3588_v26 = vmul.f32 -1.442695, %v2418_v25  ;;  %vm2295_vm4 = vcmp.eq.f32.partialorder %v2294_v48, 8.507059e+37  ;;  %v7420_v25 = vld [vmem:[#allocation3 + $0x178] sm:$0xff] }
 0x4a8   :  { %v7295_v28 = vadd.f32 1.0, %v3761_v1  ;;  %v2402_v2 = vpop.f32.mrf.mxu3  ;;  %3766 = vpow2.f32 %v3587_v0  ;;  %v2382_v46 = vpop.f32.mrf.mxu2 }
 0x4a9   :  { %v3763_v32 = vpop.eup %3762  ;;  %v2412_v38 = vrot.slane %v2402_v2, 6  ;;  %v2411_v9 = vrot.slane %v2382_v46, 6  ;;  %v7352_v46 = vld [vmem:[#allocation3 + $0x1f0] sm:$0xff] }
 0x4aa   :  { %v3765_v3 = vpop.eup %3764  ;;  %v2267_v35 = vmul.f32 %v3763_v32, %v2265_v15  ;;  %3768 = vrcp.f32 %v7295_v28  ;;  %vm2272_vm13 = vweird.f32 %v3763_v32  ;;  %v2316_v19 = vand.u32 2147483648, %v7295_v28 }
 0x4ab   :  { %v2286_v4 = vmul.f32 %v3765_v3, %v2284_v51  ;;  %3770 = vpow2.f32 %v3588_v26  ;;  %v2420_v24 = vadd.f32 %v2412_v38, %v7053_v21  ;;  %vm2291_vm14 = vweird.f32 %v3765_v3  ;;  %vm2273_vm1 = vmor %vm2271_vm15, %vm2272_vm13 }
 0x4ac   :  { %v2268_v43 = vsub.f32 1.0, %v2267_v35  ;;  %3772 = vtanh.f32 %v2260_v63  ;;  %vm2292_vm3 = vmor %vm2290_vm0, %vm2291_vm14  ;;  %v2419_v17 = vadd.f32 %v2411_v9, %v7071_v16  ;;  %vm2310_vm6 = vweird.f32 %v7295_v28 }
 0x4ad   :  { %v2287_v12 = vsub.f32 1.0, %v2286_v4  ;;  %v3589_v39 = vmul.f32 -1.442695, %v2420_v24  ;;  %v2314_v22 = vand.u32 2147483647, %v7295_v28  ;;  %v2317_v26 = vor.u32 1.1754944e-38, %v2316_v19 }
 0x4ae   :  { %v2269_v60 = vmul.f32 %v3763_v32, %v2268_v43  ;;  %v3767_v10 = vpop.eup %3766  ;;  %v7402_v19 = vld [vmem:[#allocation3 + $0x190] sm:$0xff] }
 0x4af   :  { %v2288_v56 = vmul.f32 %v3765_v3, %v2287_v12  ;;  %v7302_v6 = vadd.f32 1.0, %v3767_v10  ;;  %3774 = vpow2.f32 %v3589_v39  ;;  %vm2315_vm10 = vcmp.eq.f32.partialorder %v2314_v22, 8.507059e+37  ;;  %v7414_v22 = vld [vmem:[#allocation3 + $0x168] sm:$0xff] }
 0x4b0   :  { %v7300_v52 = vpop.eup %3768  ;;  %v2270_v62 = vadd.f32 %v3763_v32, %v2269_v60  ;;  %v2480_v10 = vrot.slane %v7107_v36, 6 }
 0x4b1   :  { %v3771_v30 = vpop.eup %3770  ;;  %v2289_v42 = vadd.f32 %v3765_v3, %v2288_v56  ;;  %v2306_v44 = vmul.f32 %v7300_v52, %v7295_v28  ;;  %3776 = vrcp.f32 %v7302_v6  ;;  %vm2311_vm5 = vweird.f32 %v7300_v52 }
 0x4b2   :  { %v2274_v18 = vsel %vm2273_vm1, %v3763_v32, %v2270_v62  ;;  %v7308_v31 = vadd.f32 1.0, %v3771_v30  ;;  %v3773_v34 = vpop.eup %3772  ;;  %vm7327_vm7 = vmor %vm2310_vm6, %vm2311_vm5  ;;  %v2436_v1 = vand.u32 2147483648, %v7302_v6  ;;  %v2434_v28 = vand.u32 2147483647, %v7302_v6 }
 0x4b3   :  { %v2279_v55 = vsel %vm2276_vm2, %v2278_v41, %v2274_v18  ;;  %v2293_v29 = vsel %vm2292_vm3, %v3765_v3, %v2289_v42  ;;  %v2307_v58 = vsub.f32 1.0, %v2306_v44  ;;  %vm2430_vm9 = vweird.f32 %v7302_v6  ;;  %v7345_v41 = vld [vmem:[#allocation3 + $0x1e0] sm:$0xff]  ;;  %v7348_v42 = vld [vmem:[#allocation3 + $0x1e8] sm:$0xff] }
 0x4b4   :  { %v2298_v59 = vsel %vm2295_vm4, %v2297_v37, %v2293_v29  ;;  %v2321_v61 = vmul.f32 %v3773_v34, %v2279_v55  ;;  %3778 = vrcp.f32 %v7308_v31  ;;  %v2455_v63 = vand.u32 2147483648, %v7308_v31  ;;  %v7355_v37 = vld [vmem:[#allocation3 + $0x1f8] sm:$0xff]  ;;  %v7358_v18 = vld [vmem:[#allocation3 + $0x1c0] sm:$0xff]  ;;  %v7366_v55 = vld [vmem:[#allocation3 + $0x1d0] sm:$0xff] }
 0x4b5   :  { %v2320_v13 = vmul.f32 %v2298_v59, %v7059_v45  ;;  %v3775_v14 = vpop.eup %3774  ;;  %v2308_v27 = vmul.f32 %v7300_v52, %v2307_v58  ;;  %v2453_v38 = vand.u32 2147483647, %v7308_v31  ;;  %vm2449_vm12 = vweird.f32 %v7308_v31  ;;  %v7369_v29 = vld [vmem:[#allocation3 + $0x1d8] sm:$0xff]  ;;  %v7374_v59 = vld [vmem:[#allocation3 + $0x1a0] sm:$0xff] }
 0x4b6   :  { %v7315_v15 = vadd.f32 1.0, %v3775_v14  ;;  %v2437_v12 = vor.u32 1.1754944e-38, %v2436_v1  ;;  %vm2435_vm14 = vcmp.eq.f32.partialorder %v2434_v28, 8.507059e+37  ;;  %v2456_v56 = vor.u32 1.1754944e-38, %v2455_v63  ;;  %v7385_v14 = vld [vmem:[#allocation3 + $0x1b8] sm:$0xff]  ;;  %v7423_v1 = vld [vmem:[#allocation3 + $0x140] sm:$0xff] }
 0x4b7   :  { %v7313_v50 = vadd.f32 %v2321_v61, %v2320_v13  ;;  %v3777_v54 = vpop.eup %3776  ;;  %v2309_v51 = vadd.f32 %v7300_v52, %v2308_v27  ;;  %vm2454_vm0 = vcmp.eq.f32.partialorder %v2453_v38, 8.507059e+37  ;;  %v7377_v61 = vld [vmem:[#allocation3 + $0x1a8] sm:$0xff]  ;;  %v7382_v13 = vld [vmem:[#allocation3 + $0x1b0] sm:$0xff]  ;;  %v7432_v28 = vld [vmem:[#allocation3 + $0x158] sm:$0xff] }
 0x4b8   :  { %v2426_v45 = vmul.f32 %v3777_v54, %v7302_v6  ;;  %vm2431_vm8 = vweird.f32 %v3777_v54  ;;  %v2475_v9 = vand.u32 2147483648, %v7315_v15  ;;  %vm2469_vm2 = vweird.f32 %v7315_v15  ;;  %v7435_v38 = vld [vmem:[#allocation3 + $0x120] sm:$0xff] }
 0x4b9   :  { %3780 = vtanh.f32 %v7313_v50  ;;  %v2313_v0 = vsel %vm7327_vm7, %v7300_v52, %v2309_v51  ;;  %vm2432_vm13 = vmor %vm2430_vm9, %vm2431_vm8  ;;  %v2473_v27 = vand.u32 2147483647, %v7315_v15  ;;  %v7510_v51 = vld [vmem:[#allocation3 + $0x98] sm:$0xff] }
 0x4ba   :  { %v3779_v11 = vpop.eup %3778  ;;  %3782 = vrcp.f32 %v7315_v15  ;;  %v2427_v57 = vsub.f32 1.0, %v2426_v45  ;;  %v2318_v43 = vsel %vm2315_vm10, %v2317_v26, %v2313_v0  ;;  %v7405_v45 = vld [vmem:[#allocation3 + $0x198] sm:$0xff]  ;;  %v7426_v0 = vld [vmem:[#allocation3 + $0x148] sm:$0xff]  ;;  %9917 = vst [vmem:[#allocation25_spill] sm:$0xff] %v7510_v51 }
 0x4bb   :  { %v2445_v47 = vmul.f32 %v3779_v11, %v7308_v31  ;;  %3784 = vtanh.f32 %v2419_v17  ;;  %vm2450_vm11 = vweird.f32 %v3779_v11  ;;  %v7361_v31 = vld [vmem:[#allocation3 + $0x1c8] sm:$0xff]  ;;  %vm2474_vm4 = vcmp.eq.f32.partialorder %v2473_v27, 8.507059e+37  ;;  %v7507_v27 = vld [vmem:[#allocation3 + $0x90] sm:$0xff] }
 0x4bc   :  { %v2428_v32 = vmul.f32 %v3777_v54, %v2427_v57  ;;  %vm2451_vm15 = vmor %vm2449_vm12, %vm2450_vm11  ;;  %v7393_v17 = vld [vmem:[#allocation3 + $0x188] sm:$0xff]  ;;  %v2476_v57 = vor.u32 1.1754944e-38, %v2475_v9  ;;  %9916 = vst [vmem:[#allocation24_spill] sm:$0xff] %v7507_v27 }
 0x4bd   :  { %v2446_v2 = vsub.f32 1.0, %v2445_v47  ;;  %v7417_v47 = vld [vmem:[#allocation3 + $0x170] sm:$0xff]  ;;  %v7504_v9 = vld [vmem:[#allocation3 + $0x88] sm:$0xff] }
 0x4be   :  { %v2429_v4 = vadd.f32 %v3777_v54, %v2428_v32  ;;  %v7429_v32 = vld [vmem:[#allocation3 + $0x150] sm:$0xff]  ;;  %9915 = vst [vmem:[#allocation23_spill] sm:$0xff] %v7504_v9 }
 0x4bf   :  { %v3781_v3 = vpop.eup %3780  ;;  %v2447_v35 = vmul.f32 %v3779_v11, %v2446_v2 }
 0x4c0   :  { %v7339_v24 = vpop.eup %3782  ;;  %v2324_v33 = vmul.f32 %v3781_v3, %v2318_v43  ;;  %v2433_v7 = vsel %vm2432_vm13, %v3777_v54, %v2429_v4  ;;  %v7390_v54 = vld [vmem:[#allocation3 + $0x180] sm:$0xff]  ;;  %v7438_v3 = vld [vmem:[#allocation3 + $0x128] sm:$0xff]  ;;  %v7444_v4 = vld [vmem:[#allocation3 + $0x138] sm:$0xff] }
 0x4c1   :  { %v2448_v40 = vadd.f32 %v3779_v11, %v2447_v35  ;;  %v2465_v60 = vmul.f32 %v7339_v24, %v7315_v15  ;;  %v3785_v39 = vpop.eup %3784  ;;  %v2438_v48 = vsel %vm2435_vm14, %v2437_v12, %v2433_v7  ;;  %vm2470_vm1 = vweird.f32 %v7339_v24  ;;  %v7441_v35 = vld [vmem:[#allocation3 + $0x130] sm:$0xff]  ;;  %v7452_v12 = vld [vmem:[#allocation3 + $0x108] sm:$0xff]  ;;  %v7458_v7 = vld [vmem:[#allocation3 + $0x118] sm:$0xff] }
 0x4c2   :  { %2503 = vmatmul.f32.vlgmr.msra.gmra.mxu0 %v2324_v33  ;;  %2523 = vmatmul.f32.vlgmr.msra.gmra.mxu1 %v2324_v33  ;;  %v2483_v62 = vmul.f32 %v3785_v39, %v2438_v48  ;;  %vm7398_vm3 = vmor %vm2469_vm2, %vm2470_vm1  ;;  %v7471_v39 = vld [vmem:[#allocation3 + $0xf0] sm:$0xff]  ;;  %v7480_v48 = vld [vmem:[#allocation3 + $0xc8] sm:$0xff] }
 0x4c3   :  { %v2452_v52 = vsel %vm2451_vm15, %v3779_v11, %v2448_v40  ;;  %v2466_v6 = vsub.f32 1.0, %v2465_v60  ;;  %2543 = vmatmul.f32.vlgmr.msrb.gmra.mxu2 %v2324_v33  ;;  %2563 = vmatmul.f32.vlgmr.msrb.gmra.mxu3 %v2324_v33  ;;  %v7411_v11 = vld [vmem:[#allocation3 + $0x160] sm:$0xff]  ;;  %v7455_v33 = vld [vmem:[#allocation3 + $0x110] sm:$0xff]  ;;  %v7468_v60 = vld [vmem:[#allocation3 + $0xe8] sm:$0xff]  ;;  %9904 = vst [vmem:[#allocation148_spill] sm:$0xff] %v7471_v39 }
 0x4c4   :  { %v2457_v30 = vsel %vm2454_vm0, %v2456_v56, %v2452_v52  ;;  %2717 = vmatpush.msra.mxu0 %v7345_v41  ;;  %2737 = vmatpush.msra.mxu1 %v7348_v42  ;;  %v7465_v40 = vld [vmem:[#allocation3 + $0xe0] sm:$0xff]  ;;  %9903 = vst [vmem:[#allocation147_spill] sm:$0xff] %v7468_v60  ;;  %v7483_v52 = vld [vmem:[#allocation3 + $0xd0] sm:$0xff] }
 0x4c5   :  { %v2482_v36 = vmul.f32 %v2480_v10, %v2457_v30  ;;  %v2467_v44 = vmul.f32 %v7339_v24, %v2466_v6  ;;  %2757 = vmatpush.msrb.mxu2 %v7352_v46  ;;  %2777 = vmatpush.msrb.mxu3 %v7355_v37  ;;  %v7474_v10 = vld [vmem:[#allocation3 + $0xf8] sm:$0xff]  ;;  %v7477_v56 = vld [vmem:[#allocation3 + $0xc0] sm:$0xff]  ;;  %9907 = vst [vmem:[#allocation17_spill] sm:$0xff] %v7480_v48  ;;  %v7492_v30 = vld [vmem:[#allocation3 + $0xa8] sm:$0xff] }
 0x4c6   :  { %2718 = vmatpush.msra.mxu0 %v7358_v18  ;;  %2738 = vmatpush.msra.mxu1 %v7361_v31  ;;  %9905 = vst [vmem:[#allocation151_spill] sm:$0xff] %v7474_v10  ;;  %v7489_v6 = vld [vmem:[#allocation3 + $0xa0] sm:$0xff] }
 0x4c7   :  { %v7364_v34 = vadd.f32 %v2483_v62, %v2482_v36  ;;  %2758 = vmatpush.msrb.mxu2 %v7366_v55  ;;  %2778 = vmatpush.msrb.mxu3 %v7369_v29  ;;  %v2468_v58 = vadd.f32 %v7339_v24, %v2467_v44  ;;  %9906 = vst [vmem:[#allocation12_spill] sm:$0xff] %v7477_v56  ;;  %v7486_v62 = vld [vmem:[#allocation3 + $0xd8] sm:$0xff]  ;;  %v7495_v36 = vld [vmem:[#allocation3 + $0xb0] sm:$0xff] }
 0x4c8   :  { %2719 = vmatpush.msra.mxu0 %v7374_v59  ;;  %2739 = vmatpush.msra.mxu1 %v7377_v61  ;;  %9908 = vst [vmem:[#allocation18_spill] sm:$0xff] %v7483_v52  ;;  %v7498_v44 = vld [vmem:[#allocation3 + $0xb8] sm:$0xff] }
 0x4c9   :  { %3786 = vtanh.f32 %v7364_v34  ;;  %2759 = vmatpush.msrb.mxu2 %v7382_v13  ;;  %2779 = vmatpush.msrb.mxu3 %v7385_v14  ;;  %v2472_v15 = vsel %vm7398_vm3, %v7339_v24, %v2468_v58  ;;  %v7449_v24 = vld [vmem:[#allocation3 + $0x100] sm:$0xff]  ;;  %9909 = vst [vmem:[#allocation15_spill] sm:$0xff] %v7486_v62 }
 0x4ca   :  { %2720 = vmatpush.msra.mxu0 %v7390_v54  ;;  %2740 = vmatpush.msra.mxu1 %v7393_v17  ;;  %v2477_v2 = vsel %vm2474_vm4, %v2476_v57, %v2472_v15  ;;  %9910 = vst [vmem:[#allocation16_spill] sm:$0xff] %v7489_v6  ;;  %v7501_v58 = vld [vmem:[#allocation3 + $0x80] sm:$0xff]  ;;  %v7516_v57 = vld [vmem:[#allocation3 + $0x68] sm:$0xff] }
 0x4cb   :  { %2760 = vmatpush.msrb.mxu2 %v7402_v19  ;;  %2780 = vmatpush.msrb.mxu3 %v7405_v45  ;;  %9911 = vst [vmem:[#allocation20_spill] sm:$0xff] %v7492_v30  ;;  %v7513_v15 = vld [vmem:[#allocation3 + $0x60] sm:$0xff] }
 0x4cc   :  { %2721 = vmatpush.msra.mxu0 %v7411_v11  ;;  %2741 = vmatpush.msra.mxu1 %v7414_v22  ;;  %9912 = vst [vmem:[#allocation21_spill] sm:$0xff] %v7495_v36 }
 0x4cd   :  { %2761 = vmatpush.msrb.mxu2 %v7417_v47  ;;  %2781 = vmatpush.msrb.mxu3 %v7420_v25  ;;  %9913 = vst [vmem:[#allocation19_spill] sm:$0xff] %v7498_v44 }
 0x4ce   :  { %2722 = vmatpush.msra.mxu0 %v7423_v1  ;;  %2742 = vmatpush.msra.mxu1 %v7426_v0  ;;  %9914 = vst [vmem:[#allocation22_spill] sm:$0xff] %v7501_v58 }
 0x4cf   :  { %v3787_v26 = vpop.eup %3786  ;;  %2762 = vmatpush.msrb.mxu2 %v7429_v32  ;;  %2782 = vmatpush.msrb.mxu3 %v7432_v28  ;;  %9918 = vst [vmem:[#allocation26_spill] sm:$0xff] %v7513_v15 }
 0x4d0   :  { %v2486_v63 = vmul.f32 %v3787_v26, %v2477_v2  ;;  %2723 = vmatpush.msra.mxu0 %v7435_v38  ;;  %2743 = vmatpush.msra.mxu1 %v7438_v3  ;;  %9919 = vst [vmem:[#allocation27_spill] sm:$0xff] %v7516_v57  ;;  %v7519_v26 = vld [vmem:[#allocation3 + $0x70] sm:$0xff]  ;;  %v7522_v2 = vld [vmem:[#allocation3 + $0x78] sm:$0xff] }
 0x4d1   :  { %2763 = vmatpush.msrb.mxu2 %v7441_v35  ;;  %2783 = vmatpush.msrb.mxu3 %v7444_v4  ;;  %9920 = vst [vmem:[#allocation28_spill] sm:$0xff] %v7519_v26 }
 0x4d2   :  { %v7447_v43 = vrot.slane %v2486_v63, 2  ;;  %2724 = vmatpush.msra.mxu0 %v7449_v24  ;;  %2744 = vmatpush.msra.mxu1 %v7452_v12  ;;  %9921 = vst [vmem:[#allocation29_spill] sm:$0xff] %v7522_v2  ;;  %v7525_v63 = vld [vmem:[#allocation3 + $0x40] sm:$0xff] }
 0x4d3   :  { %2764 = vmatpush.msrb.mxu2 %v7455_v33  ;;  %2784 = vmatpush.msrb.mxu3 %v7458_v7  ;;  %9922 = vst [vmem:[#allocation30_spill] sm:$0xff] %v7525_v63 }
 0x4d4   :  { %2586 = vmatmul.f32.vlgmr.msrb.gmra.mxu0 %v7447_v43  ;;  %2606 = vmatmul.f32.vlgmr.msrb.gmra.mxu1 %v7447_v43 }
 0x4d5   :  { %2626 = vmatmul.f32.vlgmr.msra.gmra.mxu2 %v7447_v43  ;;  %2646 = vmatmul.f32.vlgmr.msra.gmra.mxu3 %v7447_v43 }
 0x4d6   :  { %2725 = vmatpush.msra.mxu0 %v7465_v40  ;;  %2745 = vmatpush.msra.mxu1 %v7468_v60 }
 0x4d7   :  { %2765 = vmatpush.msrb.mxu2 %v7471_v39  ;;  %2785 = vmatpush.msrb.mxu3 %v7474_v10 }
 0x4d8   :  { %2726 = vmatpush.msra.mxu0 %v7477_v56  ;;  %2746 = vmatpush.msra.mxu1 %v7480_v48 }
 0x4d9   :  { %2766 = vmatpush.msrb.mxu2 %v7483_v52  ;;  %2786 = vmatpush.msrb.mxu3 %v7486_v62 }
 0x4da   :  { %2727 = vmatpush.msra.mxu0 %v7489_v6  ;;  %2747 = vmatpush.msra.mxu1 %v7492_v30 }
 0x4db   :  { %2767 = vmatpush.msrb.mxu2 %v7495_v36  ;;  %2787 = vmatpush.msrb.mxu3 %v7498_v44 }
 0x4dc   :  { %2728 = vmatpush.msra.mxu0 %v7501_v58  ;;  %2748 = vmatpush.msra.mxu1 %v7504_v9 }
 0x4dd   :  { %2768 = vmatpush.msrb.mxu2 %v7507_v27  ;;  %2788 = vmatpush.msrb.mxu3 %v7510_v51  ;;  %v7528_v51 = vld [vmem:[#allocation3 + $0x48] sm:$0xff] }
 0x4de   :  { %2729 = vmatpush.msra.mxu0 %v7513_v15  ;;  %2749 = vmatpush.msra.mxu1 %v7516_v57  ;;  %9923 = vst [vmem:[#allocation31_spill] sm:$0xff] %v7528_v51  ;;  %v7531_v15 = vld [vmem:[#allocation3 + $0x50] sm:$0xff]  ;;  %v7534_v57 = vld [vmem:[#allocation3 + $0x58] sm:$0xff] }
 0x4df   :  { %2769 = vmatpush.msrb.mxu2 %v7519_v26  ;;  %2789 = vmatpush.msrb.mxu3 %v7522_v2  ;;  %9924 = vst [vmem:[#allocation32_spill] sm:$0xff] %v7531_v15  ;;  %v7537_v26 = vld [vmem:[#allocation3 + $0x20] sm:$0xff]  ;;  %v7540_v2 = vld [vmem:[#allocation3 + $0x28] sm:$0xff] }
 0x4e0   :  { %2730 = vmatpush.msra.mxu0 %v7525_v63  ;;  %2750 = vmatpush.msra.mxu1 %v7528_v51  ;;  %9925 = vst [vmem:[#allocation33_spill] sm:$0xff] %v7534_v57  ;;  %v7543_v63 = vld [vmem:[#allocation3 + $0x30] sm:$0xff]  ;;  %v7546_v51 = vld [vmem:[#allocation3 + $0x38] sm:$0xff] }
 0x4e1   :  { %2770 = vmatpush.msrb.mxu2 %v7531_v15  ;;  %2790 = vmatpush.msrb.mxu3 %v7534_v57  ;;  %9926 = vst [vmem:[#allocation34_spill] sm:$0xff] %v7537_v26  ;;  %v7549_v15 = vld [vmem:[#allocation3] sm:$0xff]  ;;  %v7552_v57 = vld [vmem:[#allocation3 + $0x8] sm:$0xff] }
 0x4e2   :  { %2731 = vmatpush.msra.mxu0 %v7537_v26  ;;  %9927 = vst [vmem:[#allocation35_spill] sm:$0xff] %v7540_v2  ;;  %2751 = vmatpush.msra.mxu1 %v7540_v2  ;;  %v7555_v26 = vld [vmem:[#allocation3 + $0x10] sm:$0xff]  ;;  %v7558_v2 = vld [vmem:[#allocation3 + $0x18] sm:$0xff] }
 0x4e3   :  { %9928 = vst [vmem:[#allocation36_spill] sm:$0xff] %v7543_v63  ;;  %2771 = vmatpush.msrb.mxu2 %v7543_v63  ;;  %2791 = vmatpush.msrb.mxu3 %v7546_v51 }
 0x4e4   :  { %9929 = vst [vmem:[#allocation37_spill] sm:$0xff] %v7546_v51  ;;  %2732 = vmatpush.msra.mxu0 %v7549_v15  ;;  %2752 = vmatpush.msra.mxu1 %v7552_v57  ;;  %v7577_v51 = vld [vmem:[#allocation7 + $0x1c0] sm:$0xff] }
 0x4e5   :  { %9930 = vst [vmem:[#allocation38_spill] sm:$0xff] %v7549_v15  ;;  %2772 = vmatpush.msrb.mxu2 %v7555_v26  ;;  %2792 = vmatpush.msrb.mxu3 %v7558_v2  ;;  %v7565_v15 = vld [vmem:[#allocation7 + $0x1e0] sm:$0xff] }
 0x4e6   :  { %9931 = vst [vmem:[#allocation39_spill] sm:$0xff] %v7552_v57  ;;  %2733 = vmatmul.f32.vlgmr.msra.gmra.mxu0 %v7447_v43  ;;  %2753 = vmatmul.f32.vlgmr.msra.gmra.mxu1 %v7447_v43  ;;  %v7568_v57 = vld [vmem:[#allocation7 + $0x1e8] sm:$0xff] }
 0x4e7   :  { %9932 = vst [vmem:[#allocation40_spill] sm:$0xff] %v7555_v26  ;;  %2773 = vmatmul.f32.vlgmr.msrb.gmra.mxu2 %v7447_v43  ;;  %2793 = vmatmul.f32.vlgmr.msrb.gmra.mxu3 %v7447_v43  ;;  %v7571_v26 = vld [vmem:[#allocation7 + $0x1f0] sm:$0xff]  ;;  %v7580_v43 = vld [vmem:[#allocation7 + $0x1c8] sm:$0xff] }
 0x4e8   :  { %9933 = vst [vmem:[#allocation41_spill] sm:$0xff] %v7558_v2  ;;  %2879 = vmatpush.msrb.mxu0 %v7565_v15  ;;  %2899 = vmatpush.msrb.mxu1 %v7568_v57  ;;  %v7574_v2 = vld [vmem:[#allocation7 + $0x1f8] sm:$0xff] }
 0x4e9   :  { %9934 = vst [vmem:[#allocation42_spill] sm:$0xff] %v7565_v15  ;;  %2919 = vmatpush.msra.mxu2 %v7571_v26  ;;  %2939 = vmatpush.msra.mxu3 %v7574_v2  ;;  %v7583_v15 = vld [vmem:[#allocation7 + $0x1d0] sm:$0xff] }
 0x4ea   :  { %9935 = vst [vmem:[#allocation43_spill] sm:$0xff] %v7568_v57  ;;  %2880 = vmatpush.msrb.mxu0 %v7577_v51  ;;  %2900 = vmatpush.msrb.mxu1 %v7580_v43  ;;  %v7586_v57 = vld [vmem:[#allocation7 + $0x1d8] sm:$0xff] }
 0x4eb   :  { %9936 = vst [vmem:[#allocation44_spill] sm:$0xff] %v7571_v26  ;;  %2920 = vmatpush.msra.mxu2 %v7583_v15  ;;  %2940 = vmatpush.msra.mxu3 %v7586_v57  ;;  %v7589_v26 = vld [vmem:[#allocation7 + $0x1a0] sm:$0xff] }
 0x4ec   :  { %9937 = vst [vmem:[#allocation45_spill] sm:$0xff] %v7574_v2  ;;  %2881 = vmatpush.msrb.mxu0 %v7589_v26  ;;  %v7592_v2 = vld [vmem:[#allocation7 + $0x1a8] sm:$0xff] }
 0x4ed   :  { %9938 = vst [vmem:[#allocation46_spill] sm:$0xff] %v7577_v51  ;;  %2901 = vmatpush.msrb.mxu1 %v7592_v2  ;;  %v7595_v51 = vld [vmem:[#allocation7 + $0x1b0] sm:$0xff] }
 0x4ee   :  { %9939 = vst [vmem:[#allocation47_spill] sm:$0xff] %v7580_v43  ;;  %2921 = vmatpush.msra.mxu2 %v7595_v51  ;;  %v7598_v43 = vld [vmem:[#allocation7 + $0x1b8] sm:$0xff] }
 0x4ef   :  { %9940 = vst [vmem:[#allocation48_spill] sm:$0xff] %v7583_v15  ;;  %2941 = vmatpush.msra.mxu3 %v7598_v43  ;;  %v7601_v15 = vld [vmem:[#allocation7 + $0x180] sm:$0xff] }
 0x4f0   :  { %9941 = vst [vmem:[#allocation49_spill] sm:$0xff] %v7586_v57  ;;  %2882 = vmatpush.msrb.mxu0 %v7601_v15  ;;  %v7604_v57 = vld [vmem:[#allocation7 + $0x188] sm:$0xff] }
 0x4f1   :  { %9942 = vst [vmem:[#allocation50_spill] sm:$0xff] %v7589_v26  ;;  %2902 = vmatpush.msrb.mxu1 %v7604_v57  ;;  %v7607_v26 = vld [vmem:[#allocation7 + $0x190] sm:$0xff] }
 0x4f2   :  { %9943 = vst [vmem:[#allocation51_spill] sm:$0xff] %v7592_v2  ;;  %2922 = vmatpush.msra.mxu2 %v7607_v26  ;;  %v7610_v2 = vld [vmem:[#allocation7 + $0x198] sm:$0xff] }
 0x4f3   :  { %9944 = vst [vmem:[#allocation52_spill] sm:$0xff] %v7595_v51  ;;  %2942 = vmatpush.msra.mxu3 %v7610_v2  ;;  %v7613_v51 = vld [vmem:[#allocation7 + $0x160] sm:$0xff] }
 0x4f4   :  { %9945 = vst [vmem:[#allocation53_spill] sm:$0xff] %v7598_v43  ;;  %2883 = vmatpush.msrb.mxu0 %v7613_v51  ;;  %v7616_v43 = vld [vmem:[#allocation7 + $0x168] sm:$0xff] }
 0x4f5   :  { %9946 = vst [vmem:[#allocation54_spill] sm:$0xff] %v7601_v15  ;;  %2903 = vmatpush.msrb.mxu1 %v7616_v43  ;;  %v7619_v15 = vld [vmem:[#allocation7 + $0x170] sm:$0xff] }
 0x4f6   :  { %9947 = vst [vmem:[#allocation55_spill] sm:$0xff] %v7604_v57  ;;  %2923 = vmatpush.msra.mxu2 %v7619_v15  ;;  %v7622_v57 = vld [vmem:[#allocation7 + $0x178] sm:$0xff] }
 0x4f7   :  { %9948 = vst [vmem:[#allocation56_spill] sm:$0xff] %v7607_v26  ;;  %2943 = vmatpush.msra.mxu3 %v7622_v57  ;;  %v7625_v26 = vld [vmem:[#allocation7 + $0x140] sm:$0xff] }
 0x4f8   :  { %9949 = vst [vmem:[#allocation57_spill] sm:$0xff] %v7610_v2  ;;  %2884 = vmatpush.msrb.mxu0 %v7625_v26  ;;  %v7628_v2 = vld [vmem:[#allocation7 + $0x148] sm:$0xff] }
 0x4f9   :  { %9950 = vst [vmem:[#allocation58_spill] sm:$0xff] %v7613_v51  ;;  %2904 = vmatpush.msrb.mxu1 %v7628_v2  ;;  %v7631_v51 = vld [vmem:[#allocation7 + $0x150] sm:$0xff] }
 0x4fa   :  { %9951 = vst [vmem:[#allocation59_spill] sm:$0xff] %v7616_v43  ;;  %2924 = vmatpush.msra.mxu2 %v7631_v51  ;;  %v7634_v43 = vld [vmem:[#allocation7 + $0x158] sm:$0xff] }
 0x4fb   :  { %9952 = vst [vmem:[#allocation60_spill] sm:$0xff] %v7619_v15  ;;  %2944 = vmatpush.msra.mxu3 %v7634_v43  ;;  %v7637_v15 = vld [vmem:[#allocation7 + $0x120] sm:$0xff] }
 0x4fc   :  { %9953 = vst [vmem:[#allocation61_spill] sm:$0xff] %v7622_v57  ;;  %2885 = vmatpush.msrb.mxu0 %v7637_v15  ;;  %v7640_v57 = vld [vmem:[#allocation7 + $0x128] sm:$0xff] }
 0x4fd   :  { %9954 = vst [vmem:[#allocation62_spill] sm:$0xff] %v7625_v26  ;;  %2905 = vmatpush.msrb.mxu1 %v7640_v57  ;;  %v7643_v26 = vld [vmem:[#allocation7 + $0x130] sm:$0xff] }
 0x4fe   :  { %9955 = vst [vmem:[#allocation63_spill] sm:$0xff] %v7628_v2  ;;  %2925 = vmatpush.msra.mxu2 %v7643_v26  ;;  %v7646_v2 = vld [vmem:[#allocation7 + $0x138] sm:$0xff] }
 0x4ff   :  { %9956 = vst [vmem:[#allocation64_spill] sm:$0xff] %v7631_v51  ;;  %2945 = vmatpush.msra.mxu3 %v7646_v2  ;;  %v7649_v51 = vld [vmem:[#allocation7 + $0x100] sm:$0xff] }
 0x500   :  { %9957 = vst [vmem:[#allocation65_spill] sm:$0xff] %v7634_v43  ;;  %2886 = vmatpush.msrb.mxu0 %v7649_v51  ;;  %v7652_v43 = vld [vmem:[#allocation7 + $0x108] sm:$0xff] }
 0x501   :  { %9958 = vst [vmem:[#allocation66_spill] sm:$0xff] %v7637_v15  ;;  %2906 = vmatpush.msrb.mxu1 %v7652_v43  ;;  %v7655_v15 = vld [vmem:[#allocation7 + $0x110] sm:$0xff] }
 0x502   :  { %9959 = vst [vmem:[#allocation67_spill] sm:$0xff] %v7640_v57  ;;  %2926 = vmatpush.msra.mxu2 %v7655_v15  ;;  %v7658_v57 = vld [vmem:[#allocation7 + $0x118] sm:$0xff] }
 0x503   :  { %9960 = vst [vmem:[#allocation68_spill] sm:$0xff] %v7643_v26  ;;  %2946 = vmatpush.msra.mxu3 %v7658_v57  ;;  %v7661_v26 = vld [vmem:[#allocation7 + $0xe0] sm:$0xff] }
 0x504   :  { %9961 = vst [vmem:[#allocation69_spill] sm:$0xff] %v7646_v2  ;;  %2887 = vmatpush.msrb.mxu0 %v7661_v26  ;;  %v7664_v2 = vld [vmem:[#allocation7 + $0xe8] sm:$0xff] }
 0x505   :  { %9962 = vst [vmem:[#allocation70_spill] sm:$0xff] %v7649_v51  ;;  %2907 = vmatpush.msrb.mxu1 %v7664_v2  ;;  %v7667_v51 = vld [vmem:[#allocation7 + $0xf0] sm:$0xff] }
 0x506   :  { %9963 = vst [vmem:[#allocation71_spill] sm:$0xff] %v7652_v43  ;;  %2927 = vmatpush.msra.mxu2 %v7667_v51  ;;  %v7670_v43 = vld [vmem:[#allocation7 + $0xf8] sm:$0xff] }
 0x507   :  { %9964 = vst [vmem:[#allocation72_spill] sm:$0xff] %v7655_v15  ;;  %2947 = vmatpush.msra.mxu3 %v7670_v43  ;;  %v7673_v15 = vld [vmem:[#allocation7 + $0xc0] sm:$0xff] }
 0x508   :  { %9965 = vst [vmem:[#allocation73_spill] sm:$0xff] %v7658_v57  ;;  %2888 = vmatpush.msrb.mxu0 %v7673_v15  ;;  %v7676_v57 = vld [vmem:[#allocation7 + $0xc8] sm:$0xff] }
 0x509   :  { %9966 = vst [vmem:[#allocation74_spill] sm:$0xff] %v7661_v26  ;;  %2908 = vmatpush.msrb.mxu1 %v7676_v57  ;;  %v7679_v26 = vld [vmem:[#allocation7 + $0xd0] sm:$0xff] }
 0x50a   :  { %9967 = vst [vmem:[#allocation75_spill] sm:$0xff] %v7664_v2  ;;  %2928 = vmatpush.msra.mxu2 %v7679_v26  ;;  %v7682_v2 = vld [vmem:[#allocation7 + $0xd8] sm:$0xff] }
 0x50b   :  { %9968 = vst [vmem:[#allocation76_spill] sm:$0xff] %v7667_v51  ;;  %2948 = vmatpush.msra.mxu3 %v7682_v2  ;;  %v7685_v51 = vld [vmem:[#allocation7 + $0xa0] sm:$0xff] }
 0x50c   :  { %9969 = vst [vmem:[#allocation77_spill] sm:$0xff] %v7670_v43  ;;  %2889 = vmatpush.msrb.mxu0 %v7685_v51  ;;  %v7688_v43 = vld [vmem:[#allocation7 + $0xa8] sm:$0xff] }
 0x50d   :  { %9970 = vst [vmem:[#allocation78_spill] sm:$0xff] %v7673_v15  ;;  %2909 = vmatpush.msrb.mxu1 %v7688_v43  ;;  %v7691_v15 = vld [vmem:[#allocation7 + $0xb0] sm:$0xff] }
 0x50e   :  { %9971 = vst [vmem:[#allocation79_spill] sm:$0xff] %v7676_v57  ;;  %2929 = vmatpush.msra.mxu2 %v7691_v15  ;;  %v7694_v57 = vld [vmem:[#allocation7 + $0xb8] sm:$0xff] }
 0x50f   :  { %9972 = vst [vmem:[#allocation80_spill] sm:$0xff] %v7679_v26  ;;  %2949 = vmatpush.msra.mxu3 %v7694_v57  ;;  %v7697_v26 = vld [vmem:[#allocation7 + $0x80] sm:$0xff] }
 0x510   :  { %9973 = vst [vmem:[#allocation81_spill] sm:$0xff] %v7682_v2  ;;  %2890 = vmatpush.msrb.mxu0 %v7697_v26  ;;  %v7700_v2 = vld [vmem:[#allocation7 + $0x88] sm:$0xff] }
 0x511   :  { %9974 = vst [vmem:[#allocation82_spill] sm:$0xff] %v7685_v51  ;;  %2910 = vmatpush.msrb.mxu1 %v7700_v2  ;;  %v7703_v51 = vld [vmem:[#allocation7 + $0x90] sm:$0xff] }
 0x512   :  { %9975 = vst [vmem:[#allocation83_spill] sm:$0xff] %v7688_v43  ;;  %2930 = vmatpush.msra.mxu2 %v7703_v51  ;;  %v7706_v43 = vld [vmem:[#allocation7 + $0x98] sm:$0xff] }
 0x513   :  { %9976 = vst [vmem:[#allocation84_spill] sm:$0xff] %v7691_v15  ;;  %2950 = vmatpush.msra.mxu3 %v7706_v43  ;;  %v7709_v15 = vld [vmem:[#allocation7 + $0x60] sm:$0xff] }
 0x514   :  { %9977 = vst [vmem:[#allocation85_spill] sm:$0xff] %v7694_v57  ;;  %2891 = vmatpush.msrb.mxu0 %v7709_v15  ;;  %v7712_v57 = vld [vmem:[#allocation7 + $0x68] sm:$0xff] }
 0x515   :  { %9978 = vst [vmem:[#allocation86_spill] sm:$0xff] %v7697_v26  ;;  %2911 = vmatpush.msrb.mxu1 %v7712_v57  ;;  %v7715_v26 = vld [vmem:[#allocation7 + $0x70] sm:$0xff] }
 0x516   :  { %9979 = vst [vmem:[#allocation87_spill] sm:$0xff] %v7700_v2  ;;  %2931 = vmatpush.msra.mxu2 %v7715_v26  ;;  %v7718_v2 = vld [vmem:[#allocation7 + $0x78] sm:$0xff] }
 0x517   :  { %9980 = vst [vmem:[#allocation88_spill] sm:$0xff] %v7703_v51  ;;  %2951 = vmatpush.msra.mxu3 %v7718_v2  ;;  %v7721_v51 = vld [vmem:[#allocation7 + $0x40] sm:$0xff] }
 0x518   :  { %9981 = vst [vmem:[#allocation89_spill] sm:$0xff] %v7706_v43  ;;  %2892 = vmatpush.msrb.mxu0 %v7721_v51  ;;  %v7724_v43 = vld [vmem:[#allocation7 + $0x48] sm:$0xff] }
 0x519   :  { %9982 = vst [vmem:[#allocation90_spill] sm:$0xff] %v7709_v15  ;;  %2912 = vmatpush.msrb.mxu1 %v7724_v43  ;;  %v7727_v15 = vld [vmem:[#allocation7 + $0x50] sm:$0xff] }
 0x51a   :  { %9983 = vst [vmem:[#allocation91_spill] sm:$0xff] %v7712_v57  ;;  %2932 = vmatpush.msra.mxu2 %v7727_v15  ;;  %v7730_v57 = vld [vmem:[#allocation7 + $0x58] sm:$0xff] }
 0x51b   :  { %9984 = vst [vmem:[#allocation92_spill] sm:$0xff] %v7715_v26  ;;  %2952 = vmatpush.msra.mxu3 %v7730_v57  ;;  %v7733_v26 = vld [vmem:[#allocation7 + $0x20] sm:$0xff] }
 0x51c   :  { %9985 = vst [vmem:[#allocation93_spill] sm:$0xff] %v7718_v2  ;;  %2893 = vmatpush.msrb.mxu0 %v7733_v26  ;;  %v7736_v2 = vld [vmem:[#allocation7 + $0x28] sm:$0xff] }
 0x51d   :  { %9986 = vst [vmem:[#allocation94_spill] sm:$0xff] %v7721_v51  ;;  %2913 = vmatpush.msrb.mxu1 %v7736_v2  ;;  %v7739_v51 = vld [vmem:[#allocation7 + $0x30] sm:$0xff] }
 0x51e   :  { %9987 = vst [vmem:[#allocation95_spill] sm:$0xff] %v7724_v43  ;;  %2933 = vmatpush.msra.mxu2 %v7739_v51  ;;  %v7742_v43 = vld [vmem:[#allocation7 + $0x38] sm:$0xff] }
 0x51f   :  { %9988 = vst [vmem:[#allocation96_spill] sm:$0xff] %v7727_v15  ;;  %2953 = vmatpush.msra.mxu3 %v7742_v43  ;;  %v7745_v15 = vld [vmem:[#allocation7] sm:$0xff] }
 0x520   :  { %9989 = vst [vmem:[#allocation97_spill] sm:$0xff] %v7730_v57  ;;  %2894 = vmatpush.msrb.mxu0 %v7745_v15  ;;  %v7748_v57 = vld [vmem:[#allocation7 + $0x8] sm:$0xff] }
 0x521   :  { %9990 = vst [vmem:[#allocation98_spill] sm:$0xff] %v7733_v26  ;;  %2914 = vmatpush.msrb.mxu1 %v7748_v57  ;;  %v7751_v26 = vld [vmem:[#allocation7 + $0x10] sm:$0xff] }
 0x522   :  { %9991 = vst [vmem:[#allocation99_spill] sm:$0xff] %v7736_v2  ;;  %2934 = vmatpush.msra.mxu2 %v7751_v26  ;;  %v7754_v2 = vld [vmem:[#allocation7 + $0x18] sm:$0xff] }
 0x523   :  { %9992 = vst [vmem:[#allocation100_spill] sm:$0xff] %v7739_v51  ;;  %2954 = vmatpush.msra.mxu3 %v7754_v2  ;;  %v7757_v51 = vld [vmem:[#allocation5 + $0x1e0] sm:$0xff] }
 0x524   :  { %9993 = vst [vmem:[#allocation101_spill] sm:$0xff] %v7742_v43  ;;  %2962 = vmatpush.msra.mxu0 %v7757_v51  ;;  %v7760_v43 = vld [vmem:[#allocation5 + $0x1e8] sm:$0xff] }
 0x525   :  { %9994 = vst [vmem:[#allocation102_spill] sm:$0xff] %v7745_v15  ;;  %2982 = vmatpush.msra.mxu1 %v7760_v43  ;;  %v7763_v15 = vld [vmem:[#allocation5 + $0x1f0] sm:$0xff] }
 0x526   :  { %9995 = vst [vmem:[#allocation103_spill] sm:$0xff] %v7748_v57  ;;  %3002 = vmatpush.msrb.mxu2 %v7763_v15  ;;  %v7766_v57 = vld [vmem:[#allocation5 + $0x1f8] sm:$0xff] }
 0x527   :  { %9996 = vst [vmem:[#allocation104_spill] sm:$0xff] %v7751_v26  ;;  %3022 = vmatpush.msrb.mxu3 %v7766_v57  ;;  %v7769_v26 = vld [vmem:[#allocation5 + $0x1c0] sm:$0xff] }
 0x528   :  { %9997 = vst [vmem:[#allocation105_spill] sm:$0xff] %v7754_v2  ;;  %2963 = vmatpush.msra.mxu0 %v7769_v26  ;;  %v7772_v2 = vld [vmem:[#allocation5 + $0x1c8] sm:$0xff] }
 0x529   :  { %9998 = vst [vmem:[#allocation106_spill] sm:$0xff] %v7757_v51  ;;  %2983 = vmatpush.msra.mxu1 %v7772_v2  ;;  %v7775_v51 = vld [vmem:[#allocation5 + $0x1d0] sm:$0xff] }
 0x52a   :  { %9999 = vst [vmem:[#allocation107_spill] sm:$0xff] %v7760_v43  ;;  %3003 = vmatpush.msrb.mxu2 %v7775_v51  ;;  %v7778_v43 = vld [vmem:[#allocation5 + $0x1d8] sm:$0xff] }
 0x52b   :  { %10000 = vst [vmem:[#allocation108_spill] sm:$0xff] %v7763_v15  ;;  %3023 = vmatpush.msrb.mxu3 %v7778_v43  ;;  %v7781_v15 = vld [vmem:[#allocation5 + $0x1a0] sm:$0xff] }
 0x52c   :  { %10001 = vst [vmem:[#allocation109_spill] sm:$0xff] %v7766_v57  ;;  %2964 = vmatpush.msra.mxu0 %v7781_v15  ;;  %v7784_v57 = vld [vmem:[#allocation5 + $0x1a8] sm:$0xff] }
 0x52d   :  { %10002 = vst [vmem:[#allocation110_spill] sm:$0xff] %v7769_v26  ;;  %2984 = vmatpush.msra.mxu1 %v7784_v57  ;;  %v7787_v26 = vld [vmem:[#allocation5 + $0x1b0] sm:$0xff] }
 0x52e   :  { %10003 = vst [vmem:[#allocation111_spill] sm:$0xff] %v7772_v2  ;;  %3004 = vmatpush.msrb.mxu2 %v7787_v26  ;;  %v7790_v2 = vld [vmem:[#allocation5 + $0x1b8] sm:$0xff] }
 0x52f   :  { %10004 = vst [vmem:[#allocation112_spill] sm:$0xff] %v7775_v51  ;;  %3024 = vmatpush.msrb.mxu3 %v7790_v2  ;;  %v7793_v51 = vld [vmem:[#allocation5 + $0x180] sm:$0xff] }
 0x530   :  { %10005 = vst [vmem:[#allocation113_spill] sm:$0xff] %v7778_v43  ;;  %2965 = vmatpush.msra.mxu0 %v7793_v51  ;;  %v7796_v43 = vld [vmem:[#allocation5 + $0x188] sm:$0xff] }
 0x531   :  { %10006 = vst [vmem:[#allocation114_spill] sm:$0xff] %v7781_v15  ;;  %2985 = vmatpush.msra.mxu1 %v7796_v43  ;;  %v7799_v15 = vld [vmem:[#allocation5 + $0x190] sm:$0xff] }
 0x532   :  { %10007 = vst [vmem:[#allocation115_spill] sm:$0xff] %v7784_v57  ;;  %3005 = vmatpush.msrb.mxu2 %v7799_v15  ;;  %v7802_v57 = vld [vmem:[#allocation5 + $0x198] sm:$0xff] }
 0x533   :  { %10008 = vst [vmem:[#allocation116_spill] sm:$0xff] %v7787_v26  ;;  %3025 = vmatpush.msrb.mxu3 %v7802_v57  ;;  %v7805_v26 = vld [vmem:[#allocation5 + $0x160] sm:$0xff] }
 0x534   :  { %10009 = vst [vmem:[#allocation118_spill] sm:$0xff] %v7790_v2  ;;  %2966 = vmatpush.msra.mxu0 %v7805_v26  ;;  %v7808_v2 = vld [vmem:[#allocation5 + $0x168] sm:$0xff] }
 0x535   :  { %10010 = vst [vmem:[#allocation119_spill] sm:$0xff] %v7793_v51  ;;  %2986 = vmatpush.msra.mxu1 %v7808_v2  ;;  %v7811_v51 = vld [vmem:[#allocation5 + $0x170] sm:$0xff] }
 0x536   :  { %10011 = vst [vmem:[#allocation120_spill] sm:$0xff] %v7796_v43  ;;  %3006 = vmatpush.msrb.mxu2 %v7811_v51  ;;  %v7814_v43 = vld [vmem:[#allocation5 + $0x178] sm:$0xff] }
 0x537   :  { %10012 = vst [vmem:[#allocation121_spill] sm:$0xff] %v7799_v15  ;;  %3026 = vmatpush.msrb.mxu3 %v7814_v43  ;;  %v7817_v15 = vld [vmem:[#allocation5 + $0x140] sm:$0xff] }
 0x538   :  { %10013 = vst [vmem:[#allocation122_spill] sm:$0xff] %v7802_v57  ;;  %2967 = vmatpush.msra.mxu0 %v7817_v15  ;;  %v7820_v57 = vld [vmem:[#allocation5 + $0x148] sm:$0xff] }
 0x539   :  { %10014 = vst [vmem:[#allocation123_spill] sm:$0xff] %v7805_v26  ;;  %2987 = vmatpush.msra.mxu1 %v7820_v57  ;;  %v7823_v26 = vld [vmem:[#allocation5 + $0x150] sm:$0xff] }
 0x53a   :  { %10015 = vst [vmem:[#allocation124_spill] sm:$0xff] %v7808_v2  ;;  %3007 = vmatpush.msrb.mxu2 %v7823_v26  ;;  %v7826_v2 = vld [vmem:[#allocation5 + $0x158] sm:$0xff] }
 0x53b   :  { %10016 = vst [vmem:[#allocation125_spill] sm:$0xff] %v7811_v51  ;;  %3027 = vmatpush.msrb.mxu3 %v7826_v2  ;;  %v7829_v51 = vld [vmem:[#allocation5 + $0x120] sm:$0xff] }
 0x53c   :  { %10017 = vst [vmem:[#allocation126_spill] sm:$0xff] %v7814_v43  ;;  %2968 = vmatpush.msra.mxu0 %v7829_v51  ;;  %v7832_v43 = vld [vmem:[#allocation5 + $0x128] sm:$0xff] }
 0x53d   :  { %10018 = vst [vmem:[#allocation127_spill] sm:$0xff] %v7817_v15  ;;  %2988 = vmatpush.msra.mxu1 %v7832_v43  ;;  %v7835_v15 = vld [vmem:[#allocation5 + $0x130] sm:$0xff] }
 0x53e   :  { %10019 = vst [vmem:[#allocation128_spill] sm:$0xff] %v7820_v57  ;;  %3008 = vmatpush.msrb.mxu2 %v7835_v15  ;;  %v7838_v57 = vld [vmem:[#allocation5 + $0x138] sm:$0xff] }
 0x53f   :  { %10020 = vst [vmem:[#allocation129_spill] sm:$0xff] %v7823_v26  ;;  %3028 = vmatpush.msrb.mxu3 %v7838_v57  ;;  %v7841_v26 = vld [vmem:[#allocation5 + $0x100] sm:$0xff]  ;;  %v2524_v63 = vpop.f32.mrf.mxu1 }
 0x540   :  { %10021 = vst [vmem:[#allocation130_spill] sm:$0xff] %v7826_v2  ;;  %2969 = vmatpush.msra.mxu0 %v7841_v26  ;;  %v7844_v2 = vld [vmem:[#allocation5 + $0x108] sm:$0xff] }
 0x541   :  { %10022 = vst [vmem:[#allocation131_spill] sm:$0xff] %v7829_v51  ;;  %2989 = vmatpush.msra.mxu1 %v7844_v2  ;;  %v7847_v51 = vld [vmem:[#allocation5 + $0x110] sm:$0xff] }
 0x542   :  { %10023 = vst [vmem:[#allocation132_spill] sm:$0xff] %v7832_v43  ;;  %3009 = vmatpush.msrb.mxu2 %v7847_v51  ;;  %v7850_v43 = vld [vmem:[#allocation5 + $0x118] sm:$0xff] }
 0x543   :  { %10024 = vst [vmem:[#allocation133_spill] sm:$0xff] %v7835_v15  ;;  %3029 = vmatpush.msrb.mxu3 %v7850_v43  ;;  %v7853_v15 = vld [vmem:[#allocation5 + $0xe0] sm:$0xff] }
 0x544   :  { %10025 = vst [vmem:[#allocation134_spill] sm:$0xff] %v7838_v57  ;;  %2970 = vmatpush.msra.mxu0 %v7853_v15  ;;  %v7856_v57 = vld [vmem:[#allocation5 + $0xe8] sm:$0xff] }
 0x545   :  { %10026 = vst [vmem:[#allocation135_spill] sm:$0xff] %v7841_v26  ;;  %2990 = vmatpush.msra.mxu1 %v7856_v57  ;;  %v7859_v26 = vld [vmem:[#allocation5 + $0xf0] sm:$0xff] }
 0x546   :  { %10027 = vst [vmem:[#allocation136_spill] sm:$0xff] %v7844_v2  ;;  %3010 = vmatpush.msrb.mxu2 %v7859_v26  ;;  %v7862_v2 = vld [vmem:[#allocation5 + $0xf8] sm:$0xff]  ;;  %v2564_v27 = vpop.f32.mrf.mxu3 }
 0x547   :  { %10028 = vst [vmem:[#allocation137_spill] sm:$0xff] %v7847_v51  ;;  %3030 = vmatpush.msrb.mxu3 %v7862_v2  ;;  %v7865_v51 = vld [vmem:[#allocation5 + $0xc0] sm:$0xff] }
 0x548   :  { %10029 = vst [vmem:[#allocation138_spill] sm:$0xff] %v7850_v43  ;;  %2971 = vmatpush.msra.mxu0 %v7865_v51  ;;  %v7868_v43 = vld [vmem:[#allocation5 + $0xc8] sm:$0xff] }
 0x549   :  { %10030 = vst [vmem:[#allocation139_spill] sm:$0xff] %v7853_v15  ;;  %2991 = vmatpush.msra.mxu1 %v7868_v43  ;;  %v7871_v15 = vld [vmem:[#allocation5 + $0xd0] sm:$0xff] }
 0x54a   :  { %10031 = vst [vmem:[#allocation140_spill] sm:$0xff] %v7856_v57  ;;  %3011 = vmatpush.msrb.mxu2 %v7871_v15  ;;  %v7874_v57 = vld [vmem:[#allocation5 + $0xd8] sm:$0xff] }
 0x54b   :  { %10032 = vst [vmem:[#allocation141_spill] sm:$0xff] %v7859_v26  ;;  %3031 = vmatpush.msrb.mxu3 %v7874_v57  ;;  %v7877_v26 = vld [vmem:[#allocation5 + $0xa0] sm:$0xff] }
 0x54c   :  { %10033 = vst [vmem:[#allocation142_spill] sm:$0xff] %v7862_v2  ;;  %2972 = vmatpush.msra.mxu0 %v7877_v26  ;;  %v7880_v2 = vld [vmem:[#allocation5 + $0xa8] sm:$0xff] }
 0x54d   :  { %10034 = vst [vmem:[#allocation143_spill] sm:$0xff] %v7865_v51  ;;  %2992 = vmatpush.msra.mxu1 %v7880_v2  ;;  %v7883_v51 = vld [vmem:[#allocation5 + $0xb0] sm:$0xff] }
 0x54e   :  { %10035 = vst [vmem:[#allocation145_spill] sm:$0xff] %v7868_v43  ;;  %3012 = vmatpush.msrb.mxu2 %v7883_v51  ;;  %v7886_v43 = vld [vmem:[#allocation5 + $0xb8] sm:$0xff] }
 0x54f   :  { %10036 = vst [vmem:[#allocation146_spill] sm:$0xff] %v7871_v15  ;;  %3032 = vmatpush.msrb.mxu3 %v7886_v43  ;;  %v7889_v15 = vld [vmem:[#allocation5 + $0x80] sm:$0xff] }
 0x550   :  { %10037 = vst [vmem:[#allocation152_spill] sm:$0xff] %v7874_v57  ;;  %2973 = vmatpush.msra.mxu0 %v7889_v15  ;;  %v7892_v57 = vld [vmem:[#allocation5 + $0x88] sm:$0xff] }
 0x551   :  { %10038 = vst [vmem:[#allocation153_spill] sm:$0xff] %v7877_v26  ;;  %2993 = vmatpush.msra.mxu1 %v7892_v57  ;;  %v7895_v26 = vld [vmem:[#allocation5 + $0x90] sm:$0xff]  ;;  %v2607_v9 = vpop.f32.mrf.mxu1 }
 0x552   :  { %10039 = vst [vmem:[#allocation154_spill] sm:$0xff] %v7880_v2  ;;  %3013 = vmatpush.msrb.mxu2 %v7895_v26  ;;  %v7898_v2 = vld [vmem:[#allocation5 + $0x98] sm:$0xff]  ;;  %v2608_v44 = vadd.f32 %v2607_v9, %v2524_v63 }
 0x553   :  { %10040 = vst [vmem:[#allocation155_spill] sm:$0xff] %v7883_v51  ;;  %3033 = vmatpush.msrb.mxu3 %v7898_v2  ;;  %v7901_v51 = vld [vmem:[#allocation5 + $0x60] sm:$0xff] }
 0x554   :  { %10041 = vst [vmem:[#allocation156_spill] sm:$0xff] %v7886_v43  ;;  %2974 = vmatpush.msra.mxu0 %v7901_v51  ;;  %v7904_v43 = vld [vmem:[#allocation5 + $0x68] sm:$0xff]  ;;  %v2651_v36 = vadd.f32 %v2608_v44, %v9894_v20 }
 0x555   :  { %10042 = vst [vmem:[#allocation157_spill] sm:$0xff] %v7889_v15  ;;  %2994 = vmatpush.msra.mxu1 %v7904_v43  ;;  %v7907_v15 = vld [vmem:[#allocation5 + $0x70] sm:$0xff] }
 0x556   :  { %10043 = vst [vmem:[#allocation158_spill] sm:$0xff] %v7892_v57  ;;  %3014 = vmatpush.msrb.mxu2 %v7907_v15  ;;  %v7910_v57 = vld [vmem:[#allocation5 + $0x78] sm:$0xff]  ;;  %v3591_v6 = vmul.f32 -1.442695, %v2651_v36 }
 0x557   :  { %10044 = vst [vmem:[#allocation159_spill] sm:$0xff] %v7895_v26  ;;  %3034 = vmatpush.msrb.mxu3 %v7910_v57  ;;  %v7913_v26 = vld [vmem:[#allocation5 + $0x40] sm:$0xff] }
 0x558   :  { %10045 = vst [vmem:[#allocation160_spill] sm:$0xff] %v7898_v2  ;;  %2975 = vmatpush.msra.mxu0 %v7913_v26  ;;  %v7916_v2 = vld [vmem:[#allocation5 + $0x48] sm:$0xff] }
 0x559   :  { %10046 = vst [vmem:[#allocation161_spill] sm:$0xff] %v7901_v51  ;;  %2995 = vmatpush.msra.mxu1 %v7916_v2  ;;  %v7919_v51 = vld [vmem:[#allocation5 + $0x50] sm:$0xff] }
 0x55a   :  { %10047 = vst [vmem:[#allocation162_spill] sm:$0xff] %v7904_v43  ;;  %3015 = vmatpush.msrb.mxu2 %v7919_v51  ;;  %v7922_v43 = vld [vmem:[#allocation5 + $0x58] sm:$0xff] }
 0x55b   :  { %10048 = vst [vmem:[#allocation163_spill] sm:$0xff] %v7907_v15  ;;  %3035 = vmatpush.msrb.mxu3 %v7922_v43  ;;  %v7925_v15 = vld [vmem:[#allocation5 + $0x20] sm:$0xff] }
 0x55c   :  { %10049 = vst [vmem:[#allocation164_spill] sm:$0xff] %v7910_v57  ;;  %2976 = vmatpush.msra.mxu0 %v7925_v15  ;;  %v7928_v57 = vld [vmem:[#allocation5 + $0x28] sm:$0xff] }
 0x55d   :  { %10050 = vst [vmem:[#allocation165_spill] sm:$0xff] %v7913_v26  ;;  %2996 = vmatpush.msra.mxu1 %v7928_v57  ;;  %v7931_v26 = vld [vmem:[#allocation5 + $0x30] sm:$0xff] }
 0x55e   :  { %10051 = vst [vmem:[#allocation166_spill] sm:$0xff] %v7916_v2  ;;  %3016 = vmatpush.msrb.mxu2 %v7931_v26  ;;  %v7934_v2 = vld [vmem:[#allocation5 + $0x38] sm:$0xff] }
 0x55f   :  { %10052 = vst [vmem:[#allocation167_spill] sm:$0xff] %v7919_v51  ;;  %3036 = vmatpush.msrb.mxu3 %v7934_v2  ;;  %v7937_v51 = vld [vmem:[#allocation5] sm:$0xff] }
 0x560   :  { %10053 = vst [vmem:[#allocation168_spill] sm:$0xff] %v7922_v43  ;;  %2977 = vmatpush.msra.mxu0 %v7937_v51  ;;  %v7940_v43 = vld [vmem:[#allocation5 + $0x8] sm:$0xff] }
 0x561   :  { %10054 = vst [vmem:[#allocation169_spill] sm:$0xff] %v7925_v15  ;;  %2997 = vmatpush.msra.mxu1 %v7940_v43  ;;  %v7943_v15 = vld [vmem:[#allocation5 + $0x10] sm:$0xff] }
 0x562   :  { %10055 = vst [vmem:[#allocation170_spill] sm:$0xff] %v7928_v57  ;;  %3017 = vmatpush.msrb.mxu2 %v7943_v15  ;;  %v7946_v57 = vld [vmem:[#allocation5 + $0x18] sm:$0xff] }
 0x563   :  { %10056 = vst [vmem:[#allocation171_spill] sm:$0xff] %v7931_v26  ;;  %3037 = vmatpush.msrb.mxu3 %v7946_v57  ;;  %v2504_v26 = vpop.f32.mrf.mxu0 }
 0x564   :  { %10057 = vst [vmem:[#allocation172_spill] sm:$0xff] %v7934_v2 }
 0x565   :  { %10058 = vst [vmem:[#allocation173_spill] sm:$0xff] %v7937_v51 }
 0x566   :  { %10059 = vst [vmem:[#allocation174_spill] sm:$0xff] %v7940_v43  ;;  %v2544_v43 = vpop.f32.mrf.mxu2 }
 0x567   :  { %10060 = vst [vmem:[#allocation175_spill] sm:$0xff] %v7943_v15  ;;  %v2647_v15 = vpop.f32.mrf.mxu3 }
 0x568   :  { %10061 = vst [vmem:[#allocation176_spill] sm:$0xff] %v7946_v57  ;;  %v2648_v62 = vadd.f32 %v2647_v15, %v2564_v27 }
 0x56a   :  { %v2653_v57 = vadd.f32 %v2648_v62, %v9895_v53 }
 0x56b   :  { %v2587_v2 = vpop.f32.mrf.mxu0 }
 0x56c   :  { %v2588_v58 = vadd.f32 %v2587_v2, %v2504_v26  ;;  %v3592_v52 = vmul.f32 -1.442695, %v2653_v57  ;;  %v2754_v26 = vpop.f32.mrf.mxu1 }
 0x56d   :  { %v2802_v36 = vrot.slane %v2754_v26, 4 }
 0x56e   :  { %v2650_v51 = vadd.f32 %v2588_v58, %v9893_v49  ;;  %v2627_v56 = vpop.f32.mrf.mxu2 }
 0x56f   :  { %v2628_v58 = vadd.f32 %v2627_v56, %v2544_v43  ;;  %v2810_v15 = vadd.f32 %v2802_v36, %v9897_v23 }
 0x570   :  { %v3590_v30 = vmul.f32 -1.442695, %v2650_v51 }
 0x571   :  { %v3594_v2 = vmul.f32 -1.442695, %v2810_v15 }
 0x572   :  { %3788 = vpow2.f32 %v3590_v30 }
 0x573   :  { %3790 = vpow2.f32 %v3591_v6  ;;  %v2734_v44 = vpop.f32.mrf.mxu0  ;;  %v2652_v6 = vadd.f32 %v2628_v58, %v9898_v5 }
 0x574   :  { %3792 = vpow2.f32 %v3592_v52  ;;  %v2801_v51 = vrot.slane %v2734_v44, 4  ;;  %v2794_v44 = vpop.f32.mrf.mxu3 }
 0x576   :  { %v2809_v62 = vadd.f32 %v2801_v51, %v9896_v8 }
 0x578   :  { %v3789_v48 = vpop.eup %3788 }
 0x579   :  { %v3791_v10 = vpop.eup %3790  ;;  %v2657_v39 = vadd.f32 1.0, %v3789_v48 }
 0x57a   :  { %v2676_v9 = vadd.f32 1.0, %v3791_v10  ;;  %v3793_v30 = vpop.eup %3792  ;;  %v3593_v10 = vmul.f32 -1.442695, %v2809_v62 }
 0x57b   :  { %3794 = vrcp.f32 %v2657_v39  ;;  %v7953_v27 = vadd.f32 1.0, %v3793_v30  ;;  %v2667_v43 = vand.u32 2147483647, %v2657_v39  ;;  %v2669_v26 = vand.u32 2147483648, %v2657_v39 }
 0x57c   :  { %3796 = vrcp.f32 %v2676_v9  ;;  %v2804_v30 = vrot.slane %v2794_v44, 4  ;;  %v2688_v51 = vand.u32 2147483648, %v2676_v9  ;;  %v2686_v36 = vand.u32 2147483647, %v2676_v9 }
 0x57d   :  { %3798 = vrcp.f32 %v7953_v27  ;;  %vm2682_vm7 = vweird.f32 %v2676_v9  ;;  %vm2663_vm8 = vweird.f32 %v2657_v39  ;;  %vm2668_vm11 = vcmp.eq.f32.partialorder %v2667_v43, 8.507059e+37 }
 0x57e   :  { %3800 = vtanh.f32 %v2652_v6  ;;  %v2812_v8 = vadd.f32 %v2804_v30, %v7053_v21  ;;  %vm2687_vm12 = vcmp.eq.f32.partialorder %v2686_v36, 8.507059e+37  ;;  %vm2702_vm14 = vweird.f32 %v7953_v27 }
 0x57f   :  { %3802 = vpow2.f32 %v3593_v10 }
 0x580   :  { %3804 = vpow2.f32 %v3594_v2  ;;  %v3595_v2 = vmul.f32 -1.442695, %v2812_v8 }
 0x581   :  { %v3795_v57 = vpop.eup %3794 }
 0x582   :  { %v3797_v48 = vpop.eup %3796  ;;  %v2659_v52 = vmul.f32 %v3795_v57, %v2657_v39  ;;  %vm2664_vm5 = vweird.f32 %v3795_v57  ;;  %3806 = vpow2.f32 %v3595_v2 }
 0x583   :  { %v2678_v56 = vmul.f32 %v3797_v48, %v2676_v9  ;;  %vm2683_vm6 = vweird.f32 %v3797_v48  ;;  %v3799_v62 = vpop.eup %3798  ;;  %vm2665_vm9 = vmor %vm2663_vm8, %vm2664_vm5 }
 0x584   :  { %v2660_v63 = vsub.f32 1.0, %v2659_v52  ;;  %v3801_v15 = vpop.eup %3800  ;;  %v2670_v52 = vor.u32 1.1754944e-38, %v2669_v26  ;;  %vm2684_vm10 = vmor %vm2682_vm7, %vm2683_vm6  ;;  %vm2703_vm13 = vweird.f32 %v3799_v62 }
 0x585   :  { %v2679_v58 = vsub.f32 1.0, %v2678_v56  ;;  %v2698_v56 = vmul.f32 %v3799_v62, %v7953_v27  ;;  %v3803_v44 = vpop.eup %3802  ;;  %vm2704_vm15 = vmor %vm2702_vm14, %vm2703_vm13 }
 0x586   :  { %v2661_v5 = vmul.f32 %v3795_v57, %v2660_v63  ;;  %v2689_v63 = vor.u32 1.1754944e-38, %v2688_v51  ;;  %v2816_v9 = vadd.f32 1.0, %v3803_v44 }
 0x587   :  { %v2680_v23 = vmul.f32 %v3797_v48, %v2679_v58  ;;  %v3805_v58 = vpop.eup %3804  ;;  %v2699_v21 = vsub.f32 1.0, %v2698_v56 }
 0x588   :  { %v2662_v6 = vadd.f32 %v3795_v57, %v2661_v5  ;;  %v2774_v5 = vpop.f32.mrf.mxu2  ;;  %v7960_v60 = vadd.f32 1.0, %v3805_v58  ;;  %3808 = vrcp.f32 %v2816_v9  ;;  %v3807_v26 = vpop.eup %3806  ;;  %v2826_v44 = vand.u32 2147483647, %v2816_v9 }
 0x589   :  { %v2681_v10 = vadd.f32 %v3797_v48, %v2680_v23  ;;  %v2803_v8 = vrot.slane %v2774_v5, 4  ;;  %v2700_v43 = vmul.f32 %v3799_v62, %v2699_v21  ;;  %v7971_v36 = vadd.f32 1.0, %v3807_v26 }
 0x58a   :  { %v2666_v53 = vsel %vm2665_vm9, %v3795_v57, %v2662_v6  ;;  %3810 = vrcp.f32 %v7960_v60  ;;  %v2847_v58 = vand.u32 2147483648, %v7960_v60  ;;  %vm2822_vm3 = vweird.f32 %v2816_v9 }
 0x58b   :  { %v2671_v20 = vsel %vm2668_vm11, %v2670_v52, %v2666_v53  ;;  %v2685_v30 = vsel %vm2684_vm10, %v3797_v48, %v2681_v10  ;;  %v2701_v53 = vadd.f32 %v3799_v62, %v2700_v43  ;;  %v2708_v48 = vand.u32 2147483648, %v7953_v27 }
 0x58c   :  { %v2690_v39 = vsel %vm2687_vm12, %v2689_v63, %v2685_v30  ;;  %v2713_v49 = vmul.f32 %v3801_v15, %v2671_v20  ;;  %v2811_v20 = vadd.f32 %v2803_v8, %v7071_v16  ;;  %v2828_v63 = vand.u32 2147483648, %v2816_v9 }
 0x58d   :  { %v2712_v23 = vmul.f32 %v2690_v39, %v7313_v50  ;;  %v2706_v50 = vand.u32 2147483647, %v7953_v27  ;;  %v2705_v21 = vsel %vm2704_vm15, %v3799_v62, %v2701_v53  ;;  %v2709_v52 = vor.u32 1.1754944e-38, %v2708_v48 }
 0x58e   :  { %v3809_v51 = vpop.eup %3808  ;;  %v2845_v62 = vand.u32 2147483647, %v7960_v60  ;;  %vm2841_vm4 = vweird.f32 %v7960_v60  ;;  %v2829_v43 = vor.u32 1.1754944e-38, %v2828_v63  ;;  %v2848_v26 = vor.u32 1.1754944e-38, %v2847_v58  ;;  %v10091_v63 = vld [vmem:[#allocation40_spill] sm:$0xff]  ;;  %v10093_v58 = vld [vmem:[#allocation42_spill] sm:$0xff] }
 0x58f   :  { %v7964_v57 = vadd.f32 %v2713_v49, %v2712_v23  ;;  %v2818_v6 = vmul.f32 %v3809_v51, %v2816_v9  ;;  %vm2707_vm0 = vcmp.eq.f32.partialorder %v2706_v50, 8.507059e+37  ;;  %vm2823_vm1 = vweird.f32 %v3809_v51 }
 0x590   :  { %v3811_v49 = vpop.eup %3810  ;;  %v2710_v27 = vsel %vm2707_vm0, %v2709_v52, %v2705_v21  ;;  %vm2824_vm5 = vmor %vm2822_vm3, %vm2823_vm1  ;;  %vm2827_vm7 = vcmp.eq.f32.partialorder %v2826_v44, 8.507059e+37  ;;  %v2872_v9 = vrot.slane %v7364_v34, 6  ;;  %vm2846_vm8 = vcmp.eq.f32.partialorder %v2845_v62, 8.507059e+37  ;;  %v10090_v44 = vld [vmem:[#allocation39_spill] sm:$0xff]  ;;  %v10097_v62 = vld [vmem:[#allocation46_spill] sm:$0xff] }
 0x591   :  { %3812 = vtanh.f32 %v7964_v57  ;;  %v2837_v15 = vmul.f32 %v3811_v49, %v7960_v60  ;;  %v2819_v10 = vsub.f32 1.0, %v2818_v6  ;;  %vm2842_vm2 = vweird.f32 %v3811_v49 }
 0x592   :  { %3814 = vrcp.f32 %v7971_v36  ;;  %vm2843_vm6 = vmor %vm2841_vm4, %vm2842_vm2  ;;  %vm2861_vm10 = vweird.f32 %v7971_v36 }
 0x593   :  { %3816 = vtanh.f32 %v2811_v20  ;;  %v2838_v2 = vsub.f32 1.0, %v2837_v15  ;;  %v2820_v30 = vmul.f32 %v3809_v51, %v2819_v10  ;;  %v10087_v10 = vld [vmem:[#allocation36_spill] sm:$0xff] }
 0x595   :  { %v2839_v39 = vmul.f32 %v3811_v49, %v2838_v2  ;;  %v2821_v23 = vadd.f32 %v3809_v51, %v2820_v30  ;;  %v10089_v2 = vld [vmem:[#allocation38_spill] sm:$0xff]  ;;  %v10094_v30 = vld [vmem:[#allocation43_spill] sm:$0xff] }
 0x597   :  { %v3813_v56 = vpop.eup %3812  ;;  %v2840_v53 = vadd.f32 %v3811_v49, %v2839_v39  ;;  %v2825_v20 = vsel %vm2824_vm5, %v3809_v51, %v2821_v23  ;;  %v10096_v39 = vld [vmem:[#allocation45_spill] sm:$0xff]  ;;  %v10098_v23 = vld [vmem:[#allocation47_spill] sm:$0xff] }
 0x598   :  { %v2716_v5 = vmul.f32 %v3813_v56, %v2710_v27  ;;  %v3815_v8 = vpop.eup %3814  ;;  %v2830_v6 = vsel %vm2827_vm7, %v2829_v43, %v2825_v20  ;;  %v10088_v56 = vld [vmem:[#allocation37_spill] sm:$0xff] }
 0x599   :  { %v3817_v48 = vpop.eup %3816  ;;  %v2857_v50 = vmul.f32 %v3815_v8, %v7971_v36  ;;  %v2844_v60 = vsel %vm2843_vm6, %v3811_v49, %v2840_v53  ;;  %vm2862_vm9 = vweird.f32 %v3815_v8  ;;  %v10086_v49 = vld [vmem:[#allocation35_spill] sm:$0xff]  ;;  %v10092_v27 = vld [vmem:[#allocation41_spill] sm:$0xff]  ;;  %v10101_v53 = vld [vmem:[#allocation50_spill] sm:$0xff] }
 0x59a   :  { %2895 = vmatmul.f32.vlgmr.msrb.gmra.mxu0 %v2716_v5  ;;  %2915 = vmatmul.f32.vlgmr.msrb.gmra.mxu1 %v2716_v5  ;;  %v2849_v21 = vsel %vm2846_vm8, %v2848_v26, %v2844_v60  ;;  %v2875_v15 = vmul.f32 %v3817_v48, %v2830_v6  ;;  %vm2863_vm11 = vmor %vm2861_vm10, %vm2862_vm9  ;;  %v10100_v43 = vld [vmem:[#allocation49_spill] sm:$0xff]  ;;  %v10102_v48 = vld [vmem:[#allocation51_spill] sm:$0xff] }
 0x59b   :  { %2935 = vmatmul.f32.vlgmr.msra.gmra.mxu2 %v2716_v5  ;;  %2955 = vmatmul.f32.vlgmr.msra.gmra.mxu3 %v2716_v5  ;;  %v2858_v52 = vsub.f32 1.0, %v2857_v50  ;;  %v2874_v51 = vmul.f32 %v2872_v9, %v2849_v21  ;;  %v10095_v5 = vld [vmem:[#allocation44_spill] sm:$0xff]  ;;  %v10104_v20 = vld [vmem:[#allocation53_spill] sm:$0xff]  ;;  %v10105_v50 = vld [vmem:[#allocation54_spill] sm:$0xff] }
 0x59c   :  { %3109 = vmatpush.msrb.mxu0 %v7345_v41  ;;  %3129 = vmatpush.msrb.mxu1 %v7348_v42  ;;  %v10103_v26 = vld [vmem:[#allocation52_spill] sm:$0xff]  ;;  %v10106_v9 = vld [vmem:[#allocation55_spill] sm:$0xff]  ;;  %v10108_v60 = vld [vmem:[#allocation57_spill] sm:$0xff] }
 0x59d   :  { %3149 = vmatpush.msra.mxu2 %v7352_v46  ;;  %3169 = vmatpush.msra.mxu3 %v7355_v37  ;;  %v2859_v41 = vmul.f32 %v3815_v8, %v2858_v52  ;;  %v7990_v42 = vadd.f32 %v2875_v15, %v2874_v51  ;;  %v2867_v37 = vand.u32 2147483648, %v7971_v36  ;;  %v10107_v6 = vld [vmem:[#allocation56_spill] sm:$0xff]  ;;  %v10109_v21 = vld [vmem:[#allocation58_spill] sm:$0xff]  ;;  %v10110_v15 = vld [vmem:[#allocation59_spill] sm:$0xff] }
 0x59e   :  { %3110 = vmatpush.msrb.mxu0 %v7358_v18  ;;  %3130 = vmatpush.msrb.mxu1 %v7361_v31  ;;  %v2865_v18 = vand.u32 2147483647, %v7971_v36  ;;  %v10085_v36 = vld [vmem:[#allocation34_spill] sm:$0xff]  ;;  %v10111_v52 = vld [vmem:[#allocation60_spill] sm:$0xff]  ;;  %v10112_v51 = vld [vmem:[#allocation61_spill] sm:$0xff] }
 0x59f   :  { %3150 = vmatpush.msra.mxu2 %v7366_v55  ;;  %3170 = vmatpush.msra.mxu3 %v7369_v29  ;;  %v2860_v46 = vadd.f32 %v3815_v8, %v2859_v41  ;;  %3818 = vtanh.f32 %v7990_v42  ;;  %v2868_v34 = vor.u32 1.1754944e-38, %v2867_v37  ;;  %v10113_v41 = vld [vmem:[#allocation62_spill] sm:$0xff]  ;;  %v10115_v37 = vld [vmem:[#allocation64_spill] sm:$0xff] }
 0x5a0   :  { %3111 = vmatpush.msrb.mxu0 %v7374_v59  ;;  %3131 = vmatpush.msrb.mxu1 %v7377_v61  ;;  %vm2866_vm12 = vcmp.eq.f32.partialorder %v2865_v18, 8.507059e+37  ;;  %v10116_v18 = vld [vmem:[#allocation65_spill] sm:$0xff] }
 0x5a1   :  { %3151 = vmatpush.msra.mxu2 %v7382_v13  ;;  %3171 = vmatpush.msra.mxu3 %v7385_v14  ;;  %v2864_v31 = vsel %vm2863_vm11, %v3815_v8, %v2860_v46  ;;  %v10062_v13 = vld [vmem:[#allocation147_spill] sm:$0xff]  ;;  %v10063_v14 = vld [vmem:[#allocation148_spill] sm:$0xff] }
 0x5a2   :  { %3112 = vmatpush.msrb.mxu0 %v7390_v54  ;;  %3132 = vmatpush.msrb.mxu1 %v7393_v17  ;;  %v2869_v29 = vsel %vm2866_vm12, %v2868_v34, %v2864_v31  ;;  %v10064_v54 = vld [vmem:[#allocation151_spill] sm:$0xff]  ;;  %v10065_v17 = vld [vmem:[#allocation12_spill] sm:$0xff]  ;;  %v10117_v31 = vld [vmem:[#allocation66_spill] sm:$0xff] }
 0x5a3   :  { %3152 = vmatpush.msra.mxu2 %v7402_v19  ;;  %3172 = vmatpush.msra.mxu3 %v7405_v45  ;;  %v10066_v19 = vld [vmem:[#allocation17_spill] sm:$0xff]  ;;  %v10067_v45 = vld [vmem:[#allocation18_spill] sm:$0xff]  ;;  %v10099_v8 = vld [vmem:[#allocation48_spill] sm:$0xff] }
 0x5a4   :  { %3113 = vmatpush.msrb.mxu0 %v7411_v11  ;;  %3133 = vmatpush.msrb.mxu1 %v7414_v22  ;;  %v10068_v11 = vld [vmem:[#allocation15_spill] sm:$0xff]  ;;  %v10069_v22 = vld [vmem:[#allocation16_spill] sm:$0xff] }
 0x5a5   :  { %3153 = vmatpush.msra.mxu2 %v7417_v47  ;;  %3173 = vmatpush.msra.mxu3 %v7420_v25  ;;  %v3819_v55 = vpop.eup %3818  ;;  %v10070_v47 = vld [vmem:[#allocation20_spill] sm:$0xff]  ;;  %v10071_v25 = vld [vmem:[#allocation21_spill] sm:$0xff]  ;;  %v10114_v46 = vld [vmem:[#allocation63_spill] sm:$0xff] }
 0x5a6   :  { %3114 = vmatpush.msrb.mxu0 %v7423_v1  ;;  %3134 = vmatpush.msrb.mxu1 %v7426_v0  ;;  %v2878_v59 = vmul.f32 %v3819_v55, %v2869_v29  ;;  %v10072_v1 = vld [vmem:[#allocation19_spill] sm:$0xff]  ;;  %v10073_v0 = vld [vmem:[#allocation22_spill] sm:$0xff]  ;;  %v10119_v55 = vld [vmem:[#allocation68_spill] sm:$0xff] }
 0x5a7   :  { %3154 = vmatpush.msra.mxu2 %v7429_v32  ;;  %3174 = vmatpush.msra.mxu3 %v7432_v28  ;;  %v10074_v32 = vld [vmem:[#allocation23_spill] sm:$0xff]  ;;  %v10075_v28 = vld [vmem:[#allocation24_spill] sm:$0xff]  ;;  %v10120_v29 = vld [vmem:[#allocation69_spill] sm:$0xff] }
 0x5a8   :  { %3115 = vmatpush.msrb.mxu0 %v7435_v38  ;;  %3135 = vmatpush.msrb.mxu1 %v7438_v3  ;;  %v2960_v61 = vrot.slane %v2878_v59, 4  ;;  %v10076_v38 = vld [vmem:[#allocation25_spill] sm:$0xff]  ;;  %v10077_v3 = vld [vmem:[#allocation26_spill] sm:$0xff]  ;;  %v10118_v34 = vld [vmem:[#allocation67_spill] sm:$0xff] }
 0x5a9   :  { %3155 = vmatpush.msra.mxu2 %v7441_v35  ;;  %3175 = vmatpush.msra.mxu3 %v7444_v4  ;;  %v10078_v35 = vld [vmem:[#allocation27_spill] sm:$0xff]  ;;  %v10079_v4 = vld [vmem:[#allocation28_spill] sm:$0xff]  ;;  %v10121_v59 = vld [vmem:[#allocation70_spill] sm:$0xff] }
 0x5aa   :  { %3116 = vmatpush.msrb.mxu0 %v7449_v24  ;;  %3136 = vmatpush.msrb.mxu1 %v7452_v12  ;;  %v10080_v24 = vld [vmem:[#allocation29_spill] sm:$0xff]  ;;  %v10081_v12 = vld [vmem:[#allocation30_spill] sm:$0xff] }
 0x5ab   :  { %3156 = vmatpush.msra.mxu2 %v7455_v33  ;;  %3176 = vmatpush.msra.mxu3 %v7458_v7  ;;  %v10082_v33 = vld [vmem:[#allocation31_spill] sm:$0xff]  ;;  %v10083_v7 = vld [vmem:[#allocation32_spill] sm:$0xff] }
 0x5ac   :  { %3117 = vmatpush.msrb.mxu0 %v7465_v40  ;;  %3137 = vmatpush.msrb.mxu1 %v10062_v13  ;;  %v10084_v40 = vld [vmem:[#allocation33_spill] sm:$0xff]  ;;  %v10123_v13 = vld [vmem:[#allocation72_spill] sm:$0xff] }
 0x5ad   :  { %3157 = vmatpush.msra.mxu2 %v10063_v14  ;;  %3177 = vmatpush.msra.mxu3 %v10064_v54  ;;  %v10124_v14 = vld [vmem:[#allocation73_spill] sm:$0xff]  ;;  %v10125_v54 = vld [vmem:[#allocation74_spill] sm:$0xff] }
 0x5ae   :  { %3118 = vmatpush.msrb.mxu0 %v10065_v17  ;;  %3138 = vmatpush.msrb.mxu1 %v10066_v19  ;;  %v10126_v17 = vld [vmem:[#allocation75_spill] sm:$0xff]  ;;  %v10127_v19 = vld [vmem:[#allocation76_spill] sm:$0xff] }
 0x5af   :  { %3158 = vmatpush.msra.mxu2 %v10067_v45  ;;  %3178 = vmatpush.msra.mxu3 %v10068_v11  ;;  %v10128_v45 = vld [vmem:[#allocation77_spill] sm:$0xff]  ;;  %v10129_v11 = vld [vmem:[#allocation78_spill] sm:$0xff] }
 0x5b0   :  { %2978 = vmatmul.f32.vlgmr.msra.gmra.mxu0 %v2960_v61  ;;  %2998 = vmatmul.f32.vlgmr.msra.gmra.mxu1 %v2960_v61 }
 0x5b1   :  { %3018 = vmatmul.f32.vlgmr.msrb.gmra.mxu2 %v2960_v61  ;;  %3038 = vmatmul.f32.vlgmr.msrb.gmra.mxu3 %v2960_v61 }
 0x5b2   :  { %3119 = vmatpush.msrb.mxu0 %v10069_v22  ;;  %3139 = vmatpush.msrb.mxu1 %v10070_v47  ;;  %v10130_v22 = vld [vmem:[#allocation79_spill] sm:$0xff]  ;;  %v10131_v47 = vld [vmem:[#allocation80_spill] sm:$0xff] }
 0x5b3   :  { %3159 = vmatpush.msra.mxu2 %v10071_v25  ;;  %3179 = vmatpush.msra.mxu3 %v10072_v1  ;;  %v10132_v25 = vld [vmem:[#allocation81_spill] sm:$0xff]  ;;  %v10133_v1 = vld [vmem:[#allocation82_spill] sm:$0xff] }
 0x5b4   :  { %3120 = vmatpush.msrb.mxu0 %v10073_v0  ;;  %3140 = vmatpush.msrb.mxu1 %v10074_v32  ;;  %v10134_v0 = vld [vmem:[#allocation83_spill] sm:$0xff]  ;;  %v10135_v32 = vld [vmem:[#allocation84_spill] sm:$0xff] }
 0x5b5   :  { %3160 = vmatpush.msra.mxu2 %v10075_v28  ;;  %3180 = vmatpush.msra.mxu3 %v10076_v38  ;;  %v10136_v28 = vld [vmem:[#allocation85_spill] sm:$0xff]  ;;  %v10137_v38 = vld [vmem:[#allocation86_spill] sm:$0xff] }
 0x5b6   :  { %3121 = vmatpush.msrb.mxu0 %v10077_v3  ;;  %3141 = vmatpush.msrb.mxu1 %v10078_v35  ;;  %v10138_v3 = vld [vmem:[#allocation87_spill] sm:$0xff]  ;;  %v10139_v35 = vld [vmem:[#allocation88_spill] sm:$0xff] }
 0x5b7   :  { %3161 = vmatpush.msra.mxu2 %v10079_v4  ;;  %3181 = vmatpush.msra.mxu3 %v10080_v24  ;;  %v10140_v4 = vld [vmem:[#allocation89_spill] sm:$0xff]  ;;  %v10141_v24 = vld [vmem:[#allocation90_spill] sm:$0xff] }
 0x5b8   :  { %3122 = vmatpush.msrb.mxu0 %v10081_v12  ;;  %3142 = vmatpush.msrb.mxu1 %v10082_v33  ;;  %v10142_v12 = vld [vmem:[#allocation91_spill] sm:$0xff]  ;;  %v10143_v33 = vld [vmem:[#allocation92_spill] sm:$0xff] }
 0x5b9   :  { %3162 = vmatpush.msra.mxu2 %v10083_v7  ;;  %3182 = vmatpush.msra.mxu3 %v10084_v40  ;;  %v10144_v7 = vld [vmem:[#allocation93_spill] sm:$0xff]  ;;  %v10145_v40 = vld [vmem:[#allocation94_spill] sm:$0xff] }
 0x5ba   :  { %3123 = vmatpush.msrb.mxu0 %v10085_v36  ;;  %3143 = vmatpush.msrb.mxu1 %v10086_v49  ;;  %v10146_v36 = vld [vmem:[#allocation95_spill] sm:$0xff]  ;;  %v10147_v49 = vld [vmem:[#allocation96_spill] sm:$0xff] }
 0x5bb   :  { %3163 = vmatpush.msra.mxu2 %v10087_v10  ;;  %3183 = vmatpush.msra.mxu3 %v10088_v56  ;;  %v10148_v10 = vld [vmem:[#allocation97_spill] sm:$0xff]  ;;  %v10149_v56 = vld [vmem:[#allocation98_spill] sm:$0xff] }
 0x5bc   :  { %3124 = vmatpush.msrb.mxu0 %v10089_v2  ;;  %3144 = vmatpush.msrb.mxu1 %v10090_v44  ;;  %v10150_v2 = vld [vmem:[#allocation99_spill] sm:$0xff]  ;;  %v10151_v44 = vld [vmem:[#allocation100_spill] sm:$0xff] }
 0x5bd   :  { %3164 = vmatpush.msra.mxu2 %v10091_v63  ;;  %3184 = vmatpush.msra.mxu3 %v10092_v27  ;;  %v10152_v63 = vld [vmem:[#allocation101_spill] sm:$0xff]  ;;  %v10153_v27 = vld [vmem:[#allocation102_spill] sm:$0xff] }
 0x5be   :  { %3125 = vmatmul.f32.vlgmr.msrb.gmra.mxu0 %v2960_v61  ;;  %3145 = vmatmul.f32.vlgmr.msrb.gmra.mxu1 %v2960_v61 }
 0x5bf   :  { %3165 = vmatmul.f32.vlgmr.msra.gmra.mxu2 %v2960_v61  ;;  %3185 = vmatmul.f32.vlgmr.msra.gmra.mxu3 %v2960_v61  ;;  %v10122_v61 = vld [vmem:[#allocation71_spill] sm:$0xff] }
 0x5c0   :  { %3271 = vmatpush.msra.mxu0 %v10093_v58  ;;  %3291 = vmatpush.msra.mxu1 %v10094_v30  ;;  %v10154_v58 = vld [vmem:[#allocation103_spill] sm:$0xff]  ;;  %v10155_v30 = vld [vmem:[#allocation104_spill] sm:$0xff] }
 0x5c1   :  { %3311 = vmatpush.msrb.mxu2 %v10095_v5  ;;  %3331 = vmatpush.msrb.mxu3 %v10096_v39  ;;  %v10156_v5 = vld [vmem:[#allocation105_spill] sm:$0xff]  ;;  %v10157_v39 = vld [vmem:[#allocation106_spill] sm:$0xff] }
 0x5c2   :  { %3272 = vmatpush.msra.mxu0 %v10097_v62  ;;  %3292 = vmatpush.msra.mxu1 %v10098_v23  ;;  %v10158_v62 = vld [vmem:[#allocation107_spill] sm:$0xff]  ;;  %v10159_v23 = vld [vmem:[#allocation108_spill] sm:$0xff] }
 0x5c3   :  { %3312 = vmatpush.msrb.mxu2 %v10099_v8  ;;  %3332 = vmatpush.msrb.mxu3 %v10100_v43  ;;  %v10160_v8 = vld [vmem:[#allocation109_spill] sm:$0xff]  ;;  %v10161_v43 = vld [vmem:[#allocation110_spill] sm:$0xff] }
 0x5c4   :  { %3273 = vmatpush.msra.mxu0 %v10101_v53  ;;  %3293 = vmatpush.msra.mxu1 %v10102_v48  ;;  %v10162_v53 = vld [vmem:[#allocation111_spill] sm:$0xff]  ;;  %v10163_v48 = vld [vmem:[#allocation112_spill] sm:$0xff] }
 0x5c5   :  { %3313 = vmatpush.msrb.mxu2 %v10103_v26  ;;  %3333 = vmatpush.msrb.mxu3 %v10104_v20  ;;  %v10164_v26 = vld [vmem:[#allocation113_spill] sm:$0xff]  ;;  %v10165_v20 = vld [vmem:[#allocation114_spill] sm:$0xff] }
 0x5c6   :  { %3274 = vmatpush.msra.mxu0 %v10105_v50  ;;  %3294 = vmatpush.msra.mxu1 %v10106_v9  ;;  %v10166_v50 = vld [vmem:[#allocation115_spill] sm:$0xff]  ;;  %v10167_v9 = vld [vmem:[#allocation116_spill] sm:$0xff] }
 0x5c7   :  { %3314 = vmatpush.msrb.mxu2 %v10107_v6  ;;  %3334 = vmatpush.msrb.mxu3 %v10108_v60  ;;  %v10168_v6 = vld [vmem:[#allocation118_spill] sm:$0xff]  ;;  %v10169_v60 = vld [vmem:[#allocation119_spill] sm:$0xff] }
 0x5c8   :  { %3275 = vmatpush.msra.mxu0 %v10109_v21  ;;  %3295 = vmatpush.msra.mxu1 %v10110_v15  ;;  %v10170_v21 = vld [vmem:[#allocation120_spill] sm:$0xff]  ;;  %v10171_v15 = vld [vmem:[#allocation121_spill] sm:$0xff] }
 0x5c9   :  { %3315 = vmatpush.msrb.mxu2 %v10111_v52  ;;  %3335 = vmatpush.msrb.mxu3 %v10112_v51  ;;  %v10172_v52 = vld [vmem:[#allocation122_spill] sm:$0xff]  ;;  %v10173_v51 = vld [vmem:[#allocation123_spill] sm:$0xff] }
 0x5ca   :  { %3276 = vmatpush.msra.mxu0 %v10113_v41  ;;  %3296 = vmatpush.msra.mxu1 %v10114_v46  ;;  %v10174_v41 = vld [vmem:[#allocation124_spill] sm:$0xff]  ;;  %v10175_v46 = vld [vmem:[#allocation125_spill] sm:$0xff] }
 0x5cb   :  { %3316 = vmatpush.msrb.mxu2 %v10115_v37  ;;  %3336 = vmatpush.msrb.mxu3 %v10116_v18  ;;  %v10176_v37 = vld [vmem:[#allocation126_spill] sm:$0xff]  ;;  %v10177_v18 = vld [vmem:[#allocation127_spill] sm:$0xff] }
 0x5cc   :  { %3277 = vmatpush.msra.mxu0 %v10117_v31  ;;  %3297 = vmatpush.msra.mxu1 %v10118_v34  ;;  %v10178_v31 = vld [vmem:[#allocation128_spill] sm:$0xff]  ;;  %v10179_v34 = vld [vmem:[#allocation129_spill] sm:$0xff] }
 0x5cd   :  { %3317 = vmatpush.msrb.mxu2 %v10119_v55  ;;  %3337 = vmatpush.msrb.mxu3 %v10120_v29  ;;  %v10180_v55 = vld [vmem:[#allocation130_spill] sm:$0xff]  ;;  %v10181_v29 = vld [vmem:[#allocation131_spill] sm:$0xff] }
 0x5ce   :  { %3278 = vmatpush.msra.mxu0 %v10121_v59  ;;  %3298 = vmatpush.msra.mxu1 %v10122_v61  ;;  %v10182_v59 = vld [vmem:[#allocation132_spill] sm:$0xff]  ;;  %v10183_v61 = vld [vmem:[#allocation133_spill] sm:$0xff] }
 0x5cf   :  { %3318 = vmatpush.msrb.mxu2 %v10123_v13  ;;  %3338 = vmatpush.msrb.mxu3 %v10124_v14  ;;  %v10184_v13 = vld [vmem:[#allocation134_spill] sm:$0xff]  ;;  %v10185_v14 = vld [vmem:[#allocation135_spill] sm:$0xff] }
 0x5d0   :  { %3279 = vmatpush.msra.mxu0 %v10125_v54  ;;  %3299 = vmatpush.msra.mxu1 %v10126_v17  ;;  %v10186_v54 = vld [vmem:[#allocation136_spill] sm:$0xff]  ;;  %v10187_v17 = vld [vmem:[#allocation137_spill] sm:$0xff] }
 0x5d1   :  { %3319 = vmatpush.msrb.mxu2 %v10127_v19  ;;  %3339 = vmatpush.msrb.mxu3 %v10128_v45  ;;  %v10188_v19 = vld [vmem:[#allocation138_spill] sm:$0xff]  ;;  %v10189_v45 = vld [vmem:[#allocation139_spill] sm:$0xff] }
 0x5d2   :  { %3280 = vmatpush.msra.mxu0 %v10129_v11  ;;  %3300 = vmatpush.msra.mxu1 %v10130_v22  ;;  %v10190_v11 = vld [vmem:[#allocation140_spill] sm:$0xff]  ;;  %v10191_v22 = vld [vmem:[#allocation141_spill] sm:$0xff] }
 0x5d3   :  { %3320 = vmatpush.msrb.mxu2 %v10131_v47  ;;  %3340 = vmatpush.msrb.mxu3 %v10132_v25  ;;  %v10192_v47 = vld [vmem:[#allocation142_spill] sm:$0xff]  ;;  %v10193_v25 = vld [vmem:[#allocation143_spill] sm:$0xff] }
 0x5d4   :  { %3281 = vmatpush.msra.mxu0 %v10133_v1  ;;  %3301 = vmatpush.msra.mxu1 %v10134_v0  ;;  %v10194_v1 = vld [vmem:[#allocation145_spill] sm:$0xff]  ;;  %v10195_v0 = vld [vmem:[#allocation146_spill] sm:$0xff] }
 0x5d5   :  { %3321 = vmatpush.msrb.mxu2 %v10135_v32  ;;  %3341 = vmatpush.msrb.mxu3 %v10136_v28  ;;  %v10196_v32 = vld [vmem:[#allocation152_spill] sm:$0xff]  ;;  %v10197_v28 = vld [vmem:[#allocation153_spill] sm:$0xff] }
 0x5d6   :  { %3282 = vmatpush.msra.mxu0 %v10137_v38  ;;  %3302 = vmatpush.msra.mxu1 %v10138_v3  ;;  %v10198_v38 = vld [vmem:[#allocation154_spill] sm:$0xff]  ;;  %v10199_v3 = vld [vmem:[#allocation155_spill] sm:$0xff] }
 0x5d7   :  { %3322 = vmatpush.msrb.mxu2 %v10139_v35  ;;  %3342 = vmatpush.msrb.mxu3 %v10140_v4  ;;  %v10200_v35 = vld [vmem:[#allocation156_spill] sm:$0xff]  ;;  %v10201_v4 = vld [vmem:[#allocation157_spill] sm:$0xff] }
 0x5d8   :  { %3283 = vmatpush.msra.mxu0 %v10141_v24  ;;  %3303 = vmatpush.msra.mxu1 %v10142_v12  ;;  %v10202_v24 = vld [vmem:[#allocation158_spill] sm:$0xff]  ;;  %v10203_v12 = vld [vmem:[#allocation159_spill] sm:$0xff] }
 0x5d9   :  { %3323 = vmatpush.msrb.mxu2 %v10143_v33  ;;  %3343 = vmatpush.msrb.mxu3 %v10144_v7  ;;  %v10204_v33 = vld [vmem:[#allocation160_spill] sm:$0xff]  ;;  %v10205_v7 = vld [vmem:[#allocation161_spill] sm:$0xff] }
 0x5da   :  { %3284 = vmatpush.msra.mxu0 %v10145_v40  ;;  %3304 = vmatpush.msra.mxu1 %v10146_v36  ;;  %v10206_v40 = vld [vmem:[#allocation162_spill] sm:$0xff]  ;;  %v10207_v36 = vld [vmem:[#allocation163_spill] sm:$0xff] }
 0x5db   :  { %3324 = vmatpush.msrb.mxu2 %v10147_v49  ;;  %3344 = vmatpush.msrb.mxu3 %v10148_v10  ;;  %v10208_v49 = vld [vmem:[#allocation164_spill] sm:$0xff]  ;;  %v10209_v10 = vld [vmem:[#allocation165_spill] sm:$0xff] }
 0x5dc   :  { %3285 = vmatpush.msra.mxu0 %v10149_v56  ;;  %3305 = vmatpush.msra.mxu1 %v10150_v2  ;;  %v10210_v56 = vld [vmem:[#allocation166_spill] sm:$0xff]  ;;  %v10211_v2 = vld [vmem:[#allocation167_spill] sm:$0xff] }
 0x5dd   :  { %3325 = vmatpush.msrb.mxu2 %v10151_v44  ;;  %3345 = vmatpush.msrb.mxu3 %v10152_v63  ;;  %v10212_v44 = vld [vmem:[#allocation168_spill] sm:$0xff]  ;;  %v10213_v63 = vld [vmem:[#allocation169_spill] sm:$0xff] }
 0x5de   :  { %3286 = vmatpush.msra.mxu0 %v10153_v27  ;;  %3306 = vmatpush.msra.mxu1 %v10154_v58  ;;  %v10214_v27 = vld [vmem:[#allocation170_spill] sm:$0xff]  ;;  %v10215_v58 = vld [vmem:[#allocation171_spill] sm:$0xff] }
 0x5df   :  { %3326 = vmatpush.msrb.mxu2 %v10155_v30  ;;  %3346 = vmatpush.msrb.mxu3 %v10156_v5  ;;  %v10216_v30 = vld [vmem:[#allocation172_spill] sm:$0xff]  ;;  %v10217_v5 = vld [vmem:[#allocation173_spill] sm:$0xff] }
 0x5e0   :  { %3354 = vmatpush.msrb.mxu0 %v10157_v39  ;;  %3374 = vmatpush.msrb.mxu1 %v10158_v62  ;;  %v10218_v39 = vld [vmem:[#allocation174_spill] sm:$0xff]  ;;  %v10219_v62 = vld [vmem:[#allocation175_spill] sm:$0xff] }
 0x5e1   :  { %3394 = vmatpush.msra.mxu2 %v10159_v23  ;;  %3414 = vmatpush.msra.mxu3 %v10160_v8  ;;  %v10220_v23 = vld [vmem:[#allocation176_spill] sm:$0xff] }
 0x5e2   :  { %3355 = vmatpush.msrb.mxu0 %v10161_v43  ;;  %3375 = vmatpush.msrb.mxu1 %v10162_v53 }
 0x5e3   :  { %3395 = vmatpush.msra.mxu2 %v10163_v48  ;;  %3415 = vmatpush.msra.mxu3 %v10164_v26 }
 0x5e4   :  { %3356 = vmatpush.msrb.mxu0 %v10165_v20  ;;  %3376 = vmatpush.msrb.mxu1 %v10166_v50 }
 0x5e5   :  { %3396 = vmatpush.msra.mxu2 %v10167_v9  ;;  %3416 = vmatpush.msra.mxu3 %v10168_v6  ;;  %v10221_v9 = vld [vmem:[#allocation10_spill] sm:$0xff] }
 0x5e6   :  { %3357 = vmatpush.msrb.mxu0 %v10169_v60  ;;  %3377 = vmatpush.msrb.mxu1 %v10170_v21  ;;  %v10222_v60 = vld [vmem:[#allocation13_spill] sm:$0xff] }
 0x5e7   :  { %3397 = vmatpush.msra.mxu2 %v10171_v15  ;;  %3417 = vmatpush.msra.mxu3 %v10172_v52 }
 0x5e8   :  { %3358 = vmatpush.msrb.mxu0 %v10173_v51  ;;  %3378 = vmatpush.msrb.mxu1 %v10174_v41 }
 0x5e9   :  { %3398 = vmatpush.msra.mxu2 %v10175_v46  ;;  %3418 = vmatpush.msra.mxu3 %v10176_v37  ;;  %v10223_v37 = vld [vmem:[#allocation14_spill] sm:$0xff] }
 0x5ea   :  { %3359 = vmatpush.msrb.mxu0 %v10177_v18  ;;  %3379 = vmatpush.msrb.mxu1 %v10178_v31 }
 0x5eb   :  { %3399 = vmatpush.msra.mxu2 %v10179_v34  ;;  %3419 = vmatpush.msra.mxu3 %v10180_v55 }
 0x5ec   :  { %3360 = vmatpush.msrb.mxu0 %v10181_v29  ;;  %3380 = vmatpush.msrb.mxu1 %v10182_v59 }
 0x5ed   :  { %3400 = vmatpush.msra.mxu2 %v10183_v61  ;;  %3420 = vmatpush.msra.mxu3 %v10184_v13 }
 0x5ee   :  { %3361 = vmatpush.msrb.mxu0 %v10185_v14  ;;  %3381 = vmatpush.msrb.mxu1 %v10186_v54 }
 0x5ef   :  { %3401 = vmatpush.msra.mxu2 %v10187_v17  ;;  %3421 = vmatpush.msra.mxu3 %v10188_v19 }
 0x5f0   :  { %3362 = vmatpush.msrb.mxu0 %v10189_v45  ;;  %3382 = vmatpush.msrb.mxu1 %v10190_v11  ;;  %v10224_v45 = vld [vmem:[#allocation150_spill] sm:$0xff] }
 0x5f1   :  { %3402 = vmatpush.msra.mxu2 %v10191_v22  ;;  %3422 = vmatpush.msra.mxu3 %v10192_v47  ;;  %v10225_v22 = vld [vmem:[#allocation144_spill] sm:$0xff] }
 0x5f2   :  { %3363 = vmatpush.msrb.mxu0 %v10193_v25  ;;  %3383 = vmatpush.msrb.mxu1 %v10194_v1 }
 0x5f3   :  { %3403 = vmatpush.msra.mxu2 %v10195_v0  ;;  %3423 = vmatpush.msra.mxu3 %v10196_v32 }
 0x5f4   :  { %3364 = vmatpush.msrb.mxu0 %v10197_v28  ;;  %3384 = vmatpush.msrb.mxu1 %v10198_v38 }
 0x5f5   :  { %3404 = vmatpush.msra.mxu2 %v10199_v3  ;;  %3424 = vmatpush.msra.mxu3 %v10200_v35  ;;  %v10226_v3 = vld [vmem:[#allocation11_spill] sm:$0xff] }
 0x5f6   :  { %3365 = vmatpush.msrb.mxu0 %v10201_v4  ;;  %3385 = vmatpush.msrb.mxu1 %v10202_v24 }
 0x5f7   :  { %3405 = vmatpush.msra.mxu2 %v10203_v12  ;;  %3425 = vmatpush.msra.mxu3 %v10204_v33 }
 0x5f8   :  { %3366 = vmatpush.msrb.mxu0 %v10205_v7  ;;  %3386 = vmatpush.msrb.mxu1 %v10206_v40  ;;  %v10227_v40 = vld [vmem:[#allocation117_spill] sm:$0xff] }
 0x5f9   :  { %3406 = vmatpush.msra.mxu2 %v10207_v36  ;;  %3426 = vmatpush.msra.mxu3 %v10208_v49 }
 0x5fa   :  { %3367 = vmatpush.msrb.mxu0 %v10209_v10  ;;  %3387 = vmatpush.msrb.mxu1 %v10210_v56 }
 0x5fb   :  { %3407 = vmatpush.msra.mxu2 %v10211_v2  ;;  %3427 = vmatpush.msra.mxu3 %v10212_v44 }
 0x5fc   :  { %3368 = vmatpush.msrb.mxu0 %v10213_v63  ;;  %3388 = vmatpush.msrb.mxu1 %v10214_v27 }
 0x5fd   :  { %3408 = vmatpush.msra.mxu2 %v10215_v58  ;;  %3428 = vmatpush.msra.mxu3 %v10216_v30 }
 0x5fe   :  { %3369 = vmatpush.msrb.mxu0 %v10217_v5  ;;  %3389 = vmatpush.msrb.mxu1 %v10218_v39 }
 0x5ff   :  { %3409 = vmatpush.msra.mxu2 %v10219_v62  ;;  %3429 = vmatpush.msra.mxu3 %v10220_v23 }
 0x617   :  { %v2896_v8 = vpop.f32.mrf.mxu0  ;;  %v2916_v43 = vpop.f32.mrf.mxu1 }
 0x61e   :  { %v2956_v53 = vpop.f32.mrf.mxu3  ;;  %v2936_v51 = vpop.f32.mrf.mxu2 }
 0x62d   :  { %v2979_v48 = vpop.f32.mrf.mxu0  ;;  %v2999_v26 = vpop.f32.mrf.mxu1 }
 0x62e   :  { %v2980_v20 = vadd.f32 %v2979_v48, %v2896_v8  ;;  %v3000_v50 = vadd.f32 %v2999_v26, %v2916_v43 }
 0x630   :  { %v3042_v6 = vadd.f32 %v2980_v20, %v10221_v9  ;;  %v3043_v21 = vadd.f32 %v3000_v50, %v10222_v60 }
 0x632   :  { %v3596_v15 = vmul.f32 -1.442695, %v3042_v6  ;;  %v3597_v52 = vmul.f32 -1.442695, %v3043_v21 }
 0x634   :  { %3820 = vpow2.f32 %v3596_v15  ;;  %v3039_v41 = vpop.f32.mrf.mxu3  ;;  %v3019_v14 = vpop.f32.mrf.mxu2 }
 0x635   :  { %3822 = vpow2.f32 %v3597_v52  ;;  %v3040_v46 = vadd.f32 %v3039_v41, %v2956_v53  ;;  %v3020_v19 = vadd.f32 %v3019_v14, %v2936_v51 }
 0x637   :  { %v3045_v18 = vadd.f32 %v3040_v46, %v10223_v37  ;;  %v3044_v35 = vadd.f32 %v3020_v19, %v10226_v3 }
 0x639   :  { %v3598_v31 = vmul.f32 -1.442695, %v3045_v18 }
 0x63a   :  { %v3821_v34 = vpop.eup %3820 }
 0x63b   :  { %v3823_v55 = vpop.eup %3822  ;;  %v3049_v29 = vadd.f32 1.0, %v3821_v34  ;;  %3824 = vpow2.f32 %v3598_v31  ;;  %v3126_v59 = vpop.f32.mrf.mxu0 }
 0x63c   :  { %v3146_v61 = vpop.f32.mrf.mxu1  ;;  %v3068_v13 = vadd.f32 1.0, %v3823_v55  ;;  %v3193_v54 = vrot.slane %v3126_v59, 2 }
 0x63d   :  { %v3194_v17 = vrot.slane %v3146_v61, 2  ;;  %3826 = vrcp.f32 %v3049_v29  ;;  %v3059_v10 = vand.u32 2147483647, %v3049_v29  ;;  %v3061_v56 = vand.u32 2147483648, %v3049_v29 }
 0x63e   :  { %3828 = vrcp.f32 %v3068_v13  ;;  %v3201_v11 = vadd.f32 %v3193_v54, %v10224_v45  ;;  %v3080_v2 = vand.u32 2147483648, %v3068_v13  ;;  %vm3055_vm15 = vweird.f32 %v3049_v29 }
 0x63f   :  { %v3202_v47 = vadd.f32 %v3194_v17, %v10225_v22  ;;  %v3078_v30 = vand.u32 2147483647, %v3068_v13  ;;  %vm3074_vm0 = vweird.f32 %v3068_v13  ;;  %vm3060_vm2 = vcmp.eq.f32.partialorder %v3059_v10, 8.507059e+37 }
 0x640   :  { %v3599_v1 = vmul.f32 -1.442695, %v3201_v11  ;;  %v3062_v8 = vor.u32 1.1754944e-38, %v3061_v56  ;;  %v3081_v26 = vor.u32 1.1754944e-38, %v3080_v2  ;;  %v3264_v56 = vrot.slane %v7990_v42, 6 }
 0x641   :  { %v3825_v25 = vpop.eup %3824  ;;  %v3600_v0 = vmul.f32 -1.442695, %v3202_v47  ;;  %vm3079_vm4 = vcmp.eq.f32.partialorder %v3078_v30, 8.507059e+37 }
 0x642   :  { %v8183_v32 = vadd.f32 1.0, %v3825_v25  ;;  %v3186_v28 = vpop.f32.mrf.mxu3  ;;  %3830 = vpow2.f32 %v3599_v1  ;;  %v3166_v48 = vpop.f32.mrf.mxu2 }
 0x643   :  { %v3827_v38 = vpop.eup %3826  ;;  %v3196_v4 = vrot.slane %v3186_v28, 2  ;;  %v3195_v46 = vrot.slane %v3166_v48, 2 }
 0x644   :  { %v3829_v24 = vpop.eup %3828  ;;  %v3051_v12 = vmul.f32 %v3827_v38, %v3049_v29  ;;  %3832 = vrcp.f32 %v8183_v32  ;;  %vm3056_vm13 = vweird.f32 %v3827_v38  ;;  %v3100_v14 = vand.u32 2147483648, %v8183_v32 }
 0x645   :  { %v3070_v33 = vmul.f32 %v3829_v24, %v3068_v13  ;;  %3834 = vpow2.f32 %v3600_v0  ;;  %v3204_v36 = vadd.f32 %v3196_v4, %v10227_v40  ;;  %vm3075_vm14 = vweird.f32 %v3829_v24  ;;  %vm3057_vm1 = vmor %vm3055_vm15, %vm3056_vm13 }
 0x646   :  { %v3052_v7 = vsub.f32 1.0, %v3051_v12  ;;  %3836 = vtanh.f32 %v3044_v35  ;;  %vm3076_vm3 = vmor %vm3074_vm0, %vm3075_vm14  ;;  %v3203_v61 = vadd.f32 %v3195_v46, %v7071_v16  ;;  %vm3094_vm6 = vweird.f32 %v8183_v32  ;;  %v3512_v46 = vld [vmem:[%s8296_s7 + $0x58] sm:$0xff] }
 0x647   :  { %v3071_v49 = vsub.f32 1.0, %v3070_v33  ;;  %v3601_v63 = vmul.f32 -1.442695, %v3204_v36  ;;  %v3098_v17 = vand.u32 2147483647, %v8183_v32  ;;  %v3101_v47 = vor.u32 1.1754944e-38, %v3100_v14 }
 0x648   :  { %v3053_v44 = vmul.f32 %v3827_v38, %v3052_v7  ;;  %v3831_v27 = vpop.eup %3830 }
 0x649   :  { %v3072_v58 = vmul.f32 %v3829_v24, %v3071_v49  ;;  %v8190_v62 = vadd.f32 1.0, %v3831_v27  ;;  %3838 = vpow2.f32 %v3601_v63  ;;  %vm3099_vm10 = vcmp.eq.f32.partialorder %v3098_v17, 8.507059e+37 }
 0x64a   :  { %v8188_v5 = vpop.eup %3832  ;;  %v3054_v39 = vadd.f32 %v3827_v38, %v3053_v44 }
 0x64b   :  { %v3835_v23 = vpop.eup %3834  ;;  %v3073_v43 = vadd.f32 %v3829_v24, %v3072_v58  ;;  %v3090_v53 = vmul.f32 %v8188_v5, %v8183_v32  ;;  %3840 = vrcp.f32 %v8190_v62  ;;  %vm3095_vm5 = vweird.f32 %v8188_v5 }
 0x64c   :  { %v3058_v20 = vsel %vm3057_vm1, %v3827_v38, %v3054_v39  ;;  %v8196_v50 = vadd.f32 1.0, %v3835_v23  ;;  %v3837_v6 = vpop.eup %3836  ;;  %vm8215_vm7 = vmor %vm3094_vm6, %vm3095_vm5  ;;  %v3220_v11 = vand.u32 2147483648, %v8190_v62  ;;  %v3218_v0 = vand.u32 2147483647, %v8190_v62 }
 0x64d   :  { %v3063_v21 = vsel %vm3060_vm2, %v3062_v8, %v3058_v20  ;;  %v3077_v15 = vsel %vm3076_vm3, %v3829_v24, %v3073_v43  ;;  %v3091_v52 = vsub.f32 1.0, %v3090_v53  ;;  %vm3214_vm9 = vweird.f32 %v8190_v62 }
 0x64e   :  { %v3082_v51 = vsel %vm3079_vm4, %v3081_v26, %v3077_v15  ;;  %v3105_v41 = vmul.f32 %v3837_v6, %v3063_v21  ;;  %3842 = vrcp.f32 %v8196_v50  ;;  %v3239_v32 = vand.u32 2147483648, %v8196_v50  ;;  %v3516_v6 = vld [vmem:[%s8296_s7 + $0x78] sm:$0xff]  ;;  %v3515_v21 = vld [vmem:[%s8296_s7 + $0x70] sm:$0xff]  ;;  %v3514_v15 = vld [vmem:[%s8296_s7 + $0x68] sm:$0xff] }
 0x64f   :  { %v3104_v18 = vmul.f32 %v3082_v51, %v7964_v57  ;;  %v3839_v31 = vpop.eup %3838  ;;  %v3092_v34 = vmul.f32 %v8188_v5, %v3091_v52  ;;  %v3237_v28 = vand.u32 2147483647, %v8196_v50  ;;  %vm3233_vm12 = vweird.f32 %v8196_v50  ;;  %v3513_v52 = vld [vmem:[%s8296_s7 + $0x60] sm:$0xff] }
 0x650   :  { %v8203_v29 = vadd.f32 1.0, %v3839_v31  ;;  %v3221_v33 = vor.u32 1.1754944e-38, %v3220_v11  ;;  %vm3219_vm14 = vcmp.eq.f32.partialorder %v3218_v0, 8.507059e+37  ;;  %v3240_v2 = vor.u32 1.1754944e-38, %v3239_v32  ;;  %v3510_v31 = vld [vmem:[%s8296_s7 + $0x48] sm:$0xff] }
 0x651   :  { %v8201_v55 = vadd.f32 %v3105_v41, %v3104_v18  ;;  %v3841_v59 = vpop.eup %3840  ;;  %v3093_v13 = vadd.f32 %v8188_v5, %v3092_v34  ;;  %vm3238_vm0 = vcmp.eq.f32.partialorder %v3237_v28, 8.507059e+37  ;;  %v3511_v18 = vld [vmem:[%s8296_s7 + $0x50] sm:$0xff]  ;;  %v3509_v34 = vld [vmem:[%s8296_s7 + $0x40] sm:$0xff]  ;;  %v3502_v32 = vld [vmem:[%s8296_s7 + $0x8] sm:$0xff] }
 0x652   :  { %v3210_v57 = vmul.f32 %v3841_v59, %v8190_v62  ;;  %vm3215_vm8 = vweird.f32 %v3841_v59  ;;  %v3259_v42 = vand.u32 2147483648, %v8203_v29  ;;  %vm3253_vm2 = vweird.f32 %v8203_v29 }
 0x653   :  { %3844 = vtanh.f32 %v8201_v55  ;;  %v3097_v22 = vsel %vm8215_vm7, %v8188_v5, %v3093_v13  ;;  %vm3216_vm13 = vmor %vm3214_vm9, %vm3215_vm8  ;;  %v3257_v8 = vand.u32 2147483647, %v8203_v29  ;;  %v3508_v13 = vld [vmem:[%s8296_s7 + $0x38] sm:$0xff] }
 0x654   :  { %v3843_v54 = vpop.eup %3842  ;;  %3846 = vrcp.f32 %v8203_v29  ;;  %v3211_v19 = vsub.f32 1.0, %v3210_v57  ;;  %v3102_v24 = vsel %vm3099_vm10, %v3101_v47, %v3097_v22  ;;  %v3260_v53 = vor.u32 1.1754944e-38, %v3259_v42  ;;  %v3505_v22 = vld [vmem:[%s8296_s7 + $0x20] sm:$0xff]  ;;  %v3504_v47 = vld [vmem:[%s8296_s7 + $0x18] sm:$0xff] }
 0x655   :  { %v3229_v16 = vmul.f32 %v3843_v54, %v8196_v50  ;;  %3848 = vtanh.f32 %v3203_v61  ;;  %vm3234_vm11 = vweird.f32 %v3843_v54  ;;  %vm3258_vm4 = vcmp.eq.f32.partialorder %v3257_v8, 8.507059e+37 }
 0x656   :  { %v3212_v1 = vmul.f32 %v3841_v59, %v3211_v19  ;;  %vm3235_vm15 = vmor %vm3233_vm12, %vm3234_vm11 }
 0x657   :  { %v3230_v25 = vsub.f32 1.0, %v3229_v16  ;;  %v3506_v16 = vld [vmem:[%s8296_s7 + $0x28] sm:$0xff] }
 0x658   :  { %v3213_v4 = vadd.f32 %v3841_v59, %v3212_v1  ;;  %v3503_v1 = vld [vmem:[%s8296_s7 + $0x10] sm:$0xff] }
 0x659   :  { %v3845_v38 = vpop.eup %3844  ;;  %v3231_v35 = vmul.f32 %v3843_v54, %v3230_v25 }
 0x65a   :  { %v3847_v12 = vpop.eup %3846  ;;  %v3108_v7 = vmul.f32 %v3845_v38, %v3102_v24  ;;  %v3217_v40 = vsel %vm3216_vm13, %v3841_v59, %v3213_v4  ;;  %v3501_v38 = vld [vmem:[%s8296_s7] sm:$0xff] }
 0x65b   :  { %v3232_v36 = vadd.f32 %v3843_v54, %v3231_v35  ;;  %v3249_v49 = vmul.f32 %v3847_v12, %v8203_v29  ;;  %v3849_v10 = vpop.eup %3848  ;;  %v3222_v44 = vsel %vm3219_vm14, %v3221_v33, %v3217_v40  ;;  %vm3254_vm1 = vweird.f32 %v3847_v12 }
 0x65c   :  { %3287 = vmatmul.f32.vlgmr.msra.gmra.mxu0 %v3108_v7  ;;  %3307 = vmatmul.f32.vlgmr.msra.gmra.mxu1 %v3108_v7  ;;  %v3267_v27 = vmul.f32 %v3849_v10, %v3222_v44  ;;  %vm3255_vm3 = vmor %vm3253_vm2, %vm3254_vm1  ;;  %vm3541_vm1 = vcmask 1024  }
 0x65d   :  { %v3236_v63 = vsel %vm3235_vm15, %v3843_v54, %v3232_v36  ;;  %v3250_v58 = vsub.f32 1.0, %v3249_v49  ;;  %3327 = vmatmul.f32.vlgmr.msrb.gmra.mxu2 %v3108_v7  ;;  %3347 = vmatmul.f32.vlgmr.msrb.gmra.mxu3 %v3108_v7  ;;  %v3507_v54 = vld [vmem:[%s8296_s7 + $0x30] sm:$0xff] }
 0x65e   :  { %v3241_v30 = vsel %vm3238_vm0, %v3240_v2, %v3236_v63  ;;  %3521 = vmatpush.msra.mxu0 %v3516_v6 }
 0x65f   :  { %v3266_v5 = vmul.f32 %v3264_v56, %v3241_v30  ;;  %v3251_v39 = vmul.f32 %v3847_v12, %v3250_v58 }
 0x660   :  { %3522 = vmatpush.msra.mxu0 %v3515_v21 }
 0x661   :  { %v3268_v62 = vadd.f32 %v3267_v27, %v3266_v5  ;;  %v3252_v23 = vadd.f32 %v3847_v12, %v3251_v39 }
 0x662   :  { %3523 = vmatpush.msra.mxu0 %v3514_v15 }
 0x663   :  { %3850 = vtanh.f32 %v3268_v62  ;;  %v3256_v43 = vsel %vm3255_vm3, %v3847_v12, %v3252_v23 }
 0x664   :  { %v3261_v26 = vsel %vm3258_vm4, %v3260_v53, %v3256_v43  ;;  %3524 = vmatpush.msra.mxu0 %v3513_v52 }
 0x666   :  { %3525 = vmatpush.msra.mxu0 %v3512_v46 }
 0x668   :  { %3526 = vmatpush.msra.mxu0 %v3511_v18 }
 0x669   :  { %v3851_v48 = vpop.eup %3850 }
 0x66a   :  { %v3270_v20 = vmul.f32 %v3851_v48, %v3261_v26  ;;  %3527 = vmatpush.msra.mxu0 %v3510_v31 }
 0x66c   :  { %v3352_v50 = vrot.slane %v3270_v20, 6  ;;  %3528 = vmatpush.msra.mxu0 %v3509_v34 }
 0x66e   :  { %3370 = vmatmul.f32.vlgmr.msrb.gmra.mxu0 %v3352_v50  ;;  %3390 = vmatmul.f32.vlgmr.msrb.gmra.mxu1 %v3352_v50 }
 0x66f   :  { %3410 = vmatmul.f32.vlgmr.msra.gmra.mxu2 %v3352_v50  ;;  %3430 = vmatmul.f32.vlgmr.msra.gmra.mxu3 %v3352_v50 }
 0x670   :  { %3529 = vmatpush.msra.mxu0 %v3508_v13 }
 0x672   :  { %3530 = vmatpush.msra.mxu0 %v3507_v54 }
 0x674   :  { %3531 = vmatpush.msra.mxu0 %v3506_v16 }
 0x676   :  { %3532 = vmatpush.msra.mxu0 %v3505_v22 }
 0x678   :  { %3533 = vmatpush.msra.mxu0 %v3504_v47 }
 0x67a   :  { %3534 = vmatpush.msra.mxu0 %v3503_v1 }
 0x67c   :  { %3535 = vmatpush.msra.mxu0 %v3502_v32 }
 0x67e   :  { %3536 = vmatpush.msra.mxu0 %v3501_v38 }
 0x6d9   :  { %v3288_v51 = vpop.f32.mrf.mxu0  ;;  %v3308_v41 = vpop.f32.mrf.mxu1 }
 0x6e0   :  { %v3348_v29 = vpop.f32.mrf.mxu3  ;;  %v3328_v25 = vpop.f32.mrf.mxu2 }
 0x6eb   :  { %v3371_v59 = vpop.f32.mrf.mxu0  ;;  %v3391_v61 = vpop.f32.mrf.mxu1 }
 0x6ec   :  { %v3372_v14 = vadd.f32 %v3371_v59, %v3288_v51  ;;  %v3392_v57 = vadd.f32 %v3391_v61, %v3308_v41 }
 0x6ee   :  { %v3434_v17 = vadd.f32 %v3372_v14, %v10221_v9  ;;  %v3435_v19 = vadd.f32 %v3392_v57, %v10222_v60  ;;  %v3611_v14 = vld [vmem:[#allocation2] ss:$0 sm:$0xff] }
 0x6f0   :  { %v3602_v45 = vmul.f32 -1.442695, %v3434_v17  ;;  %v3603_v11 = vmul.f32 -1.442695, %v3435_v19 }
 0x6f2   :  { %3852 = vpow2.f32 %v3602_v45  ;;  %v3431_v9 = vpop.f32.mrf.mxu3  ;;  %v3411_v33 = vpop.f32.mrf.mxu2 }
 0x6f3   :  { %3854 = vpow2.f32 %v3603_v11  ;;  %v3432_v60 = vadd.f32 %v3431_v9, %v3348_v29 }
 0x6f5   :  { %v3437_v0 = vadd.f32 %v3432_v60, %v10223_v37  ;;  %v3412_v37 = vadd.f32 %v3411_v33, %v3328_v25 }
 0x6f7   :  { %v3604_v28 = vmul.f32 -1.442695, %v3437_v0  ;;  %v3436_v49 = vadd.f32 %v3412_v37, %v10226_v3 }
 0x6f8   :  { %v3853_v35 = vpop.eup %3852 }
 0x6f9   :  { %v3855_v4 = vpop.eup %3854  ;;  %v3441_v24 = vadd.f32 1.0, %v3853_v35  ;;  %3856 = vpow2.f32 %v3604_v28 }
 0x6fa   :  { %v3460_v12 = vadd.f32 1.0, %v3855_v4 }
 0x6fb   :  { %3858 = vrcp.f32 %v3441_v24  ;;  %v3453_v27 = vand.u32 2147483648, %v3441_v24  ;;  %v3451_v5 = vand.u32 2147483647, %v3441_v24  ;;  %vm3447_vm7 = vweird.f32 %v3441_v24 }
 0x6fc   :  { %3860 = vrcp.f32 %v3460_v12  ;;  %v3472_v58 = vand.u32 2147483648, %v3460_v12  ;;  %v3470_v62 = vand.u32 2147483647, %v3460_v12  ;;  %vm3466_vm8 = vweird.f32 %v3460_v12 }
 0x6fd   :  { %v3454_v3 = vor.u32 1.1754944e-38, %v3453_v27  ;;  %vm3452_vm11 = vcmp.eq.f32.partialorder %v3451_v5, 8.507059e+37 }
 0x6fe   :  { %v3473_v53 = vor.u32 1.1754944e-38, %v3472_v58  ;;  %vm3471_vm12 = vcmp.eq.f32.partialorder %v3470_v62, 8.507059e+37 }
 0x6ff   :  { %v3857_v7 = vpop.eup %3856 }
 0x700   :  { %v3480_v40 = vadd.f32 1.0, %v3857_v7 }
 0x701   :  { %v3859_v36 = vpop.eup %3858 }
 0x702   :  { %v3861_v10 = vpop.eup %3860  ;;  %v3443_v56 = vmul.f32 %v3859_v36, %v3441_v24  ;;  %3862 = vrcp.f32 %v3480_v40  ;;  %vm3448_vm5 = vweird.f32 %v3859_v36  ;;  %v3492_v18 = vand.u32 2147483648, %v3480_v40 }
 0x703   :  { %v3462_v2 = vmul.f32 %v3861_v10, %v3460_v12  ;;  %3864 = vtanh.f32 %v3436_v49  ;;  %vm3467_vm6 = vweird.f32 %v3861_v10  ;;  %vm3449_vm9 = vmor %vm3447_vm7, %vm3448_vm5  ;;  %vm3486_vm14 = vweird.f32 %v3480_v40 }
 0x704   :  { %v3444_v44 = vsub.f32 1.0, %v3443_v56  ;;  %vm3468_vm10 = vmor %vm3466_vm8, %vm3467_vm6  ;;  %v3490_v31 = vand.u32 2147483647, %v3480_v40  ;;  %v3493_v29 = vor.u32 1.1754944e-38, %v3492_v18 }
 0x705   :  { %v3463_v63 = vsub.f32 1.0, %v3462_v2 }
 0x706   :  { %v3445_v30 = vmul.f32 %v3859_v36, %v3444_v44  ;;  %vm3491_vm0 = vcmp.eq.f32.partialorder %v3490_v31, 8.507059e+37 }
 0x707   :  { %v3464_v39 = vmul.f32 %v3861_v10, %v3463_v63 }
 0x708   :  { %v3863_v23 = vpop.eup %3862  ;;  %v3446_v42 = vadd.f32 %v3859_v36, %v3445_v30 }
 0x709   :  { %v3465_v8 = vadd.f32 %v3861_v10, %v3464_v39  ;;  %v3482_v43 = vmul.f32 %v3863_v23, %v3480_v40  ;;  %v3865_v26 = vpop.eup %3864  ;;  %vm3487_vm13 = vweird.f32 %v3863_v23 }
 0x70a   :  { %v3450_v48 = vsel %vm3449_vm9, %v3859_v36, %v3446_v42  ;;  %vm3488_vm15 = vmor %vm3486_vm14, %vm3487_vm13 }
 0x70b   :  { %v3455_v20 = vsel %vm3452_vm11, %v3454_v3, %v3450_v48  ;;  %v3469_v50 = vsel %vm3468_vm10, %v3861_v10, %v3465_v8  ;;  %v3483_v6 = vsub.f32 1.0, %v3482_v43 }
 0x70c   :  { %v3474_v21 = vsel %vm3471_vm12, %v3473_v53, %v3469_v50  ;;  %v3497_v15 = vmul.f32 %v3865_v26, %v3455_v20 }
 0x70d   :  { %v3496_v52 = vmul.f32 %v3474_v21, %v8201_v55  ;;  %v3484_v51 = vmul.f32 %v3863_v23, %v3483_v6 }
 0x70f   :  { %v3498_v41 = vadd.f32 %v3497_v15, %v3496_v52  ;;  %v3485_v46 = vadd.f32 %v3863_v23, %v3484_v51 }
 0x711   :  { %3866 = vtanh.f32 %v3498_v41  ;;  %v3489_v34 = vsel %vm3488_vm15, %v3863_v23, %v3485_v46 }
 0x712   :  { %v3494_v61 = vsel %vm3491_vm0, %v3493_v29, %v3489_v34 }
 0x717   :  { %v3867_v59 = vpop.eup %3866 }
 0x718   :  { %v3500_v13 = vmul.f32 %v3867_v59, %v3494_v61 }
 0x71a   :  { %3537 = vmatmul.f32.vlgmr.msra.gmra.mxu0 %v3500_v13 }
 0x797   :  { %v3538_v57 = vpop.f32.mrf.mxu0 }
 0x798   :  { %v3539_v55 = vadd.f32 %v3611_v14, %v3538_v57 }
 0x79a   :  { %3542 = vst.msk [vmem:[%s8298_s9] sm:$0x3] %vm3541_vm1, %v3539_v55 }
 0x79b   :  { %3547 = vsyncpa [#allocation4], 1 }
 0x79c   :  { %3548 = vsyncpa [#allocation6], 1 }

</bundles_post_ra>
